<compile_context>
chip_gen: v7x
topology: tpu7x:2x2x1
jax: 0.10.0
libtpu: 0.0.40
codegen_flags: <defaults>
</compile_context>

<pallas_src>
import functools

import jax
import jax.numpy as jnp
from jax.experimental import pallas as pl
from jax.experimental.pallas import tpu as pltpu

CHANNEL_SIZES = [1, 16, 32, 64, 128, 256, 128, 64, 32, 1]


def _deconvnet_fused_kernel(*refs, batch, length, channels):
    """All 9 Conv1d(k=3, pad=1) layers fused; activations stay resident in VMEM.

    refs layout:
      refs[0]                 : x        (B, L, 1) f32
      refs[1 .. n]            : weights, layer i as (3, C_in_i, C_out_i)
                                (last layer packed as (3, 1, C_in) for the VPU matvec path)
      refs[1+n .. 2n]         : biases   (1, C_out_i)
      refs[1+2n]              : output   (B, L, 1)
      refs[2+2n], refs[3+2n]  : ping-pong activation scratch (B, L+2, C_MAX) f32
    """
    n_layers = len(channels) - 1
    x_ref = refs[0]
    w_refs = refs[1:1 + n_layers]
    b_refs = refs[1 + n_layers:1 + 2 * n_layers]
    o_ref = refs[1 + 2 * n_layers]
    act_a = refs[2 + 2 * n_layers]
    act_b = refs[3 + 2 * n_layers]

    B, L = batch, length
    M = B * L
    c_max = act_a.shape[2]

    # padding=1 halo: zero the two halo rows of both buffers ONCE.  Every layer only writes
    # interior rows [1:L+1], so the halos stay zero for all 9 layers (and per batch element,
    # so no cross-batch leakage when batch is folded into M).
    zrow = jnp.zeros((B, 1, c_max), jnp.float32)
    act_a[:, 0:1, :] = zrow
    act_a[:, L + 1:L + 2, :] = zrow
    act_b[:, 0:1, :] = zrow
    act_b[:, L + 1:L + 2, :] = zrow

    # Stage the C_in = 1 input into the interior rows of buffer A.
    act_a[:, 1:L + 1, 0:1] = x_ref[...]

    bufs = (act_a, act_b)
    for i in range(n_layers):
        c_in, c_out = channels[i], channels[i + 1]
        src = bufs[i % 2]
        dst = bufs[(i + 1) % 2]
        w_ref = w_refs[i]
        b_ref = b_refs[i]
        is_last = i == n_layers - 1

        if is_last:
            # C_out == 1 matvec: VPU multiply + cross-lane sum (no N=1 MXU shapes).
            # w_ref is packed (3, 1, C_in).
            acc = jnp.zeros((M, 1), jnp.float32)
            for k in range(3):
                xs = src[:, k:k + L, 0:c_in].reshape(M, c_in)
                acc = acc + jnp.sum(xs * w_ref[k], axis=-1, keepdims=True)
            acc = acc + b_ref[...]
            # TODO(synk): output kept (B, L, 1) (masked single-lane store) instead of a
            # lane-dense (B, L) layout -- at B*L=256 floats the store cost is negligible.
            o_ref[...] = acc.reshape(B, L, 1).astype(o_ref.dtype)
        else:
            acc = jnp.zeros((M, c_out), jnp.float32)
            for k in range(3):
                # Batch folded into M: (B, L, C_in) -> (B*L, C_in) is a layout-free reshape
                # (L % 8 == 0), so the MXU sees M = B*L rows per pass.
                xs = src[:, k:k + L, 0:c_in].reshape(M, c_in)
                if c_in == 1:
                    # C_in == 1 outer product: VPU broadcast multiply, skip the MXU.
                    acc = acc + xs * w_ref[k]
                else:
                    acc = acc + jnp.dot(xs, w_ref[k],
                                        preferred_element_type=jnp.float32)
            acc = jnp.maximum(acc + b_ref[...], 0.0)  # ReLU after every conv except the last
            # TODO(synk): nn.Dropout after layers 4 and 7 is identity in eval/inference mode;
            # training-mode stochastic dropout is not reproduced here.
            dst[:, 1:L + 1, 0:c_out] = acc.reshape(B, L, c_out)


def init_params(key):
    """Deterministic init mirroring PyTorch Conv1d param shapes.

    PyTorch weight is (out_c, in_c, 3); we store it as (3, in_c, out_c). Bias is (out_c,).
    """
    params = []
    for i in range(len(CHANNEL_SIZES) - 1):
        in_c, out_c = CHANNEL_SIZES[i], CHANNEL_SIZES[i + 1]
        key, kw, kb = jax.random.split(key, 3)
        bound = 1.0 / jnp.sqrt(in_c * 3.0)
        w_torch = jax.random.uniform(kw, (out_c, in_c, 3), jnp.float32, -bound, bound)
        b = jax.random.uniform(kb, (out_c,), jnp.float32, -bound, bound)
        w_kio = jnp.transpose(w_torch, (2, 1, 0))  # (3, in_c, out_c)
        params.append((w_kio, b))
    return params


def deconvnet_forward(x_ncl, params):
    """x_ncl: (B, 1, L) like PyTorch NCL. Returns (B, 1, L)."""
    B, C, L = x_ncl.shape
    assert C == 1
    assert L % 8 == 0, "L must be a multiple of 8 for the layout-free batch fold"
    n_layers = len(params)
    channels = tuple(CHANNEL_SIZES)
    c_max = max(channels)

    # (B, 1, L) -> (B, L, 1) is a pure reshape (identical linear order), no transpose.
    x = x_ncl.reshape(B, L, 1).astype(jnp.float32)

    weights, biases = [], []
    for i, (w, b) in enumerate(params):
        if i == n_layers - 1:
            # (3, C_in, 1) -> (3, 1, C_in) so the kernel's VPU matvec can broadcast it directly.
            w = jnp.transpose(w, (0, 2, 1))
        weights.append(w)
        biases.append(b.reshape(1, -1))

    kern = functools.partial(_deconvnet_fused_kernel,
                             batch=B, length=L, channels=channels)

    in_specs = [pl.BlockSpec((B, L, 1), lambda i: (0, 0, 0))]
    in_specs += [pl.BlockSpec(w.shape, lambda i: (0, 0, 0)) for w in weights]
    in_specs += [pl.BlockSpec(b.shape, lambda i: (0, 0)) for b in biases]

    out = pl.pallas_call(
        kern,
        out_shape=jax.ShapeDtypeStruct((B, L, 1), jnp.float32),
        grid=(1,),  # single invocation: everything (weights + activations) resident in VMEM
        in_specs=in_specs,
        out_specs=pl.BlockSpec((B, L, 1), lambda i: (0, 0, 0)),
        scratch_shapes=[pltpu.VMEM((B, L + 2, c_max), jnp.float32),
                        pltpu.VMEM((B, L + 2, c_max), jnp.float32)],
        compiler_params=pltpu.CompilerParams(
            dimension_semantics=("arbitrary",)),
    )(x, *weights, *biases)

    # (B, L, 1) -> (B, 1, L): pure reshape.
    return out.reshape(B, 1, L)


def _reference_forward(x_ncl, params):
    """Pure-JAX reference (cross-correlation with padding=1, ReLU on all but last layer)."""
    x = jnp.transpose(x_ncl, (0, 2, 1)).astype(jnp.float32)  # (B, L, C)
    n = len(params)
    for i, (w, b) in enumerate(params):
        xp = jnp.pad(x, ((0, 0), (1, 1), (0, 0)))
        y = (jnp.einsum("blc,co->blo", xp[:, 0:-2], w[0])
             + jnp.einsum("blc,co->blo", xp[:, 1:-1], w[1])
             + jnp.einsum("blc,co->blo", xp[:, 2:], w[2])
             + b)
        if i < n - 1:
            y = jnp.maximum(y, 0.0)
        x = y
    return jnp.transpose(x, (0, 2, 1))


if __name__ == "__main__":
    key = jax.random.PRNGKey(0)
    kp, kx = jax.random.split(key)
    params = init_params(kp)

    B, L = 2, 128
    x = jax.random.normal(kx, (B, 1, L), dtype=jnp.float32)

    out = jax.block_until_ready(deconvnet_forward(x, params))
    assert out.shape == (B, 1, L), out.shape

    ref = jax.block_until_ready(_reference_forward(x, params))
    max_err = float(jnp.max(jnp.abs(out - ref)))
    assert jnp.allclose(out, ref, rtol=2e-2, atol=2e-2), max_err

    print("KERNEL_OK")
</pallas_src>

<mosaic_0001>
module attributes {stable_mosaic.version = 11 : i64} {
  func.func @_deconvnet_fused_kernel(%arg0: i32, %arg1: memref<2x128x1xf32, #tpu.memory_space<vmem>>, %arg2: memref<3x1x16xf32, #tpu.memory_space<vmem>>, %arg3: memref<3x16x32xf32, #tpu.memory_space<vmem>>, %arg4: memref<3x32x64xf32, #tpu.memory_space<vmem>>, %arg5: memref<3x64x128xf32, #tpu.memory_space<vmem>>, %arg6: memref<3x128x256xf32, #tpu.memory_space<vmem>>, %arg7: memref<3x256x128xf32, #tpu.memory_space<vmem>>, %arg8: memref<3x128x64xf32, #tpu.memory_space<vmem>>, %arg9: memref<3x64x32xf32, #tpu.memory_space<vmem>>, %arg10: memref<3x1x32xf32, #tpu.memory_space<vmem>>, %arg11: memref<1x16xf32, #tpu.memory_space<vmem>>, %arg12: memref<1x32xf32, #tpu.memory_space<vmem>>, %arg13: memref<1x64xf32, #tpu.memory_space<vmem>>, %arg14: memref<1x128xf32, #tpu.memory_space<vmem>>, %arg15: memref<1x256xf32, #tpu.memory_space<vmem>>, %arg16: memref<1x128xf32, #tpu.memory_space<vmem>>, %arg17: memref<1x64xf32, #tpu.memory_space<vmem>>, %arg18: memref<1x32xf32, #tpu.memory_space<vmem>>, %arg19: memref<1x1xf32, #tpu.memory_space<vmem>>, %arg20: memref<2x128x1xf32, #tpu.memory_space<vmem>>, %arg21: memref<2x130x256xf32, #tpu.memory_space<vmem>>, %arg22: memref<2x130x256xf32, #tpu.memory_space<vmem>>) attributes {dimension_semantics = [#tpu.dimension_semantics<arbitrary>], iteration_bounds = array<i64: 1>, scalar_prefetch = 0 : i64, scratch_operands = 2 : i64, tpu.core_type = #tpu.core_type<tc>, window_params = [{pipeline_mode = #tpu.pipeline_mode<synchronous>, transform_indices = @transform_0, window_bounds = array<i64: 2, 128, 1>}, {pipeline_mode = #tpu.pipeline_mode<synchronous>, transform_indices = @transform_1, window_bounds = array<i64: 3, 1, 16>}, {pipeline_mode = #tpu.pipeline_mode<synchronous>, transform_indices = @transform_2, window_bounds = array<i64: 3, 16, 32>}, {pipeline_mode = #tpu.pipeline_mode<synchronous>, transform_indices = @transform_3, window_bounds = array<i64: 3, 32, 64>}, {pipeline_mode = #tpu.pipeline_mode<synchronous>, transform_indices = @transform_4, window_bounds = array<i64: 3, 64, 128>}, {pipeline_mode = #tpu.pipeline_mode<synchronous>, transform_indices = @transform_5, window_bounds = array<i64: 3, 128, 256>}, {pipeline_mode = #tpu.pipeline_mode<synchronous>, transform_indices = @transform_6, window_bounds = array<i64: 3, 256, 128>}, {pipeline_mode = #tpu.pipeline_mode<synchronous>, transform_indices = @transform_7, window_bounds = array<i64: 3, 128, 64>}, {pipeline_mode = #tpu.pipeline_mode<synchronous>, transform_indices = @transform_8, window_bounds = array<i64: 3, 64, 32>}, {pipeline_mode = #tpu.pipeline_mode<synchronous>, transform_indices = @transform_9, window_bounds = array<i64: 3, 1, 32>}, {pipeline_mode = #tpu.pipeline_mode<synchronous>, transform_indices = @transform_10, window_bounds = array<i64: 1, 16>}, {pipeline_mode = #tpu.pipeline_mode<synchronous>, transform_indices = @transform_11, window_bounds = array<i64: 1, 32>}, {pipeline_mode = #tpu.pipeline_mode<synchronous>, transform_indices = @transform_12, window_bounds = array<i64: 1, 64>}, {pipeline_mode = #tpu.pipeline_mode<synchronous>, transform_indices = @transform_13, window_bounds = array<i64: 1, 128>}, {pipeline_mode = #tpu.pipeline_mode<synchronous>, transform_indices = @transform_14, window_bounds = array<i64: 1, 256>}, {pipeline_mode = #tpu.pipeline_mode<synchronous>, transform_indices = @transform_15, window_bounds = array<i64: 1, 128>}, {pipeline_mode = #tpu.pipeline_mode<synchronous>, transform_indices = @transform_16, window_bounds = array<i64: 1, 64>}, {pipeline_mode = #tpu.pipeline_mode<synchronous>, transform_indices = @transform_17, window_bounds = array<i64: 1, 32>}, {pipeline_mode = #tpu.pipeline_mode<synchronous>, transform_indices = @transform_18, window_bounds = array<i64: 1, 1>}, {pipeline_mode = #tpu.pipeline_mode<synchronous>, transform_indices = @transform_19, window_bounds = array<i64: 2, 128, 1>}]} {
    %cst = arith.constant 0.000000e+00 : f32
    %0 = vector.broadcast %cst : f32 to vector<2x1x256xf32>
    %c0 = arith.constant 0 : index
    %c0_0 = arith.constant 0 : index
    %c0_1 = arith.constant 0 : index
    %1 = vector.load %arg21[%c0, %c0_0, %c0_1] : memref<2x130x256xf32, #tpu.memory_space<vmem>>, vector<2x1x256xf32>
    tpu.vector_store %arg21[%c0, %c0_0, %c0_1], %0 {strides = array<i32>} : memref<2x130x256xf32, #tpu.memory_space<vmem>>, vector<2x1x256xf32>,
    %c0_2 = arith.constant 0 : index
    %c129 = arith.constant 129 : index
    %c0_3 = arith.constant 0 : index
    %2 = vector.load %arg21[%c0_2, %c129, %c0_3] : memref<2x130x256xf32, #tpu.memory_space<vmem>>, vector<2x1x256xf32>
    tpu.vector_store %arg21[%c0_2, %c129, %c0_3], %0 {strides = array<i32>} : memref<2x130x256xf32, #tpu.memory_space<vmem>>, vector<2x1x256xf32>,
    %c0_4 = arith.constant 0 : index
    %c0_5 = arith.constant 0 : index
    %c0_6 = arith.constant 0 : index
    %3 = vector.load %arg22[%c0_4, %c0_5, %c0_6] : memref<2x130x256xf32, #tpu.memory_space<vmem>>, vector<2x1x256xf32>
    tpu.vector_store %arg22[%c0_4, %c0_5, %c0_6], %0 {strides = array<i32>} : memref<2x130x256xf32, #tpu.memory_space<vmem>>, vector<2x1x256xf32>,
    %c0_7 = arith.constant 0 : index
    %c129_8 = arith.constant 129 : index
    %c0_9 = arith.constant 0 : index
    %4 = vector.load %arg22[%c0_7, %c129_8, %c0_9] : memref<2x130x256xf32, #tpu.memory_space<vmem>>, vector<2x1x256xf32>
    tpu.vector_store %arg22[%c0_7, %c129_8, %c0_9], %0 {strides = array<i32>} : memref<2x130x256xf32, #tpu.memory_space<vmem>>, vector<2x1x256xf32>,
    %c0_10 = arith.constant 0 : index
    %c0_11 = arith.constant 0 : index
    %c0_12 = arith.constant 0 : index
    %5 = vector.load %arg1[%c0_10, %c0_11, %c0_12] : memref<2x128x1xf32, #tpu.memory_space<vmem>>, vector<2x128x1xf32>
    %c0_13 = arith.constant 0 : index
    %c1 = arith.constant 1 : index
    %c0_14 = arith.constant 0 : index
    %6 = vector.load %arg21[%c0_13, %c1, %c0_14] : memref<2x130x256xf32, #tpu.memory_space<vmem>>, vector<2x128x1xf32>
    tpu.vector_store %arg21[%c0_13, %c1, %c0_14], %5 {strides = array<i32>} : memref<2x130x256xf32, #tpu.memory_space<vmem>>, vector<2x128x1xf32>,
    %cst_15 = arith.constant 0.000000e+00 : f32
    %7 = vector.broadcast %cst_15 : f32 to vector<256x16xf32>
    %c0_16 = arith.constant 0 : index
    %c0_17 = arith.constant 0 : index
    %c0_18 = arith.constant 0 : index
    %8 = vector.load %arg21[%c0_16, %c0_17, %c0_18] : memref<2x130x256xf32, #tpu.memory_space<vmem>>, vector<2x128x1xf32>
    %9 = vector.shape_cast %8 : vector<2x128x1xf32> to vector<256x1xf32>
    %c0_19 = arith.constant 0 : index
    %c0_20 = arith.constant 0 : index
    %c0_21 = arith.constant 0 : index
    %10 = vector.load %arg2[%c0_19, %c0_20, %c0_21] : memref<3x1x16xf32, #tpu.memory_space<vmem>>, vector<1x1x16xf32>
    %11 = vector.shape_cast %10 : vector<1x1x16xf32> to vector<1x16xf32>
    %12 = vector.broadcast %9 : vector<256x1xf32> to vector<256x16xf32>
    %13 = vector.broadcast %11 : vector<1x16xf32> to vector<256x16xf32>
    %14 = arith.mulf %12, %13 : vector<256x16xf32>
    %15 = arith.addf %7, %14 : vector<256x16xf32>
    %c0_22 = arith.constant 0 : index
    %c1_23 = arith.constant 1 : index
    %c0_24 = arith.constant 0 : index
    %16 = vector.load %arg21[%c0_22, %c1_23, %c0_24] : memref<2x130x256xf32, #tpu.memory_space<vmem>>, vector<2x128x1xf32>
    %17 = vector.shape_cast %16 : vector<2x128x1xf32> to vector<256x1xf32>
    %c1_25 = arith.constant 1 : index
    %c0_26 = arith.constant 0 : index
    %c0_27 = arith.constant 0 : index
    %18 = vector.load %arg2[%c1_25, %c0_26, %c0_27] : memref<3x1x16xf32, #tpu.memory_space<vmem>>, vector<1x1x16xf32>
    %19 = vector.shape_cast %18 : vector<1x1x16xf32> to vector<1x16xf32>
    %20 = vector.broadcast %17 : vector<256x1xf32> to vector<256x16xf32>
    %21 = vector.broadcast %19 : vector<1x16xf32> to vector<256x16xf32>
    %22 = arith.mulf %20, %21 : vector<256x16xf32>
    %23 = arith.addf %15, %22 : vector<256x16xf32>
    %c0_28 = arith.constant 0 : index
    %c2 = arith.constant 2 : index
    %c0_29 = arith.constant 0 : index
    %24 = vector.load %arg21[%c0_28, %c2, %c0_29] : memref<2x130x256xf32, #tpu.memory_space<vmem>>, vector<2x128x1xf32>
    %25 = vector.shape_cast %24 : vector<2x128x1xf32> to vector<256x1xf32>
    %c2_30 = arith.constant 2 : index
    %c0_31 = arith.constant 0 : index
    %c0_32 = arith.constant 0 : index
    %26 = vector.load %arg2[%c2_30, %c0_31, %c0_32] : memref<3x1x16xf32, #tpu.memory_space<vmem>>, vector<1x1x16xf32>
    %27 = vector.shape_cast %26 : vector<1x1x16xf32> to vector<1x16xf32>
    %28 = vector.broadcast %25 : vector<256x1xf32> to vector<256x16xf32>
    %29 = vector.broadcast %27 : vector<1x16xf32> to vector<256x16xf32>
    %30 = arith.mulf %28, %29 : vector<256x16xf32>
    %31 = arith.addf %23, %30 : vector<256x16xf32>
    %c0_33 = arith.constant 0 : index
    %c0_34 = arith.constant 0 : index
    %32 = vector.load %arg11[%c0_33, %c0_34] : memref<1x16xf32, #tpu.memory_space<vmem>>, vector<1x16xf32>
    %33 = vector.broadcast %32 : vector<1x16xf32> to vector<256x16xf32>
    %34 = arith.addf %31, %33 : vector<256x16xf32>
    %cst_35 = arith.constant 0.000000e+00 : f32
    %35 = vector.broadcast %cst_35 : f32 to vector<256x16xf32>
    %36 = arith.maximumf %34, %35 : vector<256x16xf32>
    %37 = vector.shape_cast %36 : vector<256x16xf32> to vector<2x128x16xf32>
    %c0_36 = arith.constant 0 : index
    %c1_37 = arith.constant 1 : index
    %c0_38 = arith.constant 0 : index
    %38 = vector.load %arg22[%c0_36, %c1_37, %c0_38] : memref<2x130x256xf32, #tpu.memory_space<vmem>>, vector<2x128x16xf32>
    tpu.vector_store %arg22[%c0_36, %c1_37, %c0_38], %37 {strides = array<i32>} : memref<2x130x256xf32, #tpu.memory_space<vmem>>, vector<2x128x16xf32>,
    %cst_39 = arith.constant 0.000000e+00 : f32
    %39 = vector.broadcast %cst_39 : f32 to vector<256x32xf32>
    %c0_40 = arith.constant 0 : index
    %c0_41 = arith.constant 0 : index
    %c0_42 = arith.constant 0 : index
    %40 = vector.load %arg22[%c0_40, %c0_41, %c0_42] : memref<2x130x256xf32, #tpu.memory_space<vmem>>, vector<2x128x16xf32>
    %41 = vector.shape_cast %40 : vector<2x128x16xf32> to vector<256x16xf32>
    %c0_43 = arith.constant 0 : index
    %c0_44 = arith.constant 0 : index
    %c0_45 = arith.constant 0 : index
    %42 = vector.load %arg3[%c0_43, %c0_44, %c0_45] : memref<3x16x32xf32, #tpu.memory_space<vmem>>, vector<1x16x32xf32>
    %43 = vector.shape_cast %42 : vector<1x16x32xf32> to vector<16x32xf32>
    %cst_46 = arith.constant dense<0.000000e+00> : vector<256x32xf32>
    %44 = tpu.matmul %41, %43, %cst_46 {dimension_numbers = #tpu.dot_dimension_numbers<[1], [0], [0], [1], [0, 0, 1, 1], [], []>} : vector<256x16xf32>, vector<16x32xf32>, vector<256x32xf32> -> vector<256x32xf32>
    %45 = arith.addf %39, %44 : vector<256x32xf32>
    %c0_47 = arith.constant 0 : index
    %c1_48 = arith.constant 1 : index
    %c0_49 = arith.constant 0 : index
    %46 = vector.load %arg22[%c0_47, %c1_48, %c0_49] : memref<2x130x256xf32, #tpu.memory_space<vmem>>, vector<2x128x16xf32>
    %47 = vector.shape_cast %46 : vector<2x128x16xf32> to vector<256x16xf32>
    %c1_50 = arith.constant 1 : index
    %c0_51 = arith.constant 0 : index
    %c0_52 = arith.constant 0 : index
    %48 = vector.load %arg3[%c1_50, %c0_51, %c0_52] : memref<3x16x32xf32, #tpu.memory_space<vmem>>, vector<1x16x32xf32>
    %49 = vector.shape_cast %48 : vector<1x16x32xf32> to vector<16x32xf32>
    %cst_53 = arith.constant dense<0.000000e+00> : vector<256x32xf32>
    %50 = tpu.matmul %47, %49, %cst_53 {dimension_numbers = #tpu.dot_dimension_numbers<[1], [0], [0], [1], [0, 0, 1, 1], [], []>} : vector<256x16xf32>, vector<16x32xf32>, vector<256x32xf32> -> vector<256x32xf32>
    %51 = arith.addf %45, %50 : vector<256x32xf32>
    %c0_54 = arith.constant 0 : index
    %c2_55 = arith.constant 2 : index
    %c0_56 = arith.constant 0 : index
    %52 = vector.load %arg22[%c0_54, %c2_55, %c0_56] : memref<2x130x256xf32, #tpu.memory_space<vmem>>, vector<2x128x16xf32>
    %53 = vector.shape_cast %52 : vector<2x128x16xf32> to vector<256x16xf32>
    %c2_57 = arith.constant 2 : index
    %c0_58 = arith.constant 0 : index
    %c0_59 = arith.constant 0 : index
    %54 = vector.load %arg3[%c2_57, %c0_58, %c0_59] : memref<3x16x32xf32, #tpu.memory_space<vmem>>, vector<1x16x32xf32>
    %55 = vector.shape_cast %54 : vector<1x16x32xf32> to vector<16x32xf32>
    %cst_60 = arith.constant dense<0.000000e+00> : vector<256x32xf32>
    %56 = tpu.matmul %53, %55, %cst_60 {dimension_numbers = #tpu.dot_dimension_numbers<[1], [0], [0], [1], [0, 0, 1, 1], [], []>} : vector<256x16xf32>, vector<16x32xf32>, vector<256x32xf32> -> vector<256x32xf32>
    %57 = arith.addf %51, %56 : vector<256x32xf32>
    %c0_61 = arith.constant 0 : index
    %c0_62 = arith.constant 0 : index
    %58 = vector.load %arg12[%c0_61, %c0_62] : memref<1x32xf32, #tpu.memory_space<vmem>>, vector<1x32xf32>
    %59 = vector.broadcast %58 : vector<1x32xf32> to vector<256x32xf32>
    %60 = arith.addf %57, %59 : vector<256x32xf32>
    %cst_63 = arith.constant 0.000000e+00 : f32
    %61 = vector.broadcast %cst_63 : f32 to vector<256x32xf32>
    %62 = arith.maximumf %60, %61 : vector<256x32xf32>
    %63 = vector.shape_cast %62 : vector<256x32xf32> to vector<2x128x32xf32>
    %c0_64 = arith.constant 0 : index
    %c1_65 = arith.constant 1 : index
    %c0_66 = arith.constant 0 : index
    %64 = vector.load %arg21[%c0_64, %c1_65, %c0_66] : memref<2x130x256xf32, #tpu.memory_space<vmem>>, vector<2x128x32xf32>
    tpu.vector_store %arg21[%c0_64, %c1_65, %c0_66], %63 {strides = array<i32>} : memref<2x130x256xf32, #tpu.memory_space<vmem>>, vector<2x128x32xf32>,
    %cst_67 = arith.constant 0.000000e+00 : f32
    %65 = vector.broadcast %cst_67 : f32 to vector<256x64xf32>
    %c0_68 = arith.constant 0 : index
    %c0_69 = arith.constant 0 : index
    %c0_70 = arith.constant 0 : index
    %66 = vector.load %arg21[%c0_68, %c0_69, %c0_70] : memref<2x130x256xf32, #tpu.memory_space<vmem>>, vector<2x128x32xf32>
    %67 = vector.shape_cast %66 : vector<2x128x32xf32> to vector<256x32xf32>
    %c0_71 = arith.constant 0 : index
    %c0_72 = arith.constant 0 : index
    %c0_73 = arith.constant 0 : index
    %68 = vector.load %arg4[%c0_71, %c0_72, %c0_73] : memref<3x32x64xf32, #tpu.memory_space<vmem>>, vector<1x32x64xf32>
    %69 = vector.shape_cast %68 : vector<1x32x64xf32> to vector<32x64xf32>
    %cst_74 = arith.constant dense<0.000000e+00> : vector<256x64xf32>
    %70 = tpu.matmul %67, %69, %cst_74 {dimension_numbers = #tpu.dot_dimension_numbers<[1], [0], [0], [1], [0, 0, 1, 1], [], []>} : vector<256x32xf32>, vector<32x64xf32>, vector<256x64xf32> -> vector<256x64xf32>
    %71 = arith.addf %65, %70 : vector<256x64xf32>
    %c0_75 = arith.constant 0 : index
    %c1_76 = arith.constant 1 : index
    %c0_77 = arith.constant 0 : index
    %72 = vector.load %arg21[%c0_75, %c1_76, %c0_77] : memref<2x130x256xf32, #tpu.memory_space<vmem>>, vector<2x128x32xf32>
    %73 = vector.shape_cast %72 : vector<2x128x32xf32> to vector<256x32xf32>
    %c1_78 = arith.constant 1 : index
    %c0_79 = arith.constant 0 : index
    %c0_80 = arith.constant 0 : index
    %74 = vector.load %arg4[%c1_78, %c0_79, %c0_80] : memref<3x32x64xf32, #tpu.memory_space<vmem>>, vector<1x32x64xf32>
    %75 = vector.shape_cast %74 : vector<1x32x64xf32> to vector<32x64xf32>
    %cst_81 = arith.constant dense<0.000000e+00> : vector<256x64xf32>
    %76 = tpu.matmul %73, %75, %cst_81 {dimension_numbers = #tpu.dot_dimension_numbers<[1], [0], [0], [1], [0, 0, 1, 1], [], []>} : vector<256x32xf32>, vector<32x64xf32>, vector<256x64xf32> -> vector<256x64xf32>
    %77 = arith.addf %71, %76 : vector<256x64xf32>
    %c0_82 = arith.constant 0 : index
    %c2_83 = arith.constant 2 : index
    %c0_84 = arith.constant 0 : index
    %78 = vector.load %arg21[%c0_82, %c2_83, %c0_84] : memref<2x130x256xf32, #tpu.memory_space<vmem>>, vector<2x128x32xf32>
    %79 = vector.shape_cast %78 : vector<2x128x32xf32> to vector<256x32xf32>
    %c2_85 = arith.constant 2 : index
    %c0_86 = arith.constant 0 : index
    %c0_87 = arith.constant 0 : index
    %80 = vector.load %arg4[%c2_85, %c0_86, %c0_87] : memref<3x32x64xf32, #tpu.memory_space<vmem>>, vector<1x32x64xf32>
    %81 = vector.shape_cast %80 : vector<1x32x64xf32> to vector<32x64xf32>
    %cst_88 = arith.constant dense<0.000000e+00> : vector<256x64xf32>
    %82 = tpu.matmul %79, %81, %cst_88 {dimension_numbers = #tpu.dot_dimension_numbers<[1], [0], [0], [1], [0, 0, 1, 1], [], []>} : vector<256x32xf32>, vector<32x64xf32>, vector<256x64xf32> -> vector<256x64xf32>
    %83 = arith.addf %77, %82 : vector<256x64xf32>
    %c0_89 = arith.constant 0 : index
    %c0_90 = arith.constant 0 : index
    %84 = vector.load %arg13[%c0_89, %c0_90] : memref<1x64xf32, #tpu.memory_space<vmem>>, vector<1x64xf32>
    %85 = vector.broadcast %84 : vector<1x64xf32> to vector<256x64xf32>
    %86 = arith.addf %83, %85 : vector<256x64xf32>
    %cst_91 = arith.constant 0.000000e+00 : f32
    %87 = vector.broadcast %cst_91 : f32 to vector<256x64xf32>
    %88 = arith.maximumf %86, %87 : vector<256x64xf32>
    %89 = vector.shape_cast %88 : vector<256x64xf32> to vector<2x128x64xf32>
    %c0_92 = arith.constant 0 : index
    %c1_93 = arith.constant 1 : index
    %c0_94 = arith.constant 0 : index
    %90 = vector.load %arg22[%c0_92, %c1_93, %c0_94] : memref<2x130x256xf32, #tpu.memory_space<vmem>>, vector<2x128x64xf32>
    tpu.vector_store %arg22[%c0_92, %c1_93, %c0_94], %89 {strides = array<i32>} : memref<2x130x256xf32, #tpu.memory_space<vmem>>, vector<2x128x64xf32>,
    %cst_95 = arith.constant 0.000000e+00 : f32
    %91 = vector.broadcast %cst_95 : f32 to vector<256x128xf32>
    %c0_96 = arith.constant 0 : index
    %c0_97 = arith.constant 0 : index
    %c0_98 = arith.constant 0 : index
    %92 = vector.load %arg22[%c0_96, %c0_97, %c0_98] : memref<2x130x256xf32, #tpu.memory_space<vmem>>, vector<2x128x64xf32>
    %93 = vector.shape_cast %92 : vector<2x128x64xf32> to vector<256x64xf32>
    %c0_99 = arith.constant 0 : index
    %c0_100 = arith.constant 0 : index
    %c0_101 = arith.constant 0 : index
    %94 = vector.load %arg5[%c0_99, %c0_100, %c0_101] : memref<3x64x128xf32, #tpu.memory_space<vmem>>, vector<1x64x128xf32>
    %95 = vector.shape_cast %94 : vector<1x64x128xf32> to vector<64x128xf32>
    %cst_102 = arith.constant dense<0.000000e+00> : vector<256x128xf32>
    %96 = tpu.matmul %93, %95, %cst_102 {dimension_numbers = #tpu.dot_dimension_numbers<[1], [0], [0], [1], [0, 0, 1, 1], [], []>} : vector<256x64xf32>, vector<64x128xf32>, vector<256x128xf32> -> vector<256x128xf32>
    %97 = arith.addf %91, %96 : vector<256x128xf32>
    %c0_103 = arith.constant 0 : index
    %c1_104 = arith.constant 1 : index
    %c0_105 = arith.constant 0 : index
    %98 = vector.load %arg22[%c0_103, %c1_104, %c0_105] : memref<2x130x256xf32, #tpu.memory_space<vmem>>, vector<2x128x64xf32>
    %99 = vector.shape_cast %98 : vector<2x128x64xf32> to vector<256x64xf32>
    %c1_106 = arith.constant 1 : index
    %c0_107 = arith.constant 0 : index
    %c0_108 = arith.constant 0 : index
    %100 = vector.load %arg5[%c1_106, %c0_107, %c0_108] : memref<3x64x128xf32, #tpu.memory_space<vmem>>, vector<1x64x128xf32>
    %101 = vector.shape_cast %100 : vector<1x64x128xf32> to vector<64x128xf32>
    %cst_109 = arith.constant dense<0.000000e+00> : vector<256x128xf32>
    %102 = tpu.matmul %99, %101, %cst_109 {dimension_numbers = #tpu.dot_dimension_numbers<[1], [0], [0], [1], [0, 0, 1, 1], [], []>} : vector<256x64xf32>, vector<64x128xf32>, vector<256x128xf32> -> vector<256x128xf32>
    %103 = arith.addf %97, %102 : vector<256x128xf32>
    %c0_110 = arith.constant 0 : index
    %c2_111 = arith.constant 2 : index
    %c0_112 = arith.constant 0 : index
    %104 = vector.load %arg22[%c0_110, %c2_111, %c0_112] : memref<2x130x256xf32, #tpu.memory_space<vmem>>, vector<2x128x64xf32>
    %105 = vector.shape_cast %104 : vector<2x128x64xf32> to vector<256x64xf32>
    %c2_113 = arith.constant 2 : index
    %c0_114 = arith.constant 0 : index
    %c0_115 = arith.constant 0 : index
    %106 = vector.load %arg5[%c2_113, %c0_114, %c0_115] : memref<3x64x128xf32, #tpu.memory_space<vmem>>, vector<1x64x128xf32>
    %107 = vector.shape_cast %106 : vector<1x64x128xf32> to vector<64x128xf32>
    %cst_116 = arith.constant dense<0.000000e+00> : vector<256x128xf32>
    %108 = tpu.matmul %105, %107, %cst_116 {dimension_numbers = #tpu.dot_dimension_numbers<[1], [0], [0], [1], [0, 0, 1, 1], [], []>} : vector<256x64xf32>, vector<64x128xf32>, vector<256x128xf32> -> vector<256x128xf32>
    %109 = arith.addf %103, %108 : vector<256x128xf32>
    %c0_117 = arith.constant 0 : index
    %c0_118 = arith.constant 0 : index
    %110 = vector.load %arg14[%c0_117, %c0_118] : memref<1x128xf32, #tpu.memory_space<vmem>>, vector<1x128xf32>
    %111 = vector.broadcast %110 : vector<1x128xf32> to vector<256x128xf32>
    %112 = arith.addf %109, %111 : vector<256x128xf32>
    %cst_119 = arith.constant 0.000000e+00 : f32
    %113 = vector.broadcast %cst_119 : f32 to vector<256x128xf32>
    %114 = arith.maximumf %112, %113 : vector<256x128xf32>
    %115 = vector.shape_cast %114 : vector<256x128xf32> to vector<2x128x128xf32>
    %c0_120 = arith.constant 0 : index
    %c1_121 = arith.constant 1 : index
    %c0_122 = arith.constant 0 : index
    %116 = vector.load %arg21[%c0_120, %c1_121, %c0_122] : memref<2x130x256xf32, #tpu.memory_space<vmem>>, vector<2x128x128xf32>
    tpu.vector_store %arg21[%c0_120, %c1_121, %c0_122], %115 {strides = array<i32>} : memref<2x130x256xf32, #tpu.memory_space<vmem>>, vector<2x128x128xf32>,
    %cst_123 = arith.constant 0.000000e+00 : f32
    %117 = vector.broadcast %cst_123 : f32 to vector<256x256xf32>
    %c0_124 = arith.constant 0 : index
    %c0_125 = arith.constant 0 : index
    %c0_126 = arith.constant 0 : index
    %118 = vector.load %arg21[%c0_124, %c0_125, %c0_126] : memref<2x130x256xf32, #tpu.memory_space<vmem>>, vector<2x128x128xf32>
    %119 = vector.shape_cast %118 : vector<2x128x128xf32> to vector<256x128xf32>
    %c0_127 = arith.constant 0 : index
    %c0_128 = arith.constant 0 : index
    %c0_129 = arith.constant 0 : index
    %120 = vector.load %arg6[%c0_127, %c0_128, %c0_129] : memref<3x128x256xf32, #tpu.memory_space<vmem>>, vector<1x128x256xf32>
    %121 = vector.shape_cast %120 : vector<1x128x256xf32> to vector<128x256xf32>
    %cst_130 = arith.constant dense<0.000000e+00> : vector<256x256xf32>
    %122 = tpu.matmul %119, %121, %cst_130 {dimension_numbers = #tpu.dot_dimension_numbers<[1], [0], [0], [1], [0, 0, 1, 1], [], []>} : vector<256x128xf32>, vector<128x256xf32>, vector<256x256xf32> -> vector<256x256xf32>
    %123 = arith.addf %117, %122 : vector<256x256xf32>
    %c0_131 = arith.constant 0 : index
    %c1_132 = arith.constant 1 : index
    %c0_133 = arith.constant 0 : index
    %124 = vector.load %arg21[%c0_131, %c1_132, %c0_133] : memref<2x130x256xf32, #tpu.memory_space<vmem>>, vector<2x128x128xf32>
    %125 = vector.shape_cast %124 : vector<2x128x128xf32> to vector<256x128xf32>
    %c1_134 = arith.constant 1 : index
    %c0_135 = arith.constant 0 : index
    %c0_136 = arith.constant 0 : index
    %126 = vector.load %arg6[%c1_134, %c0_135, %c0_136] : memref<3x128x256xf32, #tpu.memory_space<vmem>>, vector<1x128x256xf32>
    %127 = vector.shape_cast %126 : vector<1x128x256xf32> to vector<128x256xf32>
    %cst_137 = arith.constant dense<0.000000e+00> : vector<256x256xf32>
    %128 = tpu.matmul %125, %127, %cst_137 {dimension_numbers = #tpu.dot_dimension_numbers<[1], [0], [0], [1], [0, 0, 1, 1], [], []>} : vector<256x128xf32>, vector<128x256xf32>, vector<256x256xf32> -> vector<256x256xf32>
    %129 = arith.addf %123, %128 : vector<256x256xf32>
    %c0_138 = arith.constant 0 : index
    %c2_139 = arith.constant 2 : index
    %c0_140 = arith.constant 0 : index
    %130 = vector.load %arg21[%c0_138, %c2_139, %c0_140] : memref<2x130x256xf32, #tpu.memory_space<vmem>>, vector<2x128x128xf32>
    %131 = vector.shape_cast %130 : vector<2x128x128xf32> to vector<256x128xf32>
    %c2_141 = arith.constant 2 : index
    %c0_142 = arith.constant 0 : index
    %c0_143 = arith.constant 0 : index
    %132 = vector.load %arg6[%c2_141, %c0_142, %c0_143] : memref<3x128x256xf32, #tpu.memory_space<vmem>>, vector<1x128x256xf32>
    %133 = vector.shape_cast %132 : vector<1x128x256xf32> to vector<128x256xf32>
    %cst_144 = arith.constant dense<0.000000e+00> : vector<256x256xf32>
    %134 = tpu.matmul %131, %133, %cst_144 {dimension_numbers = #tpu.dot_dimension_numbers<[1], [0], [0], [1], [0, 0, 1, 1], [], []>} : vector<256x128xf32>, vector<128x256xf32>, vector<256x256xf32> -> vector<256x256xf32>
    %135 = arith.addf %129, %134 : vector<256x256xf32>
    %c0_145 = arith.constant 0 : index
    %c0_146 = arith.constant 0 : index
    %136 = vector.load %arg15[%c0_145, %c0_146] : memref<1x256xf32, #tpu.memory_space<vmem>>, vector<1x256xf32>
    %137 = vector.broadcast %136 : vector<1x256xf32> to vector<256x256xf32>
    %138 = arith.addf %135, %137 : vector<256x256xf32>
    %cst_147 = arith.constant 0.000000e+00 : f32
    %139 = vector.broadcast %cst_147 : f32 to vector<256x256xf32>
    %140 = arith.maximumf %138, %139 : vector<256x256xf32>
    %141 = vector.shape_cast %140 : vector<256x256xf32> to vector<2x128x256xf32>
    %c0_148 = arith.constant 0 : index
    %c1_149 = arith.constant 1 : index
    %c0_150 = arith.constant 0 : index
    %142 = vector.load %arg22[%c0_148, %c1_149, %c0_150] : memref<2x130x256xf32, #tpu.memory_space<vmem>>, vector<2x128x256xf32>
    tpu.vector_store %arg22[%c0_148, %c1_149, %c0_150], %141 {strides = array<i32>} : memref<2x130x256xf32, #tpu.memory_space<vmem>>, vector<2x128x256xf32>,
    %cst_151 = arith.constant 0.000000e+00 : f32
    %143 = vector.broadcast %cst_151 : f32 to vector<256x128xf32>
    %c0_152 = arith.constant 0 : index
    %c0_153 = arith.constant 0 : index
    %c0_154 = arith.constant 0 : index
    %144 = vector.load %arg22[%c0_152, %c0_153, %c0_154] : memref<2x130x256xf32, #tpu.memory_space<vmem>>, vector<2x128x256xf32>
    %145 = vector.shape_cast %144 : vector<2x128x256xf32> to vector<256x256xf32>
    %c0_155 = arith.constant 0 : index
    %c0_156 = arith.constant 0 : index
    %c0_157 = arith.constant 0 : index
    %146 = vector.load %arg7[%c0_155, %c0_156, %c0_157] : memref<3x256x128xf32, #tpu.memory_space<vmem>>, vector<1x256x128xf32>
    %147 = vector.shape_cast %146 : vector<1x256x128xf32> to vector<256x128xf32>
    %cst_158 = arith.constant dense<0.000000e+00> : vector<256x128xf32>
    %148 = tpu.matmul %145, %147, %cst_158 {dimension_numbers = #tpu.dot_dimension_numbers<[1], [0], [0], [1], [0, 0, 1, 1], [], []>} : vector<256x256xf32>, vector<256x128xf32>, vector<256x128xf32> -> vector<256x128xf32>
    %149 = arith.addf %143, %148 : vector<256x128xf32>
    %c0_159 = arith.constant 0 : index
    %c1_160 = arith.constant 1 : index
    %c0_161 = arith.constant 0 : index
    %150 = vector.load %arg22[%c0_159, %c1_160, %c0_161] : memref<2x130x256xf32, #tpu.memory_space<vmem>>, vector<2x128x256xf32>
    %151 = vector.shape_cast %150 : vector<2x128x256xf32> to vector<256x256xf32>
    %c1_162 = arith.constant 1 : index
    %c0_163 = arith.constant 0 : index
    %c0_164 = arith.constant 0 : index
    %152 = vector.load %arg7[%c1_162, %c0_163, %c0_164] : memref<3x256x128xf32, #tpu.memory_space<vmem>>, vector<1x256x128xf32>
    %153 = vector.shape_cast %152 : vector<1x256x128xf32> to vector<256x128xf32>
    %cst_165 = arith.constant dense<0.000000e+00> : vector<256x128xf32>
    %154 = tpu.matmul %151, %153, %cst_165 {dimension_numbers = #tpu.dot_dimension_numbers<[1], [0], [0], [1], [0, 0, 1, 1], [], []>} : vector<256x256xf32>, vector<256x128xf32>, vector<256x128xf32> -> vector<256x128xf32>
    %155 = arith.addf %149, %154 : vector<256x128xf32>
    %c0_166 = arith.constant 0 : index
    %c2_167 = arith.constant 2 : index
    %c0_168 = arith.constant 0 : index
    %156 = vector.load %arg22[%c0_166, %c2_167, %c0_168] : memref<2x130x256xf32, #tpu.memory_space<vmem>>, vector<2x128x256xf32>
    %157 = vector.shape_cast %156 : vector<2x128x256xf32> to vector<256x256xf32>
    %c2_169 = arith.constant 2 : index
    %c0_170 = arith.constant 0 : index
    %c0_171 = arith.constant 0 : index
    %158 = vector.load %arg7[%c2_169, %c0_170, %c0_171] : memref<3x256x128xf32, #tpu.memory_space<vmem>>, vector<1x256x128xf32>
    %159 = vector.shape_cast %158 : vector<1x256x128xf32> to vector<256x128xf32>
    %cst_172 = arith.constant dense<0.000000e+00> : vector<256x128xf32>
    %160 = tpu.matmul %157, %159, %cst_172 {dimension_numbers = #tpu.dot_dimension_numbers<[1], [0], [0], [1], [0, 0, 1, 1], [], []>} : vector<256x256xf32>, vector<256x128xf32>, vector<256x128xf32> -> vector<256x128xf32>
    %161 = arith.addf %155, %160 : vector<256x128xf32>
    %c0_173 = arith.constant 0 : index
    %c0_174 = arith.constant 0 : index
    %162 = vector.load %arg16[%c0_173, %c0_174] : memref<1x128xf32, #tpu.memory_space<vmem>>, vector<1x128xf32>
    %163 = vector.broadcast %162 : vector<1x128xf32> to vector<256x128xf32>
    %164 = arith.addf %161, %163 : vector<256x128xf32>
    %cst_175 = arith.constant 0.000000e+00 : f32
    %165 = vector.broadcast %cst_175 : f32 to vector<256x128xf32>
    %166 = arith.maximumf %164, %165 : vector<256x128xf32>
    %167 = vector.shape_cast %166 : vector<256x128xf32> to vector<2x128x128xf32>
    %c0_176 = arith.constant 0 : index
    %c1_177 = arith.constant 1 : index
    %c0_178 = arith.constant 0 : index
    %168 = vector.load %arg21[%c0_176, %c1_177, %c0_178] : memref<2x130x256xf32, #tpu.memory_space<vmem>>, vector<2x128x128xf32>
    tpu.vector_store %arg21[%c0_176, %c1_177, %c0_178], %167 {strides = array<i32>} : memref<2x130x256xf32, #tpu.memory_space<vmem>>, vector<2x128x128xf32>,
    %cst_179 = arith.constant 0.000000e+00 : f32
    %169 = vector.broadcast %cst_179 : f32 to vector<256x64xf32>
    %c0_180 = arith.constant 0 : index
    %c0_181 = arith.constant 0 : index
    %c0_182 = arith.constant 0 : index
    %170 = vector.load %arg21[%c0_180, %c0_181, %c0_182] : memref<2x130x256xf32, #tpu.memory_space<vmem>>, vector<2x128x128xf32>
    %171 = vector.shape_cast %170 : vector<2x128x128xf32> to vector<256x128xf32>
    %c0_183 = arith.constant 0 : index
    %c0_184 = arith.constant 0 : index
    %c0_185 = arith.constant 0 : index
    %172 = vector.load %arg8[%c0_183, %c0_184, %c0_185] : memref<3x128x64xf32, #tpu.memory_space<vmem>>, vector<1x128x64xf32>
    %173 = vector.shape_cast %172 : vector<1x128x64xf32> to vector<128x64xf32>
    %cst_186 = arith.constant dense<0.000000e+00> : vector<256x64xf32>
    %174 = tpu.matmul %171, %173, %cst_186 {dimension_numbers = #tpu.dot_dimension_numbers<[1], [0], [0], [1], [0, 0, 1, 1], [], []>} : vector<256x128xf32>, vector<128x64xf32>, vector<256x64xf32> -> vector<256x64xf32>
    %175 = arith.addf %169, %174 : vector<256x64xf32>
    %c0_187 = arith.constant 0 : index
    %c1_188 = arith.constant 1 : index
    %c0_189 = arith.constant 0 : index
    %176 = vector.load %arg21[%c0_187, %c1_188, %c0_189] : memref<2x130x256xf32, #tpu.memory_space<vmem>>, vector<2x128x128xf32>
    %177 = vector.shape_cast %176 : vector<2x128x128xf32> to vector<256x128xf32>
    %c1_190 = arith.constant 1 : index
    %c0_191 = arith.constant 0 : index
    %c0_192 = arith.constant 0 : index
    %178 = vector.load %arg8[%c1_190, %c0_191, %c0_192] : memref<3x128x64xf32, #tpu.memory_space<vmem>>, vector<1x128x64xf32>
    %179 = vector.shape_cast %178 : vector<1x128x64xf32> to vector<128x64xf32>
    %cst_193 = arith.constant dense<0.000000e+00> : vector<256x64xf32>
    %180 = tpu.matmul %177, %179, %cst_193 {dimension_numbers = #tpu.dot_dimension_numbers<[1], [0], [0], [1], [0, 0, 1, 1], [], []>} : vector<256x128xf32>, vector<128x64xf32>, vector<256x64xf32> -> vector<256x64xf32>
    %181 = arith.addf %175, %180 : vector<256x64xf32>
    %c0_194 = arith.constant 0 : index
    %c2_195 = arith.constant 2 : index
    %c0_196 = arith.constant 0 : index
    %182 = vector.load %arg21[%c0_194, %c2_195, %c0_196] : memref<2x130x256xf32, #tpu.memory_space<vmem>>, vector<2x128x128xf32>
    %183 = vector.shape_cast %182 : vector<2x128x128xf32> to vector<256x128xf32>
    %c2_197 = arith.constant 2 : index
    %c0_198 = arith.constant 0 : index
    %c0_199 = arith.constant 0 : index
    %184 = vector.load %arg8[%c2_197, %c0_198, %c0_199] : memref<3x128x64xf32, #tpu.memory_space<vmem>>, vector<1x128x64xf32>
    %185 = vector.shape_cast %184 : vector<1x128x64xf32> to vector<128x64xf32>
    %cst_200 = arith.constant dense<0.000000e+00> : vector<256x64xf32>
    %186 = tpu.matmul %183, %185, %cst_200 {dimension_numbers = #tpu.dot_dimension_numbers<[1], [0], [0], [1], [0, 0, 1, 1], [], []>} : vector<256x128xf32>, vector<128x64xf32>, vector<256x64xf32> -> vector<256x64xf32>
    %187 = arith.addf %181, %186 : vector<256x64xf32>
    %c0_201 = arith.constant 0 : index
    %c0_202 = arith.constant 0 : index
    %188 = vector.load %arg17[%c0_201, %c0_202] : memref<1x64xf32, #tpu.memory_space<vmem>>, vector<1x64xf32>
    %189 = vector.broadcast %188 : vector<1x64xf32> to vector<256x64xf32>
    %190 = arith.addf %187, %189 : vector<256x64xf32>
    %cst_203 = arith.constant 0.000000e+00 : f32
    %191 = vector.broadcast %cst_203 : f32 to vector<256x64xf32>
    %192 = arith.maximumf %190, %191 : vector<256x64xf32>
    %193 = vector.shape_cast %192 : vector<256x64xf32> to vector<2x128x64xf32>
    %c0_204 = arith.constant 0 : index
    %c1_205 = arith.constant 1 : index
    %c0_206 = arith.constant 0 : index
    %194 = vector.load %arg22[%c0_204, %c1_205, %c0_206] : memref<2x130x256xf32, #tpu.memory_space<vmem>>, vector<2x128x64xf32>
    tpu.vector_store %arg22[%c0_204, %c1_205, %c0_206], %193 {strides = array<i32>} : memref<2x130x256xf32, #tpu.memory_space<vmem>>, vector<2x128x64xf32>,
    %cst_207 = arith.constant 0.000000e+00 : f32
    %195 = vector.broadcast %cst_207 : f32 to vector<256x32xf32>
    %c0_208 = arith.constant 0 : index
    %c0_209 = arith.constant 0 : index
    %c0_210 = arith.constant 0 : index
    %196 = vector.load %arg22[%c0_208, %c0_209, %c0_210] : memref<2x130x256xf32, #tpu.memory_space<vmem>>, vector<2x128x64xf32>
    %197 = vector.shape_cast %196 : vector<2x128x64xf32> to vector<256x64xf32>
    %c0_211 = arith.constant 0 : index
    %c0_212 = arith.constant 0 : index
    %c0_213 = arith.constant 0 : index
    %198 = vector.load %arg9[%c0_211, %c0_212, %c0_213] : memref<3x64x32xf32, #tpu.memory_space<vmem>>, vector<1x64x32xf32>
    %199 = vector.shape_cast %198 : vector<1x64x32xf32> to vector<64x32xf32>
    %cst_214 = arith.constant dense<0.000000e+00> : vector<256x32xf32>
    %200 = tpu.matmul %197, %199, %cst_214 {dimension_numbers = #tpu.dot_dimension_numbers<[1], [0], [0], [1], [0, 0, 1, 1], [], []>} : vector<256x64xf32>, vector<64x32xf32>, vector<256x32xf32> -> vector<256x32xf32>
    %201 = arith.addf %195, %200 : vector<256x32xf32>
    %c0_215 = arith.constant 0 : index
    %c1_216 = arith.constant 1 : index
    %c0_217 = arith.constant 0 : index
    %202 = vector.load %arg22[%c0_215, %c1_216, %c0_217] : memref<2x130x256xf32, #tpu.memory_space<vmem>>, vector<2x128x64xf32>
    %203 = vector.shape_cast %202 : vector<2x128x64xf32> to vector<256x64xf32>
    %c1_218 = arith.constant 1 : index
    %c0_219 = arith.constant 0 : index
    %c0_220 = arith.constant 0 : index
    %204 = vector.load %arg9[%c1_218, %c0_219, %c0_220] : memref<3x64x32xf32, #tpu.memory_space<vmem>>, vector<1x64x32xf32>
    %205 = vector.shape_cast %204 : vector<1x64x32xf32> to vector<64x32xf32>
    %cst_221 = arith.constant dense<0.000000e+00> : vector<256x32xf32>
    %206 = tpu.matmul %203, %205, %cst_221 {dimension_numbers = #tpu.dot_dimension_numbers<[1], [0], [0], [1], [0, 0, 1, 1], [], []>} : vector<256x64xf32>, vector<64x32xf32>, vector<256x32xf32> -> vector<256x32xf32>
    %207 = arith.addf %201, %206 : vector<256x32xf32>
    %c0_222 = arith.constant 0 : index
    %c2_223 = arith.constant 2 : index
    %c0_224 = arith.constant 0 : index
    %208 = vector.load %arg22[%c0_222, %c2_223, %c0_224] : memref<2x130x256xf32, #tpu.memory_space<vmem>>, vector<2x128x64xf32>
    %209 = vector.shape_cast %208 : vector<2x128x64xf32> to vector<256x64xf32>
    %c2_225 = arith.constant 2 : index
    %c0_226 = arith.constant 0 : index
    %c0_227 = arith.constant 0 : index
    %210 = vector.load %arg9[%c2_225, %c0_226, %c0_227] : memref<3x64x32xf32, #tpu.memory_space<vmem>>, vector<1x64x32xf32>
    %211 = vector.shape_cast %210 : vector<1x64x32xf32> to vector<64x32xf32>
    %cst_228 = arith.constant dense<0.000000e+00> : vector<256x32xf32>
    %212 = tpu.matmul %209, %211, %cst_228 {dimension_numbers = #tpu.dot_dimension_numbers<[1], [0], [0], [1], [0, 0, 1, 1], [], []>} : vector<256x64xf32>, vector<64x32xf32>, vector<256x32xf32> -> vector<256x32xf32>
    %213 = arith.addf %207, %212 : vector<256x32xf32>
    %c0_229 = arith.constant 0 : index
    %c0_230 = arith.constant 0 : index
    %214 = vector.load %arg18[%c0_229, %c0_230] : memref<1x32xf32, #tpu.memory_space<vmem>>, vector<1x32xf32>
    %215 = vector.broadcast %214 : vector<1x32xf32> to vector<256x32xf32>
    %216 = arith.addf %213, %215 : vector<256x32xf32>
    %cst_231 = arith.constant 0.000000e+00 : f32
    %217 = vector.broadcast %cst_231 : f32 to vector<256x32xf32>
    %218 = arith.maximumf %216, %217 : vector<256x32xf32>
    %219 = vector.shape_cast %218 : vector<256x32xf32> to vector<2x128x32xf32>
    %c0_232 = arith.constant 0 : index
    %c1_233 = arith.constant 1 : index
    %c0_234 = arith.constant 0 : index
    %220 = vector.load %arg21[%c0_232, %c1_233, %c0_234] : memref<2x130x256xf32, #tpu.memory_space<vmem>>, vector<2x128x32xf32>
    tpu.vector_store %arg21[%c0_232, %c1_233, %c0_234], %219 {strides = array<i32>} : memref<2x130x256xf32, #tpu.memory_space<vmem>>, vector<2x128x32xf32>,
    %cst_235 = arith.constant 0.000000e+00 : f32
    %221 = vector.broadcast %cst_235 : f32 to vector<256x1xf32>
    %c0_236 = arith.constant 0 : index
    %c0_237 = arith.constant 0 : index
    %c0_238 = arith.constant 0 : index
    %222 = vector.load %arg21[%c0_236, %c0_237, %c0_238] : memref<2x130x256xf32, #tpu.memory_space<vmem>>, vector<2x128x32xf32>
    %223 = vector.shape_cast %222 : vector<2x128x32xf32> to vector<256x32xf32>
    %c0_239 = arith.constant 0 : index
    %c0_240 = arith.constant 0 : index
    %c0_241 = arith.constant 0 : index
    %224 = vector.load %arg10[%c0_239, %c0_240, %c0_241] : memref<3x1x32xf32, #tpu.memory_space<vmem>>, vector<1x1x32xf32>
    %225 = vector.shape_cast %224 : vector<1x1x32xf32> to vector<1x32xf32>
    %226 = vector.broadcast %225 : vector<1x32xf32> to vector<256x32xf32>
    %227 = arith.mulf %223, %226 : vector<256x32xf32>
    %cst_242 = arith.constant dense<0.000000e+00> : vector<256xf32>
    %228 = vector.multi_reduction <add>, %227, %cst_242 [1] : vector<256x32xf32> to vector<256xf32>
    %229 = vector.shape_cast %228 : vector<256xf32> to vector<256x1xf32>
    %230 = arith.addf %221, %229 : vector<256x1xf32>
    %c0_243 = arith.constant 0 : index
    %c1_244 = arith.constant 1 : index
    %c0_245 = arith.constant 0 : index
    %231 = vector.load %arg21[%c0_243, %c1_244, %c0_245] : memref<2x130x256xf32, #tpu.memory_space<vmem>>, vector<2x128x32xf32>
    %232 = vector.shape_cast %231 : vector<2x128x32xf32> to vector<256x32xf32>
    %c1_246 = arith.constant 1 : index
    %c0_247 = arith.constant 0 : index
    %c0_248 = arith.constant 0 : index
    %233 = vector.load %arg10[%c1_246, %c0_247, %c0_248] : memref<3x1x32xf32, #tpu.memory_space<vmem>>, vector<1x1x32xf32>
    %234 = vector.shape_cast %233 : vector<1x1x32xf32> to vector<1x32xf32>
    %235 = vector.broadcast %234 : vector<1x32xf32> to vector<256x32xf32>
    %236 = arith.mulf %232, %235 : vector<256x32xf32>
    %cst_249 = arith.constant dense<0.000000e+00> : vector<256xf32>
    %237 = vector.multi_reduction <add>, %236, %cst_249 [1] : vector<256x32xf32> to vector<256xf32>
    %238 = vector.shape_cast %237 : vector<256xf32> to vector<256x1xf32>
    %239 = arith.addf %230, %238 : vector<256x1xf32>
    %c0_250 = arith.constant 0 : index
    %c2_251 = arith.constant 2 : index
    %c0_252 = arith.constant 0 : index
    %240 = vector.load %arg21[%c0_250, %c2_251, %c0_252] : memref<2x130x256xf32, #tpu.memory_space<vmem>>, vector<2x128x32xf32>
    %241 = vector.shape_cast %240 : vector<2x128x32xf32> to vector<256x32xf32>
    %c2_253 = arith.constant 2 : index
    %c0_254 = arith.constant 0 : index
    %c0_255 = arith.constant 0 : index
    %242 = vector.load %arg10[%c2_253, %c0_254, %c0_255] : memref<3x1x32xf32, #tpu.memory_space<vmem>>, vector<1x1x32xf32>
    %243 = vector.shape_cast %242 : vector<1x1x32xf32> to vector<1x32xf32>
    %244 = vector.broadcast %243 : vector<1x32xf32> to vector<256x32xf32>
    %245 = arith.mulf %241, %244 : vector<256x32xf32>
    %cst_256 = arith.constant dense<0.000000e+00> : vector<256xf32>
    %246 = vector.multi_reduction <add>, %245, %cst_256 [1] : vector<256x32xf32> to vector<256xf32>
    %247 = vector.shape_cast %246 : vector<256xf32> to vector<256x1xf32>
    %248 = arith.addf %239, %247 : vector<256x1xf32>
    %c0_257 = arith.constant 0 : index
    %c0_258 = arith.constant 0 : index
    %249 = vector.load %arg19[%c0_257, %c0_258] : memref<1x1xf32, #tpu.memory_space<vmem>>, vector<1x1xf32>
    %250 = vector.broadcast %249 : vector<1x1xf32> to vector<256x1xf32>
    %251 = arith.addf %248, %250 : vector<256x1xf32>
    %252 = vector.shape_cast %251 : vector<256x1xf32> to vector<2x128x1xf32>
    %c0_259 = arith.constant 0 : index
    %c0_260 = arith.constant 0 : index
    %c0_261 = arith.constant 0 : index
    %253 = vector.load %arg20[%c0_259, %c0_260, %c0_261] : memref<2x128x1xf32, #tpu.memory_space<vmem>>, vector<2x128x1xf32>
    tpu.vector_store %arg20[%c0_259, %c0_260, %c0_261], %252 {strides = array<i32>} : memref<2x128x1xf32, #tpu.memory_space<vmem>>, vector<2x128x1xf32>,
    return
  }
  func.func @transform_0(%arg0: i32) -> (i32, i32, i32) {
    %c0_i32 = arith.constant 0 : i32
    %c0_i32_0 = arith.constant 0 : i32
    %c0_i32_1 = arith.constant 0 : i32
    %c0_i32_2 = arith.constant 0 : i32
    return %c0_i32, %c0_i32_0, %c0_i32_1 : i32, i32, i32
  }
  func.func @transform_1(%arg0: i32) -> (i32, i32, i32) {
    %c0_i32 = arith.constant 0 : i32
    %c0_i32_0 = arith.constant 0 : i32
    %c0_i32_1 = arith.constant 0 : i32
    %c0_i32_2 = arith.constant 0 : i32
    return %c0_i32, %c0_i32_0, %c0_i32_1 : i32, i32, i32
  }
  func.func @transform_2(%arg0: i32) -> (i32, i32, i32) {
    %c0_i32 = arith.constant 0 : i32
    %c0_i32_0 = arith.constant 0 : i32
    %c0_i32_1 = arith.constant 0 : i32
    %c0_i32_2 = arith.constant 0 : i32
    return %c0_i32, %c0_i32_0, %c0_i32_1 : i32, i32, i32
  }
  func.func @transform_3(%arg0: i32) -> (i32, i32, i32) {
    %c0_i32 = arith.constant 0 : i32
    %c0_i32_0 = arith.constant 0 : i32
    %c0_i32_1 = arith.constant 0 : i32
    %c0_i32_2 = arith.constant 0 : i32
    return %c0_i32, %c0_i32_0, %c0_i32_1 : i32, i32, i32
  }
  func.func @transform_4(%arg0: i32) -> (i32, i32, i32) {
    %c0_i32 = arith.constant 0 : i32
    %c0_i32_0 = arith.constant 0 : i32
    %c0_i32_1 = arith.constant 0 : i32
    %c0_i32_2 = arith.constant 0 : i32
    return %c0_i32, %c0_i32_0, %c0_i32_1 : i32, i32, i32
  }
  func.func @transform_5(%arg0: i32) -> (i32, i32, i32) {
    %c0_i32 = arith.constant 0 : i32
    %c0_i32_0 = arith.constant 0 : i32
    %c0_i32_1 = arith.constant 0 : i32
    %c0_i32_2 = arith.constant 0 : i32
    return %c0_i32, %c0_i32_0, %c0_i32_1 : i32, i32, i32
  }
  func.func @transform_6(%arg0: i32) -> (i32, i32, i32) {
    %c0_i32 = arith.constant 0 : i32
    %c0_i32_0 = arith.constant 0 : i32
    %c0_i32_1 = arith.constant 0 : i32
    %c0_i32_2 = arith.constant 0 : i32
    return %c0_i32, %c0_i32_0, %c0_i32_1 : i32, i32, i32
  }
  func.func @transform_7(%arg0: i32) -> (i32, i32, i32) {
    %c0_i32 = arith.constant 0 : i32
    %c0_i32_0 = arith.constant 0 : i32
    %c0_i32_1 = arith.constant 0 : i32
    %c0_i32_2 = arith.constant 0 : i32
    return %c0_i32, %c0_i32_0, %c0_i32_1 : i32, i32, i32
  }
  func.func @transform_8(%arg0: i32) -> (i32, i32, i32) {
    %c0_i32 = arith.constant 0 : i32
    %c0_i32_0 = arith.constant 0 : i32
    %c0_i32_1 = arith.constant 0 : i32
    %c0_i32_2 = arith.constant 0 : i32
    return %c0_i32, %c0_i32_0, %c0_i32_1 : i32, i32, i32
  }
  func.func @transform_9(%arg0: i32) -> (i32, i32, i32) {
    %c0_i32 = arith.constant 0 : i32
    %c0_i32_0 = arith.constant 0 : i32
    %c0_i32_1 = arith.constant 0 : i32
    %c0_i32_2 = arith.constant 0 : i32
    return %c0_i32, %c0_i32_0, %c0_i32_1 : i32, i32, i32
  }
  func.func @transform_10(%arg0: i32) -> (i32, i32) {
    %c0_i32 = arith.constant 0 : i32
    %c0_i32_0 = arith.constant 0 : i32
    %c0_i32_1 = arith.constant 0 : i32
    return %c0_i32, %c0_i32_0 : i32, i32
  }
  func.func @transform_11(%arg0: i32) -> (i32, i32) {
    %c0_i32 = arith.constant 0 : i32
    %c0_i32_0 = arith.constant 0 : i32
    %c0_i32_1 = arith.constant 0 : i32
    return %c0_i32, %c0_i32_0 : i32, i32
  }
  func.func @transform_12(%arg0: i32) -> (i32, i32) {
    %c0_i32 = arith.constant 0 : i32
    %c0_i32_0 = arith.constant 0 : i32
    %c0_i32_1 = arith.constant 0 : i32
    return %c0_i32, %c0_i32_0 : i32, i32
  }
  func.func @transform_13(%arg0: i32) -> (i32, i32) {
    %c0_i32 = arith.constant 0 : i32
    %c0_i32_0 = arith.constant 0 : i32
    %c0_i32_1 = arith.constant 0 : i32
    return %c0_i32, %c0_i32_0 : i32, i32
  }
  func.func @transform_14(%arg0: i32) -> (i32, i32) {
    %c0_i32 = arith.constant 0 : i32
    %c0_i32_0 = arith.constant 0 : i32
    %c0_i32_1 = arith.constant 0 : i32
    return %c0_i32, %c0_i32_0 : i32, i32
  }
  func.func @transform_15(%arg0: i32) -> (i32, i32) {
    %c0_i32 = arith.constant 0 : i32
    %c0_i32_0 = arith.constant 0 : i32
    %c0_i32_1 = arith.constant 0 : i32
    return %c0_i32, %c0_i32_0 : i32, i32
  }
  func.func @transform_16(%arg0: i32) -> (i32, i32) {
    %c0_i32 = arith.constant 0 : i32
    %c0_i32_0 = arith.constant 0 : i32
    %c0_i32_1 = arith.constant 0 : i32
    return %c0_i32, %c0_i32_0 : i32, i32
  }
  func.func @transform_17(%arg0: i32) -> (i32, i32) {
    %c0_i32 = arith.constant 0 : i32
    %c0_i32_0 = arith.constant 0 : i32
    %c0_i32_1 = arith.constant 0 : i32
    return %c0_i32, %c0_i32_0 : i32, i32
  }
  func.func @transform_18(%arg0: i32) -> (i32, i32) {
    %c0_i32 = arith.constant 0 : i32
    %c0_i32_0 = arith.constant 0 : i32
    %c0_i32_1 = arith.constant 0 : i32
    return %c0_i32, %c0_i32_0 : i32, i32
  }
  func.func @transform_19(%arg0: i32) -> (i32, i32, i32) {
    %c0_i32 = arith.constant 0 : i32
    %c0_i32_0 = arith.constant 0 : i32
    %c0_i32_1 = arith.constant 0 : i32
    %c0_i32_2 = arith.constant 0 : i32
    return %c0_i32, %c0_i32_0, %c0_i32_1 : i32, i32, i32
  }
}

</mosaic_0001>

<bundles_post_ra>
// kernel: tpu_custom_call.1
= control target key start
LH: loop header
LB: loop body
LE: loop exit
PB: predicated region body
PF: predicated region fallthrough
CT: control target
= control target key end

     0   :  { %s20622_s0 = inlined_call_operand.vmem [shape: f32[2,128,1], index: 0, kind: input, shape index: {}]   ;;  %s20623_s1 = inlined_call_operand.hbm [shape: f32[3,1,16], index: 1, kind: input, shape index: {}]   ;;  %s20624_s2 = inlined_call_operand.hbm [shape: f32[3,16,32], index: 2, kind: input, shape index: {}]   ;;  %s20625_s3 = inlined_call_operand.hbm [shape: f32[3,32,64], index: 3, kind: input, shape index: {}]   ;;  %s20626_s4 = inlined_call_operand.vmem [shape: f32[3,64,128], index: 4, kind: input, shape index: {}]   ;;  %s20627_s5 = inlined_call_operand.vmem [shape: f32[3,128,256], index: 5, kind: input, shape index: {}]   ;;  %s20628_s6 = inlined_call_operand.hbm [shape: f32[3,256,128], index: 6, kind: input, shape index: {}]   ;;  %s20629_s7 = inlined_call_operand.vmem [shape: f32[3,128,64], index: 7, kind: input, shape index: {}]   ;;  %s20630_s8 = inlined_call_operand.vmem [shape: f32[3,64,32], index: 8, kind: input, shape index: {}]   ;;  %s20631_s9 = inlined_call_operand.hbm [shape: f32[3,1,32], index: 9, kind: input, shape index: {}]   ;;  %s20632_s10 = inlined_call_operand.hbm [shape: f32[1,16], index: 10, kind: input, shape index: {}]   ;;  %s20633_s11 = inlined_call_operand.vmem [shape: f32[1,32], index: 11, kind: input, shape index: {}]   ;;  %s20634_s12 = inlined_call_operand.vmem [shape: f32[1,64], index: 12, kind: input, shape index: {}]   ;;  %s20635_s13 = inlined_call_operand.vmem [shape: f32[1,128], index: 13, kind: input, shape index: {}]   ;;  %s20636_s14 = inlined_call_operand.vmem [shape: f32[1,256], index: 14, kind: input, shape index: {}]   ;;  %s20637_s15 = inlined_call_operand.vmem [shape: f32[1,128], index: 15, kind: input, shape index: {}]   ;;  %s20638_s16 = inlined_call_operand.vmem [shape: f32[1,64], index: 16, kind: input, shape index: {}]   ;;  %s20639_s17 = inlined_call_operand.vmem [shape: f32[1,32], index: 17, kind: input, shape index: {}]   ;;  %s20640_s18 = inlined_call_operand.<no memory space> [shape: f32[1,1], index: 18, kind: input, shape index: {}]   ;;  %s20641_s19 = inlined_call_operand.vmem [shape: f32[2,128,1], index: 19, kind: output, shape index: {}]  }
   0x1   :  { %20649 = sst [smem:[#allocation35_spill]] %s20622_s0  ;;  %v24_v0 = vstv %s20640_s18 }
   0x2   :  { %20650 = sst [smem:[#allocation36_spill]] %s20623_s1  ;;  %25 = vst [vmem:[#allocation4] sm:$0x1] %v24_v0 }
   0x3   :  { %20651 = sst [smem:[#allocation37_spill]] %s20624_s2 }
   0x4   :  { %20652 = sst [smem:[#allocation38_spill]] %s20625_s3 }
   0x5   :  { %20653 = sst [smem:[#allocation39_spill]] %s20641_s19 }
   0x6   :  { %26 = vsyncpa [#allocation6], 0 }
   0x7   :  { %27 = vsyncpa [#allocation8], 0 }
   0x8   :  { %28 = vsyncpa [#allocation11], 0 }
   0x9   :  { %29 = vsyncpa [#allocation14], 0  ;;  %s15491_s20 = smov [#allocation7]   ;;  %s20654_s2 = sld [smem:[#allocation37_spill]] }
   0xa   :  { %s49_s21 = sshll.u32 %s15491_s20, 4  ;;  %s50_s21 = int_to_ptr.vmem [resolvable:$true] %s49_s21 }
   0xf   :  { %s15351_s23 = scalar_lea.hbm %s20654_s2, 768 }
  0x10   :  { %p15352_p0 = scmp.ne.s32.totalorder %s20654_s2, %s15351_s23  ;;  %p15355_p1 = scmp.lt.u32.totalorder %s15351_s23, %s20654_s2 }
  0x12   :  { %p15357_p2 = pnand %p15355_p1, %p15352_p0 }
  0x14   :  { %15360 = shalt.err (!%p15357_p2)
}
  0x15   :  { %s15361_s18 = scalar_lea.vmem %s50_s21, 768  ;;  %p15366_p4 = scmp.lt.s32.totalorder %s50_s21, %s50_s21 }
  0x16   :  { %p15362_p3 = scmp.ne.s32.totalorder %s50_s21, %s15361_s18  ;;  %p15367_p5 = scmp.lt.s32.totalorder %s15361_s18, %s15361_s18 }
  0x18   :  { %p15368_p6 = por %p15367_p5, %p15366_p4 }
  0x1a   :  { %p15369_p7 = pnand %p15368_p6, %p15362_p3 }
  0x1c   :  { %15372 = shalt.err (!%p15369_p7)
}
  0x1d   :  { %s20647_s27 = smov 128   ;;  %s20648_s28 = smov 8  }
  0x1e   :  { %55 = dma.hbm_to_vmem [thread:$0]  %s20654_s2, 768, %s50_s21, [#allocation8], %s20647_s27, %s20647_s27, %s20648_s28  }
  0x1f   :  { %s15494_s30 = smov [#allocation10]   ;;  %s15495_s1 = smov [#allocation5]  }
  0x20   :  { %s77_s20 = sshll.u32 %s15494_s30, 4  ;;  %s37_s22 = sshll.u32 %s15495_s1, 4  ;;  %s78_s20 = int_to_ptr.vmem [resolvable:$true] %s77_s20  ;;  %s38_s22 = int_to_ptr.vmem [resolvable:$true] %s37_s22 }
  0x21   :  { %s15373_s25 = scalar_lea.hbm %s20628_s6, 12288 }
  0x22   :  { %p15374_p8 = scmp.ne.s32.totalorder %s20628_s6, %s15373_s25  ;;  %p15377_p9 = scmp.lt.u32.totalorder %s15373_s25, %s20628_s6 }
  0x24   :  { %p15379_p10 = pnand %p15377_p9, %p15374_p8 }
  0x26   :  { %15382 = shalt.err (!%p15379_p10)
}
  0x27   :  { %s15383_s21 = scalar_lea.vmem %s78_s20, 12288  ;;  %p15388_p12 = scmp.lt.s32.totalorder %s78_s20, %s78_s20 }
  0x28   :  { %p15384_p11 = scmp.ne.s32.totalorder %s78_s20, %s15383_s21  ;;  %p15389_p13 = scmp.lt.s32.totalorder %s15383_s21, %s15383_s21 }
  0x2a   :  { %p15390_p0 = por %p15389_p13, %p15388_p12 }
  0x2c   :  { %p15391_p1 = pnand %p15390_p0, %p15384_p11 }
  0x2e   :  { %15394 = shalt.err (!%p15391_p1)
}
  0x2f   :  { %83 = dma.hbm_to_vmem [thread:$0]  %s20628_s6, 12288, %s78_s20, [#allocation11], %s20647_s27, %s20647_s27, %s20648_s28  }
  0x30   :  { %s20655_s30 = sld [smem:[#allocation36_spill]] }
  0x36   :  { %s15395_s1 = scalar_lea.hbm %s20655_s30, 48 }
  0x37   :  { %p15396_p2 = scmp.ne.s32.totalorder %s20655_s30, %s15395_s1  ;;  %p15399_p3 = scmp.lt.u32.totalorder %s15395_s1, %s20655_s30 }
  0x39   :  { %p15401_p4 = pnand %p15399_p3, %p15396_p2 }
  0x3b   :  { %15404 = shalt.err (!%p15401_p4)
}
  0x3c   :  { %s15405_s26 = scalar_lea.vmem %s38_s22, 48  ;;  %s15409_s18 = scalar_lea.vmem %s38_s22, 64 }
  0x3d   :  { %p15406_p5 = scmp.ne.s32.totalorder %s38_s22, %s15405_s26  ;;  %p15410_p6 = scmp.lt.s32.totalorder %s38_s22, %s38_s22 }
  0x3e   :  { %p15411_p7 = scmp.lt.s32.totalorder %s15409_s18, %s15405_s26 }
  0x40   :  { %p15412_p8 = por %p15411_p7, %p15410_p6 }
  0x42   :  { %p15413_p9 = pnand %p15412_p8, %p15406_p5 }
  0x44   :  { %15416 = shalt.err (!%p15413_p9)
}
  0x45   :  { %s15496_s6 = smov 16   ;;  %s15497_s20 = smov 1  }
  0x46   :  { %43 = dma.hbm_to_vmem [thread:$0]  %s20655_s30, 48, %s38_s22, [#allocation6], %s15496_s6, %s15496_s6, %s15497_s20  }
  0x47   :  { %s15498_s29 = smov [#allocation9]   ;;  %s15499_s19 = smov [#allocation12]  }
  0x48   :  { %s61_s0 = sshll.u32 %s15498_s29, 4  ;;  %s93_s1 = sshll.u32 %s15499_s19, 4  ;;  %s62_s0 = int_to_ptr.vmem [resolvable:$true] %s61_s0  ;;  %s94_s1 = int_to_ptr.vmem [resolvable:$true] %s93_s1 }
  0x49   :  { %s20656_s25 = sld [smem:[#allocation38_spill]] }
  0x4f   :  { %s15417_s3 = scalar_lea.hbm %s20656_s25, 1536 }
  0x50   :  { %p15418_p10 = scmp.ne.s32.totalorder %s20656_s25, %s15417_s3  ;;  %p15421_p11 = scmp.lt.u32.totalorder %s15417_s3, %s20656_s25 }
  0x52   :  { %p15423_p12 = pnand %p15421_p11, %p15418_p10 }
  0x54   :  { %15426 = shalt.err (!%p15423_p12)
}
  0x55   :  { %s15427_s22 = scalar_lea.vmem %s62_s0, 1536  ;;  %p15432_p0 = scmp.lt.s32.totalorder %s62_s0, %s62_s0 }
  0x56   :  { %p15428_p13 = scmp.ne.s32.totalorder %s62_s0, %s15427_s22  ;;  %p15433_p1 = scmp.lt.s32.totalorder %s15427_s22, %s15427_s22 }
  0x58   :  { %p15434_p2 = por %p15433_p1, %p15432_p0 }
  0x5a   :  { %p15435_p3 = pnand %p15434_p2, %p15428_p13 }
  0x5c   :  { %15438 = shalt.err (!%p15435_p3)
}
  0x5d   :  { %s20657_s30 = smov 8   ;;  %s20658_s21 = smov 128  }
  0x5e   :  { %67 = dma.hbm_to_vmem [thread:$0]  %s20656_s25, 1536, %s62_s0, [#allocation8], %s20658_s21, %s20658_s21, %s20657_s30  }
  0x5f   :  { %s15439_s28 = scalar_lea.hbm %s20631_s9, 48 }
  0x60   :  { %p15440_p4 = scmp.ne.s32.totalorder %s20631_s9, %s15439_s28  ;;  %p15443_p5 = scmp.lt.u32.totalorder %s15439_s28, %s20631_s9 }
  0x62   :  { %p15445_p6 = pnand %p15443_p5, %p15440_p4 }
  0x64   :  { %15448 = shalt.err (!%p15445_p6)
}
  0x65   :  { %s15449_s18 = scalar_lea.vmem %s94_s1, 48  ;;  %s15453_s22 = scalar_lea.vmem %s94_s1, 64 }
  0x66   :  { %p15450_p7 = scmp.ne.s32.totalorder %s94_s1, %s15449_s18  ;;  %p15454_p8 = scmp.lt.s32.totalorder %s94_s1, %s94_s1 }
  0x67   :  { %p15455_p9 = scmp.lt.s32.totalorder %s15453_s22, %s15449_s18 }
  0x69   :  { %p15456_p10 = por %p15455_p9, %p15454_p8 }
  0x6b   :  { %p15457_p11 = pnand %p15456_p10, %p15450_p7 }
  0x6d   :  { %15460 = shalt.err (!%p15457_p11)
}
  0x6e   :  { %99 = dma.hbm_to_vmem [thread:$0]  %s20631_s9, 48, %s94_s1, [#allocation11], %s15496_s6, %s15496_s6, %s15497_s20  }
  0x6f   :  { %s15500_s30 = smov [#allocation13]   ;;  %s15461_s19 = scalar_lea.hbm %s20632_s10, 16 }
  0x70   :  { %s106_s21 = sshll.u32 %s15500_s30, 4  ;;  %p15462_p12 = scmp.ne.s32.totalorder %s20632_s10, %s15461_s19  ;;  %s107_s21 = int_to_ptr.vmem [resolvable:$true] %s106_s21 }
  0x71   :  { %p15465_p13 = scmp.lt.u32.totalorder %s15461_s19, %s20632_s10 }
  0x73   :  { %p15467_p0 = pnand %p15465_p13, %p15462_p12 }
  0x75   :  { %15470 = shalt.err (!%p15467_p0)
}
  0x76   :  { %s15471_s3 = scalar_lea.vmem %s107_s21, 16  ;;  %s15475_s9 = scalar_lea.vmem %s107_s21, 32 }
  0x77   :  { %p15472_p1 = scmp.ne.s32.totalorder %s107_s21, %s15471_s3  ;;  %p15476_p2 = scmp.lt.s32.totalorder %s107_s21, %s107_s21 }
  0x78   :  { %p15477_p3 = scmp.lt.s32.totalorder %s15475_s9, %s15471_s3 }
  0x7a   :  { %p15478_p4 = por %p15477_p3, %p15476_p2 }
  0x7c   :  { %p15479_p5 = pnand %p15478_p4, %p15472_p1 }
  0x7e   :  { %15482 = shalt.err (!%p15479_p5)
}
  0x7f   :  { %109 = dma.hbm_to_vmem [thread:$0]  %s20632_s10, 16, %s107_s21, [#allocation14]  }
  0x80   :  { %15483 = dma.done.wait [#allocation6], 48  }
  0x81   :  { %15484 = vsyncadd [#allocation6], 4294967248 }
  0x82   :  { %15485 = dma.done.wait [#allocation8], 2304  }
  0x83   :  { %15486 = vsyncadd [#allocation8], 4294964992 }
  0x84   :  { %15487 = dma.done.wait [#allocation11], 12336  }
  0x85   :  { %15488 = vsyncadd [#allocation11], 4294954960 }
  0x86   :  { %15489 = dma.done.wait [#allocation14], 16  }
  0x87   :  { %15490 = vsyncadd [#allocation14], 4294967280  ;;  %v144_v1 = vlaneseq  ;;  %v15501_v2 = vmov 0   ;;  %v15502_v3 = vmov 0.0   ;;  %s20659_s26 = sld [smem:[#allocation35_spill]]  ;;  %vm331_vm1 = vcmask 7169  }
  0x88   :  { %15311 = vset.pattern.permute.xlu0 %v15501_v2  ;;  %15312 = vset.pattern.permute.xlu1 %v15501_v2  ;;  %vm234_vm2 = vcmask 1040384   ;;  %vm333_vm3 = vcmask 7168   ;;  %vm349_vm4 = vcmask 0   ;;  %vm699_vm5 = vcmask 1046528  }
  0x89   :  { %vm146_vm0 = vcmp.lt.s32.totalorder %v144_v1, 256  ;;  %vm974_vm6 = vcmask 1045504   ;;  %vm1440_vm7 = vcmask 130049   ;;  %vm1442_vm8 = vcmask 130048  }
  0x8a   :  { %148 = vst.msk [vmem:[#allocation2] ss:$8 sm:$0x3] %vm146_vm0, %v15502_v3  ;;  %151 = vst.msk [vmem:[#allocation2 + $0x110] ss:$8 sm:$0x3] %vm146_vm0, %v15502_v3 }
  0x8b   :  { %154 = vst.msk [vmem:[#allocation2 + $0x101] ss:$8 sm:$0x3] %vm146_vm0, %v15502_v3  ;;  %157 = vst.msk [vmem:[#allocation2 + $0x211] ss:$8 sm:$0x3] %vm146_vm0, %v15502_v3 }
  0x8c   :  { %159 = vst.msk [vmem:[#allocation3] ss:$8 sm:$0x3] %vm146_vm0, %v15502_v3  ;;  %162 = vst.msk [vmem:[#allocation3 + $0x110] ss:$8 sm:$0x3] %vm146_vm0, %v15502_v3 }
  0x8d   :  { %165 = vst.msk [vmem:[#allocation3 + $0x101] ss:$8 sm:$0x3] %vm146_vm0, %v15502_v3  ;;  %168 = vst.msk [vmem:[#allocation3 + $0x211] ss:$8 sm:$0x3] %vm146_vm0, %v15502_v3 }
  0x8e   :  { %v170_v4 = vld [vmem:[%s20659_s26] sm:$0xff]  ;;  %v172_v5 = vld [vmem:[%s20659_s26 + $0x10] sm:$0xff]  ;;  %v173_v7 = vld [vmem:[%s20659_s26 + $0x18] sm:$0xff]  ;;  %vm1458_vm9 = vcmask 122880   ;;  %vm2795_vm10 = vcmask 261121   ;;  %vm2797_vm11 = vcmask 261120  }
  0x8f   :  { %v235_v6 = vrot.slane %v170_v4, 7  ;;  %v238_v8 = vrot.slane %v172_v5, 7  ;;  %v171_v9 = vld [vmem:[%s20659_s26 + $0x8] sm:$0xff]  ;;  %v174_v10 = vld [vmem:[%s20659_s26 + $0x20] sm:$0xff]  ;;  %v240_v11 = vrot.slane %v173_v7, 7  ;;  %v176_v15 = vld [vmem:[%s20659_s26 + $0x30] sm:$0xff] }
  0x90   :  { %v236_v12 = vrot.slane %v171_v9, 7  ;;  %v242_v13 = vrot.slane %v174_v10, 7  ;;  %v175_v14 = vld [vmem:[%s20659_s26 + $0x28] sm:$0xff]  ;;  %v177_v16 = vld [vmem:[%s20659_s26 + $0x38] sm:$0xff]  ;;  %v246_v18 = vrot.slane %v176_v15, 7  ;;  %v178_v20 = vld [vmem:[%s20659_s26 + $0x40] sm:$0xff] }
  0x91   :  { %332 = vst.msk [vmem:[#allocation2] sm:$0xfe] %vm331_vm1, %v235_v6  ;;  %v244_v17 = vrot.slane %v175_v14, 7  ;;  %v248_v19 = vrot.slane %v177_v16, 7  ;;  %v179_v21 = vld [vmem:[%s20659_s26 + $0x48] sm:$0xff]  ;;  %v180_v22 = vld [vmem:[%s20659_s26 + $0x50] sm:$0xff]  ;;  %v241_v23 = vsel %vm234_vm2, %v238_v8, %v240_v11 }
  0x92   :  { %v237_v24 = vsel %vm234_vm2, %v235_v6, %v236_v12  ;;  %v243_v25 = vsel %vm234_vm2, %v240_v11, %v242_v13  ;;  %v239_v26 = vsel %vm234_vm2, %v236_v12, %v238_v8  ;;  %v181_v27 = vld [vmem:[%s20659_s26 + $0x58] sm:$0xff]  ;;  %v182_v28 = vld [vmem:[%s20659_s26 + $0x60] sm:$0xff]  ;;  %v183_v29 = vld [vmem:[%s20659_s26 + $0x68] sm:$0xff]  ;;  %336 = vst.msk [vmem:[#allocation2 + $0x30] sm:$0xff] %vm333_vm3, %v241_v23  ;;  %v250_v33 = vrot.slane %v178_v20, 7 }
  0x93   :  { %334 = vst.msk [vmem:[#allocation2 + $0x10] sm:$0xff] %vm333_vm3, %v237_v24  ;;  %337 = vst.msk [vmem:[#allocation2 + $0x40] sm:$0xff] %vm333_vm3, %v243_v25  ;;  %v245_v30 = vsel %vm234_vm2, %v242_v13, %v244_v17  ;;  %v247_v31 = vsel %vm234_vm2, %v244_v17, %v246_v18  ;;  %v249_v32 = vsel %vm234_vm2, %v246_v18, %v248_v19  ;;  %v184_v34 = vld [vmem:[%s20659_s26 + $0x70] sm:$0xff]  ;;  %v185_v35 = vld [vmem:[%s20659_s26 + $0x78] sm:$0xff]  ;;  %v252_v36 = vrot.slane %v179_v21, 7 }
  0x94   :  { %335 = vst.msk [vmem:[#allocation2 + $0x20] sm:$0xff] %vm333_vm3, %v239_v26  ;;  %338 = vst.msk [vmem:[#allocation2 + $0x50] sm:$0xff] %vm333_vm3, %v245_v30  ;;  %v254_v37 = vrot.slane %v180_v22, 7  ;;  %v256_v38 = vrot.slane %v181_v27, 7  ;;  %v258_v39 = vrot.slane %v182_v28, 7  ;;  %v186_v40 = vld [vmem:[%s20659_s26 + $0x80] sm:$0xff]  ;;  %v251_v41 = vsel %vm234_vm2, %v248_v19, %v250_v33 }
  0x95   :  { %339 = vst.msk [vmem:[#allocation2 + $0x60] sm:$0xff] %vm333_vm3, %v247_v31  ;;  %340 = vst.msk [vmem:[#allocation2 + $0x70] sm:$0xff] %vm333_vm3, %v249_v32  ;;  %v260_v42 = vrot.slane %v183_v29, 7  ;;  %v262_v43 = vrot.slane %v184_v34, 7  ;;  %v264_v44 = vrot.slane %v185_v35, 7  ;;  %v15773_v45 = vld [vmem:[%s20659_s26 + $0x88] sm:$0xff]  ;;  %v253_v46 = vsel %vm234_vm2, %v250_v33, %v252_v36 }
  0x96   :  { %341 = vst.msk [vmem:[#allocation2 + $0x80] sm:$0xff] %vm333_vm3, %v251_v41  ;;  %v255_v47 = vsel %vm234_vm2, %v252_v36, %v254_v37  ;;  %v257_v48 = vsel %vm234_vm2, %v254_v37, %v256_v38  ;;  %v259_v49 = vsel %vm234_vm2, %v256_v38, %v258_v39  ;;  %342 = vst.msk [vmem:[#allocation2 + $0x90] sm:$0xff] %vm333_vm3, %v253_v46  ;;  %v266_v53 = vrot.slane %v186_v40, 7  ;;  %v188_v12 = vld [vmem:[%s20659_s26 + $0x90] sm:$0xff]  ;;  %v189_v13 = vld [vmem:[%s20659_s26 + $0x98] sm:$0xff] }
  0x97   :  { %343 = vst.msk [vmem:[#allocation2 + $0xa0] sm:$0xff] %vm333_vm3, %v255_v47  ;;  %344 = vst.msk [vmem:[#allocation2 + $0xb0] sm:$0xff] %vm333_vm3, %v257_v48  ;;  %v261_v50 = vsel %vm234_vm2, %v258_v39, %v260_v42  ;;  %v263_v51 = vsel %vm234_vm2, %v260_v42, %v262_v43  ;;  %v265_v52 = vsel %vm234_vm2, %v262_v43, %v264_v44  ;;  %v267_v55 = vrot.slane %v15773_v45, 7  ;;  %v190_v14 = vld [vmem:[%s20659_s26 + $0xa0] sm:$0xff]  ;;  %v191_v17 = vld [vmem:[%s20659_s26 + $0xa8] sm:$0xff] }
  0x98   :  { %345 = vst.msk [vmem:[#allocation2 + $0xc0] sm:$0xff] %vm333_vm3, %v259_v49  ;;  %v368_v54 = vld [vmem:[#allocation2] sm:$0xff]  ;;  %346 = vst.msk [vmem:[#allocation2 + $0xd0] sm:$0xff] %vm333_vm3, %v261_v50  ;;  %v192_v18 = vld [vmem:[%s20659_s26 + $0xb0] sm:$0xff]  ;;  %v269_v20 = vrot.slane %v188_v12, 7  ;;  %v271_v22 = vrot.slane %v189_v13, 7 }
  0x99   :  { %350 = vst.msk [vmem:[#allocation2 + $0x100] sm:$0x1] %vm349_vm4, %v264_v44  ;;  %403 = vperm.xlu0 %15311, %v368_v54   ;;  %v631_v56 = vld [vmem:[#allocation2] sm:$0xfe]  ;;  %v15793_v57 = vld [vmem:[#allocation2 + $0x30] sm:$0xff]  ;;  %v268_v59 = vsel %vm234_vm2, %v266_v53, %v267_v55  ;;  %v273_v23 = vrot.slane %v190_v14, 7 }
  0x9a   :  { %347 = vst.msk [vmem:[#allocation2 + $0xe0] sm:$0xff] %vm333_vm3, %v263_v51  ;;  %348 = vst.msk [vmem:[#allocation2 + $0xf0] sm:$0xff] %vm333_vm3, %v265_v52  ;;  %v369_v58 = vld [vmem:[#allocation2 + $0x10] sm:$0xff]  ;;  %418 = vperm.xlu1 %15312, %v15793_v57   ;;  %v966_v60 = vld [vmem:[#allocation2] sm:$0xfc]  ;;  %v700_v62 = vrot.slane %v631_v56, 1  ;;  %v270_v30 = vsel %vm234_vm2, %v267_v55, %v269_v20  ;;  %v272_v35 = vsel %vm234_vm2, %v269_v20, %v271_v22 }
  0x9b   :  { %351 = vst.msk [vmem:[#allocation2 + $0x110] sm:$0xfe] %vm331_vm1, %v266_v53  ;;  %v15798_v61 = vld [vmem:[#allocation2 + $0x40] sm:$0xff]  ;;  %v701_v63 = vrot.slane %v369_v58, 1  ;;  %v975_v2 = vrot.slane %v966_v60, 2  ;;  %v976_v4 = vrot.slane %v369_v58, 2  ;;  %v274_v36 = vsel %vm234_vm2, %v271_v22, %v273_v23 }
  0x9c   :  { %352 = vst.msk [vmem:[#allocation2 + $0x120] sm:$0xff] %vm333_vm3, %v268_v59  ;;  %v370_v0 = vld [vmem:[#allocation2 + $0x20] sm:$0xff]  ;;  %v980_v9 = vrot.slane %v15793_v57, 2  ;;  %v705_v11 = vrot.slane %v15793_v57, 1  ;;  %v707_v16 = vrot.slane %v15798_v61, 1  ;;  %v15823_v19 = vld [vmem:[#allocation2 + $0x50] sm:$0xff] }
  0x9d   :  { %408 = vperm.xlu0 %15311, %v369_v58   ;;  %v702_v5 = vsel %vm699_vm5, %v700_v62, %v701_v63  ;;  %v703_v6 = vrot.slane %v370_v0, 1  ;;  %v977_v7 = vsel %vm974_vm6, %v975_v2, %v976_v4  ;;  %v978_v8 = vrot.slane %v370_v0, 2  ;;  %v193_v28 = vld [vmem:[%s20659_s26 + $0xb8] sm:$0xff]  ;;  %v194_v31 = vld [vmem:[%s20659_s26 + $0xc0] sm:$0xff]  ;;  %v195_v32 = vld [vmem:[%s20659_s26 + $0xc8] sm:$0xff]  ;;  %353 = vst.msk [vmem:[#allocation2 + $0x130] sm:$0xff] %vm333_vm3, %v270_v30 }
  0x9e   :  { %423 = vperm.xlu1 %15312, %v15798_v61   ;;  %v275_v24 = vrot.slane %v191_v17, 7  ;;  %v277_v25 = vrot.slane %v192_v18, 7  ;;  %v708_v26 = vsel %vm699_vm5, %v705_v11, %v707_v16  ;;  %v709_v27 = vrot.slane %v15823_v19, 1  ;;  %v196_v33 = vld [vmem:[%s20659_s26 + $0xd0] sm:$0xff]  ;;  %v197_v37 = vld [vmem:[%s20659_s26 + $0xd8] sm:$0xff]  ;;  %354 = vst.msk [vmem:[#allocation2 + $0x140] sm:$0xff] %vm333_vm3, %v272_v35 }
  0x9f   :  { %v704_v10 = vsel %vm699_vm5, %v701_v63, %v703_v6  ;;  %v981_v15 = vsel %vm974_vm6, %v978_v8, %v980_v9  ;;  %v706_v21 = vsel %vm699_vm5, %v703_v6, %v705_v11  ;;  %v982_v29 = vrot.slane %v15798_v61, 2  ;;  %355 = vst.msk [vmem:[#allocation2 + $0x150] sm:$0xff] %vm333_vm3, %v274_v36  ;;  %v637_v47 = vld [vmem:[#allocation2 + $0x60] sm:$0xff]  ;;  %v638_v59 = vld [vmem:[#allocation2 + $0x70] sm:$0xff]  ;;  %v199_v62 = vld [vmem:[%s20659_s26 + $0xe8] sm:$0xff] }
  0xa0   :  { %v979_v34 = vsel %vm974_vm6, %v976_v4, %v978_v8  ;;  %v984_v38 = vrot.slane %v15823_v19, 2  ;;  %v276_v39 = vsel %vm234_vm2, %v273_v23, %v275_v24  ;;  %v278_v40 = vsel %vm234_vm2, %v275_v24, %v277_v25  ;;  %v198_v50 = vld [vmem:[%s20659_s26 + $0xe0] sm:$0xff]  ;;  %v200_v6 = vld [vmem:[%s20659_s26 + $0xf0] sm:$0xff] }
  0xa1   :  { %413 = vperm.xlu0 %15311, %v370_v0   ;;  %v279_v41 = vrot.slane %v193_v28, 7  ;;  %v710_v42 = vsel %vm699_vm5, %v707_v16, %v709_v27  ;;  %356 = vst.msk [vmem:[#allocation2 + $0x160] sm:$0xff] %vm333_vm3, %v276_v39  ;;  %357 = vst.msk [vmem:[#allocation2 + $0x170] sm:$0xff] %vm333_vm3, %v278_v40  ;;  %v281_v43 = vrot.slane %v194_v31, 7  ;;  %v283_v44 = vrot.slane %v195_v32, 7  ;;  %v640_v11 = vld [vmem:[#allocation2 + $0x90] sm:$0xff] }
  0xa2   :  { %769 = vperm.xlu1 %15312, %v702_v5   ;;  %v285_v45 = vrot.slane %v196_v33, 7  ;;  %v983_v46 = vsel %vm974_vm6, %v980_v9, %v982_v29  ;;  %v287_v49 = vrot.slane %v197_v37, 7  ;;  %v289_v54 = vrot.slane %v198_v50, 7  ;;  %v639_v5 = vld [vmem:[#allocation2 + $0x80] sm:$0xff]  ;;  %v1616_v13 = vld [vmem:[#allocation7 + $0x10] sm:$0xff] }
  0xa3   :  { %v280_v48 = vsel %vm234_vm2, %v277_v25, %v279_v41  ;;  %v282_v51 = vsel %vm234_vm2, %v279_v41, %v281_v43  ;;  %v284_v52 = vsel %vm234_vm2, %v281_v43, %v283_v44  ;;  %v985_v56 = vsel %vm974_vm6, %v982_v29, %v984_v38  ;;  %v1617_v14 = vld [vmem:[#allocation7 + $0x18] sm:$0xff]  ;;  %v642_v29 = vld [vmem:[#allocation2 + $0xb0] sm:$0xff] }
  0xa4   :  { %358 = vst.msk [vmem:[#allocation2 + $0x180] sm:$0xff] %vm333_vm3, %v280_v48  ;;  %v286_v53 = vsel %vm234_vm2, %v283_v44, %v285_v45  ;;  %359 = vst.msk [vmem:[#allocation2 + $0x190] sm:$0xff] %vm333_vm3, %v282_v51  ;;  %v288_v55 = vsel %vm234_vm2, %v285_v45, %v287_v49  ;;  %v711_v57 = vrot.slane %v637_v47, 1  ;;  %v290_v58 = vsel %vm234_vm2, %v287_v49, %v289_v54  ;;  %v641_v25 = vld [vmem:[#allocation2 + $0xa0] sm:$0xff]  ;;  %v644_v39 = vld [vmem:[#allocation2 + $0xd0] sm:$0xff] }
  0xa5   :  { %1044 = vperm.xlu0 %15311, %v977_v7   ;;  %360 = vst.msk [vmem:[#allocation2 + $0x1a0] sm:$0xff] %vm333_vm3, %v284_v52  ;;  %361 = vst.msk [vmem:[#allocation2 + $0x1b0] sm:$0xff] %vm333_vm3, %v286_v53  ;;  %v713_v61 = vrot.slane %v638_v59, 1  ;;  %v986_v63 = vrot.slane %v637_v47, 2  ;;  %v291_v0 = vrot.slane %v199_v62, 7  ;;  %v988_v4 = vrot.slane %v638_v59, 2 }
  0xa6   :  { %773 = vperm.xlu1 %15312, %v704_v10   ;;  %362 = vst.msk [vmem:[#allocation2 + $0x1c0] sm:$0xff] %vm333_vm3, %v288_v55  ;;  %363 = vst.msk [vmem:[#allocation2 + $0x1d0] sm:$0xff] %vm333_vm3, %v290_v58  ;;  %v712_v60 = vsel %vm699_vm5, %v709_v27, %v711_v57  ;;  %v715_v10 = vrot.slane %v639_v5, 1  ;;  %v293_v12 = vrot.slane %v200_v6, 7  ;;  %v14378_v16 = vpack.c.bf16 %v1617_v14, %v1616_v13  ;;  %v643_v35 = vld [vmem:[#allocation2 + $0xc0] sm:$0xff]  ;;  %v646_v49 = vld [vmem:[#allocation2 + $0xf0] sm:$0xff] }
  0xa7   :  { %v714_v2 = vsel %vm699_vm5, %v711_v57, %v713_v61  ;;  %v987_v7 = vsel %vm974_vm6, %v984_v38, %v986_v63  ;;  %v292_v8 = vsel %vm234_vm2, %v289_v54, %v291_v0  ;;  %v989_v9 = vsel %vm974_vm6, %v986_v63, %v988_v4  ;;  %v645_v45 = vld [vmem:[#allocation2 + $0xe0] sm:$0xff]  ;;  %v648_v63 = vld [vmem:[#allocation2 + $0x110] sm:$0xfe] }
  0xa8   :  { %364 = vst.msk [vmem:[#allocation2 + $0x1e0] sm:$0xff] %vm333_vm3, %v292_v8  ;;  %v294_v17 = vsel %vm234_vm2, %v291_v0, %v293_v12  ;;  %v717_v20 = vrot.slane %v640_v11, 1  ;;  %14379 = vmatprep.subr.bf16.mxu0 %v14378_v16  ;;  %v990_v22 = vrot.slane %v639_v5, 2  ;;  %v992_v24 = vrot.slane %v640_v11, 2  ;;  %v647_v55 = vld [vmem:[#allocation2 + $0x100] sm:$0x1] }
  0xa9   :  { %1052 = vperm.xlu0 %15311, %v981_v15   ;;  %v201_v15 = vld [vmem:[%s20659_s26 + $0xf8] sm:$0xff]  ;;  %365 = vst.msk [vmem:[#allocation2 + $0x1f0] sm:$0xff] %vm333_vm3, %v294_v17  ;;  %14381 = vmatpush3.bf16.msra.mxu0 %v14378_v16  ;;  %v719_v28 = vrot.slane %v641_v25, 1  ;;  %v721_v31 = vrot.slane %v642_v29, 1  ;;  %v994_v32 = vrot.slane %v641_v25, 2  ;;  %v723_v38 = vrot.slane %v643_v35, 1 }
  0xaa   :  { %777 = vperm.xlu1 %15312, %v706_v21   ;;  %v295_v18 = vrot.slane %v201_v15, 7  ;;  %v718_v23 = vsel %vm699_vm5, %v715_v10, %v717_v20  ;;  %v993_v27 = vsel %vm974_vm6, %v990_v22, %v992_v24  ;;  %v725_v41 = vrot.slane %v644_v39, 1  ;;  %v967_v57 = vld [vmem:[#allocation2 + $0x100] sm:$0x3] }
  0xab   :  { %v720_v30 = vsel %vm699_vm5, %v717_v20, %v719_v28  ;;  %v722_v33 = vsel %vm699_vm5, %v719_v28, %v721_v31  ;;  %v995_v36 = vsel %vm974_vm6, %v992_v24, %v994_v32  ;;  %v724_v40 = vsel %vm699_vm5, %v721_v31, %v723_v38  ;;  %v385_v62 = vld [vmem:[#allocation2 + $0x120] sm:$0xff] }
  0xac   :  { %v296_v21 = vsel %vm234_vm2, %v293_v12, %v295_v18  ;;  %367 = vst.msk [vmem:[#allocation2 + $0x210] sm:$0x1] %vm349_vm4, %v295_v18  ;;  %v726_v43 = vsel %vm699_vm5, %v723_v38, %v725_v41  ;;  %v1000_v44 = vrot.slane %v644_v39, 2  ;;  %v727_v48 = vrot.slane %v645_v45, 1  ;;  %v651_v8 = vld [vmem:[#allocation2 + $0x140] sm:$0xff] }
  0xad   :  { %781 = vperm.xlu0 %15311, %v708_v26   ;;  %366 = vst.msk [vmem:[#allocation2 + $0x200] sm:$0xff] %vm333_vm3, %v296_v21  ;;  %v991_v26 = vsel %vm974_vm6, %v988_v4, %v990_v22  ;;  %v729_v51 = vrot.slane %v646_v49, 1  ;;  %v1002_v52 = vrot.slane %v645_v45, 2  ;;  %v1004_v54 = vrot.slane %v646_v49, 2  ;;  %v384_v4 = vld [vmem:[#allocation2 + $0x110] sm:$0xff] }
  0xae   :  { %1048 = vperm.xlu1 %15312, %v979_v34   ;;  %v996_v34 = vrot.slane %v642_v29, 2  ;;  %v728_v50 = vsel %vm699_vm5, %v725_v41, %v727_v48  ;;  %v734_v6 = vrot.slane %v385_v62, 1  ;;  %v738_v12 = vrot.slane %v651_v8, 1  ;;  %v656_v41 = vld [vmem:[#allocation2 + $0x190] sm:$0xff] }
  0xaf   :  { %v730_v53 = vsel %vm699_vm5, %v727_v48, %v729_v51  ;;  %v1005_v58 = vsel %vm974_vm6, %v1002_v52, %v1004_v54  ;;  %v1009_v14 = vrot.slane %v385_v62, 2  ;;  %v1013_v18 = vrot.slane %v651_v8, 2  ;;  %v15933_v48 = vld [vmem:[#allocation5] ss:$0 sm:$0xff] }
  0xb0   :  { %v997_v37 = vsel %vm974_vm6, %v994_v32, %v996_v34  ;;  %vm2813_vm12 = vcmask 253952   ;;  %vm4156_vm13 = vcmask 523265   ;;  %vm4158_vm14 = vcmask 523264  }
  0xb1   :  { %785 = vperm.xlu0 %15311, %v710_v42   ;;  %v998_v42 = vrot.slane %v643_v35, 2  ;;  %vm4174_vm15 = vcmask 516096  }
  0xb2   :  { %1056 = vperm.xlu1 %15312, %v983_v46  }
  0xb3   :  { %v999_v46 = vsel %vm974_vm6, %v996_v34, %v998_v42 }
  0xb5   :  { %1060 = vperm.xlu0 %15311, %v985_v56   ;;  %v1003_v56 = vsel %vm974_vm6, %v1000_v44, %v1002_v52  ;;  %v15937_v52 = vld [vmem:[#allocation5 + $0x2] ss:$0 sm:$0xff] }
  0xb6   :  { %428 = vperm.xlu1 %15312, %v15823_v19   ;;  %v716_v19 = vsel %vm699_vm5, %v713_v61, %v715_v10  ;;  %v968_v10 = vld [vmem:[#allocation2 + $0x110] sm:$0xfc] }
  0xb7   :  { %v1008_v13 = vrot.slane %v968_v10, 2 }
  0xb9   :  { %789 = vperm.xlu0 %15311, %v712_v60   ;;  %v1006_v60 = vrot.slane %v967_v57, 2  ;;  %v1010_v17 = vsel %vm974_vm6, %v1008_v13, %v1009_v14 }
  0xba   :  { %433 = vperm.xlu1 %15312, %v637_v47   ;;  %v1001_v47 = vsel %vm974_vm6, %v998_v42, %v1000_v44 }
  0xbb   :  { %v1007_v0 = vsel %vm974_vm6, %v1004_v54, %v1006_v60 }
  0xbd   :  { %793 = vperm.xlu0 %15311, %v714_v2   ;;  %v650_v2 = vld [vmem:[#allocation2 + $0x130] sm:$0xff] }
  0xbe   :  { %1064 = vperm.xlu1 %15312, %v987_v7   ;;  %v736_v7 = vrot.slane %v650_v2, 1  ;;  %v1011_v16 = vrot.slane %v650_v2, 2 }
  0xc0   :  { %v739_v15 = vsel %vm699_vm5, %v736_v7, %v738_v12  ;;  %v1012_v20 = vsel %vm974_vm6, %v1009_v14, %v1011_v16  ;;  %v1014_v21 = vsel %vm974_vm6, %v1011_v16, %v1013_v18 }
  0xc1   :  { %1068 = vperm.xlu0 %15311, %v989_v9  }
  0xc2   :  { %438 = vperm.xlu1 %15312, %v638_v59   ;;  %v731_v59 = vrot.slane %v647_v55, 1 }
  0xc4   :  { %v732_v61 = vsel %vm699_vm5, %v729_v51, %v731_v59 }
  0xc5   :  { %797 = vperm.xlu0 %15311, %v716_v19   ;;  %v652_v19 = vld [vmem:[#allocation2 + $0x150] sm:$0xff] }
  0xc6   :  { %443 = vperm.xlu1 %15312, %v639_v5   ;;  %v733_v5 = vrot.slane %v648_v63, 1  ;;  %v740_v22 = vrot.slane %v652_v19, 1 }
  0xc8   :  { %v735_v9 = vsel %vm699_vm5, %v733_v5, %v734_v6  ;;  %v741_v24 = vsel %vm699_vm5, %v738_v12, %v740_v22 }
  0xc9   :  { %801 = vperm.xlu0 %15311, %v718_v23   ;;  %v653_v23 = vld [vmem:[#allocation2 + $0x160] sm:$0xff] }
  0xca   :  { %1072 = vperm.xlu1 %15312, %v991_v26   ;;  %v1015_v26 = vrot.slane %v652_v19, 2  ;;  %v1017_v28 = vrot.slane %v653_v23, 2 }
  0xcc   :  { %v1018_v31 = vsel %vm974_vm6, %v1015_v26, %v1017_v28 }
  0xcd   :  { %1076 = vperm.xlu0 %15311, %v993_v27  }
  0xce   :  { %448 = vperm.xlu1 %15312, %v640_v11   ;;  %v737_v11 = vsel %vm699_vm5, %v734_v6, %v736_v7 }
  0xd1   :  { %805 = vperm.xlu0 %15311, %v720_v30   ;;  %v1016_v30 = vsel %vm974_vm6, %v1013_v18, %v1015_v26 }
  0xd2   :  { %453 = vperm.xlu1 %15312, %v641_v25   ;;  %v742_v25 = vrot.slane %v653_v23, 1 }
  0xd4   :  { %v743_v27 = vsel %vm699_vm5, %v740_v22, %v742_v25 }
  0xd5   :  { %809 = vperm.xlu0 %15311, %v722_v33   ;;  %v655_v33 = vld [vmem:[#allocation2 + $0x180] sm:$0xff] }
  0xd6   :  { %1080 = vperm.xlu1 %15312, %v995_v36  }
  0xd9   :  { %1084 = vperm.xlu0 %15311, %v997_v37  }
  0xda   :  { %458 = vperm.xlu1 %15312, %v642_v29   ;;  %v654_v29 = vld [vmem:[#allocation2 + $0x170] sm:$0xff] }
  0xdb   :  { %v744_v32 = vrot.slane %v654_v29, 1  ;;  %v1019_v37 = vrot.slane %v654_v29, 2 }
  0xdd   :  { %813 = vperm.xlu0 %15311, %v724_v40   ;;  %v745_v34 = vsel %vm699_vm5, %v742_v25, %v744_v32  ;;  %v1021_v40 = vrot.slane %v655_v33, 2 }
  0xde   :  { %463 = vperm.xlu1 %15312, %v643_v35   ;;  %v746_v35 = vrot.slane %v655_v33, 1 }
  0xe1   :  { %817 = vperm.xlu0 %15311, %v726_v43   ;;  %v1020_v43 = vsel %vm974_vm6, %v1017_v28, %v1019_v37 }
  0xe2   :  { %1088 = vperm.xlu1 %15312, %v999_v46   ;;  %v748_v46 = vrot.slane %v656_v41, 1 }
  0xe5   :  { %1092 = vperm.xlu0 %15311, %v1001_v47   ;;  %v15931_v47 = vld [vmem:[#allocation2 + $0x1a0] sm:$0xff] }
  0xe6   :  { %468 = vperm.xlu1 %15312, %v644_v39   ;;  %v747_v39 = vsel %vm699_vm5, %v744_v32, %v746_v35  ;;  %v750_v54 = vrot.slane %v15931_v47, 1 }
  0xe8   :  { %v751_v63 = vsel %vm699_vm5, %v748_v46, %v750_v54 }
  0xe9   :  { %821 = vperm.xlu0 %15311, %v728_v50   ;;  %v15935_v50 = vld [vmem:[#allocation5 + $0x1] ss:$0 sm:$0xff] }
  0xea   :  { %473 = vperm.xlu1 %15312, %v645_v45   ;;  %v1022_v45 = vsel %vm974_vm6, %v1019_v37, %v1021_v40 }
  0xed   :  { %825 = vperm.xlu0 %15311, %v730_v53   ;;  %v749_v53 = vsel %vm699_vm5, %v746_v35, %v748_v46 }
  0xee   :  { %1096 = vperm.xlu1 %15312, %v1003_v56  }
  0xf1   :  { %1100 = vperm.xlu0 %15311, %v1005_v58   ;;  %v1023_v58 = vrot.slane %v656_v41, 2 }
  0xf2   :  { %478 = vperm.xlu1 %15312, %v646_v49  }
  0xf3   :  { %v1024_v6 = vsel %vm974_vm6, %v1021_v40, %v1023_v58 }
  0xf5   :  { %829 = vperm.xlu0 %15311, %v732_v61   ;;  %v15944_v61 = vld [vmem:[#allocation13] ss:$0 sm:$0xff] }
  0xf6   :  { %1104 = vperm.xlu1 %15312, %v1007_v0   ;;  %v1025_v0 = vrot.slane %v15931_v47, 2 }
  0xf9   :  { %483 = vperm.xlu0 %15311, %v384_v4   ;;  %v658_v4 = vld [vmem:[#allocation2 + $0x1b0] sm:$0xff] }
  0xfa   :  { %488 = vperm.xlu1 %15312, %v385_v62   ;;  %v752_v10 = vrot.slane %v658_v4, 1 }
  0xfc   :  { %v753_v22 = vsel %vm699_vm5, %v750_v54, %v752_v10 }
  0xfd   :  { %833 = vperm.xlu0 %15311, %v735_v9   ;;  %v1026_v9 = vsel %vm974_vm6, %v1023_v58, %v1025_v0 }
  0xfe   :  { %837 = vperm.xlu1 %15312, %v737_v11  }
 0x101   :  { %493 = vperm.xlu0 %15311, %v650_v2  }
 0x102   :  { %841 = vperm.xlu1 %15312, %v739_v15   ;;  %v15954_v15 = vld [vmem:[#allocation2 + $0x1c0] sm:$0xff] }
 0x103   :  { %v1029_v37 = vrot.slane %v15954_v15, 2 }
 0x105   :  { %1108 = vperm.xlu0 %15311, %v1010_v17  }
 0x106   :  { %1112 = vperm.xlu1 %15312, %v1012_v20  }
 0x109   :  { %1116 = vperm.xlu0 %15311, %v1014_v21  }
 0x10a   :  { %498 = vperm.xlu1 %15312, %v651_v8  }
 0x10d   :  { %845 = vperm.xlu0 %15311, %v741_v24  }
 0x10e   :  { %503 = vperm.xlu1 %15312, %v652_v19  }
 0x111   :  { %849 = vperm.xlu0 %15311, %v743_v27  }
 0x112   :  { %1120 = vperm.xlu1 %15312, %v1016_v30  }
 0x115   :  { %1124 = vperm.xlu0 %15311, %v1018_v31  }
 0x116   :  { %508 = vperm.xlu1 %15312, %v653_v23   ;;  %v754_v23 = vrot.slane %v15954_v15, 1 }
 0x118   :  { %v404_v36 = vpop.permute.xlu0 %403 }
 0x119   :  { %853 = vperm.xlu0 %15311, %v745_v34   ;;  %v15924_v38 = vpop.permute.xlu1 %418  ;;  %v567_v55 = vmul.f32 %v15933_v48, %v404_v36  ;;  %v755_v36 = vsel %vm699_vm5, %v752_v10, %v754_v23 }
 0x11a   :  { %513 = vperm.xlu1 %15312, %v654_v29   ;;  %v1027_v29 = vrot.slane %v658_v4, 2  ;;  %v570_v30 = vmul.f32 %v15933_v48, %v15924_v38 }
 0x11c   :  { %v409_v42 = vpop.permute.xlu0 %408 }
 0x11d   :  { %857 = vperm.xlu0 %15311, %v747_v39   ;;  %v15928_v44 = vpop.permute.xlu1 %423  ;;  %v568_v17 = vmul.f32 %v15933_v48, %v409_v42  ;;  %v15974_v42 = vld [vmem:[#allocation2 + $0x1d0] sm:$0xff] }
 0x11e   :  { %1128 = vperm.xlu1 %15312, %v1020_v43   ;;  %v571_v34 = vmul.f32 %v15933_v48, %v15928_v44  ;;  %v756_v54 = vrot.slane %v15974_v42, 1 }
 0x120   :  { %v414_v49 = vpop.permute.xlu0 %413 }
 0x121   :  { %1132 = vperm.xlu0 %15311, %v1022_v45   ;;  %v770_v51 = vpop.permute.xlu1 %769  ;;  %v569_v11 = vmul.f32 %v15933_v48, %v414_v49  ;;  %v1028_v45 = vsel %vm974_vm6, %v1025_v0, %v1027_v29 }
 0x122   :  { %v902_v56 = vmul.f32 %v15935_v50, %v770_v51  ;;  %518 = vperm.xlu1 %15312, %v655_v33  }
 0x124   :  { %v1045_v57 = vpop.permute.xlu0 %1044  ;;  %v934_v59 = vadd.f32 %v902_v56, %v567_v55 }
 0x125   :  { %v1177_v60 = vmul.f32 %v15937_v52, %v1045_v57  ;;  %861 = vperm.xlu0 %15311, %v749_v53   ;;  %v774_v62 = vpop.permute.xlu1 %773  ;;  %v1030_v53 = vsel %vm974_vm6, %v1027_v29, %v1029_v37 }
 0x126   :  { %523 = vperm.xlu1 %15312, %v656_v41   ;;  %v903_v13 = vmul.f32 %v15935_v50, %v774_v62  ;;  %v1509_v62 = vld [vmem:[#allocation7] sm:$0xff] }
 0x127   :  { %v1209_v2 = vadd.f32 %v1177_v60, %v934_v59  ;;  %v15983_v59 = vld [vmem:[#allocation2 + $0x1e0] sm:$0xff] }
 0x128   :  { %v1053_v5 = vpop.permute.xlu0 %1052  ;;  %v935_v24 = vadd.f32 %v903_v13, %v568_v17 }
 0x129   :  { %v1248_v7 = vadd.f32 %v15944_v61, %v1209_v2  ;;  %865 = vperm.xlu0 %15311, %v751_v63   ;;  %v778_v8 = vpop.permute.xlu1 %777  ;;  %v1179_v19 = vmul.f32 %v15937_v52, %v1053_v5  ;;  %v1510_v63 = vld [vmem:[#allocation7 + $0x8] sm:$0xff] }
 0x12a   :  { %v904_v14 = vmul.f32 %v15935_v50, %v778_v8  ;;  %1136 = vperm.xlu1 %15312, %v1024_v6   ;;  %v758_v8 = vrot.slane %v15983_v59, 1 }
 0x12b   :  { %v1280_v12 = vmax.f32 %v1248_v7, 0.0  ;;  %v757_v7 = vsel %vm699_vm5, %v754_v23, %v756_v54 }
 0x12c   :  { %v782_v16 = vpop.permute.xlu0 %781  ;;  %v936_v20 = vadd.f32 %v904_v14, %v569_v11  ;;  %v1031_v14 = vrot.slane %v15974_v42, 2 }
 0x12d   :  { %v1344_v18 = vrot.slane %v1280_v12, 7  ;;  %1140 = vperm.xlu0 %15311, %v1026_v9   ;;  %v1049_v21 = vpop.permute.xlu1 %1048  ;;  %v905_v26 = vmul.f32 %v15935_v50, %v782_v16  ;;  %v14382_v9 = vpack.c.bf16 %v1510_v63, %v1509_v62  ;;  %v1033_v16 = vrot.slane %v15983_v59, 2 }
 0x12e   :  { %v1211_v25 = vadd.f32 %v1179_v19, %v936_v20  ;;  %v1178_v27 = vmul.f32 %v15937_v52, %v1049_v21  ;;  %528 = vperm.xlu1 %15312, %v15931_v47  }
 0x12f   :  { %1441 = vst.msk [vmem:[#allocation3] sm:$0xfe] %vm1440_vm7, %v1344_v18  ;;  %v937_v40 = vadd.f32 %v905_v26, %v570_v30  ;;  %14383 = vmatprep.subr.bf16.mxu0 %v14382_v9  ;;  %v1032_v30 = vsel %vm974_vm6, %v1029_v37, %v1031_v14 }
 0x130   :  { %v786_v28 = vpop.permute.xlu0 %785  ;;  %v1250_v31 = vadd.f32 %v15944_v61, %v1211_v25  ;;  %v1210_v32 = vadd.f32 %v1178_v27, %v935_v24 }
 0x131   :  { %v906_v33 = vmul.f32 %v15935_v50, %v786_v28  ;;  %869 = vperm.xlu0 %15311, %v753_v22   ;;  %v1057_v35 = vpop.permute.xlu1 %1056  ;;  %v759_v22 = vsel %vm699_vm5, %v756_v54, %v758_v8  ;;  %v16005_v28 = vld [vmem:[#allocation2 + $0x1f0] sm:$0xff] }
 0x132   :  { %v1282_v39 = vmax.f32 %v1250_v31, 0.0  ;;  %v1249_v41 = vadd.f32 %v15944_v61, %v1210_v32  ;;  %v1180_v38 = vmul.f32 %v15937_v52, %v1057_v35  ;;  %533 = vperm.xlu1 %15312, %v658_v4   ;;  %v1034_v35 = vsel %vm974_vm6, %v1031_v14, %v1033_v16 }
 0x133   :  { %v938_v47 = vadd.f32 %v906_v33, %v571_v34  ;;  %v760_v37 = vrot.slane %v16005_v28, 1 }
 0x134   :  { %v1061_v43 = vpop.permute.xlu0 %1060  ;;  %v1281_v46 = vmax.f32 %v1249_v41, 0.0  ;;  %v1212_v44 = vadd.f32 %v1180_v38, %v937_v40  ;;  %v1347_v55 = vrot.slane %v1282_v39, 7 }
 0x135   :  { %v1181_v49 = vmul.f32 %v15937_v52, %v1061_v43  ;;  %873 = vperm.xlu0 %15311, %v755_v36   ;;  %v429_v51 = vpop.permute.xlu1 %428  ;;  %v16023_v43 = vld [vmem:[#allocation2 + $0x200] sm:$0xff] }
 0x136   :  { %v1345_v56 = vrot.slane %v1281_v46, 7  ;;  %v1251_v57 = vadd.f32 %v15944_v61, %v1212_v44  ;;  %1144 = vperm.xlu1 %15312, %v1028_v45   ;;  %v572_v19 = vmul.f32 %v15933_v48, %v429_v51  ;;  %v1511_v27 = vld [vmem:[#allocation3] sm:$0xfe] }
 0x137   :  { %v1213_v58 = vadd.f32 %v1181_v49, %v938_v47  ;;  %v1549_v40 = vrot.slane %v1511_v27, 1 }
 0x138   :  { %v790_v60 = vpop.permute.xlu0 %789  ;;  %v1346_v0 = vsel %vm234_vm2, %v1344_v18, %v1345_v56  ;;  %v1348_v2 = vsel %vm234_vm2, %v1345_v56, %v1347_v55  ;;  %v1283_v4 = vmax.f32 %v1251_v57, 0.0  ;;  %v761_v56 = vsel %vm699_vm5, %v758_v8, %v760_v37 }
 0x139   :  { %v1252_v5 = vadd.f32 %v15944_v61, %v1213_v58  ;;  %1148 = vperm.xlu0 %15311, %v1030_v53   ;;  %1443 = vst.msk [vmem:[#allocation3 + $0x10] sm:$0xff] %vm1442_vm8, %v1346_v0  ;;  %1444 = vst.msk [vmem:[#allocation3 + $0x20] sm:$0xff] %vm1442_vm8, %v1348_v2  ;;  %v434_v6 = vpop.permute.xlu1 %433  ;;  %v907_v12 = vmul.f32 %v15935_v50, %v790_v60  ;;  %v762_v57 = vrot.slane %v16023_v43, 1 }
 0x13a   :  { %v1349_v10 = vrot.slane %v1283_v4, 7  ;;  %538 = vperm.xlu1 %15312, %v15954_v15   ;;  %v573_v25 = vmul.f32 %v15933_v48, %v434_v6 }
 0x13b   :  { %v1284_v11 = vmax.f32 %v1252_v5, 0.0  ;;  %v939_v24 = vadd.f32 %v907_v12, %v572_v19  ;;  %v1035_v5 = vrot.slane %v16005_v28, 2  ;;  %v763_v12 = vsel %vm699_vm5, %v760_v37, %v762_v57  ;;  %v664_v19 = vld [vmem:[#allocation2 + $0x210] sm:$0x1] }
 0x13c   :  { %v794_v13 = vpop.permute.xlu0 %793  ;;  %v1350_v17 = vsel %vm234_vm2, %v1347_v55, %v1349_v10 }
 0x13d   :  { %v1351_v18 = vrot.slane %v1284_v11, 7  ;;  %v908_v20 = vmul.f32 %v15935_v50, %v794_v13  ;;  %877 = vperm.xlu0 %15311, %v757_v7   ;;  %1445 = vst.msk [vmem:[#allocation3 + $0x30] sm:$0xff] %vm1442_vm8, %v1350_v17  ;;  %v1065_v21 = vpop.permute.xlu1 %1064  ;;  %v1037_v13 = vrot.slane %v16023_v43, 2 }
 0x13e   :  { %v1182_v26 = vmul.f32 %v15937_v52, %v1065_v21  ;;  %543 = vperm.xlu1 %15312, %v15974_v42   ;;  %v1036_v21 = vsel %vm974_vm6, %v1033_v16, %v1035_v5 }
 0x13f   :  { %v1352_v23 = vsel %vm234_vm2, %v1349_v10, %v1351_v18  ;;  %v940_v31 = vadd.f32 %v908_v20, %v573_v25  ;;  %v969_v25 = vld [vmem:[#allocation2 + $0x210] sm:$0x3]  ;;  %v1038_v27 = vsel %vm974_vm6, %v1035_v5, %v1037_v13 }
 0x140   :  { %1446 = vst.msk [vmem:[#allocation3 + $0x40] sm:$0xff] %vm1442_vm8, %v1352_v23  ;;  %v1069_v29 = vpop.permute.xlu0 %1068  ;;  %v1214_v32 = vadd.f32 %v1182_v26, %v939_v24  ;;  %v16012_v34 = vld [vmem:[#allocation3 + $0x10] sm:$0xff]  ;;  %v16017_v36 = vld [vmem:[#allocation3 + $0x20] sm:$0xff] }
 0x141   :  { %v1183_v33 = vmul.f32 %v15937_v52, %v1069_v29  ;;  %881 = vperm.xlu0 %15311, %v759_v22   ;;  %v439_v39 = vpop.permute.xlu1 %438  ;;  %v1550_v41 = vrot.slane %v16012_v34, 1  ;;  %v1552_v15 = vrot.slane %v16017_v36, 1 }
 0x142   :  { %v1253_v38 = vadd.f32 %v15944_v61, %v1214_v32  ;;  %1152 = vperm.xlu1 %15312, %v1032_v30   ;;  %v574_v63 = vmul.f32 %v15933_v48, %v439_v39  ;;  %v1039_v32 = vrot.slane %v969_v25, 2 }
 0x143   :  { %v1215_v42 = vadd.f32 %v1183_v33, %v940_v31  ;;  %v1551_v45 = vsel %vm699_vm5, %v1549_v40, %v1550_v41  ;;  %v1553_v47 = vsel %vm699_vm5, %v1550_v41, %v1552_v15 }
 0x144   :  { %v798_v46 = vpop.permute.xlu0 %797  ;;  %v1285_v44 = vmax.f32 %v1253_v38, 0.0  ;;  %13434 = vmatprep.mubr.msk.f32.mxu0 %vm1442_vm8, %v1551_v45  ;;  %v16029_v51 = vld [vmem:[#allocation3 + $0x30] sm:$0xff] }
 0x145   :  { %v1254_v49 = vadd.f32 %v15944_v61, %v1215_v42  ;;  %1156 = vperm.xlu0 %15311, %v1034_v35   ;;  %v909_v53 = vmul.f32 %v15935_v50, %v798_v46  ;;  %v444_v54 = vpop.permute.xlu1 %443  ;;  %13435 = vmatmul.mubr.msk.f32.vlgmr.msra.gmra.mrb[0].mxu0 %vm1442_vm8, %v1553_v47  ;;  %v1554_v55 = vrot.slane %v16029_v51, 1  ;;  %v1040_v47 = vsel %vm974_vm6, %v1037_v13, %v1039_v32 }
 0x146   :  { %v1353_v58 = vrot.slane %v1285_v44, 7  ;;  %548 = vperm.xlu1 %15312, %v15983_v59   ;;  %14385 = vmatpush3.bf16.msra.mxu0 %v14382_v9  ;;  %v575_v17 = vmul.f32 %v15933_v48, %v444_v54 }
 0x147   :  { %v1286_v60 = vmax.f32 %v1254_v49, 0.0  ;;  %v16037_v62 = vld [vmem:[#allocation3 + $0x40] sm:$0xff]  ;;  %v1555_v0 = vsel %vm699_vm5, %v1552_v15, %v1554_v55  ;;  %v941_v9 = vadd.f32 %v909_v53, %v574_v63 }
 0x148   :  { %v802_v2 = vpop.permute.xlu0 %801  ;;  %v1556_v4 = vrot.slane %v16037_v62, 1  ;;  %v1354_v6 = vsel %vm234_vm2, %v1351_v18, %v1353_v58  ;;  %13437 = vmatprep.mubr.msk.f32.mxu0 %vm1442_vm8, %v1555_v0 }
 0x149   :  { %v1355_v7 = vrot.slane %v1286_v60, 7  ;;  %v910_v8 = vmul.f32 %v15935_v50, %v802_v2  ;;  %885 = vperm.xlu0 %15311, %v761_v56   ;;  %1447 = vst.msk [vmem:[#allocation3 + $0x50] sm:$0xff] %vm1442_vm8, %v1354_v6  ;;  %v1073_v10 = vpop.permute.xlu1 %1072 }
 0x14a   :  { %v1557_v11 = vsel %vm699_vm5, %v1554_v55, %v1556_v4  ;;  %v1184_v18 = vmul.f32 %v15937_v52, %v1073_v10  ;;  %553 = vperm.xlu1 %15312, %v16005_v28   ;;  %v764_v28 = vrot.slane %v664_v19, 1 }
 0x14b   :  { %v1356_v14 = vsel %vm234_vm2, %v1353_v58, %v1355_v7  ;;  %13438 = vmatmul.mubr.msk.f32.gmra.mrb[2].mxu0 %vm1442_vm8, %v1557_v11  ;;  %v942_v22 = vadd.f32 %v910_v8, %v575_v17 }
 0x14c   :  { %1448 = vst.msk [vmem:[#allocation3 + $0x60] sm:$0xff] %vm1442_vm8, %v1356_v14  ;;  %v1077_v20 = vpop.permute.xlu0 %1076  ;;  %v1216_v23 = vadd.f32 %v1184_v18, %v941_v9  ;;  %v765_v41 = vsel %vm699_vm5, %v762_v57, %v764_v28 }
 0x14d   :  { %v1185_v24 = vmul.f32 %v15937_v52, %v1077_v20  ;;  %889 = vperm.xlu0 %15311, %v763_v12   ;;  %v449_v26 = vpop.permute.xlu1 %448 }
 0x14e   :  { %v1255_v29 = vadd.f32 %v15944_v61, %v1216_v23  ;;  %1160 = vperm.xlu1 %15312, %v1036_v21   ;;  %v576_v42 = vmul.f32 %v15933_v48, %v449_v26 }
 0x14f   :  { %v1217_v30 = vadd.f32 %v1185_v24, %v942_v22 }
 0x150   :  { %v806_v31 = vpop.permute.xlu0 %805  ;;  %v1287_v33 = vmax.f32 %v1255_v29, 0.0  ;;  %v16063_v16 = vld [vmem:[#allocation3 + $0x50] sm:$0xff] }
 0x151   :  { %v1256_v59 = vadd.f32 %v15944_v61, %v1217_v30  ;;  %1164 = vperm.xlu0 %15311, %v1038_v27   ;;  %v911_v35 = vmul.f32 %v15935_v50, %v806_v31  ;;  %v454_v39 = vpop.permute.xlu1 %453  ;;  %v1558_v40 = vrot.slane %v16063_v16, 1 }
 0x152   :  { %v1357_v15 = vrot.slane %v1287_v33, 7  ;;  %558 = vperm.xlu1 %15312, %v16023_v43   ;;  %v577_v58 = vmul.f32 %v15933_v48, %v454_v39 }
 0x153   :  { %v1288_v37 = vmax.f32 %v1256_v59, 0.0  ;;  %v16069_v38 = vld [vmem:[#allocation3 + $0x60] sm:$0xff]  ;;  %v1559_v45 = vsel %vm699_vm5, %v1556_v4, %v1558_v40  ;;  %v943_v43 = vadd.f32 %v911_v35, %v576_v42 }
 0x154   :  { %v810_v46 = vpop.permute.xlu0 %809  ;;  %v1560_v44 = vrot.slane %v16069_v38, 1  ;;  %v1358_v49 = vsel %vm234_vm2, %v1355_v7, %v1357_v15  ;;  %13440 = vmatprep.mubr.msk.f32.mxu0 %vm1442_vm8, %v1559_v45 }
 0x155   :  { %v1359_v53 = vrot.slane %v1288_v37, 7  ;;  %v912_v54 = vmul.f32 %v15935_v50, %v810_v46  ;;  %893 = vperm.xlu0 %15311, %v765_v41   ;;  %1449 = vst.msk [vmem:[#allocation3 + $0x70] sm:$0xff] %vm1442_vm8, %v1358_v49  ;;  %v1081_v55 = vpop.permute.xlu1 %1080 }
 0x156   :  { %v1561_v56 = vsel %vm699_vm5, %v1558_v40, %v1560_v44  ;;  %v1186_v60 = vmul.f32 %v15937_v52, %v1081_v55  ;;  %1168 = vperm.xlu1 %15312, %v1040_v47  }
 0x157   :  { %v1360_v57 = vsel %vm234_vm2, %v1357_v15, %v1359_v53  ;;  %13441 = vmatmul.mubr.msk.f32.gmra.mrb[4].mxu0 %vm1442_vm8, %v1561_v56  ;;  %v944_v0 = vadd.f32 %v912_v54, %v577_v58 }
 0x158   :  { %1450 = vst.msk [vmem:[#allocation3 + $0x80] sm:$0xff] %vm1442_vm8, %v1360_v57  ;;  %v1085_v63 = vpop.permute.xlu0 %1084  ;;  %v1218_v2 = vadd.f32 %v1186_v60, %v943_v43 }
 0x159   :  { %v1187_v4 = vmul.f32 %v15937_v52, %v1085_v63  ;;  %v459_v5 = vpop.permute.xlu1 %458 }
 0x15a   :  { %v1257_v6 = vadd.f32 %v15944_v61, %v1218_v2  ;;  %v578_v25 = vmul.f32 %v15933_v48, %v459_v5 }
 0x15b   :  { %v1219_v7 = vadd.f32 %v1187_v4, %v944_v0 }
 0x15c   :  { %v814_v8 = vpop.permute.xlu0 %813  ;;  %v1289_v9 = vmax.f32 %v1257_v6, 0.0  ;;  %v16088_v11 = vld [vmem:[#allocation3 + $0x70] sm:$0xff] }
 0x15d   :  { %v1258_v10 = vadd.f32 %v15944_v61, %v1219_v7  ;;  %v464_v12 = vpop.permute.xlu1 %463  ;;  %v1562_v13 = vrot.slane %v16088_v11, 1  ;;  %v913_v18 = vmul.f32 %v15935_v50, %v814_v8 }
 0x15e   :  { %v1361_v14 = vrot.slane %v1289_v9, 7  ;;  %v579_v31 = vmul.f32 %v15933_v48, %v464_v12  ;;  %v2273_v9 = vld [vmem:[#allocation7 + $0x20] sm:$0xff] }
 0x15f   :  { %v1290_v17 = vmax.f32 %v1258_v10, 0.0  ;;  %v16092_v19 = vld [vmem:[#allocation3 + $0x80] sm:$0xff]  ;;  %v1563_v20 = vsel %vm699_vm5, %v1560_v44, %v1562_v13  ;;  %v945_v30 = vadd.f32 %v913_v18, %v578_v25  ;;  %v2274_v10 = vld [vmem:[#allocation7 + $0x28] sm:$0xff] }
 0x160   :  { %v818_v21 = vpop.permute.xlu0 %817  ;;  %v1564_v22 = vrot.slane %v16092_v19, 1  ;;  %v1362_v23 = vsel %vm234_vm2, %v1359_v53, %v1361_v14  ;;  %13443 = vmatprep.mubr.msk.f32.mxu0 %vm1442_vm8, %v1563_v20 }
 0x161   :  { %v1363_v24 = vrot.slane %v1290_v17, 7  ;;  %v914_v26 = vmul.f32 %v15935_v50, %v818_v21  ;;  %1451 = vst.msk [vmem:[#allocation3 + $0x90] sm:$0xff] %vm1442_vm8, %v1362_v23  ;;  %v1089_v27 = vpop.permute.xlu1 %1088 }
 0x162   :  { %v1565_v28 = vsel %vm699_vm5, %v1562_v13, %v1564_v22  ;;  %v1188_v32 = vmul.f32 %v15937_v52, %v1089_v27  ;;  %v16129_v13 = vpack.c.bf16 %v2274_v10, %v2273_v9 }
 0x163   :  { %v1364_v29 = vsel %vm234_vm2, %v1361_v14, %v1363_v24  ;;  %13444 = vmatmul.mubr.msk.f32.gmra.mrb[6].mxu0 %vm1442_vm8, %v1565_v28  ;;  %v946_v59 = vadd.f32 %v914_v26, %v579_v31 }
 0x164   :  { %1452 = vst.msk [vmem:[#allocation3 + $0xa0] sm:$0xff] %vm1442_vm8, %v1364_v29  ;;  %v1093_v33 = vpop.permute.xlu0 %1092  ;;  %v1220_v35 = vadd.f32 %v1188_v32, %v945_v30  ;;  %14387 = vmatprep.subr.bf16.mxu0 %v16129_v13 }
 0x165   :  { %v1189_v39 = vmul.f32 %v15937_v52, %v1093_v33  ;;  %v469_v40 = vpop.permute.xlu1 %468 }
 0x166   :  { %v1259_v41 = vadd.f32 %v15944_v61, %v1220_v35  ;;  %v580_v63 = vmul.f32 %v15933_v48, %v469_v40 }
 0x167   :  { %v1221_v15 = vadd.f32 %v1189_v39, %v946_v59 }
 0x168   :  { %v822_v37 = vpop.permute.xlu0 %821  ;;  %v1291_v42 = vmax.f32 %v1259_v41, 0.0  ;;  %v16110_v46 = vld [vmem:[#allocation3 + $0x90] sm:$0xff] }
 0x169   :  { %v1260_v45 = vadd.f32 %v15944_v61, %v1221_v15  ;;  %v474_v47 = vpop.permute.xlu1 %473  ;;  %v1566_v44 = vrot.slane %v16110_v46, 1  ;;  %v915_v54 = vmul.f32 %v15935_v50, %v822_v37 }
 0x16a   :  { %v1365_v49 = vrot.slane %v1291_v42, 7  ;;  %v581_v7 = vmul.f32 %v15933_v48, %v474_v47 }
 0x16b   :  { %v1292_v53 = vmax.f32 %v1260_v45, 0.0  ;;  %v16114_v43 = vld [vmem:[#allocation3 + $0xa0] sm:$0xff]  ;;  %v1567_v55 = vsel %vm699_vm5, %v1564_v22, %v1566_v44  ;;  %v947_v6 = vadd.f32 %v915_v54, %v580_v63 }
 0x16c   :  { %v826_v56 = vpop.permute.xlu0 %825  ;;  %v1568_v57 = vrot.slane %v16114_v43, 1  ;;  %v1366_v58 = vsel %vm234_vm2, %v1363_v24, %v1365_v49  ;;  %13446 = vmatprep.mubr.msk.f32.mxu0 %vm1442_vm8, %v1567_v55 }
 0x16d   :  { %v1367_v60 = vrot.slane %v1292_v53, 7  ;;  %v916_v0 = vmul.f32 %v15935_v50, %v826_v56  ;;  %1453 = vst.msk [vmem:[#allocation3 + $0xb0] sm:$0xff] %vm1442_vm8, %v1366_v58  ;;  %v1097_v2 = vpop.permute.xlu1 %1096 }
 0x16e   :  { %v1569_v4 = vsel %vm699_vm5, %v1566_v44, %v1568_v57  ;;  %v1190_v8 = vmul.f32 %v15937_v52, %v1097_v2 }
 0x16f   :  { %v1368_v5 = vsel %vm234_vm2, %v1365_v49, %v1367_v60  ;;  %13447 = vmatmul.mubr.msk.f32.gmra.mrb[8].mxu0 %vm1442_vm8, %v1569_v4  ;;  %v948_v14 = vadd.f32 %v916_v0, %v581_v7 }
 0x170   :  { %1454 = vst.msk [vmem:[#allocation3 + $0xc0] sm:$0xff] %vm1442_vm8, %v1368_v5  ;;  %v1101_v12 = vpop.permute.xlu0 %1100  ;;  %v1222_v17 = vadd.f32 %v1190_v8, %v947_v6 }
 0x171   :  { %v1191_v18 = vmul.f32 %v15937_v52, %v1101_v12  ;;  %v479_v20 = vpop.permute.xlu1 %478 }
 0x172   :  { %v1261_v21 = vadd.f32 %v15944_v61, %v1222_v17  ;;  %v582_v26 = vmul.f32 %v15933_v48, %v479_v20 }
 0x173   :  { %v1223_v22 = vadd.f32 %v1191_v18, %v948_v14 }
 0x174   :  { %v830_v23 = vpop.permute.xlu0 %829  ;;  %v1293_v24 = vmax.f32 %v1261_v21, 0.0  ;;  %v16137_v28 = vld [vmem:[#allocation3 + $0xb0] sm:$0xff] }
 0x175   :  { %v1262_v25 = vadd.f32 %v15944_v61, %v1223_v22  ;;  %v917_v27 = vmul.f32 %v15935_v50, %v830_v23  ;;  %v1105_v29 = vpop.permute.xlu1 %1104  ;;  %v1570_v30 = vrot.slane %v16137_v28, 1 }
 0x176   :  { %v1369_v31 = vrot.slane %v1293_v24, 7  ;;  %v1192_v59 = vmul.f32 %v15937_v52, %v1105_v29 }
 0x177   :  { %v1294_v32 = vmax.f32 %v1262_v25, 0.0  ;;  %v949_v33 = vadd.f32 %v917_v27, %v582_v26  ;;  %v16141_v35 = vld [vmem:[#allocation3 + $0xc0] sm:$0xff]  ;;  %v1571_v39 = vsel %vm699_vm5, %v1568_v57, %v1570_v30 }
 0x178   :  { %v484_v40 = vpop.permute.xlu0 %483  ;;  %v1572_v41 = vrot.slane %v16141_v35, 1  ;;  %v1370_v15 = vsel %vm234_vm2, %v1367_v60, %v1369_v31  ;;  %13449 = vmatprep.mubr.msk.f32.mxu0 %vm1442_vm8, %v1571_v39 }
 0x179   :  { %v1371_v37 = vrot.slane %v1294_v32, 7  ;;  %v1224_v42 = vadd.f32 %v1192_v59, %v949_v33  ;;  %1455 = vst.msk [vmem:[#allocation3 + $0xd0] sm:$0xff] %vm1442_vm8, %v1370_v15  ;;  %v489_v45 = vpop.permute.xlu1 %488  ;;  %v583_v4 = vmul.f32 %v15933_v48, %v484_v40 }
 0x17a   :  { %v1573_v47 = vsel %vm699_vm5, %v1570_v30, %v1572_v41  ;;  %v584_v14 = vmul.f32 %v15933_v48, %v489_v45 }
 0x17b   :  { %v1372_v44 = vsel %vm234_vm2, %v1369_v31, %v1371_v37  ;;  %v1263_v49 = vadd.f32 %v15944_v61, %v1224_v42  ;;  %13450 = vmatmul.mubr.msk.f32.gmra.mrb[10].mxu0 %vm1442_vm8, %v1573_v47 }
 0x17c   :  { %1456 = vst.msk [vmem:[#allocation3 + $0xe0] sm:$0xff] %vm1442_vm8, %v1372_v44  ;;  %v834_v53 = vpop.permute.xlu0 %833 }
 0x17d   :  { %v1295_v54 = vmax.f32 %v1263_v49, 0.0  ;;  %v838_v55 = vpop.permute.xlu1 %837  ;;  %v918_v60 = vmul.f32 %v15935_v50, %v834_v53 }
 0x17e   :  { %v919_v5 = vmul.f32 %v15935_v50, %v838_v55 }
 0x17f   :  { %v1373_v56 = vrot.slane %v1295_v54, 7  ;;  %v950_v17 = vadd.f32 %v918_v60, %v583_v4 }
 0x180   :  { %v494_v57 = vpop.permute.xlu0 %493  ;;  %v16156_v63 = vld [vmem:[#allocation3 + $0xd0] sm:$0xff]  ;;  %v951_v22 = vadd.f32 %v919_v5, %v584_v14 }
 0x181   :  { %v1374_v58 = vsel %vm234_vm2, %v1371_v37, %v1373_v56  ;;  %1459 = vst.msk [vmem:[#allocation3 + $0x100] sm:$0x1] %vm1458_vm9, %v1373_v56  ;;  %v842_v0 = vpop.permute.xlu1 %841  ;;  %v1574_v2 = vrot.slane %v16156_v63, 1  ;;  %v585_v7 = vmul.f32 %v15933_v48, %v494_v57 }
 0x182   :  { %1457 = vst.msk [vmem:[#allocation3 + $0xf0] sm:$0xff] %vm1442_vm8, %v1374_v58  ;;  %v920_v8 = vmul.f32 %v15935_v50, %v842_v0 }
 0x183   :  { %v16162_v6 = vld [vmem:[#allocation3 + $0xe0] sm:$0xff]  ;;  %v1575_v9 = vsel %vm699_vm5, %v1572_v41, %v1574_v2 }
 0x184   :  { %v1109_v10 = vpop.permute.xlu0 %1108  ;;  %v1576_v12 = vrot.slane %v16162_v6, 1  ;;  %13452 = vmatprep.mubr.msk.f32.mxu0 %vm1442_vm8, %v1575_v9  ;;  %v952_v25 = vadd.f32 %v920_v8, %v585_v7 }
 0x185   :  { %v1193_v18 = vmul.f32 %v15937_v52, %v1109_v10  ;;  %v1113_v20 = vpop.permute.xlu1 %1112 }
 0x186   :  { %v1577_v21 = vsel %vm699_vm5, %v1574_v2, %v1576_v12  ;;  %v1194_v24 = vmul.f32 %v15937_v52, %v1113_v20 }
 0x187   :  { %v1225_v23 = vadd.f32 %v1193_v18, %v950_v17  ;;  %13453 = vmatmul.mubr.msk.f32.gmra.mrb[12].mxu0 %vm1442_vm8, %v1577_v21 }
 0x188   :  { %v1117_v26 = vpop.permute.xlu0 %1116  ;;  %v1512_v27 = vld [vmem:[#allocation3 + $0x100] sm:$0x1]  ;;  %v1226_v30 = vadd.f32 %v1194_v24, %v951_v22 }
 0x189   :  { %v1264_v29 = vadd.f32 %v15944_v61, %v1225_v23  ;;  %v1195_v31 = vmul.f32 %v15937_v52, %v1117_v26  ;;  %v16176_v32 = vld [vmem:[#allocation3 + $0xf0] sm:$0xff]  ;;  %v1580_v33 = vrot.slane %v1512_v27, 1  ;;  %v499_v59 = vpop.permute.xlu1 %498 }
 0x18a   :  { %v1578_v39 = vrot.slane %v16176_v32, 1  ;;  %v1265_v41 = vadd.f32 %v15944_v61, %v1226_v30  ;;  %v586_v0 = vmul.f32 %v15933_v48, %v499_v59 }
 0x18b   :  { %v1296_v40 = vmax.f32 %v1264_v29, 0.0  ;;  %v1227_v15 = vadd.f32 %v1195_v31, %v952_v25 }
 0x18c   :  { %v846_v37 = vpop.permute.xlu0 %845  ;;  %v1579_v42 = vsel %vm699_vm5, %v1576_v12, %v1578_v39  ;;  %v1581_v45 = vsel %vm699_vm5, %v1578_v39, %v1580_v33  ;;  %v1297_v44 = vmax.f32 %v1265_v41, 0.0 }
 0x18d   :  { %v1375_v47 = vrot.slane %v1296_v40, 7  ;;  %v1266_v49 = vadd.f32 %v15944_v61, %v1227_v15  ;;  %13455 = vmatprep.mubr.msk.f32.mxu0 %vm1442_vm8, %v1579_v42  ;;  %v504_v53 = vpop.permute.xlu1 %503  ;;  %v921_v56 = vmul.f32 %v15935_v50, %v846_v37 }
 0x18e   :  { %13456 = vmatmul.mubr.msk.f32.gmra.mrb[14].mxu0 %vm1442_vm8, %v1581_v45  ;;  %v1376_v54 = vrot.slane %v1297_v44, 7  ;;  %v587_v8 = vmul.f32 %v15933_v48, %v504_v53 }
 0x18f   :  { %1460 = vst.msk [vmem:[#allocation3 + $0x110] sm:$0xfe] %vm1440_vm7, %v1375_v47  ;;  %v1298_v55 = vmax.f32 %v1266_v49, 0.0  ;;  %v953_v7 = vadd.f32 %v921_v56, %v586_v0 }
 0x190   :  { %v850_v57 = vpop.permute.xlu0 %849  ;;  %v1377_v58 = vsel %vm234_vm2, %v1375_v47, %v1376_v54 }
 0x191   :  { %v1378_v60 = vrot.slane %v1298_v55, 7  ;;  %v922_v2 = vmul.f32 %v15935_v50, %v850_v57  ;;  %1461 = vst.msk [vmem:[#allocation3 + $0x120] sm:$0xff] %vm1442_vm8, %v1377_v58  ;;  %v1121_v4 = vpop.permute.xlu1 %1120 }
 0x192   :  { %v1196_v9 = vmul.f32 %v15937_v52, %v1121_v4 }
 0x193   :  { %v1379_v5 = vsel %vm234_vm2, %v1376_v54, %v1378_v60  ;;  %v954_v12 = vadd.f32 %v922_v2, %v587_v8 }
 0x194   :  { %1462 = vst.msk [vmem:[#allocation3 + $0x130] sm:$0xff] %vm1442_vm8, %v1379_v5  ;;  %v1125_v10 = vpop.permute.xlu0 %1124  ;;  %v1228_v14 = vadd.f32 %v1196_v9, %v953_v7 }
 0x195   :  { %v1197_v17 = vmul.f32 %v15937_v52, %v1125_v10  ;;  %v509_v18 = vpop.permute.xlu1 %508 }
 0x196   :  { %v1267_v20 = vadd.f32 %v15944_v61, %v1228_v14  ;;  %v1513_v22 = vld [vmem:[#allocation3 + $0x110] sm:$0xfe]  ;;  %v588_v45 = vmul.f32 %v15933_v48, %v509_v18 }
 0x197   :  { %v1229_v21 = vadd.f32 %v1197_v17, %v954_v12  ;;  %v1582_v29 = vrot.slane %v1513_v22, 1 }
 0x198   :  { %v854_v23 = vpop.permute.xlu0 %853  ;;  %v1299_v24 = vmax.f32 %v1267_v20, 0.0  ;;  %v16198_v26 = vld [vmem:[#allocation3 + $0x120] sm:$0xff] }
 0x199   :  { %v1268_v25 = vadd.f32 %v15944_v61, %v1229_v21  ;;  %v514_v27 = vpop.permute.xlu1 %513  ;;  %v1583_v30 = vrot.slane %v16198_v26, 1  ;;  %v923_v59 = vmul.f32 %v15935_v50, %v854_v23 }
 0x19a   :  { %v1380_v31 = vrot.slane %v1299_v24, 7  ;;  %v589_v55 = vmul.f32 %v15933_v48, %v514_v27 }
 0x19b   :  { %v1300_v33 = vmax.f32 %v1268_v25, 0.0  ;;  %v16202_v39 = vld [vmem:[#allocation3 + $0x130] sm:$0xff]  ;;  %v1584_v40 = vsel %vm699_vm5, %v1582_v29, %v1583_v30  ;;  %v955_v54 = vadd.f32 %v923_v59, %v588_v45 }
 0x19c   :  { %v858_v41 = vpop.permute.xlu0 %857  ;;  %v1585_v15 = vrot.slane %v16202_v39, 1  ;;  %v1381_v37 = vsel %vm234_vm2, %v1378_v60, %v1380_v31  ;;  %13458 = vmatprep.mubr.msk.f32.mxu0 %vm1442_vm8, %v1584_v40 }
 0x19d   :  { %v1382_v42 = vrot.slane %v1300_v33, 7  ;;  %v924_v47 = vmul.f32 %v15935_v50, %v858_v41  ;;  %1463 = vst.msk [vmem:[#allocation3 + $0x140] sm:$0xff] %vm1442_vm8, %v1381_v37  ;;  %v1129_v44 = vpop.permute.xlu1 %1128 }
 0x19e   :  { %v1586_v49 = vsel %vm699_vm5, %v1583_v30, %v1585_v15  ;;  %v1198_v56 = vmul.f32 %v15937_v52, %v1129_v44 }
 0x19f   :  { %v1383_v53 = vsel %vm234_vm2, %v1380_v31, %v1382_v42  ;;  %13459 = vmatmul.mubr.msk.f32.gmra.mrb[16].mxu0 %vm1442_vm8, %v1586_v49  ;;  %v956_v58 = vadd.f32 %v924_v47, %v589_v55 }
 0x1a0   :  { %1464 = vst.msk [vmem:[#allocation3 + $0x150] sm:$0xff] %vm1442_vm8, %v1383_v53  ;;  %v1133_v57 = vpop.permute.xlu0 %1132  ;;  %v1230_v60 = vadd.f32 %v1198_v56, %v955_v54 }
 0x1a1   :  { %v1199_v0 = vmul.f32 %v15937_v52, %v1133_v57  ;;  %v519_v2 = vpop.permute.xlu1 %518 }
 0x1a2   :  { %v1269_v4 = vadd.f32 %v15944_v61, %v1230_v60  ;;  %v590_v29 = vmul.f32 %v15933_v48, %v519_v2 }
 0x1a3   :  { %v1231_v5 = vadd.f32 %v1199_v0, %v956_v58 }
 0x1a4   :  { %v862_v7 = vpop.permute.xlu0 %861  ;;  %v1301_v8 = vmax.f32 %v1269_v4, 0.0  ;;  %v16220_v10 = vld [vmem:[#allocation3 + $0x140] sm:$0xff] }
 0x1a5   :  { %v1270_v9 = vadd.f32 %v15944_v61, %v1231_v5  ;;  %v524_v12 = vpop.permute.xlu1 %523  ;;  %v1587_v14 = vrot.slane %v16220_v10, 1  ;;  %v925_v20 = vmul.f32 %v15935_v50, %v862_v7 }
 0x1a6   :  { %v1384_v17 = vrot.slane %v1301_v8, 7  ;;  %v591_v41 = vmul.f32 %v15933_v48, %v524_v12 }
 0x1a7   :  { %v1302_v18 = vmax.f32 %v1270_v9, 0.0  ;;  %v16224_v21 = vld [vmem:[#allocation3 + $0x150] sm:$0xff]  ;;  %v1588_v22 = vsel %vm699_vm5, %v1585_v15, %v1587_v14  ;;  %v957_v40 = vadd.f32 %v925_v20, %v590_v29 }
 0x1a8   :  { %v866_v23 = vpop.permute.xlu0 %865  ;;  %v1589_v24 = vrot.slane %v16224_v21, 1  ;;  %v1385_v25 = vsel %vm234_vm2, %v1382_v42, %v1384_v17  ;;  %13461 = vmatprep.mubr.msk.f32.mxu0 %vm1442_vm8, %v1588_v22 }
 0x1a9   :  { %v1386_v27 = vrot.slane %v1302_v18, 7  ;;  %v926_v30 = vmul.f32 %v15935_v50, %v866_v23  ;;  %1465 = vst.msk [vmem:[#allocation3 + $0x160] sm:$0xff] %vm1442_vm8, %v1385_v25  ;;  %v1137_v31 = vpop.permute.xlu1 %1136 }
 0x1aa   :  { %v1590_v33 = vsel %vm699_vm5, %v1587_v14, %v1589_v24  ;;  %v1200_v15 = vmul.f32 %v15937_v52, %v1137_v31 }
 0x1ab   :  { %v1387_v59 = vsel %vm234_vm2, %v1384_v17, %v1386_v27  ;;  %13462 = vmatmul.mubr.msk.f32.gmra.mrb[18].mxu0 %vm1442_vm8, %v1590_v33  ;;  %v958_v42 = vadd.f32 %v926_v30, %v591_v41 }
 0x1ac   :  { %1466 = vst.msk [vmem:[#allocation3 + $0x170] sm:$0xff] %vm1442_vm8, %v1387_v59  ;;  %v1141_v37 = vpop.permute.xlu0 %1140  ;;  %v1232_v45 = vadd.f32 %v1200_v15, %v957_v40 }
 0x1ad   :  { %v1201_v47 = vmul.f32 %v15937_v52, %v1141_v37  ;;  %v529_v44 = vpop.permute.xlu1 %528 }
 0x1ae   :  { %v1271_v49 = vadd.f32 %v15944_v61, %v1232_v45  ;;  %v592_v17 = vmul.f32 %v15933_v48, %v529_v44 }
 0x1af   :  { %v1233_v53 = vadd.f32 %v1201_v47, %v958_v42 }
 0x1b0   :  { %v870_v54 = vpop.permute.xlu0 %869  ;;  %v1303_v55 = vmax.f32 %v1271_v49, 0.0  ;;  %v16242_v57 = vld [vmem:[#allocation3 + $0x160] sm:$0xff] }
 0x1b1   :  { %v1272_v56 = vadd.f32 %v15944_v61, %v1233_v53  ;;  %v534_v58 = vpop.permute.xlu1 %533  ;;  %v1591_v60 = vrot.slane %v16242_v57, 1  ;;  %v927_v4 = vmul.f32 %v15935_v50, %v870_v54  ;;  %v16267_v49 = vld [vmem:[#allocation5 + $0x1] ss:$0 sm:$0xff] }
 0x1b2   :  { %v1388_v0 = vrot.slane %v1303_v55, 7  ;;  %v593_v25 = vmul.f32 %v15933_v48, %v534_v58 }
 0x1b3   :  { %v1304_v2 = vmax.f32 %v1272_v56, 0.0  ;;  %v16246_v5 = vld [vmem:[#allocation3 + $0x170] sm:$0xff]  ;;  %v1592_v7 = vsel %vm699_vm5, %v1589_v24, %v1591_v60  ;;  %v959_v24 = vadd.f32 %v927_v4, %v592_v17  ;;  %v15315_v17 = vld [vmem:[#allocation5 + $0x2] ss:$0 sm:$0xff] }
 0x1b4   :  { %v874_v8 = vpop.permute.xlu0 %873  ;;  %v1593_v9 = vrot.slane %v16246_v5, 1  ;;  %v1389_v12 = vsel %vm234_vm2, %v1386_v27, %v1388_v0  ;;  %13464 = vmatprep.mubr.msk.f32.mxu0 %vm1442_vm8, %v1592_v7 }
 0x1b5   :  { %v1390_v14 = vrot.slane %v1304_v2, 7  ;;  %v928_v18 = vmul.f32 %v15935_v50, %v874_v8  ;;  %1467 = vst.msk [vmem:[#allocation3 + $0x180] sm:$0xff] %vm1442_vm8, %v1389_v12  ;;  %v1145_v20 = vpop.permute.xlu1 %1144 }
 0x1b6   :  { %v1594_v22 = vsel %vm699_vm5, %v1591_v60, %v1593_v9  ;;  %v1202_v29 = vmul.f32 %v15937_v52, %v1145_v20  ;;  %v15314_v60 = vld [vmem:[#allocation5] ss:$0 sm:$0xff] }
 0x1b7   :  { %v1391_v23 = vsel %vm234_vm2, %v1388_v0, %v1390_v14  ;;  %13465 = vmatmul.mubr.msk.f32.gmra.mrb[20].mxu0 %vm1442_vm8, %v1594_v22  ;;  %v960_v30 = vadd.f32 %v928_v18, %v593_v25  ;;  %v15316_v25 = vld [vmem:[#allocation13] ss:$0 sm:$0xff] }
 0x1b8   :  { %1468 = vst.msk [vmem:[#allocation3 + $0x190] sm:$0xff] %vm1442_vm8, %v1391_v23  ;;  %v1149_v27 = vpop.permute.xlu0 %1148  ;;  %v1234_v31 = vadd.f32 %v1202_v29, %v959_v24 }
 0x1b9   :  { %v1203_v50 = vmul.f32 %v15937_v52, %v1149_v27  ;;  %v539_v33 = vpop.permute.xlu1 %538 }
 0x1ba   :  { %v1273_v59 = vadd.f32 %v15944_v61, %v1234_v31  ;;  %v594_v0 = vmul.f32 %v15314_v60, %v539_v33 }
 0x1bb   :  { %v1235_v40 = vadd.f32 %v1203_v50, %v960_v30 }
 0x1bc   :  { %v878_v41 = vpop.permute.xlu0 %877  ;;  %v1305_v15 = vmax.f32 %v1273_v59, 0.0  ;;  %v16264_v48 = vld [vmem:[#allocation3 + $0x180] sm:$0xff] }
 0x1bd   :  { %v1274_v37 = vadd.f32 %v15944_v61, %v1235_v40  ;;  %v544_v42 = vpop.permute.xlu1 %543  ;;  %v1595_v45 = vrot.slane %v16264_v48, 1  ;;  %v929_v53 = vmul.f32 %v16267_v49, %v878_v41 }
 0x1be   :  { %v1392_v47 = vrot.slane %v1305_v15, 7  ;;  %v595_v12 = vmul.f32 %v15314_v60, %v544_v42 }
 0x1bf   :  { %v1306_v44 = vmax.f32 %v1274_v37, 0.0  ;;  %v16270_v52 = vld [vmem:[#allocation3 + $0x190] sm:$0xff]  ;;  %v1596_v54 = vsel %vm699_vm5, %v1593_v9, %v1595_v45  ;;  %v961_v9 = vadd.f32 %v929_v53, %v594_v0 }
 0x1c0   :  { %v882_v55 = vpop.permute.xlu0 %881  ;;  %v1597_v56 = vrot.slane %v16270_v52, 1  ;;  %v1393_v61 = vsel %vm234_vm2, %v1390_v14, %v1392_v47  ;;  %13467 = vmatprep.mubr.msk.f32.mxu0 %vm1442_vm8, %v1596_v54 }
 0x1c1   :  { %v1394_v58 = vrot.slane %v1306_v44, 7  ;;  %v930_v2 = vmul.f32 %v16267_v49, %v882_v55  ;;  %1469 = vst.msk [vmem:[#allocation3 + $0x1a0] sm:$0xff] %vm1442_vm8, %v1393_v61  ;;  %v1153_v4 = vpop.permute.xlu1 %1152 }
 0x1c2   :  { %v1598_v7 = vsel %vm699_vm5, %v1595_v45, %v1597_v56  ;;  %v1204_v18 = vmul.f32 %v15315_v17, %v1153_v4 }
 0x1c3   :  { %v1395_v8 = vsel %vm234_vm2, %v1392_v47, %v1394_v58  ;;  %13468 = vmatmul.mubr.msk.f32.gmra.mrb[22].mxu0 %vm1442_vm8, %v1598_v7  ;;  %v962_v20 = vadd.f32 %v930_v2, %v595_v12 }
 0x1c4   :  { %1470 = vst.msk [vmem:[#allocation3 + $0x1b0] sm:$0xff] %vm1442_vm8, %v1395_v8  ;;  %v1157_v14 = vpop.permute.xlu0 %1156  ;;  %v1236_v22 = vadd.f32 %v1204_v18, %v961_v9 }
 0x1c5   :  { %v1205_v23 = vmul.f32 %v15315_v17, %v1157_v14  ;;  %v549_v24 = vpop.permute.xlu1 %548 }
 0x1c6   :  { %v1275_v29 = vadd.f32 %v15316_v25, %v1236_v22  ;;  %v596_v55 = vmul.f32 %v15314_v60, %v549_v24 }
 0x1c7   :  { %v1237_v27 = vadd.f32 %v1205_v23, %v962_v20 }
 0x1c8   :  { %v886_v30 = vpop.permute.xlu0 %885  ;;  %v1307_v31 = vmax.f32 %v1275_v29, 0.0  ;;  %v16282_v33 = vld [vmem:[#allocation3 + $0x1a0] sm:$0xff] }
 0x1c9   :  { %v1276_v50 = vadd.f32 %v15316_v25, %v1237_v27  ;;  %v554_v59 = vpop.permute.xlu1 %553  ;;  %v1599_v40 = vrot.slane %v16282_v33, 1  ;;  %v931_v37 = vmul.f32 %v16267_v49, %v886_v30 }
 0x1ca   :  { %v1396_v41 = vrot.slane %v1307_v31, 7 }
 0x1cb   :  { %v1308_v15 = vmax.f32 %v1276_v50, 0.0  ;;  %v16286_v42 = vld [vmem:[#allocation3 + $0x1b0] sm:$0xff]  ;;  %v1600_v45 = vsel %vm699_vm5, %v1597_v56, %v1599_v40  ;;  %v963_v7 = vadd.f32 %v931_v37, %v596_v55  ;;  %v597_v56 = vmul.f32 %v15314_v60, %v554_v59 }
 0x1cc   :  { %v890_v47 = vpop.permute.xlu0 %889  ;;  %v1601_v44 = vrot.slane %v16286_v42, 1  ;;  %v1397_v53 = vsel %vm234_vm2, %v1394_v58, %v1396_v41  ;;  %13470 = vmatprep.mubr.msk.f32.mxu0 %vm1442_vm8, %v1600_v45 }
 0x1cd   :  { %v1398_v54 = vrot.slane %v1308_v15, 7  ;;  %v932_v61 = vmul.f32 %v16267_v49, %v890_v47  ;;  %1471 = vst.msk [vmem:[#allocation3 + $0x1c0] sm:$0xff] %vm1442_vm8, %v1397_v53  ;;  %v1161_v0 = vpop.permute.xlu1 %1160 }
 0x1ce   :  { %v1602_v2 = vsel %vm699_vm5, %v1599_v40, %v1601_v44  ;;  %v1206_v8 = vmul.f32 %v15315_v17, %v1161_v0 }
 0x1cf   :  { %v1399_v4 = vsel %vm234_vm2, %v1396_v41, %v1398_v54  ;;  %13471 = vmatmul.mubr.msk.f32.gmra.mrb[24].mxu0 %vm1442_vm8, %v1602_v2  ;;  %v964_v9 = vadd.f32 %v932_v61, %v597_v56 }
 0x1d0   :  { %1472 = vst.msk [vmem:[#allocation3 + $0x1d0] sm:$0xff] %vm1442_vm8, %v1399_v4  ;;  %v1165_v58 = vpop.permute.xlu0 %1164  ;;  %v1238_v12 = vadd.f32 %v1206_v8, %v963_v7 }
 0x1d1   :  { %v1207_v18 = vmul.f32 %v15315_v17, %v1165_v58  ;;  %v559_v14 = vpop.permute.xlu1 %558 }
 0x1d2   :  { %v1277_v20 = vadd.f32 %v15316_v25, %v1238_v12  ;;  %v598_v27 = vmul.f32 %v15314_v60, %v559_v14 }
 0x1d3   :  { %v1239_v22 = vadd.f32 %v1207_v18, %v964_v9 }
 0x1d4   :  { %v894_v23 = vpop.permute.xlu0 %893  ;;  %v1309_v24 = vmax.f32 %v1277_v20, 0.0  ;;  %v16299_v31 = vld [vmem:[#allocation3 + $0x1c0] sm:$0xff] }
 0x1d5   :  { %v1278_v29 = vadd.f32 %v15316_v25, %v1239_v22  ;;  %v933_v30 = vmul.f32 %v16267_v49, %v894_v23  ;;  %v1169_v50 = vpop.permute.xlu1 %1168  ;;  %v1603_v59 = vrot.slane %v16299_v31, 1  ;;  %v1477_v23 = vld [vmem:[#allocation3] sm:$0xff] }
 0x1d6   :  { %v1400_v40 = vrot.slane %v1309_v24, 7  ;;  %v1208_v37 = vmul.f32 %v15315_v17, %v1169_v50  ;;  %v15318_v24 = vld [vmem:[#allocation3 + $0x20] sm:$0xff] }
 0x1d7   :  { %v1310_v41 = vmax.f32 %v1278_v29, 0.0  ;;  %v965_v15 = vadd.f32 %v933_v30, %v598_v27  ;;  %v16302_v45 = vld [vmem:[#allocation3 + $0x1d0] sm:$0xff]  ;;  %v1604_v47 = vsel %vm699_vm5, %v1601_v44, %v1603_v59  ;;  %v2209_v29 = vrot.slane %v15318_v24, 2 }
 0x1d8   :  { %v1605_v53 = vrot.slane %v16302_v45, 1  ;;  %v1401_v55 = vsel %vm234_vm2, %v1398_v54, %v1400_v40  ;;  %13473 = vmatprep.mubr.msk.f32.mxu0 %vm1442_vm8, %v1604_v47  ;;  %v15319_v30 = vld [vmem:[#allocation3 + $0x30] sm:$0xff]  ;;  %v2256_v24 = vrot.slane %v16282_v33, 2 }
 0x1d9   :  { %v1402_v60 = vrot.slane %v1310_v41, 7  ;;  %v1240_v61 = vadd.f32 %v1208_v37, %v965_v15  ;;  %1473 = vst.msk [vmem:[#allocation3 + $0x1e0] sm:$0xff] %vm1442_vm8, %v1401_v55  ;;  %v2211_v50 = vrot.slane %v15319_v30, 2  ;;  %v2215_v37 = vrot.slane %v16063_v16, 2 }
 0x1da   :  { %v1606_v49 = vsel %vm699_vm5, %v1603_v59, %v1605_v53  ;;  %v2262_v30 = vrot.slane %v16302_v45, 2 }
 0x1db   :  { %v1403_v0 = vsel %vm234_vm2, %v1400_v40, %v1402_v60  ;;  %v1279_v2 = vadd.f32 %v15316_v25, %v1240_v61  ;;  %13474 = vmatmul.mubr.msk.f32.gmra.mrb[26].mxu0 %vm1442_vm8, %v1606_v49  ;;  %v15320_v40 = vld [vmem:[#allocation3 + $0x40] sm:$0xff]  ;;  %v2212_v15 = vsel %vm974_vm6, %v2209_v29, %v2211_v50  ;;  %v2221_v49 = vrot.slane %v16092_v19, 2 }
 0x1dc   :  { %1474 = vst.msk [vmem:[#allocation3 + $0x1f0] sm:$0xff] %vm1442_vm8, %v1403_v0  ;;  %v2213_v41 = vrot.slane %v15320_v40, 2  ;;  %v2223_v0 = vrot.slane %v16110_v46, 2 }
 0x1dd   :  { %v1311_v17 = vmax.f32 %v1279_v2, 0.0  ;;  %v2225_v2 = vrot.slane %v16114_v43, 2 }
 0x1de   :  { %v2214_v47 = vsel %vm974_vm6, %v2211_v50, %v2213_v41  ;;  %v2216_v55 = vsel %vm974_vm6, %v2213_v41, %v2215_v37 }
 0x1df   :  { %v1404_v44 = vrot.slane %v1311_v17, 7  ;;  %v2227_v17 = vrot.slane %v16137_v28, 2 }
 0x1e0   :  { %v16315_v54 = vld [vmem:[#allocation3 + $0x1e0] sm:$0xff] }
 0x1e1   :  { %v1405_v4 = vsel %vm234_vm2, %v1402_v60, %v1404_v44  ;;  %1476 = vst.msk [vmem:[#allocation3 + $0x210] sm:$0x1] %vm1458_vm9, %v1404_v44  ;;  %v1607_v7 = vrot.slane %v16315_v54, 1  ;;  %v2219_v60 = vrot.slane %v16088_v11, 2  ;;  %v2229_v44 = vrot.slane %v16141_v35, 2 }
 0x1e2   :  { %1475 = vst.msk [vmem:[#allocation3 + $0x200] sm:$0xff] %vm1442_vm8, %v1405_v4  ;;  %v2231_v4 = vrot.slane %v16156_v63, 2  ;;  %v2264_v50 = vrot.slane %v16315_v54, 2 }
 0x1e3   :  { %v16319_v56 = vld [vmem:[#allocation3 + $0x1f0] sm:$0xff]  ;;  %v1608_v25 = vsel %vm699_vm5, %v1605_v53, %v1607_v7  ;;  %v2217_v53 = vrot.slane %v16069_v38, 2 }
 0x1e4   :  { %v1609_v8 = vrot.slane %v16319_v56, 1  ;;  %13476 = vmatprep.mubr.msk.f32.mxu0 %vm1442_vm8, %v1608_v25  ;;  %v2235_v25 = vrot.slane %v16176_v32, 2 }
 0x1e5   :  { %v2218_v61 = vsel %vm974_vm6, %v2215_v37, %v2217_v53  ;;  %v2973_v37 = vld [vmem:[#allocation9 + $0x20] sm:$0xff] }
 0x1e6   :  { %v1610_v58 = vsel %vm699_vm5, %v1607_v7, %v1609_v8  ;;  %v2233_v7 = vrot.slane %v16162_v6, 2 }
 0x1e7   :  { %13477 = vmatmul.mubr.msk.f32.gmra.mrb[28].mxu0 %vm1442_vm8, %v1610_v58 }
 0x1e8   :  { %v1514_v9 = vld [vmem:[#allocation3 + $0x210] sm:$0x1] }
 0x1e9   :  { %v16326_v12 = vld [vmem:[#allocation3 + $0x200] sm:$0xff]  ;;  %v1613_v18 = vrot.slane %v1514_v9, 1  ;;  %v2200_v9 = vld [vmem:[#allocation3 + $0x110] sm:$0xfc]  ;;  %v2201_v41 = vld [vmem:[#allocation3 + $0x210] sm:$0x3] }
 0x1ea   :  { %v1611_v14 = vrot.slane %v16326_v12, 1  ;;  %v2268_v40 = vrot.slane %v16326_v12, 2 }
 0x1ec   :  { %v1612_v20 = vsel %vm699_vm5, %v1609_v8, %v1611_v14  ;;  %v1614_v22 = vsel %vm699_vm5, %v1611_v14, %v1613_v18  ;;  %v2199_v8 = vld [vmem:[#allocation3 + $0x100] sm:$0x3]  ;;  %v2240_v18 = vrot.slane %v16198_v26, 2 }
 0x1ed   :  { %13479 = vmatprep.mubr.msk.f32.mxu0 %vm1442_vm8, %v1612_v20  ;;  %v2237_v58 = vrot.slane %v2199_v8, 2 }
 0x1ee   :  { %13480 = vmatmul.mubr.msk.f32.gmra.mrb[30].mxu0 %vm1442_vm8, %v1614_v22  ;;  %v2244_v22 = vrot.slane %v16220_v10, 2 }
 0x1ef   :  { %13486 = vmatprep.mubr.msk.f32.mxu0 %vm1442_vm8, %v1477_v23  ;;  %v2238_v14 = vsel %vm974_vm6, %v2235_v25, %v2237_v58 }
 0x1f2   :  { %13487 = vmatmul.mubr.msk.f32.vlgmr.msra.gmra.mrb[0].mxu0 %vm1442_vm8, %v16012_v34  ;;  %v1493_v34 = vld [vmem:[#allocation3 + $0x110] sm:$0xff] }
 0x1f3   :  { %14389 = vmatpush3.bf16.msra.mxu0 %v16129_v13  ;;  %13489 = vmatprep.mubr.msk.f32.mxu0 %vm1442_vm8, %v16017_v36  ;;  %v2198_v36 = vld [vmem:[#allocation3] sm:$0xfc] }
 0x1f4   :  { %v2206_v13 = vrot.slane %v2198_v36, 2  ;;  %v2248_v36 = vrot.slane %v16242_v57, 2 }
 0x1f6   :  { %13490 = vmatmul.mubr.msk.f32.gmra.mrb[2].mxu0 %vm1442_vm8, %v16029_v51  ;;  %v15317_v51 = vld [vmem:[#allocation3 + $0x10] sm:$0xff] }
 0x1f7   :  { %13492 = vmatprep.mubr.msk.f32.mxu0 %vm1442_vm8, %v16037_v62  ;;  %v2207_v62 = vrot.slane %v15317_v51, 2  ;;  %v2250_v51 = vrot.slane %v16246_v5, 2 }
 0x1f9   :  { %v2208_v27 = vsel %vm974_vm6, %v2206_v13, %v2207_v62  ;;  %v2210_v59 = vsel %vm974_vm6, %v2207_v62, %v2209_v29  ;;  %v2252_v62 = vrot.slane %v16264_v48, 2  ;;  %v2254_v13 = vrot.slane %v16270_v52, 2 }
 0x1fa   :  { %13493 = vmatmul.mubr.msk.f32.gmra.mrb[4].mxu0 %vm1442_vm8, %v16063_v16  ;;  %v2220_v16 = vsel %vm974_vm6, %v2217_v53, %v2219_v60  ;;  %v2258_v29 = vrot.slane %v16286_v42, 2 }
 0x1fb   :  { %13495 = vmatprep.mubr.msk.f32.mxu0 %vm1442_vm8, %v16069_v38  ;;  %v2222_v38 = vsel %vm974_vm6, %v2219_v60, %v2221_v49 }
 0x1fe   :  { %13496 = vmatmul.mubr.msk.f32.gmra.mrb[6].mxu0 %vm1442_vm8, %v16088_v11  ;;  %v2224_v11 = vsel %vm974_vm6, %v2221_v49, %v2223_v0  ;;  %v2865_v49 = vld [vmem:[#allocation9 + $0x8] sm:$0xff] }
 0x1ff   :  { %13498 = vmatprep.mubr.msk.f32.mxu0 %vm1442_vm8, %v16092_v19  ;;  %v2226_v19 = vsel %vm974_vm6, %v2223_v0, %v2225_v2  ;;  %v16492_v0 = vld [vmem:[%s20633_s11] ss:$0 sm:$0xff] }
 0x202   :  { %13499 = vmatmul.mubr.msk.f32.gmra.mrb[8].mxu0 %vm1442_vm8, %v16110_v46  ;;  %v2228_v46 = vsel %vm974_vm6, %v2225_v2, %v2227_v17 }
 0x203   :  { %13501 = vmatprep.mubr.msk.f32.mxu0 %vm1442_vm8, %v16114_v43  ;;  %v2230_v43 = vsel %vm974_vm6, %v2227_v17, %v2229_v44 }
 0x206   :  { %13502 = vmatmul.mubr.msk.f32.gmra.mrb[10].mxu0 %vm1442_vm8, %v16137_v28  ;;  %v2232_v28 = vsel %vm974_vm6, %v2229_v44, %v2231_v4 }
 0x207   :  { %13504 = vmatprep.mubr.msk.f32.mxu0 %vm1442_vm8, %v16141_v35  ;;  %v2234_v35 = vsel %vm974_vm6, %v2231_v4, %v2233_v7 }
 0x20a   :  { %13505 = vmatmul.mubr.msk.f32.gmra.mrb[12].mxu0 %vm1442_vm8, %v16156_v63  ;;  %v2236_v63 = vsel %vm974_vm6, %v2233_v7, %v2235_v25 }
 0x20b   :  { %13507 = vmatprep.mubr.msk.f32.mxu0 %vm1442_vm8, %v16162_v6  ;;  %v2239_v6 = vrot.slane %v2200_v9, 2 }
 0x20d   :  { %v2241_v20 = vsel %vm974_vm6, %v2239_v6, %v2240_v18 }
 0x20e   :  { %13508 = vmatmul.mubr.msk.f32.gmra.mrb[14].mxu0 %vm1442_vm8, %v16176_v32  ;;  %v2242_v32 = vrot.slane %v16202_v39, 2 }
 0x20f   :  { %13510 = vmatprep.mubr.msk.f32.mxu0 %vm1442_vm8, %v1493_v34  ;;  %v2246_v34 = vrot.slane %v16224_v21, 2 }
 0x210   :  { %v2243_v23 = vsel %vm974_vm6, %v2240_v18, %v2242_v32 }
 0x212   :  { %13511 = vmatmul.mubr.msk.f32.gmra.mrb[16].mxu0 %vm1442_vm8, %v16198_v26  ;;  %v2245_v26 = vsel %vm974_vm6, %v2242_v32, %v2244_v22 }
 0x213   :  { %13513 = vmatprep.mubr.msk.f32.mxu0 %vm1442_vm8, %v16202_v39  ;;  %v2247_v39 = vsel %vm974_vm6, %v2244_v22, %v2246_v34 }
 0x216   :  { %13514 = vmatmul.mubr.msk.f32.gmra.mrb[18].mxu0 %vm1442_vm8, %v16220_v10  ;;  %v2249_v10 = vsel %vm974_vm6, %v2246_v34, %v2248_v36 }
 0x217   :  { %13516 = vmatprep.mubr.msk.f32.mxu0 %vm1442_vm8, %v16224_v21  ;;  %v2251_v21 = vsel %vm974_vm6, %v2248_v36, %v2250_v51 }
 0x21a   :  { %13517 = vmatmul.mubr.msk.f32.gmra.mrb[20].mxu0 %vm1442_vm8, %v16242_v57  ;;  %v2253_v57 = vsel %vm974_vm6, %v2250_v51, %v2252_v62 }
 0x21b   :  { %13519 = vmatprep.mubr.msk.f32.mxu0 %vm1442_vm8, %v16246_v5  ;;  %v2255_v5 = vsel %vm974_vm6, %v2252_v62, %v2254_v13 }
 0x21e   :  { %13520 = vmatmul.mubr.msk.f32.gmra.mrb[22].mxu0 %vm1442_vm8, %v16264_v48  ;;  %v2257_v48 = vsel %vm974_vm6, %v2254_v13, %v2256_v24 }
 0x21f   :  { %13522 = vmatprep.mubr.msk.f32.mxu0 %vm1442_vm8, %v16270_v52  ;;  %v2259_v52 = vsel %vm974_vm6, %v2256_v24, %v2258_v29 }
 0x222   :  { %13523 = vmatmul.mubr.msk.f32.gmra.mrb[24].mxu0 %vm1442_vm8, %v16282_v33 }
 0x223   :  { %13525 = vmatprep.mubr.msk.f32.mxu0 %vm1442_vm8, %v16286_v42 }
 0x226   :  { %13526 = vmatmul.mubr.msk.f32.gmra.mrb[26].mxu0 %vm1442_vm8, %v16299_v31 }
 0x227   :  { %13528 = vmatprep.mubr.msk.f32.mxu0 %vm1442_vm8, %v16302_v45 }
 0x22a   :  { %13529 = vmatmul.mubr.msk.f32.gmra.mrb[28].mxu0 %vm1442_vm8, %v16315_v54 }
 0x22b   :  { %13531 = vmatprep.mubr.msk.f32.mxu0 %vm1442_vm8, %v16319_v56 }
 0x22e   :  { %13532 = vmatmul.mubr.msk.f32.gmra.mrb[30].mxu0 %vm1442_vm8, %v16326_v12  ;;  %v2975_v12 = vld [vmem:[#allocation9 + $0x30] sm:$0xff] }
 0x22f   :  { %13538 = vmatprep.mubr.msk.f32.mxu0 %vm1442_vm8, %v2208_v27  ;;  %v2260_v27 = vrot.slane %v16299_v31, 2  ;;  %v2265_v31 = vsel %vm974_vm6, %v2262_v30, %v2264_v50 }
 0x231   :  { %v2261_v33 = vsel %vm974_vm6, %v2258_v29, %v2260_v27  ;;  %v2263_v42 = vsel %vm974_vm6, %v2260_v27, %v2262_v30 }
 0x232   :  { %13539 = vmatmul.mubr.msk.f32.vlgmr.msra.gmra.mrb[0].mxu0 %vm1442_vm8, %v2210_v59  ;;  %v2266_v59 = vrot.slane %v16319_v56, 2 }
 0x233   :  { %13541 = vmatprep.mubr.msk.f32.mxu0 %vm1442_vm8, %v2212_v15  ;;  %v2270_v15 = vrot.slane %v2201_v41, 2 }
 0x234   :  { %v2267_v45 = vsel %vm974_vm6, %v2264_v50, %v2266_v59  ;;  %v2269_v54 = vsel %vm974_vm6, %v2266_v59, %v2268_v40 }
 0x235   :  { %v2271_v56 = vsel %vm974_vm6, %v2268_v40, %v2270_v15 }
 0x236   :  { %13542 = vmatmul.mubr.msk.f32.gmra.mrb[2].mxu0 %vm1442_vm8, %v2214_v47  ;;  %v2974_v47 = vld [vmem:[#allocation9 + $0x28] sm:$0xff] }
 0x237   :  { %13544 = vmatprep.mubr.msk.f32.mxu0 %vm1442_vm8, %v2216_v55  ;;  %v14390_v53 = vpack.c.bf16 %v2974_v47, %v2973_v37  ;;  %v2976_v55 = vld [vmem:[#allocation9 + $0x38] sm:$0xff] }
 0x238   :  { %v14394_v60 = vpack.c.bf16 %v2976_v55, %v2975_v12 }
 0x239   :  { %14391 = vmatprep.subr.bf16.mxu0 %v14390_v53  ;;  %14846 = vmatprep.subr.bf16.mxu1 %v14390_v53 }
 0x23a   :  { %13545 = vmatmul.mubr.msk.f32.gmra.mrb[4].mxu0 %vm1442_vm8, %v2218_v61  ;;  %14848 = vmatpush3.bf16.msra.mxu1 %v14390_v53  ;;  %v2864_v61 = vld [vmem:[#allocation9] sm:$0xff] }
 0x23b   :  { %13547 = vmatprep.mubr.msk.f32.mxu0 %vm1442_vm8, %v2220_v16  ;;  %14393 = vmatpush3.bf16.msra.mxu0 %v14390_v53  ;;  %v16486_v16 = vpack.c.bf16 %v2865_v49, %v2864_v61 }
 0x23c   :  { %14395 = vmatprep.subr.bf16.mxu0 %v14394_v60  ;;  %14847 = vmatprep.subr.bf16.mxu1 %v14394_v60 }
 0x23e   :  { %13548 = vmatmul.mubr.msk.f32.gmra.mrb[6].mxu0 %vm1442_vm8, %v2222_v38  ;;  %14849 = vmatpush3.bf16.msra.mxu1 %v14394_v60 }
 0x23f   :  { %13550 = vmatprep.mubr.msk.f32.mxu0 %vm1442_vm8, %v2224_v11  ;;  %14397 = vmatpush3.bf16.msra.mxu0 %v14394_v60 }
 0x240   :  { %14399 = vmatprep.subr.bf16.mxu1 %v16486_v16 }
 0x242   :  { %13551 = vmatmul.mubr.msk.f32.gmra.mrb[8].mxu0 %vm1442_vm8, %v2226_v19 }
 0x243   :  { %13553 = vmatprep.mubr.msk.f32.mxu0 %vm1442_vm8, %v2228_v46 }
 0x246   :  { %13554 = vmatmul.mubr.msk.f32.gmra.mrb[10].mxu0 %vm1442_vm8, %v2230_v43 }
 0x247   :  { %13556 = vmatprep.mubr.msk.f32.mxu0 %vm1442_vm8, %v2232_v28 }
 0x24a   :  { %13557 = vmatmul.mubr.msk.f32.gmra.mrb[12].mxu0 %vm1442_vm8, %v2234_v35 }
 0x24b   :  { %13559 = vmatprep.mubr.msk.f32.mxu0 %vm1442_vm8, %v2236_v63 }
 0x24e   :  { %13560 = vmatmul.mubr.msk.f32.gmra.mrb[14].mxu0 %vm1442_vm8, %v2238_v14 }
 0x24f   :  { %13562 = vmatprep.mubr.msk.f32.mxu0 %vm1442_vm8, %v2241_v20 }
 0x252   :  { %13563 = vmatmul.mubr.msk.f32.gmra.mrb[16].mxu0 %vm1442_vm8, %v2243_v23 }
 0x253   :  { %13565 = vmatprep.mubr.msk.f32.mxu0 %vm1442_vm8, %v2245_v26 }
 0x256   :  { %13566 = vmatmul.mubr.msk.f32.gmra.mrb[18].mxu0 %vm1442_vm8, %v2247_v39 }
 0x257   :  { %13568 = vmatprep.mubr.msk.f32.mxu0 %vm1442_vm8, %v2249_v10 }
 0x25a   :  { %13569 = vmatmul.mubr.msk.f32.gmra.mrb[20].mxu0 %vm1442_vm8, %v2251_v21 }
 0x25b   :  { %13571 = vmatprep.mubr.msk.f32.mxu0 %vm1442_vm8, %v2253_v57 }
 0x25e   :  { %13572 = vmatmul.mubr.msk.f32.gmra.mrb[22].mxu0 %vm1442_vm8, %v2255_v5 }
 0x25f   :  { %13574 = vmatprep.mubr.msk.f32.mxu0 %vm1442_vm8, %v2257_v48 }
 0x262   :  { %13575 = vmatmul.mubr.msk.f32.gmra.mrb[24].mxu0 %vm1442_vm8, %v2259_v52 }
 0x263   :  { %13577 = vmatprep.mubr.msk.f32.mxu0 %vm1442_vm8, %v2261_v33 }
 0x266   :  { %13578 = vmatmul.mubr.msk.f32.gmra.mrb[26].mxu0 %vm1442_vm8, %v2263_v42 }
 0x267   :  { %13580 = vmatprep.mubr.msk.f32.mxu0 %vm1442_vm8, %v2265_v31 }
 0x26a   :  { %13581 = vmatmul.mubr.msk.f32.gmra.mrb[28].mxu0 %vm1442_vm8, %v2267_v45 }
 0x26b   :  { %13583 = vmatprep.mubr.msk.f32.mxu0 %vm1442_vm8, %v2269_v54 }
 0x26e   :  { %13584 = vmatmul.mubr.msk.f32.gmra.mrb[30].mxu0 %vm1442_vm8, %v2271_v56 }
 0x305   :  { %v13540_v38 = vpop.f32.mrb[0].mxu0 }
 0x306   :  { %v2604_v2 = vadd.f32 %v13540_v38, %v16492_v0  ;;  %v2405_v11 = vpop.f32.mrb[1].mxu0 }
 0x307   :  { %v2603_v17 = vadd.f32 %v16492_v0, %v2405_v11 }
 0x308   :  { %v2636_v19 = vmax.f32 %v2604_v2, 0.0 }
 0x309   :  { %v2635_v44 = vmax.f32 %v2603_v17, 0.0  ;;  %v13543_v46 = vpop.f32.mrb[2].mxu0 }
 0x30a   :  { %v2700_v4 = vrot.slane %v2636_v19, 7  ;;  %v2606_v43 = vadd.f32 %v13543_v46, %v16492_v0  ;;  %v2415_v7 = vpop.f32.mrb[3].mxu0 }
 0x30b   :  { %v2699_v28 = vrot.slane %v2635_v44, 7  ;;  %v2605_v25 = vadd.f32 %v16492_v0, %v2415_v7 }
 0x30c   :  { %v2638_v8 = vmax.f32 %v2606_v43, 0.0 }
 0x30d   :  { %v2701_v35 = vsel %vm234_vm2, %v2699_v28, %v2700_v4  ;;  %2796 = vst.msk [vmem:[#allocation2] sm:$0xfe] %vm2795_vm10, %v2699_v28  ;;  %v2637_v58 = vmax.f32 %v2605_v25, 0.0  ;;  %v13546_v9 = vpop.f32.mrb[4].mxu0 }
 0x30e   :  { %2798 = vst.msk [vmem:[#allocation2 + $0x10] sm:$0xff] %vm2797_vm11, %v2701_v35  ;;  %v2704_v63 = vrot.slane %v2638_v8, 7  ;;  %v2608_v18 = vadd.f32 %v13546_v9, %v16492_v0  ;;  %v2425_v6 = vpop.f32.mrb[5].mxu0 }
 0x30f   :  { %v2702_v14 = vrot.slane %v2637_v58, 7  ;;  %v2607_v32 = vadd.f32 %v16492_v0, %v2425_v6 }
 0x310   :  { %v2640_v20 = vmax.f32 %v2608_v18, 0.0 }
 0x311   :  { %v2703_v22 = vsel %vm234_vm2, %v2700_v4, %v2702_v14  ;;  %v2705_v23 = vsel %vm234_vm2, %v2702_v14, %v2704_v63  ;;  %v2639_v34 = vmax.f32 %v2607_v32, 0.0  ;;  %v13549_v26 = vpop.f32.mrb[6].mxu0 }
 0x312   :  { %2799 = vst.msk [vmem:[#allocation2 + $0x20] sm:$0xff] %vm2797_vm11, %v2703_v22  ;;  %2800 = vst.msk [vmem:[#allocation2 + $0x30] sm:$0xff] %vm2797_vm11, %v2705_v23  ;;  %v2708_v36 = vrot.slane %v2640_v20, 7  ;;  %v2610_v39 = vadd.f32 %v13549_v26, %v16492_v0  ;;  %v2435_v51 = vpop.f32.mrb[7].mxu0 }
 0x313   :  { %v2706_v10 = vrot.slane %v2639_v34, 7  ;;  %v2609_v62 = vadd.f32 %v16492_v0, %v2435_v51 }
 0x314   :  { %v2642_v21 = vmax.f32 %v2610_v39, 0.0  ;;  %v2868_v13 = vld [vmem:[#allocation2] sm:$0xfe] }
 0x315   :  { %v2707_v57 = vsel %vm234_vm2, %v2704_v63, %v2706_v10  ;;  %v2709_v24 = vsel %vm234_vm2, %v2706_v10, %v2708_v36  ;;  %v2641_v5 = vmax.f32 %v2609_v62, 0.0  ;;  %v13552_v29 = vpop.f32.mrb[8].mxu0  ;;  %v16511_v48 = vld [vmem:[#allocation2 + $0x10] sm:$0xff]  ;;  %v2906_v27 = vrot.slane %v2868_v13, 1 }
 0x316   :  { %2801 = vst.msk [vmem:[#allocation2 + $0x40] sm:$0xff] %vm2797_vm11, %v2707_v57  ;;  %2802 = vst.msk [vmem:[#allocation2 + $0x50] sm:$0xff] %vm2797_vm11, %v2709_v24  ;;  %v2712_v52 = vrot.slane %v2642_v21, 7  ;;  %v2612_v30 = vadd.f32 %v13552_v29, %v16492_v0  ;;  %v2445_v33 = vpop.f32.mrb[9].mxu0  ;;  %v2907_v50 = vrot.slane %v16511_v48, 1 }
 0x317   :  { %v2710_v42 = vrot.slane %v2641_v5, 7  ;;  %v2611_v59 = vadd.f32 %v16492_v0, %v2445_v33 }
 0x318   :  { %v2644_v31 = vmax.f32 %v2612_v30, 0.0  ;;  %v2908_v40 = vsel %vm699_vm5, %v2906_v27, %v2907_v50 }
 0x319   :  { %v2711_v41 = vsel %vm234_vm2, %v2708_v36, %v2710_v42  ;;  %v2713_v45 = vsel %vm234_vm2, %v2710_v42, %v2712_v52  ;;  %v2643_v15 = vmax.f32 %v2611_v59, 0.0  ;;  %v13555_v54 = vpop.f32.mrb[10].mxu0  ;;  %13594 = vmatprep.mubr.msk.f32.mxu0 %vm2797_vm11, %v2908_v40  ;;  %v16522_v56 = vld [vmem:[#allocation2 + $0x20] sm:$0xff]  ;;  %v16524_v37 = vld [vmem:[#allocation2 + $0x30] sm:$0xff] }
 0x31a   :  { %2803 = vst.msk [vmem:[#allocation2 + $0x60] sm:$0xff] %vm2797_vm11, %v2711_v41  ;;  %2804 = vst.msk [vmem:[#allocation2 + $0x70] sm:$0xff] %vm2797_vm11, %v2713_v45  ;;  %v2716_v47 = vrot.slane %v2644_v31, 7  ;;  %v2614_v53 = vadd.f32 %v13555_v54, %v16492_v0  ;;  %v2455_v12 = vpop.f32.mrb[11].mxu0  ;;  %v2909_v55 = vrot.slane %v16522_v56, 1  ;;  %v2911_v60 = vrot.slane %v16524_v37, 1 }
 0x31b   :  { %v2714_v61 = vrot.slane %v2643_v15, 7  ;;  %v2613_v49 = vadd.f32 %v16492_v0, %v2455_v12 }
 0x31c   :  { %v2646_v38 = vmax.f32 %v2614_v53, 0.0  ;;  %v2910_v2 = vsel %vm699_vm5, %v2907_v50, %v2909_v55  ;;  %v2912_v11 = vsel %vm699_vm5, %v2909_v55, %v2911_v60 }
 0x31d   :  { %v2715_v17 = vsel %vm234_vm2, %v2712_v52, %v2714_v61  ;;  %v2717_v19 = vsel %vm234_vm2, %v2714_v61, %v2716_v47  ;;  %v2645_v44 = vmax.f32 %v2613_v49, 0.0  ;;  %v13558_v46 = vpop.f32.mrb[12].mxu0  ;;  %13595 = vmatmul.mubr.msk.f32.vlgmr.msra.gmra.mrb[32].mxu0 %vm2797_vm11, %v2910_v2  ;;  %v16537_v4 = vld [vmem:[#allocation2 + $0x40] sm:$0xff]  ;;  %v16539_v43 = vld [vmem:[#allocation2 + $0x50] sm:$0xff] }
 0x31e   :  { %2805 = vst.msk [vmem:[#allocation2 + $0x80] sm:$0xff] %vm2797_vm11, %v2715_v17  ;;  %2806 = vst.msk [vmem:[#allocation2 + $0x90] sm:$0xff] %vm2797_vm11, %v2717_v19  ;;  %v2720_v7 = vrot.slane %v2646_v38, 7  ;;  %v2616_v28 = vadd.f32 %v13558_v46, %v16492_v0  ;;  %v2465_v25 = vpop.f32.mrb[13].mxu0  ;;  %13597 = vmatprep.mubr.msk.f32.mxu0 %vm2797_vm11, %v2912_v11  ;;  %v2913_v8 = vrot.slane %v16537_v4, 1  ;;  %v2915_v35 = vrot.slane %v16539_v43, 1 }
 0x31f   :  { %v2718_v58 = vrot.slane %v2645_v44, 7  ;;  %v2615_v9 = vadd.f32 %v16492_v0, %v2465_v25 }
 0x320   :  { %v2648_v63 = vmax.f32 %v2616_v28, 0.0  ;;  %v2914_v18 = vsel %vm699_vm5, %v2911_v60, %v2913_v8  ;;  %v2916_v6 = vsel %vm699_vm5, %v2913_v8, %v2915_v35 }
 0x321   :  { %v2719_v14 = vsel %vm234_vm2, %v2716_v47, %v2718_v58  ;;  %v2721_v32 = vsel %vm234_vm2, %v2718_v58, %v2720_v7  ;;  %v2647_v20 = vmax.f32 %v2615_v9, 0.0  ;;  %v13561_v22 = vpop.f32.mrb[14].mxu0  ;;  %13598 = vmatmul.mubr.msk.f32.gmra.mrb[34].mxu0 %vm2797_vm11, %v2914_v18  ;;  %v16553_v23 = vld [vmem:[#allocation2 + $0x60] sm:$0xff]  ;;  %v16555_v34 = vld [vmem:[#allocation2 + $0x70] sm:$0xff] }
 0x322   :  { %2807 = vst.msk [vmem:[#allocation2 + $0xa0] sm:$0xff] %vm2797_vm11, %v2719_v14  ;;  %2808 = vst.msk [vmem:[#allocation2 + $0xb0] sm:$0xff] %vm2797_vm11, %v2721_v32  ;;  %v2724_v26 = vrot.slane %v2648_v63, 7  ;;  %v2618_v36 = vadd.f32 %v13561_v22, %v16492_v0  ;;  %v2475_v39 = vpop.f32.mrb[15].mxu0  ;;  %13600 = vmatprep.mubr.msk.f32.mxu0 %vm2797_vm11, %v2916_v6  ;;  %v2917_v51 = vrot.slane %v16553_v23, 1  ;;  %v2919_v10 = vrot.slane %v16555_v34, 1 }
 0x323   :  { %v2722_v62 = vrot.slane %v2647_v20, 7  ;;  %v2617_v21 = vadd.f32 %v16492_v0, %v2475_v39 }
 0x324   :  { %v2650_v13 = vmax.f32 %v2618_v36, 0.0  ;;  %v2918_v57 = vsel %vm699_vm5, %v2915_v35, %v2917_v51  ;;  %v2920_v24 = vsel %vm699_vm5, %v2917_v51, %v2919_v10 }
 0x325   :  { %v2723_v5 = vsel %vm234_vm2, %v2720_v7, %v2722_v62  ;;  %v2725_v29 = vsel %vm234_vm2, %v2722_v62, %v2724_v26  ;;  %v2649_v27 = vmax.f32 %v2617_v21, 0.0  ;;  %v13564_v52 = vpop.f32.mrb[16].mxu0  ;;  %13601 = vmatmul.mubr.msk.f32.gmra.mrb[36].mxu0 %vm2797_vm11, %v2918_v57  ;;  %v16569_v30 = vld [vmem:[#allocation2 + $0x80] sm:$0xff]  ;;  %v16571_v33 = vld [vmem:[#allocation2 + $0x90] sm:$0xff] }
 0x326   :  { %2809 = vst.msk [vmem:[#allocation2 + $0xc0] sm:$0xff] %vm2797_vm11, %v2723_v5  ;;  %2810 = vst.msk [vmem:[#allocation2 + $0xd0] sm:$0xff] %vm2797_vm11, %v2725_v29  ;;  %v2728_v50 = vrot.slane %v2650_v13, 7  ;;  %v2620_v42 = vadd.f32 %v13564_v52, %v16492_v0  ;;  %v2485_v59 = vpop.f32.mrb[17].mxu0  ;;  %13603 = vmatprep.mubr.msk.f32.mxu0 %vm2797_vm11, %v2920_v24  ;;  %v2921_v31 = vrot.slane %v16569_v30, 1  ;;  %v2923_v40 = vrot.slane %v16571_v33, 1 }
 0x327   :  { %v2726_v41 = vrot.slane %v2649_v27, 7  ;;  %v2619_v45 = vadd.f32 %v16492_v0, %v2485_v59 }
 0x328   :  { %2814 = vst.msk [vmem:[#allocation2 + $0x100] sm:$0x1] %vm2813_vm12, %v2728_v50  ;;  %v2652_v15 = vmax.f32 %v2620_v42, 0.0  ;;  %v2922_v54 = vsel %vm699_vm5, %v2919_v10, %v2921_v31  ;;  %v2924_v47 = vsel %vm699_vm5, %v2921_v31, %v2923_v40 }
 0x329   :  { %v2727_v53 = vsel %vm234_vm2, %v2724_v26, %v2726_v41  ;;  %v2729_v12 = vsel %vm234_vm2, %v2726_v41, %v2728_v50  ;;  %v2651_v55 = vmax.f32 %v2619_v45, 0.0  ;;  %v13567_v60 = vpop.f32.mrb[18].mxu0  ;;  %13604 = vmatmul.mubr.msk.f32.gmra.mrb[38].mxu0 %vm2797_vm11, %v2922_v54  ;;  %v16586_v61 = vld [vmem:[#allocation2 + $0xa0] sm:$0xff]  ;;  %v16588_v49 = vld [vmem:[#allocation2 + $0xb0] sm:$0xff] }
 0x32a   :  { %2811 = vst.msk [vmem:[#allocation2 + $0xe0] sm:$0xff] %vm2797_vm11, %v2727_v53  ;;  %2812 = vst.msk [vmem:[#allocation2 + $0xf0] sm:$0xff] %vm2797_vm11, %v2729_v12  ;;  %v2731_v38 = vrot.slane %v2652_v15, 7  ;;  %v2622_v2 = vadd.f32 %v13567_v60, %v16492_v0  ;;  %v2495_v11 = vpop.f32.mrb[19].mxu0  ;;  %13606 = vmatprep.mubr.msk.f32.mxu0 %vm2797_vm11, %v2924_v47  ;;  %v2925_v17 = vrot.slane %v16586_v61, 1  ;;  %v2927_v19 = vrot.slane %v16588_v49, 1 }
 0x32b   :  { %v2730_v44 = vrot.slane %v2651_v55, 7  ;;  %v2621_v46 = vadd.f32 %v16492_v0, %v2495_v11 }
 0x32c   :  { %v2654_v7 = vmax.f32 %v2622_v2, 0.0  ;;  %v2926_v28 = vsel %vm699_vm5, %v2923_v40, %v2925_v17  ;;  %v2928_v25 = vsel %vm699_vm5, %v2925_v17, %v2927_v19 }
 0x32d   :  { %v2732_v8 = vsel %vm234_vm2, %v2730_v44, %v2731_v38  ;;  %2815 = vst.msk [vmem:[#allocation2 + $0x110] sm:$0xfe] %vm2795_vm10, %v2730_v44  ;;  %v2653_v35 = vmax.f32 %v2621_v46, 0.0  ;;  %v13570_v58 = vpop.f32.mrb[20].mxu0  ;;  %13607 = vmatmul.mubr.msk.f32.gmra.mrb[40].mxu0 %vm2797_vm11, %v2926_v28  ;;  %v16602_v9 = vld [vmem:[#allocation2 + $0xc0] sm:$0xff]  ;;  %v16604_v63 = vld [vmem:[#allocation2 + $0xd0] sm:$0xff] }
 0x32e   :  { %2816 = vst.msk [vmem:[#allocation2 + $0x120] sm:$0xff] %vm2797_vm11, %v2732_v8  ;;  %v2735_v18 = vrot.slane %v2654_v7, 7  ;;  %v2624_v6 = vadd.f32 %v13570_v58, %v16492_v0  ;;  %v2505_v14 = vpop.f32.mrb[21].mxu0  ;;  %13609 = vmatprep.mubr.msk.f32.mxu0 %vm2797_vm11, %v2928_v25  ;;  %v2929_v32 = vrot.slane %v16602_v9, 1  ;;  %v2931_v20 = vrot.slane %v16604_v63, 1  ;;  %v2866_v8 = vld [vmem:[#allocation9 + $0x10] sm:$0xff] }
 0x32f   :  { %v2733_v22 = vrot.slane %v2653_v35, 7  ;;  %v2623_v26 = vadd.f32 %v16492_v0, %v2505_v14  ;;  %v2869_v31 = vld [vmem:[#allocation2 + $0x100] sm:$0x1]  ;;  %v2867_v35 = vld [vmem:[#allocation9 + $0x18] sm:$0xff] }
 0x330   :  { %v2656_v36 = vmax.f32 %v2624_v6, 0.0  ;;  %v2930_v39 = vsel %vm699_vm5, %v2927_v19, %v2929_v32  ;;  %v2932_v51 = vsel %vm699_vm5, %v2929_v32, %v2931_v20  ;;  %v2937_v17 = vrot.slane %v2869_v31, 1 }
 0x331   :  { %v2734_v10 = vsel %vm234_vm2, %v2731_v38, %v2733_v22  ;;  %v2736_v62 = vsel %vm234_vm2, %v2733_v22, %v2735_v18  ;;  %v2655_v21 = vmax.f32 %v2623_v26, 0.0  ;;  %v13573_v13 = vpop.f32.mrb[22].mxu0  ;;  %13610 = vmatmul.mubr.msk.f32.gmra.mrb[42].mxu0 %vm2797_vm11, %v2930_v39  ;;  %v16617_v57 = vld [vmem:[#allocation2 + $0xe0] sm:$0xff]  ;;  %v16619_v24 = vld [vmem:[#allocation2 + $0xf0] sm:$0xff] }
 0x332   :  { %2817 = vst.msk [vmem:[#allocation2 + $0x130] sm:$0xff] %vm2797_vm11, %v2734_v10  ;;  %2818 = vst.msk [vmem:[#allocation2 + $0x140] sm:$0xff] %vm2797_vm11, %v2736_v62  ;;  %v2739_v5 = vrot.slane %v2656_v36, 7  ;;  %v2626_v29 = vadd.f32 %v13573_v13, %v16492_v0  ;;  %v2515_v27 = vpop.f32.mrb[23].mxu0  ;;  %13612 = vmatprep.mubr.msk.f32.mxu0 %vm2797_vm11, %v2932_v51  ;;  %v2933_v52 = vrot.slane %v16617_v57, 1  ;;  %v2935_v50 = vrot.slane %v16619_v24, 1 }
 0x333   :  { %v2737_v42 = vrot.slane %v2655_v21, 7  ;;  %v2625_v59 = vadd.f32 %v16492_v0, %v2515_v27  ;;  %v14402_v21 = vpack.c.bf16 %v2867_v35, %v2866_v8  ;;  %v3632_v27 = vld [vmem:[#allocation9 + $0x40] sm:$0xff] }
 0x334   :  { %v2658_v40 = vmax.f32 %v2626_v29, 0.0  ;;  %v2934_v41 = vsel %vm699_vm5, %v2931_v20, %v2933_v52  ;;  %v2936_v45 = vsel %vm699_vm5, %v2933_v52, %v2935_v50  ;;  %v2870_v15 = vld [vmem:[#allocation2 + $0x110] sm:$0xfe]  ;;  %v2938_v28 = vsel %vm699_vm5, %v2935_v50, %v2937_v17  ;;  %v3633_v52 = vld [vmem:[#allocation9 + $0x48] sm:$0xff] }
 0x335   :  { %v2738_v54 = vsel %vm234_vm2, %v2735_v18, %v2737_v42  ;;  %v2740_v47 = vsel %vm234_vm2, %v2737_v42, %v2739_v5  ;;  %v2657_v53 = vmax.f32 %v2625_v59, 0.0  ;;  %v13576_v12 = vpop.f32.mrb[24].mxu0  ;;  %13613 = vmatmul.mubr.msk.f32.gmra.mrb[44].mxu0 %vm2797_vm11, %v2934_v41  ;;  %v16633_v55 = vld [vmem:[#allocation2 + $0x120] sm:$0xff]  ;;  %v2939_v60 = vrot.slane %v2870_v15, 1 }
 0x336   :  { %2819 = vst.msk [vmem:[#allocation2 + $0x150] sm:$0xff] %vm2797_vm11, %v2738_v54  ;;  %2820 = vst.msk [vmem:[#allocation2 + $0x160] sm:$0xff] %vm2797_vm11, %v2740_v47  ;;  %v2743_v38 = vrot.slane %v2658_v40, 7  ;;  %v2628_v2 = vadd.f32 %v13576_v12, %v16492_v0  ;;  %v2525_v11 = vpop.f32.mrb[25].mxu0  ;;  %13615 = vmatprep.mubr.msk.f32.mxu0 %vm2797_vm11, %v2936_v45  ;;  %v2940_v19 = vrot.slane %v16633_v55, 1 }
 0x337   :  { %v2741_v44 = vrot.slane %v2657_v53, 7  ;;  %v2627_v46 = vadd.f32 %v16492_v0, %v2525_v11 }
 0x338   :  { %v2660_v7 = vmax.f32 %v2628_v2, 0.0  ;;  %v2941_v25 = vsel %vm699_vm5, %v2939_v60, %v2940_v19 }
 0x339   :  { %v2742_v58 = vsel %vm234_vm2, %v2739_v5, %v2741_v44  ;;  %v2744_v18 = vsel %vm234_vm2, %v2741_v44, %v2743_v38  ;;  %v2659_v6 = vmax.f32 %v2627_v46, 0.0  ;;  %v13579_v14 = vpop.f32.mrb[26].mxu0  ;;  %13616 = vmatmul.mubr.msk.f32.gmra.mrb[46].mxu0 %vm2797_vm11, %v2938_v28  ;;  %13618 = vmatprep.mubr.msk.f32.mxu1 %vm2797_vm11, %v2941_v25  ;;  %v16647_v32 = vld [vmem:[#allocation2 + $0x130] sm:$0xff]  ;;  %v16649_v20 = vld [vmem:[#allocation2 + $0x140] sm:$0xff] }
 0x33a   :  { %2821 = vst.msk [vmem:[#allocation2 + $0x170] sm:$0xff] %vm2797_vm11, %v2742_v58  ;;  %2822 = vst.msk [vmem:[#allocation2 + $0x180] sm:$0xff] %vm2797_vm11, %v2744_v18  ;;  %v2747_v22 = vrot.slane %v2660_v7, 7  ;;  %v2630_v26 = vadd.f32 %v13579_v14, %v16492_v0  ;;  %v2535_v36 = vpop.f32.mrb[27].mxu0  ;;  %v2942_v39 = vrot.slane %v16647_v32, 1  ;;  %v2944_v51 = vrot.slane %v16649_v20, 1 }
 0x33b   :  { %v2745_v10 = vrot.slane %v2659_v6, 7  ;;  %v2629_v62 = vadd.f32 %v16492_v0, %v2535_v36 }
 0x33c   :  { %v2662_v13 = vmax.f32 %v2630_v26, 0.0  ;;  %v2943_v5 = vsel %vm699_vm5, %v2940_v19, %v2942_v39  ;;  %v2945_v29 = vsel %vm699_vm5, %v2942_v39, %v2944_v51 }
 0x33d   :  { %v2746_v50 = vsel %vm234_vm2, %v2743_v38, %v2745_v10  ;;  %v2748_v42 = vsel %vm234_vm2, %v2745_v10, %v2747_v22  ;;  %v2661_v59 = vmax.f32 %v2629_v62, 0.0  ;;  %v13582_v31 = vpop.f32.mrb[28].mxu0  ;;  %13619 = vmatmul.mubr.msk.f32.vlgmr.msra.gmra.mrb[0].mxu1 %vm2797_vm11, %v2943_v5  ;;  %v16662_v40 = vld [vmem:[#allocation2 + $0x150] sm:$0xff]  ;;  %v16664_v41 = vld [vmem:[#allocation2 + $0x160] sm:$0xff]  ;;  %v16674_v38 = vpack.c.bf16 %v3633_v52, %v3632_v27 }
 0x33e   :  { %2823 = vst.msk [vmem:[#allocation2 + $0x190] sm:$0xff] %vm2797_vm11, %v2746_v50  ;;  %2824 = vst.msk [vmem:[#allocation2 + $0x1a0] sm:$0xff] %vm2797_vm11, %v2748_v42  ;;  %v2751_v45 = vrot.slane %v2662_v13, 7  ;;  %v2632_v15 = vadd.f32 %v13582_v31, %v16492_v0  ;;  %14401 = vmatpush3.bf16.msra.mxu1 %v16486_v16  ;;  %v2545_v54 = vpop.f32.mrb[29].mxu0  ;;  %13621 = vmatprep.mubr.msk.f32.mxu1 %vm2797_vm11, %v2945_v29  ;;  %v2946_v47 = vrot.slane %v16662_v40, 1  ;;  %v2948_v53 = vrot.slane %v16664_v41, 1 }
 0x33f   :  { %v2749_v12 = vrot.slane %v2661_v59, 7  ;;  %v2631_v60 = vadd.f32 %v16492_v0, %v2545_v54  ;;  %14403 = vmatprep.subr.bf16.mxu1 %v14402_v21 }
 0x340   :  { %v2664_v2 = vmax.f32 %v2632_v15, 0.0  ;;  %v2947_v11 = vsel %vm699_vm5, %v2944_v51, %v2946_v47  ;;  %v2949_v17 = vsel %vm699_vm5, %v2946_v47, %v2948_v53 }
 0x341   :  { %v2750_v16 = vsel %vm234_vm2, %v2747_v22, %v2749_v12  ;;  %v2752_v19 = vsel %vm234_vm2, %v2749_v12, %v2751_v45  ;;  %v2663_v44 = vmax.f32 %v2631_v60, 0.0  ;;  %v13585_v46 = vpop.f32.mrb[30].mxu0  ;;  %13622 = vmatmul.mubr.msk.f32.gmra.mrb[2].mxu1 %vm2797_vm11, %v2947_v11  ;;  %v16681_v7 = vld [vmem:[#allocation2 + $0x170] sm:$0xff]  ;;  %v16683_v28 = vld [vmem:[#allocation2 + $0x180] sm:$0xff] }
 0x342   :  { %2825 = vst.msk [vmem:[#allocation2 + $0x1b0] sm:$0xff] %vm2797_vm11, %v2750_v16  ;;  %2826 = vst.msk [vmem:[#allocation2 + $0x1c0] sm:$0xff] %vm2797_vm11, %v2752_v19  ;;  %v2755_v25 = vrot.slane %v2664_v2, 7  ;;  %v2634_v8 = vadd.f32 %v13585_v46, %v16492_v0  ;;  %v2555_v35 = vpop.f32.mrb[31].mxu0  ;;  %13624 = vmatprep.mubr.msk.f32.mxu1 %vm2797_vm11, %v2949_v17  ;;  %v2950_v58 = vrot.slane %v16681_v7, 1  ;;  %v2952_v18 = vrot.slane %v16683_v28, 1  ;;  %14405 = vmatpush3.bf16.msra.mxu1 %v14402_v21 }
 0x343   :  { %v2753_v6 = vrot.slane %v2663_v44, 7  ;;  %v2633_v14 = vadd.f32 %v16492_v0, %v2555_v35  ;;  %14407 = vmatprep.subr.bf16.mxu1 %v16674_v38 }
 0x344   :  { %v2666_v22 = vmax.f32 %v2634_v8, 0.0  ;;  %v2951_v26 = vsel %vm699_vm5, %v2948_v53, %v2950_v58  ;;  %v2953_v36 = vsel %vm699_vm5, %v2950_v58, %v2952_v18 }
 0x345   :  { %v2754_v39 = vsel %vm234_vm2, %v2751_v45, %v2753_v6  ;;  %v2756_v51 = vsel %vm234_vm2, %v2753_v6, %v2755_v25  ;;  %v2665_v10 = vmax.f32 %v2633_v14, 0.0  ;;  %13625 = vmatmul.mubr.msk.f32.gmra.mrb[4].mxu1 %vm2797_vm11, %v2951_v26  ;;  %v16698_v62 = vld [vmem:[#allocation2 + $0x190] sm:$0xff]  ;;  %v16700_v21 = vld [vmem:[#allocation2 + $0x1a0] sm:$0xff] }
 0x346   :  { %2827 = vst.msk [vmem:[#allocation2 + $0x1d0] sm:$0xff] %vm2797_vm11, %v2754_v39  ;;  %2828 = vst.msk [vmem:[#allocation2 + $0x1e0] sm:$0xff] %vm2797_vm11, %v2756_v51  ;;  %v2759_v0 = vrot.slane %v2666_v22, 7  ;;  %13627 = vmatprep.mubr.msk.f32.mxu1 %vm2797_vm11, %v2953_v36  ;;  %v2954_v13 = vrot.slane %v16698_v62, 1  ;;  %v2956_v5 = vrot.slane %v16700_v21, 1  ;;  %v3634_v6 = vld [vmem:[#allocation9 + $0x50] sm:$0xff] }
 0x347   :  { %v2757_v29 = vrot.slane %v2665_v10, 7  ;;  %v3635_v14 = vld [vmem:[#allocation9 + $0x58] sm:$0xff]  ;;  %v2832_v22 = vld [vmem:[#allocation2] sm:$0xff] }
 0x348   :  { %2831 = vst.msk [vmem:[#allocation2 + $0x210] sm:$0x1] %vm2813_vm12, %v2759_v0  ;;  %v2955_v27 = vsel %vm699_vm5, %v2952_v18, %v2954_v13  ;;  %v2957_v52 = vsel %vm699_vm5, %v2954_v13, %v2956_v5  ;;  %v14410_v26 = vpack.c.bf16 %v3635_v14, %v3634_v6  ;;  %v12508_v36 = vld [vmem:[%s20626_s4 + $0x40] sm:$0xff]  ;;  %v12509_v39 = vld [vmem:[%s20626_s4 + $0x48] sm:$0xff]  ;;  %v3566_v13 = vrot.slane %v16511_v48, 2 }
 0x349   :  { %v2758_v50 = vsel %vm234_vm2, %v2755_v25, %v2757_v29  ;;  %v2760_v42 = vsel %vm234_vm2, %v2757_v29, %v2759_v0  ;;  %13628 = vmatmul.mubr.msk.f32.gmra.mrb[6].mxu1 %vm2797_vm11, %v2955_v27  ;;  %v16713_v59 = vld [vmem:[#allocation2 + $0x1b0] sm:$0xff]  ;;  %v16715_v31 = vld [vmem:[#allocation2 + $0x1c0] sm:$0xff]  ;;  %v14414_v51 = vpack.c.bf16 %v12509_v39, %v12508_v36  ;;  %v3570_v27 = vrot.slane %v16524_v37, 2 }
 0x34a   :  { %2829 = vst.msk [vmem:[#allocation2 + $0x1f0] sm:$0xff] %vm2797_vm11, %v2758_v50  ;;  %2830 = vst.msk [vmem:[#allocation2 + $0x200] sm:$0xff] %vm2797_vm11, %v2760_v42  ;;  %13630 = vmatprep.mubr.msk.f32.mxu1 %vm2797_vm11, %v2957_v52  ;;  %v2958_v45 = vrot.slane %v16713_v59, 1  ;;  %v2960_v15 = vrot.slane %v16715_v31, 1  ;;  %v3557_v10 = vld [vmem:[#allocation2] sm:$0xfc] }
 0x34b   :  { %14415 = vmatprep.subr.bf16.mxu0 %v14414_v51  ;;  %v3565_v0 = vrot.slane %v3557_v10, 2  ;;  %v3572_v50 = vrot.slane %v16537_v4, 2  ;;  %v3574_v42 = vrot.slane %v16539_v43, 2  ;;  %v3603_v14 = vrot.slane %v16649_v20, 2 }
 0x34c   :  { %v2959_v54 = vsel %vm699_vm5, %v2956_v5, %v2958_v45  ;;  %v2961_v47 = vsel %vm699_vm5, %v2958_v45, %v2960_v15  ;;  %14417 = vmatpush3.bf16.msra.mxu0 %v14414_v51  ;;  %v3568_v5 = vrot.slane %v16522_v56, 2  ;;  %v3576_v45 = vrot.slane %v16553_v23, 2 }
 0x34d   :  { %13631 = vmatmul.mubr.msk.f32.gmra.mrb[8].mxu1 %vm2797_vm11, %v2959_v54  ;;  %v16725_v53 = vld [vmem:[#allocation2 + $0x1d0] sm:$0xff]  ;;  %v16727_v12 = vld [vmem:[#allocation2 + $0x1e0] sm:$0xff]  ;;  %v3567_v29 = vsel %vm974_vm6, %v3565_v0, %v3566_v13  ;;  %v3580_v54 = vrot.slane %v16569_v30, 2  ;;  %v3609_v36 = vrot.slane %v16681_v7, 2  ;;  %v3611_v39 = vrot.slane %v16683_v28, 2 }
 0x34e   :  { %13633 = vmatprep.mubr.msk.f32.mxu1 %vm2797_vm11, %v2961_v47  ;;  %v2962_v60 = vrot.slane %v16725_v53, 1  ;;  %v2964_v2 = vrot.slane %v16727_v12, 1  ;;  %v3569_v52 = vsel %vm974_vm6, %v3566_v13, %v3568_v5  ;;  %v3582_v47 = vrot.slane %v16571_v33, 2 }
 0x34f   :  { %v2871_v25 = vld [vmem:[#allocation2 + $0x210] sm:$0x1]  ;;  %v3613_v51 = vrot.slane %v16698_v62, 2  ;;  %v3615_v10 = vrot.slane %v16700_v21, 2  ;;  %v3617_v0 = vrot.slane %v16713_v59, 2  ;;  %v3619_v13 = vrot.slane %v16715_v31, 2 }
 0x350   :  { %v2963_v11 = vsel %vm699_vm5, %v2960_v15, %v2962_v60  ;;  %v2965_v17 = vsel %vm699_vm5, %v2962_v60, %v2964_v2  ;;  %v2970_v58 = vrot.slane %v2871_v25, 1  ;;  %v3578_v15 = vrot.slane %v16555_v34, 2  ;;  %v3558_v25 = vld [vmem:[#allocation2 + $0x100] sm:$0x3] }
 0x351   :  { %13634 = vmatmul.mubr.msk.f32.gmra.mrb[10].mxu1 %vm2797_vm11, %v2963_v11  ;;  %v16735_v16 = vld [vmem:[#allocation2 + $0x1f0] sm:$0xff]  ;;  %v16737_v19 = vld [vmem:[#allocation2 + $0x200] sm:$0xff]  ;;  %v3584_v60 = vrot.slane %v16586_v61, 2  ;;  %v3588_v11 = vrot.slane %v16602_v9, 2 }
 0x352   :  { %13636 = vmatprep.mubr.msk.f32.mxu1 %vm2797_vm11, %v2965_v17  ;;  %v2966_v44 = vrot.slane %v16735_v16, 1  ;;  %v2968_v46 = vrot.slane %v16737_v19, 1  ;;  %v3590_v17 = vrot.slane %v16604_v63, 2 }
 0x354   :  { %v2967_v8 = vsel %vm699_vm5, %v2964_v2, %v2966_v44  ;;  %v2969_v35 = vsel %vm699_vm5, %v2966_v44, %v2968_v46  ;;  %v2971_v18 = vsel %vm699_vm5, %v2968_v46, %v2970_v58  ;;  %v3586_v2 = vrot.slane %v16588_v49, 2 }
 0x355   :  { %13637 = vmatmul.mubr.msk.f32.gmra.mrb[12].mxu1 %vm2797_vm11, %v2967_v8  ;;  %v3592_v44 = vrot.slane %v16617_v57, 2  ;;  %v3594_v46 = vrot.slane %v16619_v24, 2  ;;  %v3599_v58 = vrot.slane %v16633_v55, 2 }
 0x356   :  { %13639 = vmatprep.mubr.msk.f32.mxu1 %vm2797_vm11, %v2969_v35 }
 0x357   :  { %v3593_v8 = vsel %vm974_vm6, %v3590_v17, %v3592_v44 }
 0x359   :  { %13640 = vmatmul.mubr.msk.f32.gmra.mrb[14].mxu1 %vm2797_vm11, %v2971_v18 }
 0x35a   :  { %13650 = vmatprep.mubr.msk.f32.mxu1 %vm2797_vm11, %v2832_v22 }
 0x35d   :  { %13651 = vmatmul.mubr.msk.f32.vlgmr.msra.gmra.mrb[16].mxu1 %vm2797_vm11, %v16511_v48  ;;  %v3571_v48 = vsel %vm974_vm6, %v3568_v5, %v3570_v27  ;;  %v3621_v5 = vrot.slane %v16725_v53, 2 }
 0x35e   :  { %14409 = vmatpush3.bf16.msra.mxu1 %v16674_v38  ;;  %13653 = vmatprep.mubr.msk.f32.mxu1 %vm2797_vm11, %v16522_v56  ;;  %v2848_v38 = vld [vmem:[#allocation2 + $0x110] sm:$0xff]  ;;  %v3573_v56 = vsel %vm974_vm6, %v3570_v27, %v3572_v50  ;;  %v3625_v27 = vrot.slane %v16735_v16, 2 }
 0x35f   :  { %14411 = vmatprep.subr.bf16.mxu1 %v14410_v26 }
 0x361   :  { %13654 = vmatmul.mubr.msk.f32.gmra.mrb[18].mxu1 %vm2797_vm11, %v16524_v37  ;;  %v3575_v37 = vsel %vm974_vm6, %v3572_v50, %v3574_v42 }
 0x362   :  { %13656 = vmatprep.mubr.msk.f32.mxu1 %vm2797_vm11, %v16537_v4  ;;  %14413 = vmatpush3.bf16.msra.mxu1 %v14410_v26  ;;  %v3577_v4 = vsel %vm974_vm6, %v3574_v42, %v3576_v45  ;;  %v3605_v26 = vrot.slane %v16662_v40, 2 }
 0x365   :  { %13657 = vmatmul.mubr.msk.f32.gmra.mrb[20].mxu1 %vm2797_vm11, %v16539_v43  ;;  %v3579_v43 = vsel %vm974_vm6, %v3576_v45, %v3578_v15 }
 0x366   :  { %13659 = vmatprep.mubr.msk.f32.mxu1 %vm2797_vm11, %v16553_v23  ;;  %v3581_v23 = vsel %vm974_vm6, %v3578_v15, %v3580_v54 }
 0x369   :  { %13660 = vmatmul.mubr.msk.f32.gmra.mrb[22].mxu1 %vm2797_vm11, %v16555_v34  ;;  %v3583_v34 = vsel %vm974_vm6, %v3580_v54, %v3582_v47  ;;  %v12511_v54 = vld [vmem:[%s20626_s4 + $0x58] sm:$0xff] }
 0x36a   :  { %13662 = vmatprep.mubr.msk.f32.mxu1 %vm2797_vm11, %v16569_v30  ;;  %v3585_v30 = vsel %vm974_vm6, %v3582_v47, %v3584_v60 }
 0x36d   :  { %13663 = vmatmul.mubr.msk.f32.gmra.mrb[24].mxu1 %vm2797_vm11, %v16571_v33  ;;  %v3587_v33 = vsel %vm974_vm6, %v3584_v60, %v3586_v2 }
 0x36e   :  { %13665 = vmatprep.mubr.msk.f32.mxu1 %vm2797_vm11, %v16586_v61  ;;  %v3589_v61 = vsel %vm974_vm6, %v3586_v2, %v3588_v11  ;;  %v12512_v2 = vld [vmem:[%s20626_s4 + $0x60] sm:$0xff] }
 0x371   :  { %13666 = vmatmul.mubr.msk.f32.gmra.mrb[26].mxu1 %vm2797_vm11, %v16588_v49  ;;  %v3591_v49 = vsel %vm974_vm6, %v3588_v11, %v3590_v17 }
 0x372   :  { %13668 = vmatprep.mubr.msk.f32.mxu1 %vm2797_vm11, %v16602_v9  ;;  %v3559_v9 = vld [vmem:[#allocation2 + $0x110] sm:$0xfc] }
 0x373   :  { %v3598_v35 = vrot.slane %v3559_v9, 2 }
 0x375   :  { %13669 = vmatmul.mubr.msk.f32.gmra.mrb[28].mxu1 %vm2797_vm11, %v16604_v63  ;;  %v3595_v63 = vsel %vm974_vm6, %v3592_v44, %v3594_v46  ;;  %v3600_v6 = vsel %vm974_vm6, %v3598_v35, %v3599_v58  ;;  %v4226_v35 = vld [vmem:[%s20626_s4 + $0x8] sm:$0xff] }
 0x376   :  { %13671 = vmatprep.mubr.msk.f32.mxu1 %vm2797_vm11, %v16617_v57  ;;  %v3596_v57 = vrot.slane %v3558_v25, 2 }
 0x378   :  { %v3597_v18 = vsel %vm974_vm6, %v3594_v46, %v3596_v57  ;;  %v12515_v46 = vld [vmem:[%s20626_s4 + $0x78] sm:$0xff] }
 0x379   :  { %13672 = vmatmul.mubr.msk.f32.gmra.mrb[30].mxu1 %vm2797_vm11, %v16619_v24  ;;  %v3601_v24 = vrot.slane %v16647_v32, 2 }
 0x37a   :  { %13674 = vmatprep.mubr.msk.f32.mxu1 %vm2797_vm11, %v2848_v38  ;;  %v3607_v38 = vrot.slane %v16664_v41, 2 }
 0x37b   :  { %v3602_v22 = vsel %vm974_vm6, %v3599_v58, %v3601_v24 }
 0x37d   :  { %13675 = vmatmul.mubr.msk.f32.gmra.mrb[0].mxu1 %vm2797_vm11, %v16633_v55  ;;  %v3604_v55 = vsel %vm974_vm6, %v3601_v24, %v3603_v14 }
 0x37e   :  { %13677 = vmatprep.mubr.msk.f32.mxu1 %vm2797_vm11, %v16647_v32  ;;  %v3606_v32 = vsel %vm974_vm6, %v3603_v14, %v3605_v26 }
 0x381   :  { %13678 = vmatmul.mubr.msk.f32.gmra.mrb[2].mxu1 %vm2797_vm11, %v16649_v20  ;;  %v3608_v20 = vsel %vm974_vm6, %v3605_v26, %v3607_v38 }
 0x382   :  { %13680 = vmatprep.mubr.msk.f32.mxu1 %vm2797_vm11, %v16662_v40  ;;  %v3610_v40 = vsel %vm974_vm6, %v3607_v38, %v3609_v36 }
 0x385   :  { %13681 = vmatmul.mubr.msk.f32.gmra.mrb[4].mxu1 %vm2797_vm11, %v16664_v41  ;;  %v3612_v41 = vsel %vm974_vm6, %v3609_v36, %v3611_v39 }
 0x386   :  { %13683 = vmatprep.mubr.msk.f32.mxu1 %vm2797_vm11, %v16681_v7  ;;  %v3614_v7 = vsel %vm974_vm6, %v3611_v39, %v3613_v51 }
 0x389   :  { %13684 = vmatmul.mubr.msk.f32.gmra.mrb[6].mxu1 %vm2797_vm11, %v16683_v28  ;;  %v3616_v28 = vsel %vm974_vm6, %v3613_v51, %v3615_v10 }
 0x38a   :  { %13686 = vmatprep.mubr.msk.f32.mxu1 %vm2797_vm11, %v16698_v62  ;;  %v3618_v62 = vsel %vm974_vm6, %v3615_v10, %v3617_v0 }
 0x38d   :  { %13687 = vmatmul.mubr.msk.f32.gmra.mrb[8].mxu1 %vm2797_vm11, %v16700_v21  ;;  %v3620_v21 = vsel %vm974_vm6, %v3617_v0, %v3619_v13 }
 0x38e   :  { %13689 = vmatprep.mubr.msk.f32.mxu1 %vm2797_vm11, %v16713_v59  ;;  %v3622_v59 = vsel %vm974_vm6, %v3619_v13, %v3621_v5 }
 0x391   :  { %13690 = vmatmul.mubr.msk.f32.gmra.mrb[10].mxu1 %vm2797_vm11, %v16715_v31 }
 0x392   :  { %13692 = vmatprep.mubr.msk.f32.mxu1 %vm2797_vm11, %v16725_v53  ;;  %v3560_v53 = vld [vmem:[#allocation2 + $0x210] sm:$0x3] }
 0x395   :  { %13693 = vmatmul.mubr.msk.f32.gmra.mrb[12].mxu1 %vm2797_vm11, %v16727_v12 }
 0x396   :  { %13695 = vmatprep.mubr.msk.f32.mxu1 %vm2797_vm11, %v16735_v16 }
 0x399   :  { %13696 = vmatmul.mubr.msk.f32.gmra.mrb[14].mxu1 %vm2797_vm11, %v16737_v19 }
 0x39a   :  { %13706 = vmatprep.mubr.msk.f32.mxu1 %vm2797_vm11, %v3567_v29  ;;  %v3623_v29 = vrot.slane %v16727_v12, 2 }
 0x39c   :  { %v3624_v31 = vsel %vm974_vm6, %v3621_v5, %v3623_v29  ;;  %v3626_v50 = vsel %vm974_vm6, %v3623_v29, %v3625_v27 }
 0x39d   :  { %13707 = vmatmul.mubr.msk.f32.vlgmr.msra.gmra.mrb[16].mxu1 %vm2797_vm11, %v3569_v52  ;;  %v3627_v52 = vrot.slane %v16737_v19, 2 }
 0x39e   :  { %13709 = vmatprep.mubr.msk.f32.mxu1 %vm2797_vm11, %v3571_v48  ;;  %v3629_v48 = vrot.slane %v3560_v53, 2 }
 0x39f   :  { %v3628_v12 = vsel %vm974_vm6, %v3625_v27, %v3627_v52 }
 0x3a0   :  { %v3630_v16 = vsel %vm974_vm6, %v3627_v52, %v3629_v48 }
 0x3a1   :  { %13710 = vmatmul.mubr.msk.f32.gmra.mrb[18].mxu1 %vm2797_vm11, %v3573_v56 }
 0x3a2   :  { %13712 = vmatprep.mubr.msk.f32.mxu1 %vm2797_vm11, %v3575_v37 }
 0x3a5   :  { %13713 = vmatmul.mubr.msk.f32.gmra.mrb[20].mxu1 %vm2797_vm11, %v3577_v4  ;;  %v12510_v4 = vld [vmem:[%s20626_s4 + $0x50] sm:$0xff] }
 0x3a6   :  { %13715 = vmatprep.mubr.msk.f32.mxu1 %vm2797_vm11, %v3579_v43  ;;  %v14418_v47 = vpack.c.bf16 %v12511_v54, %v12510_v4 }
 0x3a8   :  { %14419 = vmatprep.subr.bf16.mxu0 %v14418_v47 }
 0x3a9   :  { %13716 = vmatmul.mubr.msk.f32.gmra.mrb[22].mxu1 %vm2797_vm11, %v3581_v23  ;;  %14421 = vmatpush3.bf16.msra.mxu0 %v14418_v47 }
 0x3aa   :  { %13718 = vmatprep.mubr.msk.f32.mxu1 %vm2797_vm11, %v3583_v34 }
 0x3ad   :  { %13719 = vmatmul.mubr.msk.f32.gmra.mrb[24].mxu1 %vm2797_vm11, %v3585_v30  ;;  %v12513_v30 = vld [vmem:[%s20626_s4 + $0x68] sm:$0xff] }
 0x3ae   :  { %13721 = vmatprep.mubr.msk.f32.mxu1 %vm2797_vm11, %v3587_v33  ;;  %v14422_v33 = vpack.c.bf16 %v12513_v30, %v12512_v2 }
 0x3b0   :  { %14423 = vmatprep.subr.bf16.mxu0 %v14422_v33 }
 0x3b1   :  { %13722 = vmatmul.mubr.msk.f32.gmra.mrb[26].mxu1 %vm2797_vm11, %v3589_v61  ;;  %14425 = vmatpush3.bf16.msra.mxu0 %v14422_v33 }
 0x3b2   :  { %13724 = vmatprep.mubr.msk.f32.mxu1 %vm2797_vm11, %v3591_v49  ;;  %v12514_v49 = vld [vmem:[%s20626_s4 + $0x70] sm:$0xff] }
 0x3b3   :  { %v14426_v25 = vpack.c.bf16 %v12515_v46, %v12514_v49 }
 0x3b5   :  { %13725 = vmatmul.mubr.msk.f32.gmra.mrb[28].mxu1 %vm2797_vm11, %v3593_v8  ;;  %14427 = vmatprep.subr.bf16.mxu0 %v14426_v25 }
 0x3b6   :  { %13727 = vmatprep.mubr.msk.f32.mxu1 %vm2797_vm11, %v3595_v63  ;;  %14429 = vmatpush3.bf16.msra.mxu0 %v14426_v25  ;;  %v4225_v63 = vld [vmem:[%s20626_s4] sm:$0xff] }
 0x3b7   :  { %v16954_v58 = vpack.c.bf16 %v4226_v35, %v4225_v63 }
 0x3b9   :  { %13728 = vmatmul.mubr.msk.f32.gmra.mrb[30].mxu1 %vm2797_vm11, %v3597_v18  ;;  %14431 = vmatprep.subr.bf16.mxu0 %v16954_v58  ;;  %v16960_v18 = vld [vmem:[%s20634_s12] ss:$0 sm:$0xff] }
 0x3ba   :  { %13730 = vmatprep.mubr.msk.f32.mxu1 %vm2797_vm11, %v3600_v6 }
 0x3bd   :  { %13731 = vmatmul.mubr.msk.f32.gmra.mrb[0].mxu1 %vm2797_vm11, %v3602_v22 }
 0x3be   :  { %13733 = vmatprep.mubr.msk.f32.mxu1 %vm2797_vm11, %v3604_v55 }
 0x3c1   :  { %13734 = vmatmul.mubr.msk.f32.gmra.mrb[2].mxu1 %vm2797_vm11, %v3606_v32 }
 0x3c2   :  { %13736 = vmatprep.mubr.msk.f32.mxu1 %vm2797_vm11, %v3608_v20 }
 0x3c5   :  { %13737 = vmatmul.mubr.msk.f32.gmra.mrb[4].mxu1 %vm2797_vm11, %v3610_v40 }
 0x3c6   :  { %13739 = vmatprep.mubr.msk.f32.mxu1 %vm2797_vm11, %v3612_v41 }
 0x3c9   :  { %13740 = vmatmul.mubr.msk.f32.gmra.mrb[6].mxu1 %vm2797_vm11, %v3614_v7 }
 0x3ca   :  { %13742 = vmatprep.mubr.msk.f32.mxu1 %vm2797_vm11, %v3616_v28 }
 0x3cd   :  { %13743 = vmatmul.mubr.msk.f32.gmra.mrb[8].mxu1 %vm2797_vm11, %v3618_v62 }
 0x3ce   :  { %13745 = vmatprep.mubr.msk.f32.mxu1 %vm2797_vm11, %v3620_v21 }
 0x3d1   :  { %13746 = vmatmul.mubr.msk.f32.gmra.mrb[10].mxu1 %vm2797_vm11, %v3622_v59 }
 0x3d2   :  { %13748 = vmatprep.mubr.msk.f32.mxu1 %vm2797_vm11, %v3624_v31 }
 0x3d5   :  { %13749 = vmatmul.mubr.msk.f32.gmra.mrb[12].mxu1 %vm2797_vm11, %v3626_v50 }
 0x3d6   :  { %13751 = vmatprep.mubr.msk.f32.mxu1 %vm2797_vm11, %v3628_v12 }
 0x3d9   :  { %13752 = vmatmul.mubr.msk.f32.gmra.mrb[14].mxu1 %vm2797_vm11, %v3630_v16 }
 0x3da   :  { %5860 = vmatprep.mubr.f32.mxu1 %v15502_v3 }
 0x3f0   :  { %v13596_v42 = vpop.f32.mrb[32].mxu0 }
 0x3f1   :  { %v3107_v19 = vpop.f32.mrb[33].mxu0 }
 0x3f4   :  { %v13599_v56 = vpop.f32.mrb[34].mxu0 }
 0x3f5   :  { %v3117_v45 = vpop.f32.mrb[35].mxu0 }
 0x3f8   :  { %v13602_v37 = vpop.f32.mrb[36].mxu0 }
 0x3f9   :  { %v3127_v15 = vpop.f32.mrb[37].mxu0 }
 0x3fc   :  { %v13605_v43 = vpop.f32.mrb[38].mxu0 }
 0x3fd   :  { %v16918_v23 = vpop.f32.mrb[39].mxu0 }
 0x400   :  { %v16920_v60 = vpop.f32.mrb[40].mxu0 }
 0x401   :  { %v16922_v34 = vpop.f32.mrb[41].mxu0 }
 0x404   :  { %v16930_v11 = vpop.f32.mrb[42].mxu0 }
 0x405   :  { %v16932_v17 = vpop.f32.mrb[43].mxu0 }
 0x408   :  { %v16934_v61 = vpop.f32.mrb[44].mxu0 }
 0x409   :  { %v16936_v44 = vpop.f32.mrb[45].mxu0 }
 0x40c   :  { %v16944_v9 = vpop.f32.mrb[46].mxu0 }
 0x40d   :  { %v16946_v8 = vpop.f32.mrb[47].mxu0 }
 0x470   :  { %v13708_v57 = vpop.f32.mrb[16].mxu1 }
 0x471   :  { %v14850_v24 = vadd.f32 %v13708_v57, %v13596_v42  ;;  %v3766_v6 = vpop.f32.mrb[17].mxu1 }
 0x472   :  { %v14851_v14 = vadd.f32 %v3766_v6, %v3107_v19 }
 0x473   :  { %v3965_v22 = vadd.f32 %v14850_v24, %v16960_v18 }
 0x474   :  { %v3964_v26 = vadd.f32 %v14851_v14, %v16960_v18  ;;  %v13711_v55 = vpop.f32.mrb[18].mxu1 }
 0x475   :  { %v3997_v38 = vmax.f32 %v3965_v22, 0.0  ;;  %v14852_v32 = vadd.f32 %v13711_v55, %v13599_v56  ;;  %v3776_v36 = vpop.f32.mrb[19].mxu1  ;;  %v4227_v55 = vld [vmem:[%s20626_s4 + $0x10] sm:$0xff] }
 0x476   :  { %v3996_v20 = vmax.f32 %v3964_v26, 0.0  ;;  %v14853_v39 = vadd.f32 %v3776_v36, %v3117_v45 }
 0x477   :  { %v4061_v40 = vrot.slane %v3997_v38, 7  ;;  %v3967_v51 = vadd.f32 %v14852_v32, %v16960_v18  ;;  %v4228_v38 = vld [vmem:[%s20626_s4 + $0x18] sm:$0xff] }
 0x478   :  { %v4060_v41 = vrot.slane %v3996_v20, 7  ;;  %v3966_v10 = vadd.f32 %v14853_v39, %v16960_v18  ;;  %v13714_v7 = vpop.f32.mrb[20].mxu1 }
 0x479   :  { %v3999_v0 = vmax.f32 %v3967_v51, 0.0  ;;  %v14854_v28 = vadd.f32 %v13714_v7, %v13602_v37  ;;  %v3786_v13 = vpop.f32.mrb[21].mxu1 }
 0x47a   :  { %v4062_v62 = vsel %vm234_vm2, %v4060_v41, %v4061_v40  ;;  %4157 = vst.msk [vmem:[#allocation3] sm:$0xfe] %vm4156_vm13, %v4060_v41  ;;  %v3998_v5 = vmax.f32 %v3966_v10, 0.0  ;;  %v14855_v21 = vadd.f32 %v3786_v13, %v3127_v15  ;;  %v14434_v13 = vpack.c.bf16 %v4228_v38, %v4227_v55 }
 0x47b   :  { %4159 = vst.msk [vmem:[#allocation3 + $0x10] sm:$0xff] %vm4158_vm14, %v4062_v62  ;;  %v4065_v29 = vrot.slane %v3999_v0, 7  ;;  %v3969_v59 = vadd.f32 %v14854_v28, %v16960_v18 }
 0x47c   :  { %v4063_v27 = vrot.slane %v3998_v5, 7  ;;  %v3968_v31 = vadd.f32 %v14855_v21, %v16960_v18  ;;  %v13717_v52 = vpop.f32.mrb[22].mxu1 }
 0x47d   :  { %v4001_v53 = vmax.f32 %v3969_v59, 0.0  ;;  %v14856_v50 = vadd.f32 %v13717_v52, %v13605_v43  ;;  %v3796_v12 = vpop.f32.mrb[23].mxu1 }
 0x47e   :  { %v4064_v48 = vsel %vm234_vm2, %v4061_v40, %v4063_v27  ;;  %v4066_v16 = vsel %vm234_vm2, %v4063_v27, %v4065_v29  ;;  %v4000_v42 = vmax.f32 %v3968_v31, 0.0  ;;  %v14857_v19 = vadd.f32 %v3796_v12, %v16918_v23  ;;  %v4229_v27 = vld [vmem:[%s20626_s4 + $0x20] sm:$0xff]  ;;  %v4230_v31 = vld [vmem:[%s20626_s4 + $0x28] sm:$0xff] }
 0x47f   :  { %4160 = vst.msk [vmem:[#allocation3 + $0x20] sm:$0xff] %vm4158_vm14, %v4064_v48  ;;  %4161 = vst.msk [vmem:[#allocation3 + $0x30] sm:$0xff] %vm4158_vm14, %v4066_v16  ;;  %v4069_v56 = vrot.slane %v4001_v53, 7  ;;  %v3971_v45 = vadd.f32 %v14856_v50, %v16960_v18 }
 0x480   :  { %v4067_v37 = vrot.slane %v4000_v42, 7  ;;  %v3970_v15 = vadd.f32 %v14857_v19, %v16960_v18  ;;  %v13720_v4 = vpop.f32.mrb[24].mxu1 }
 0x481   :  { %v4003_v54 = vmax.f32 %v3971_v45, 0.0  ;;  %v14858_v43 = vadd.f32 %v13720_v4, %v16920_v60  ;;  %v3806_v47 = vpop.f32.mrb[25].mxu1  ;;  %v4233_v2 = vld [vmem:[#allocation3] sm:$0xfe] }
 0x482   :  { %v4068_v30 = vsel %vm234_vm2, %v4065_v29, %v4067_v37  ;;  %v4070_v23 = vsel %vm234_vm2, %v4067_v37, %v4069_v56  ;;  %v4002_v33 = vmax.f32 %v3970_v15, 0.0  ;;  %v14859_v49 = vadd.f32 %v3806_v47, %v16922_v34  ;;  %v16982_v46 = vld [vmem:[#allocation3 + $0x10] sm:$0xff] }
 0x483   :  { %4162 = vst.msk [vmem:[#allocation3 + $0x40] sm:$0xff] %vm4158_vm14, %v4068_v30  ;;  %4163 = vst.msk [vmem:[#allocation3 + $0x50] sm:$0xff] %vm4158_vm14, %v4070_v23  ;;  %v4073_v25 = vrot.slane %v4003_v54, 7  ;;  %v3973_v63 = vadd.f32 %v14858_v43, %v16960_v18  ;;  %v4271_v35 = vrot.slane %v4233_v2, 1  ;;  %v4272_v60 = vrot.slane %v16982_v46, 1  ;;  %v4231_v2 = vld [vmem:[%s20626_s4 + $0x30] sm:$0xff] }
 0x484   :  { %v4071_v57 = vrot.slane %v4002_v33, 7  ;;  %v3972_v24 = vadd.f32 %v14859_v49, %v16960_v18  ;;  %v13723_v6 = vpop.f32.mrb[26].mxu1  ;;  %v14438_v15 = vpack.c.bf16 %v4230_v31, %v4229_v27  ;;  %v4232_v30 = vld [vmem:[%s20626_s4 + $0x38] sm:$0xff] }
 0x485   :  { %v4005_v14 = vmax.f32 %v3973_v63, 0.0  ;;  %v14860_v22 = vadd.f32 %v13723_v6, %v16930_v11  ;;  %v3816_v34 = vpop.f32.mrb[27].mxu1  ;;  %v4273_v26 = vsel %vm699_vm5, %v4271_v35, %v4272_v60 }
 0x486   :  { %v4072_v32 = vsel %vm234_vm2, %v4069_v56, %v4071_v57  ;;  %v4074_v36 = vsel %vm234_vm2, %v4071_v57, %v4073_v25  ;;  %v4004_v20 = vmax.f32 %v3972_v24, 0.0  ;;  %v14861_v39 = vadd.f32 %v3816_v34, %v16932_v17  ;;  %13770 = vmatprep.mubr.msk.f32.mxu0 %vm4158_vm14, %v4273_v26  ;;  %v17001_v11 = vld [vmem:[#allocation3 + $0x20] sm:$0xff]  ;;  %v17003_v40 = vld [vmem:[#allocation3 + $0x30] sm:$0xff] }
 0x487   :  { %4164 = vst.msk [vmem:[#allocation3 + $0x60] sm:$0xff] %vm4158_vm14, %v4072_v32  ;;  %4165 = vst.msk [vmem:[#allocation3 + $0x70] sm:$0xff] %vm4158_vm14, %v4074_v36  ;;  %v4077_v51 = vrot.slane %v4005_v14, 7  ;;  %v3975_v41 = vadd.f32 %v14860_v22, %v16960_v18  ;;  %v4274_v10 = vrot.slane %v17001_v11, 1  ;;  %v4276_v7 = vrot.slane %v17003_v40, 1  ;;  %v12580_v36 = vld [vmem:[%s20626_s4 + $0x80] sm:$0xff] }
 0x488   :  { %v4075_v0 = vrot.slane %v4004_v20, 7  ;;  %v3974_v17 = vadd.f32 %v14861_v39, %v16960_v18  ;;  %v13726_v28 = vpop.f32.mrb[28].mxu1  ;;  %v14442_v22 = vpack.c.bf16 %v4232_v30, %v4231_v2  ;;  %v12581_v20 = vld [vmem:[%s20626_s4 + $0x88] sm:$0xff] }
 0x489   :  { %v4007_v62 = vmax.f32 %v3975_v41, 0.0  ;;  %v14862_v5 = vadd.f32 %v13726_v28, %v16934_v61  ;;  %v3826_v21 = vpop.f32.mrb[29].mxu1  ;;  %v4275_v29 = vsel %vm699_vm5, %v4272_v60, %v4274_v10  ;;  %v4277_v59 = vsel %vm699_vm5, %v4274_v10, %v4276_v7 }
 0x48a   :  { %v4076_v52 = vsel %vm234_vm2, %v4073_v25, %v4075_v0  ;;  %v4078_v53 = vsel %vm234_vm2, %v4075_v0, %v4077_v51  ;;  %v4006_v50 = vmax.f32 %v3974_v17, 0.0  ;;  %v14863_v61 = vadd.f32 %v3826_v21, %v16936_v44  ;;  %13771 = vmatmul.mubr.msk.f32.vlgmr.msra.gmra.mrb[48].mxu0 %vm4158_vm14, %v4275_v29  ;;  %v17024_v12 = vld [vmem:[#allocation3 + $0x40] sm:$0xff]  ;;  %v17026_v48 = vld [vmem:[#allocation3 + $0x50] sm:$0xff] }
 0x48b   :  { %4166 = vst.msk [vmem:[#allocation3 + $0x80] sm:$0xff] %vm4158_vm14, %v4076_v52  ;;  %4167 = vst.msk [vmem:[#allocation3 + $0x90] sm:$0xff] %vm4158_vm14, %v4078_v53  ;;  %v4081_v16 = vrot.slane %v4007_v62, 7  ;;  %v3977_v42 = vadd.f32 %v14862_v5, %v16960_v18  ;;  %14433 = vmatpush3.bf16.msra.mxu0 %v16954_v58  ;;  %13773 = vmatprep.mubr.msk.f32.mxu0 %vm4158_vm14, %v4277_v59  ;;  %v4278_v19 = vrot.slane %v17024_v12, 1  ;;  %v4280_v44 = vrot.slane %v17026_v48, 1 }
 0x48c   :  { %v4079_v56 = vrot.slane %v4006_v50, 7  ;;  %v3976_v45 = vadd.f32 %v14863_v61, %v16960_v18  ;;  %v13729_v37 = vpop.f32.mrb[30].mxu1  ;;  %14435 = vmatprep.subr.bf16.mxu0 %v14434_v13  ;;  %v17082_v59 = vpack.c.bf16 %v12581_v20, %v12580_v36 }
 0x48d   :  { %v4009_v4 = vmax.f32 %v3977_v42, 0.0  ;;  %v14864_v54 = vadd.f32 %v13729_v37, %v16944_v9  ;;  %v3836_v43 = vpop.f32.mrb[31].mxu1  ;;  %v4279_v47 = vsel %vm699_vm5, %v4276_v7, %v4278_v19  ;;  %v4281_v58 = vsel %vm699_vm5, %v4278_v19, %v4280_v44 }
 0x48e   :  { %v4080_v23 = vsel %vm234_vm2, %v4077_v51, %v4079_v56  ;;  %v4082_v33 = vsel %vm234_vm2, %v4079_v56, %v4081_v16  ;;  %v4008_v49 = vmax.f32 %v3976_v45, 0.0  ;;  %v14865_v9 = vadd.f32 %v3836_v43, %v16946_v8  ;;  %13774 = vmatmul.mubr.msk.f32.gmra.mrb[50].mxu0 %vm4158_vm14, %v4279_v47  ;;  %v17049_v25 = vld [vmem:[#allocation3 + $0x60] sm:$0xff]  ;;  %v17051_v63 = vld [vmem:[#allocation3 + $0x70] sm:$0xff] }
 0x48f   :  { %4168 = vst.msk [vmem:[#allocation3 + $0xa0] sm:$0xff] %vm4158_vm14, %v4080_v23  ;;  %4169 = vst.msk [vmem:[#allocation3 + $0xb0] sm:$0xff] %vm4158_vm14, %v4082_v33  ;;  %v4085_v35 = vrot.slane %v4009_v4, 7  ;;  %v3979_v60 = vadd.f32 %v14864_v54, %v16960_v18  ;;  %13776 = vmatprep.mubr.msk.f32.mxu0 %vm4158_vm14, %v4281_v58  ;;  %v4282_v57 = vrot.slane %v17049_v25, 1  ;;  %v4284_v24 = vrot.slane %v17051_v63, 1  ;;  %14437 = vmatpush3.bf16.msra.mxu0 %v14434_v13 }
 0x490   :  { %v4083_v8 = vrot.slane %v4008_v49, 7  ;;  %v3978_v6 = vadd.f32 %v14865_v9, %v16960_v18  ;;  %v13732_v14 = vpop.f32.mrb[0].mxu1  ;;  %14439 = vmatprep.subr.bf16.mxu0 %v14438_v15 }
 0x491   :  { %v4011_v34 = vmax.f32 %v3979_v60, 0.0  ;;  %v3981_v26 = vadd.f32 %v13732_v14, %v16960_v18  ;;  %v3846_v55 = vpop.f32.mrb[1].mxu1  ;;  %v4283_v38 = vsel %vm699_vm5, %v4280_v44, %v4282_v57  ;;  %v4285_v32 = vsel %vm699_vm5, %v4282_v57, %v4284_v24 }
 0x492   :  { %v4084_v39 = vsel %vm234_vm2, %v4081_v16, %v4083_v8  ;;  %v4086_v51 = vsel %vm234_vm2, %v4083_v8, %v4085_v35  ;;  %v4010_v41 = vmax.f32 %v3978_v6, 0.0  ;;  %v3980_v10 = vadd.f32 %v16960_v18, %v3846_v55  ;;  %13777 = vmatmul.mubr.msk.f32.gmra.mrb[52].mxu0 %vm4158_vm14, %v4283_v38  ;;  %v17073_v7 = vld [vmem:[#allocation3 + $0x80] sm:$0xff]  ;;  %v17075_v0 = vld [vmem:[#allocation3 + $0x90] sm:$0xff] }
 0x493   :  { %4170 = vst.msk [vmem:[#allocation3 + $0xc0] sm:$0xff] %vm4158_vm14, %v4084_v39  ;;  %4171 = vst.msk [vmem:[#allocation3 + $0xd0] sm:$0xff] %vm4158_vm14, %v4086_v51  ;;  %v4089_v17 = vrot.slane %v4011_v34, 7  ;;  %v4013_v28 = vmax.f32 %v3981_v26, 0.0  ;;  %13779 = vmatprep.mubr.msk.f32.mxu0 %vm4158_vm14, %v4285_v32  ;;  %v4286_v13 = vrot.slane %v17073_v7, 1  ;;  %v4288_v62 = vrot.slane %v17075_v0, 1  ;;  %14441 = vmatpush3.bf16.msra.mxu0 %v14438_v15 }
 0x494   :  { %v4087_v5 = vrot.slane %v4010_v41, 7  ;;  %v4012_v21 = vmax.f32 %v3980_v10, 0.0  ;;  %v13735_v29 = vpop.f32.mrb[2].mxu1  ;;  %14443 = vmatprep.subr.bf16.mxu0 %v14442_v22 }
 0x495   :  { %4175 = vst.msk [vmem:[#allocation3 + $0x100] sm:$0x1] %vm4174_vm15, %v4089_v17  ;;  %v4092_v27 = vrot.slane %v4013_v28, 7  ;;  %v3983_v31 = vadd.f32 %v13735_v29, %v16960_v18  ;;  %v3856_v52 = vpop.f32.mrb[3].mxu1  ;;  %v4287_v53 = vsel %vm699_vm5, %v4284_v24, %v4286_v13  ;;  %v4289_v50 = vsel %vm699_vm5, %v4286_v13, %v4288_v62 }
 0x496   :  { %v4088_v61 = vsel %vm234_vm2, %v4085_v35, %v4087_v5  ;;  %v4090_v16 = vsel %vm234_vm2, %v4087_v5, %v4089_v17  ;;  %v4091_v42 = vrot.slane %v4012_v21, 7  ;;  %v3982_v19 = vadd.f32 %v16960_v18, %v3856_v52  ;;  %13780 = vmatmul.mubr.msk.f32.gmra.mrb[54].mxu0 %vm4158_vm14, %v4287_v53  ;;  %v17092_v44 = vld [vmem:[#allocation3 + $0xa0] sm:$0xff]  ;;  %v17094_v56 = vld [vmem:[#allocation3 + $0xb0] sm:$0xff] }
 0x497   :  { %4172 = vst.msk [vmem:[#allocation3 + $0xe0] sm:$0xff] %vm4158_vm14, %v4088_v61  ;;  %4173 = vst.msk [vmem:[#allocation3 + $0xf0] sm:$0xff] %vm4158_vm14, %v4090_v16  ;;  %v4015_v45 = vmax.f32 %v3983_v31, 0.0  ;;  %13782 = vmatprep.mubr.msk.f32.mxu0 %vm4158_vm14, %v4289_v50  ;;  %v4290_v37 = vrot.slane %v17092_v44, 1  ;;  %v4292_v15 = vrot.slane %v17094_v56, 1  ;;  %14445 = vmatpush3.bf16.msra.mxu0 %v14442_v22 }
 0x498   :  { %v4093_v4 = vsel %vm234_vm2, %v4091_v42, %v4092_v27  ;;  %4176 = vst.msk [vmem:[#allocation3 + $0x110] sm:$0xfe] %vm4156_vm13, %v4091_v42  ;;  %v4014_v54 = vmax.f32 %v3982_v19, 0.0  ;;  %v13738_v43 = vpop.f32.mrb[4].mxu1  ;;  %14447 = vmatprep.subr.bf16.mxu0 %v17082_v59 }
 0x499   :  { %4177 = vst.msk [vmem:[#allocation3 + $0x120] sm:$0xff] %vm4158_vm14, %v4093_v4  ;;  %v4096_v47 = vrot.slane %v4015_v45, 7  ;;  %v3985_v58 = vadd.f32 %v13738_v43, %v16960_v18  ;;  %v3866_v2 = vpop.f32.mrb[5].mxu1  ;;  %v4291_v30 = vsel %vm699_vm5, %v4288_v62, %v4290_v37  ;;  %v4293_v23 = vsel %vm699_vm5, %v4290_v37, %v4292_v15 }
 0x49a   :  { %v4094_v33 = vrot.slane %v4014_v54, 7  ;;  %v3984_v49 = vadd.f32 %v16960_v18, %v3866_v2  ;;  %13783 = vmatmul.mubr.msk.f32.gmra.mrb[56].mxu0 %vm4158_vm14, %v4291_v30  ;;  %v17110_v9 = vld [vmem:[#allocation3 + $0xc0] sm:$0xff]  ;;  %v17112_v35 = vld [vmem:[#allocation3 + $0xd0] sm:$0xff] }
 0x49b   :  { %v4017_v60 = vmax.f32 %v3985_v58, 0.0  ;;  %13785 = vmatprep.mubr.msk.f32.mxu0 %vm4158_vm14, %v4293_v23  ;;  %v4294_v57 = vrot.slane %v17110_v9, 1  ;;  %v4296_v24 = vrot.slane %v17112_v35, 1 }
 0x49c   :  { %v4095_v8 = vsel %vm234_vm2, %v4092_v27, %v4094_v33  ;;  %v4097_v6 = vsel %vm234_vm2, %v4094_v33, %v4096_v47  ;;  %v4016_v14 = vmax.f32 %v3984_v49, 0.0  ;;  %v13741_v22 = vpop.f32.mrb[6].mxu1  ;;  %v4234_v29 = vld [vmem:[#allocation3 + $0x100] sm:$0x1] }
 0x49d   :  { %4178 = vst.msk [vmem:[#allocation3 + $0x130] sm:$0xff] %vm4158_vm14, %v4095_v8  ;;  %4179 = vst.msk [vmem:[#allocation3 + $0x140] sm:$0xff] %vm4158_vm14, %v4097_v6  ;;  %v4100_v34 = vrot.slane %v4017_v60, 7  ;;  %v3987_v26 = vadd.f32 %v13741_v22, %v16960_v18  ;;  %v3876_v55 = vpop.f32.mrb[7].mxu1  ;;  %v4295_v38 = vsel %vm699_vm5, %v4292_v15, %v4294_v57  ;;  %v4297_v32 = vsel %vm699_vm5, %v4294_v57, %v4296_v24 }
 0x49e   :  { %v4098_v36 = vrot.slane %v4016_v14, 7  ;;  %v3986_v20 = vadd.f32 %v16960_v18, %v3876_v55  ;;  %13786 = vmatmul.mubr.msk.f32.gmra.mrb[58].mxu0 %vm4158_vm14, %v4295_v38  ;;  %v17126_v39 = vld [vmem:[#allocation3 + $0xe0] sm:$0xff]  ;;  %v17128_v51 = vld [vmem:[#allocation3 + $0xf0] sm:$0xff]  ;;  %v4302_v15 = vrot.slane %v4234_v29, 1 }
 0x49f   :  { %v4019_v41 = vmax.f32 %v3987_v26, 0.0  ;;  %13788 = vmatprep.mubr.msk.f32.mxu0 %vm4158_vm14, %v4297_v32  ;;  %v4298_v10 = vrot.slane %v17126_v39, 1  ;;  %v4300_v17 = vrot.slane %v17128_v51, 1  ;;  %v4235_v28 = vld [vmem:[#allocation3 + $0x110] sm:$0xfe] }
 0x4a0   :  { %v4099_v13 = vsel %vm234_vm2, %v4096_v47, %v4098_v36  ;;  %v4101_v62 = vsel %vm234_vm2, %v4098_v36, %v4100_v34  ;;  %v4018_v5 = vmax.f32 %v3986_v20, 0.0  ;;  %v13744_v21 = vpop.f32.mrb[8].mxu1  ;;  %v17135_v27 = vld [vmem:[#allocation3 + $0x120] sm:$0xff]  ;;  %v4304_v19 = vrot.slane %v4235_v28, 1 }
 0x4a1   :  { %4180 = vst.msk [vmem:[#allocation3 + $0x150] sm:$0xff] %vm4158_vm14, %v4099_v13  ;;  %4181 = vst.msk [vmem:[#allocation3 + $0x160] sm:$0xff] %vm4158_vm14, %v4101_v62  ;;  %v4104_v31 = vrot.slane %v4019_v41, 7  ;;  %v3989_v52 = vadd.f32 %v13744_v21, %v16960_v18  ;;  %v3886_v53 = vpop.f32.mrb[9].mxu1  ;;  %v4299_v50 = vsel %vm699_vm5, %v4296_v24, %v4298_v10  ;;  %v4301_v61 = vsel %vm699_vm5, %v4298_v10, %v4300_v17 }
 0x4a2   :  { %v4102_v16 = vrot.slane %v4018_v5, 7  ;;  %v3988_v42 = vadd.f32 %v16960_v18, %v3886_v53  ;;  %13789 = vmatmul.mubr.msk.f32.gmra.mrb[60].mxu0 %vm4158_vm14, %v4299_v50  ;;  %v4305_v45 = vrot.slane %v17135_v27, 1  ;;  %v4303_v49 = vsel %vm699_vm5, %v4300_v17, %v4302_v15 }
 0x4a3   :  { %v4021_v37 = vmax.f32 %v3989_v52, 0.0  ;;  %13791 = vmatprep.mubr.msk.f32.mxu0 %vm4158_vm14, %v4301_v61 }
 0x4a4   :  { %v4103_v4 = vsel %vm234_vm2, %v4100_v34, %v4102_v16  ;;  %v4105_v54 = vsel %vm234_vm2, %v4102_v16, %v4104_v31  ;;  %v4020_v43 = vmax.f32 %v3988_v42, 0.0  ;;  %v13747_v47 = vpop.f32.mrb[10].mxu1  ;;  %v17148_v58 = vld [vmem:[#allocation3 + $0x130] sm:$0xff]  ;;  %v17150_v2 = vld [vmem:[#allocation3 + $0x140] sm:$0xff]  ;;  %v4306_v8 = vsel %vm699_vm5, %v4304_v19, %v4305_v45 }
 0x4a5   :  { %4182 = vst.msk [vmem:[#allocation3 + $0x170] sm:$0xff] %vm4158_vm14, %v4103_v4  ;;  %4183 = vst.msk [vmem:[#allocation3 + $0x180] sm:$0xff] %vm4158_vm14, %v4105_v54  ;;  %v4108_v30 = vrot.slane %v4021_v37, 7  ;;  %v3991_v23 = vadd.f32 %v13747_v47, %v16960_v18  ;;  %v3896_v33 = vpop.f32.mrb[11].mxu1  ;;  %v4307_v60 = vrot.slane %v17148_v58, 1  ;;  %v4309_v6 = vrot.slane %v17150_v2, 1 }
 0x4a6   :  { %v4106_v57 = vrot.slane %v4020_v43, 7  ;;  %v3990_v24 = vadd.f32 %v16960_v18, %v3896_v33  ;;  %13792 = vmatmul.mubr.msk.f32.gmra.mrb[62].mxu0 %vm4158_vm14, %v4303_v49 }
 0x4a7   :  { %v4023_v14 = vmax.f32 %v3991_v23, 0.0  ;;  %13794 = vmatprep.mubr.msk.f32.mxu0 %vm4158_vm14, %v4306_v8  ;;  %v4308_v10 = vsel %vm699_vm5, %v4305_v45, %v4307_v60  ;;  %v4310_v62 = vsel %vm699_vm5, %v4307_v60, %v4309_v6 }
 0x4a8   :  { %v4107_v22 = vsel %vm234_vm2, %v4104_v31, %v4106_v57  ;;  %v4109_v34 = vsel %vm234_vm2, %v4106_v57, %v4108_v30  ;;  %v4022_v26 = vmax.f32 %v3990_v24, 0.0  ;;  %v13750_v55 = vpop.f32.mrb[12].mxu1  ;;  %v17164_v38 = vld [vmem:[#allocation3 + $0x150] sm:$0xff]  ;;  %v17166_v32 = vld [vmem:[#allocation3 + $0x160] sm:$0xff] }
 0x4a9   :  { %4184 = vst.msk [vmem:[#allocation3 + $0x190] sm:$0xff] %vm4158_vm14, %v4107_v22  ;;  %4185 = vst.msk [vmem:[#allocation3 + $0x1a0] sm:$0xff] %vm4158_vm14, %v4109_v34  ;;  %v4112_v36 = vrot.slane %v4023_v14, 7  ;;  %v3993_v20 = vadd.f32 %v13750_v55, %v16960_v18  ;;  %v3906_v41 = vpop.f32.mrb[13].mxu1  ;;  %v4311_v17 = vrot.slane %v17164_v38, 1  ;;  %v4313_v5 = vrot.slane %v17166_v32, 1 }
 0x4aa   :  { %v4110_v28 = vrot.slane %v4022_v26, 7  ;;  %v3992_v13 = vadd.f32 %v16960_v18, %v3906_v41  ;;  %13795 = vmatmul.mubr.msk.f32.gmra.mrb[64].mxu0 %vm4158_vm14, %v4308_v10 }
 0x4ab   :  { %v4025_v21 = vmax.f32 %v3993_v20, 0.0  ;;  %13797 = vmatprep.mubr.msk.f32.mxu0 %vm4158_vm14, %v4310_v62  ;;  %v4312_v45 = vsel %vm699_vm5, %v4309_v6, %v4311_v17  ;;  %v4314_v54 = vsel %vm699_vm5, %v4311_v17, %v4313_v5 }
 0x4ac   :  { %v4111_v29 = vsel %vm234_vm2, %v4108_v30, %v4110_v28  ;;  %v4113_v31 = vsel %vm234_vm2, %v4110_v28, %v4112_v36  ;;  %v4024_v52 = vmax.f32 %v3992_v13, 0.0  ;;  %v13753_v53 = vpop.f32.mrb[14].mxu1  ;;  %v17180_v50 = vld [vmem:[#allocation3 + $0x170] sm:$0xff]  ;;  %v17182_v61 = vld [vmem:[#allocation3 + $0x180] sm:$0xff] }
 0x4ad   :  { %4186 = vst.msk [vmem:[#allocation3 + $0x1b0] sm:$0xff] %vm4158_vm14, %v4111_v29  ;;  %4187 = vst.msk [vmem:[#allocation3 + $0x1c0] sm:$0xff] %vm4158_vm14, %v4113_v31  ;;  %v4116_v16 = vrot.slane %v4025_v21, 7  ;;  %v3995_v42 = vadd.f32 %v13753_v53, %v16960_v18  ;;  %v3916_v19 = vpop.f32.mrb[15].mxu1  ;;  %v4315_v37 = vrot.slane %v17180_v50, 1  ;;  %v4317_v43 = vrot.slane %v17182_v61, 1 }
 0x4ae   :  { %v4114_v15 = vrot.slane %v4024_v52, 7  ;;  %v3994_v4 = vadd.f32 %v16960_v18, %v3916_v19  ;;  %13798 = vmatmul.mubr.msk.f32.gmra.mrb[66].mxu0 %vm4158_vm14, %v4312_v45 }
 0x4af   :  { %v4027_v47 = vmax.f32 %v3995_v42, 0.0  ;;  %13800 = vmatprep.mubr.msk.f32.mxu0 %vm4158_vm14, %v4314_v54  ;;  %v4316_v57 = vsel %vm699_vm5, %v4313_v5, %v4315_v37  ;;  %v4318_v6 = vsel %vm699_vm5, %v4315_v37, %v4317_v43  ;;  %v4193_v54 = vld [vmem:[#allocation3] sm:$0xff] }
 0x4b0   :  { %v4115_v30 = vsel %vm234_vm2, %v4112_v36, %v4114_v15  ;;  %v4117_v23 = vsel %vm234_vm2, %v4114_v15, %v4116_v16  ;;  %v4026_v33 = vmax.f32 %v3994_v4, 0.0  ;;  %v17196_v49 = vld [vmem:[#allocation3 + $0x190] sm:$0xff]  ;;  %v17198_v60 = vld [vmem:[#allocation3 + $0x1a0] sm:$0xff] }
 0x4b1   :  { %4188 = vst.msk [vmem:[#allocation3 + $0x1d0] sm:$0xff] %vm4158_vm14, %v4115_v30  ;;  %4189 = vst.msk [vmem:[#allocation3 + $0x1e0] sm:$0xff] %vm4158_vm14, %v4117_v23  ;;  %v4120_v18 = vrot.slane %v4027_v47, 7  ;;  %v4319_v24 = vrot.slane %v17196_v49, 1  ;;  %v4321_v14 = vrot.slane %v17198_v60, 1  ;;  %v12583_v47 = vld [vmem:[%s20626_s4 + $0x98] sm:$0xff] }
 0x4b2   :  { %v4118_v8 = vrot.slane %v4026_v33, 7  ;;  %13801 = vmatmul.mubr.msk.f32.gmra.mrb[68].mxu0 %vm4158_vm14, %v4316_v57  ;;  %v12622_v30 = vld [vmem:[%s20627_s5 + $0x108] sm:$0xff]  ;;  %v12624_v23 = vld [vmem:[%s20627_s5 + $0x118] sm:$0xff]  ;;  %v12621_v33 = vld [vmem:[%s20627_s5 + $0x100] sm:$0xff] }
 0x4b3   :  { %4192 = vst.msk [vmem:[#allocation3 + $0x210] sm:$0x1] %vm4174_vm15, %v4120_v18  ;;  %13803 = vmatprep.mubr.msk.f32.mxu0 %vm4158_vm14, %v4318_v6  ;;  %v4320_v36 = vsel %vm699_vm5, %v4317_v43, %v4319_v24  ;;  %v4322_v41 = vsel %vm699_vm5, %v4319_v24, %v4321_v14  ;;  %v12582_v43 = vld [vmem:[%s20626_s4 + $0x90] sm:$0xff]  ;;  %v12626_v24 = vld [vmem:[%s20627_s5 + $0x128] sm:$0xff] }
 0x4b4   :  { %v4119_v22 = vsel %vm234_vm2, %v4116_v16, %v4118_v8  ;;  %v4121_v34 = vsel %vm234_vm2, %v4118_v8, %v4120_v18  ;;  %v17211_v26 = vld [vmem:[#allocation3 + $0x1b0] sm:$0xff]  ;;  %v17213_v55 = vld [vmem:[#allocation3 + $0x1c0] sm:$0xff]  ;;  %v14462_v18 = vpack.c.bf16 %v12624_v23, %v12622_v30  ;;  %v12628_v8 = vld [vmem:[%s20627_s5 + $0x138] sm:$0xff]  ;;  %v14450_v6 = vpack.c.bf16 %v12583_v47, %v12582_v43 }
 0x4b5   :  { %4190 = vst.msk [vmem:[#allocation3 + $0x1f0] sm:$0xff] %vm4158_vm14, %v4119_v22  ;;  %4191 = vst.msk [vmem:[#allocation3 + $0x200] sm:$0xff] %vm4158_vm14, %v4121_v34  ;;  %v4323_v20 = vrot.slane %v17211_v26, 1  ;;  %v4325_v10 = vrot.slane %v17213_v55, 1  ;;  %v12623_v57 = vld [vmem:[%s20627_s5 + $0x110] sm:$0xff]  ;;  %v14466_v34 = vpack.c.bf16 %v12628_v8, %v12626_v24  ;;  %v12638_v43 = vld [vmem:[%s20627_s5 + $0x188] sm:$0xff] }
 0x4b6   :  { %13804 = vmatmul.mubr.msk.f32.gmra.mrb[70].mxu0 %vm4158_vm14, %v4320_v36  ;;  %v14464_v22 = vpack.c.bf16 %v12623_v57, %v12621_v33  ;;  %v12625_v36 = vld [vmem:[%s20627_s5 + $0x120] sm:$0xff]  ;;  %14463 = vmatprep.subr.bf16.mxu1 %v14462_v18  ;;  %v12640_v47 = vld [vmem:[%s20627_s5 + $0x198] sm:$0xff]  ;;  %v12639_v33 = vld [vmem:[%s20627_s5 + $0x190] sm:$0xff] }
 0x4b7   :  { %13806 = vmatprep.mubr.msk.f32.mxu0 %vm4158_vm14, %v4322_v41  ;;  %v4324_v13 = vsel %vm699_vm5, %v4321_v14, %v4323_v20  ;;  %v4326_v5 = vsel %vm699_vm5, %v4323_v20, %v4325_v10  ;;  %v12584_v14 = vld [vmem:[%s20626_s4 + $0xa0] sm:$0xff]  ;;  %v12627_v20 = vld [vmem:[%s20627_s5 + $0x130] sm:$0xff]  ;;  %v12585_v41 = vld [vmem:[%s20626_s4 + $0xa8] sm:$0xff]  ;;  %v14478_v18 = vpack.c.bf16 %v12640_v47, %v12638_v43  ;;  %v4963_v43 = vrot.slane %v17128_v51, 2 }
 0x4b8   :  { %v17223_v17 = vld [vmem:[#allocation3 + $0x1d0] sm:$0xff]  ;;  %v17225_v28 = vld [vmem:[#allocation3 + $0x1e0] sm:$0xff]  ;;  %14465 = vmatpush1.bf16.msra.mxu1 %v14464_v22  ;;  %v12642_v57 = vld [vmem:[%s20627_s5 + $0x1a8] sm:$0xff] }
 0x4b9   :  { %v4327_v62 = vrot.slane %v17223_v17, 1  ;;  %v4329_v21 = vrot.slane %v17225_v28, 1  ;;  %14467 = vmatprep.subr.bf16.mxu1 %v14466_v34  ;;  %v12637_v23 = vld [vmem:[%s20627_s5 + $0x180] sm:$0xff]  ;;  %v12644_v24 = vld [vmem:[%s20627_s5 + $0x1b8] sm:$0xff]  ;;  %v12643_v22 = vld [vmem:[%s20627_s5 + $0x1b0] sm:$0xff] }
 0x4ba   :  { %13807 = vmatmul.mubr.msk.f32.gmra.mrb[72].mxu0 %vm4158_vm14, %v4324_v13  ;;  %v4236_v19 = vld [vmem:[#allocation3 + $0x210] sm:$0x1]  ;;  %v12632_v13 = vld [vmem:[%s20627_s5 + $0x158] sm:$0xff]  ;;  %v14480_v8 = vpack.c.bf16 %v12639_v33, %v12637_v23  ;;  %v4927_v47 = vld [vmem:[#allocation3 + $0x100] sm:$0x3]  ;;  %v4968_v33 = vrot.slane %v17135_v27, 2 }
 0x4bb   :  { %13809 = vmatprep.mubr.msk.f32.mxu0 %vm4158_vm14, %v4326_v5  ;;  %v4328_v52 = vsel %vm699_vm5, %v4325_v10, %v4327_v62  ;;  %v4330_v16 = vsel %vm699_vm5, %v4327_v62, %v4329_v21  ;;  %v4335_v15 = vrot.slane %v4236_v19, 1  ;;  %v12630_v10 = vld [vmem:[%s20627_s5 + $0x148] sm:$0xff]  ;;  %v14468_v62 = vpack.c.bf16 %v12627_v20, %v12625_v36  ;;  %v12629_v5 = vld [vmem:[%s20627_s5 + $0x140] sm:$0xff]  ;;  %v12636_v19 = vld [vmem:[%s20627_s5 + $0x178] sm:$0xff] }
 0x4bc   :  { %v17233_v29 = vld [vmem:[#allocation3 + $0x1f0] sm:$0xff]  ;;  %v17235_v31 = vld [vmem:[#allocation3 + $0x200] sm:$0xff] }
 0x4bd   :  { %v4331_v53 = vrot.slane %v17233_v29, 1  ;;  %v4333_v42 = vrot.slane %v17235_v31, 1  ;;  %14469 = vmatpush1.bf16.msra.mxu1 %v14468_v62  ;;  %v4209_v36 = vld [vmem:[#allocation3 + $0x110] sm:$0xff]  ;;  %v4926_v20 = vld [vmem:[#allocation3] sm:$0xfc] }
 0x4be   :  { %13810 = vmatmul.mubr.msk.f32.gmra.mrb[74].mxu0 %vm4158_vm14, %v4328_v52  ;;  %v14454_v52 = vpack.c.bf16 %v12585_v41, %v12584_v14  ;;  %v12641_v14 = vld [vmem:[%s20627_s5 + $0x1a0] sm:$0xff]  ;;  %v4934_v41 = vrot.slane %v4926_v20, 2  ;;  %v4984_v20 = vrot.slane %v17198_v60, 2 }
 0x4bf   :  { %13812 = vmatprep.mubr.msk.f32.mxu0 %vm4158_vm14, %v4330_v16  ;;  %v4332_v45 = vsel %vm699_vm5, %v4329_v21, %v4331_v53  ;;  %v4334_v37 = vsel %vm699_vm5, %v4331_v53, %v4333_v42  ;;  %v4336_v4 = vsel %vm699_vm5, %v4333_v42, %v4335_v15  ;;  %v12631_v21 = vld [vmem:[%s20627_s5 + $0x150] sm:$0xff]  ;;  %v14470_v16 = vpack.c.bf16 %v12632_v13, %v12630_v10  ;;  %v12634_v42 = vld [vmem:[%s20627_s5 + $0x168] sm:$0xff] }
 0x4c0   :  { %v12586_v53 = vld [vmem:[%s20626_s4 + $0xb0] sm:$0xff]  ;;  %v14484_v34 = vpack.c.bf16 %v12643_v22, %v12641_v14  ;;  %v4935_v10 = vrot.slane %v16982_v46, 2  ;;  %v4937_v13 = vrot.slane %v17001_v11, 2  ;;  %v4976_v14 = vrot.slane %v17166_v32, 2 }
 0x4c1   :  { %v12635_v15 = vld [vmem:[%s20627_s5 + $0x170] sm:$0xff]  ;;  %14471 = vmatprep.subr.bf16.mxu1 %v14470_v16  ;;  %v4945_v16 = vrot.slane %v17049_v25, 2  ;;  %v4978_v22 = vrot.slane %v17180_v50, 2 }
 0x4c2   :  { %13813 = vmatmul.mubr.msk.f32.gmra.mrb[76].mxu0 %vm4158_vm14, %v4332_v45  ;;  %v14472_v45 = vpack.c.bf16 %v12631_v21, %v12629_v5  ;;  %v4936_v62 = vsel %vm974_vm6, %v4934_v41, %v4935_v10  ;;  %v4939_v5 = vrot.slane %v17003_v40, 2  ;;  %v4938_v21 = vsel %vm974_vm6, %v4935_v10, %v4937_v13 }
 0x4c3   :  { %13815 = vmatprep.mubr.msk.f32.mxu0 %vm4158_vm14, %v4334_v37  ;;  %v12633_v37 = vld [vmem:[%s20627_s5 + $0x160] sm:$0xff]  ;;  %v4986_v41 = vrot.slane %v17211_v26, 2  ;;  %v4988_v10 = vrot.slane %v17213_v55, 2 }
 0x4c4   :  { %14473 = vmatpush1.bf16.msra.mxu1 %v14472_v45  ;;  %v14476_v30 = vpack.c.bf16 %v12635_v15, %v12633_v37  ;;  %v4953_v45 = vrot.slane %v17092_v44, 2  ;;  %v4955_v37 = vrot.slane %v17094_v56, 2  ;;  %v4957_v15 = vrot.slane %v17110_v9, 2 }
 0x4c6   :  { %13816 = vmatmul.mubr.msk.f32.gmra.mrb[78].mxu0 %vm4158_vm14, %v4336_v4 }
 0x4c7   :  { %13834 = vmatprep.mubr.msk.f32.mxu0 %vm4158_vm14, %v4193_v54  ;;  %v14474_v54 = vpack.c.bf16 %v12636_v19, %v12634_v42  ;;  %v4949_v42 = vrot.slane %v17073_v7, 2  ;;  %v4951_v19 = vrot.slane %v17075_v0, 2 }
 0x4c9   :  { %14475 = vmatprep.subr.bf16.mxu1 %v14474_v54  ;;  %v4961_v54 = vrot.slane %v17126_v39, 2 }
 0x4ca   :  { %13835 = vmatmul.mubr.msk.f32.vlgmr.msra.gmra.mrb[48].mxu0 %vm4158_vm14, %v16982_v46  ;;  %14477 = vmatpush1.bf16.msra.mxu1 %v14476_v30  ;;  %v4940_v46 = vsel %vm974_vm6, %v4937_v13, %v4939_v5  ;;  %v4990_v13 = vrot.slane %v17223_v17, 2 }
 0x4cb   :  { %14449 = vmatpush3.bf16.msra.mxu0 %v17082_v59  ;;  %13837 = vmatprep.mubr.msk.f32.mxu0 %vm4158_vm14, %v17001_v11  ;;  %v12587_v59 = vld [vmem:[%s20626_s4 + $0xb8] sm:$0xff] }
 0x4cc   :  { %14451 = vmatprep.subr.bf16.mxu0 %v14450_v6  ;;  %v14458_v4 = vpack.c.bf16 %v12587_v59, %v12586_v53  ;;  %14479 = vmatprep.subr.bf16.mxu1 %v14478_v18  ;;  %v4943_v53 = vrot.slane %v17026_v48, 2  ;;  %v4947_v59 = vrot.slane %v17051_v63, 2 }
 0x4ce   :  { %13838 = vmatmul.mubr.msk.f32.gmra.mrb[50].mxu0 %vm4158_vm14, %v17003_v40  ;;  %14481 = vmatpush1.bf16.msra.mxu1 %v14480_v8 }
 0x4cf   :  { %13840 = vmatprep.mubr.msk.f32.mxu0 %vm4158_vm14, %v17024_v12  ;;  %14453 = vmatpush3.bf16.msra.mxu0 %v14450_v6  ;;  %v14482_v6 = vpack.c.bf16 %v12644_v24, %v12642_v57  ;;  %v4972_v24 = vrot.slane %v17150_v2, 2 }
 0x4d0   :  { %14455 = vmatprep.subr.bf16.mxu0 %v14454_v52 }
 0x4d1   :  { %14483 = vmatprep.subr.bf16.mxu1 %v14482_v6  ;;  %v4974_v6 = vrot.slane %v17164_v38, 2 }
 0x4d2   :  { %13841 = vmatmul.mubr.msk.f32.gmra.mrb[52].mxu0 %vm4158_vm14, %v17026_v48  ;;  %14485 = vmatpush1.bf16.msra.mxu1 %v14484_v34  ;;  %v4948_v48 = vsel %vm974_vm6, %v4945_v16, %v4947_v59  ;;  %v4980_v34 = vrot.slane %v17182_v61, 2 }
 0x4d3   :  { %13843 = vmatprep.mubr.msk.f32.mxu0 %vm4158_vm14, %v17049_v25  ;;  %14457 = vmatpush3.bf16.msra.mxu0 %v14454_v52  ;;  %v4941_v52 = vrot.slane %v17024_v12, 2  ;;  %v4946_v12 = vsel %vm974_vm6, %v4943_v53, %v4945_v16  ;;  %v4950_v25 = vsel %vm974_vm6, %v4947_v59, %v4949_v42  ;;  %v12645_v16 = vld [vmem:[%s20627_s5 + $0x1c0] sm:$0xff] }
 0x4d4   :  { %14459 = vmatprep.subr.bf16.mxu0 %v14458_v4 }
 0x4d5   :  { %v4942_v11 = vsel %vm974_vm6, %v4939_v5, %v4941_v52  ;;  %v4944_v40 = vsel %vm974_vm6, %v4941_v52, %v4943_v53  ;;  %v4994_v5 = vrot.slane %v17233_v29, 2  ;;  %v12648_v53 = vld [vmem:[%s20627_s5 + $0x1d8] sm:$0xff] }
 0x4d6   :  { %13844 = vmatmul.mubr.msk.f32.gmra.mrb[54].mxu0 %vm4158_vm14, %v17051_v63  ;;  %v4952_v63 = vsel %vm974_vm6, %v4949_v42, %v4951_v19  ;;  %v12652_v42 = vld [vmem:[%s20627_s5 + $0x1f8] sm:$0xff] }
 0x4d7   :  { %13846 = vmatprep.mubr.msk.f32.mxu0 %vm4158_vm14, %v17073_v7  ;;  %14461 = vmatpush3.bf16.msra.mxu0 %v14458_v4  ;;  %v4954_v7 = vsel %vm974_vm6, %v4951_v19, %v4953_v45  ;;  %v4959_v4 = vrot.slane %v17112_v35, 2  ;;  %v12649_v19 = vld [vmem:[%s20627_s5 + $0x1e0] sm:$0xff] }
 0x4d9   :  { %v4962_v30 = vsel %vm974_vm6, %v4959_v4, %v4961_v54 }
 0x4da   :  { %13847 = vmatmul.mubr.msk.f32.gmra.mrb[56].mxu0 %vm4158_vm14, %v17075_v0  ;;  %v4956_v0 = vsel %vm974_vm6, %v4953_v45, %v4955_v37 }
 0x4db   :  { %13849 = vmatprep.mubr.msk.f32.mxu0 %vm4158_vm14, %v17092_v44  ;;  %v4958_v44 = vsel %vm974_vm6, %v4955_v37, %v4957_v15  ;;  %v5598_v37 = vld [vmem:[%s20627_s5 + $0x18] sm:$0xff] }
 0x4de   :  { %13850 = vmatmul.mubr.msk.f32.gmra.mrb[58].mxu0 %vm4158_vm14, %v17094_v56  ;;  %v4960_v56 = vsel %vm974_vm6, %v4957_v15, %v4959_v4  ;;  %v17529_v15 = vld [vmem:[%s20635_s13] ss:$0 sm:$0xff] }
 0x4df   :  { %13852 = vmatprep.mubr.msk.f32.mxu0 %vm4158_vm14, %v17110_v9  ;;  %v4928_v9 = vld [vmem:[#allocation3 + $0x110] sm:$0xfc] }
 0x4e0   :  { %v4967_v23 = vrot.slane %v4928_v9, 2 }
 0x4e2   :  { %13853 = vmatmul.mubr.msk.f32.gmra.mrb[60].mxu0 %vm4158_vm14, %v17112_v35  ;;  %v4964_v35 = vsel %vm974_vm6, %v4961_v54, %v4963_v43  ;;  %v4969_v57 = vsel %vm974_vm6, %v4967_v23, %v4968_v33 }
 0x4e3   :  { %13855 = vmatprep.mubr.msk.f32.mxu0 %vm4158_vm14, %v17126_v39  ;;  %v4965_v39 = vrot.slane %v4927_v47, 2 }
 0x4e5   :  { %v4966_v18 = vsel %vm974_vm6, %v4963_v43, %v4965_v39 }
 0x4e6   :  { %13856 = vmatmul.mubr.msk.f32.gmra.mrb[62].mxu0 %vm4158_vm14, %v17128_v51  ;;  %v4970_v51 = vrot.slane %v17148_v58, 2 }
 0x4e7   :  { %13858 = vmatprep.mubr.msk.f32.mxu0 %vm4158_vm14, %v4209_v36  ;;  %v4982_v36 = vrot.slane %v17196_v49, 2 }
 0x4e8   :  { %v4971_v8 = vsel %vm974_vm6, %v4968_v33, %v4970_v51 }
 0x4ea   :  { %13859 = vmatmul.mubr.msk.f32.gmra.mrb[64].mxu0 %vm4158_vm14, %v17135_v27  ;;  %v4973_v27 = vsel %vm974_vm6, %v4970_v51, %v4972_v24 }
 0x4eb   :  { %13861 = vmatprep.mubr.msk.f32.mxu0 %vm4158_vm14, %v17148_v58  ;;  %v4975_v58 = vsel %vm974_vm6, %v4972_v24, %v4974_v6 }
 0x4ee   :  { %13862 = vmatmul.mubr.msk.f32.gmra.mrb[66].mxu0 %vm4158_vm14, %v17150_v2  ;;  %v4977_v2 = vsel %vm974_vm6, %v4974_v6, %v4976_v14 }
 0x4ef   :  { %13864 = vmatprep.mubr.msk.f32.mxu0 %vm4158_vm14, %v17164_v38  ;;  %v4979_v38 = vsel %vm974_vm6, %v4976_v14, %v4978_v22 }
 0x4f2   :  { %13865 = vmatmul.mubr.msk.f32.gmra.mrb[68].mxu0 %vm4158_vm14, %v17166_v32  ;;  %v4981_v32 = vsel %vm974_vm6, %v4978_v22, %v4980_v34 }
 0x4f3   :  { %13867 = vmatprep.mubr.msk.f32.mxu0 %vm4158_vm14, %v17180_v50  ;;  %v4983_v50 = vsel %vm974_vm6, %v4980_v34, %v4982_v36 }
 0x4f6   :  { %13868 = vmatmul.mubr.msk.f32.gmra.mrb[70].mxu0 %vm4158_vm14, %v17182_v61  ;;  %v4985_v61 = vsel %vm974_vm6, %v4982_v36, %v4984_v20  ;;  %v5595_v36 = vld [vmem:[%s20627_s5] sm:$0xff] }
 0x4f7   :  { %13870 = vmatprep.mubr.msk.f32.mxu0 %vm4158_vm14, %v17196_v49  ;;  %v4987_v49 = vsel %vm974_vm6, %v4984_v20, %v4986_v41 }
 0x4fa   :  { %13871 = vmatmul.mubr.msk.f32.gmra.mrb[72].mxu0 %vm4158_vm14, %v17198_v60  ;;  %v4989_v60 = vsel %vm974_vm6, %v4986_v41, %v4988_v10 }
 0x4fb   :  { %13873 = vmatprep.mubr.msk.f32.mxu0 %vm4158_vm14, %v17211_v26  ;;  %v4991_v26 = vsel %vm974_vm6, %v4988_v10, %v4990_v13 }
 0x4fe   :  { %13874 = vmatmul.mubr.msk.f32.gmra.mrb[74].mxu0 %vm4158_vm14, %v17213_v55 }
 0x4ff   :  { %13876 = vmatprep.mubr.msk.f32.mxu0 %vm4158_vm14, %v17223_v17  ;;  %v4929_v17 = vld [vmem:[#allocation3 + $0x210] sm:$0x3] }
 0x502   :  { %13877 = vmatmul.mubr.msk.f32.gmra.mrb[76].mxu0 %vm4158_vm14, %v17225_v28 }
 0x503   :  { %13879 = vmatprep.mubr.msk.f32.mxu0 %vm4158_vm14, %v17233_v29 }
 0x506   :  { %13880 = vmatmul.mubr.msk.f32.gmra.mrb[78].mxu0 %vm4158_vm14, %v17235_v31 }
 0x507   :  { %13898 = vmatprep.mubr.msk.f32.mxu0 %vm4158_vm14, %v4936_v62  ;;  %v4992_v62 = vrot.slane %v17225_v28, 2 }
 0x509   :  { %v4993_v55 = vsel %vm974_vm6, %v4990_v13, %v4992_v62  ;;  %v4995_v52 = vsel %vm974_vm6, %v4992_v62, %v4994_v5  ;;  %v5602_v13 = vld [vmem:[%s20627_s5 + $0x38] sm:$0xff] }
 0x50a   :  { %13899 = vmatmul.mubr.msk.f32.vlgmr.msra.gmra.mrb[48].mxu0 %vm4158_vm14, %v4938_v21  ;;  %v4996_v21 = vrot.slane %v17235_v31, 2  ;;  %v12646_v31 = vld [vmem:[%s20627_s5 + $0x1c8] sm:$0xff] }
 0x50b   :  { %13901 = vmatprep.mubr.msk.f32.mxu0 %vm4158_vm14, %v4940_v46  ;;  %v4998_v46 = vrot.slane %v4929_v17, 2 }
 0x50c   :  { %v4997_v28 = vsel %vm974_vm6, %v4994_v5, %v4996_v21 }
 0x50d   :  { %v4999_v29 = vsel %vm974_vm6, %v4996_v21, %v4998_v46 }
 0x50e   :  { %13902 = vmatmul.mubr.msk.f32.gmra.mrb[50].mxu0 %vm4158_vm14, %v4942_v11  ;;  %v14486_v11 = vpack.c.bf16 %v12648_v53, %v12646_v31 }
 0x50f   :  { %13904 = vmatprep.mubr.msk.f32.mxu0 %vm4158_vm14, %v4944_v40  ;;  %v12647_v40 = vld [vmem:[%s20627_s5 + $0x1d0] sm:$0xff] }
 0x510   :  { %v14488_v59 = vpack.c.bf16 %v12647_v40, %v12645_v16  ;;  %14487 = vmatprep.subr.bf16.mxu1 %v14486_v11  ;;  %v5599_v11 = vld [vmem:[%s20627_s5 + $0x20] sm:$0xff]  ;;  %v5601_v16 = vld [vmem:[%s20627_s5 + $0x30] sm:$0xff] }
 0x512   :  { %13905 = vmatmul.mubr.msk.f32.gmra.mrb[52].mxu0 %vm4158_vm14, %v4946_v12  ;;  %14489 = vmatpush1.bf16.msra.mxu1 %v14488_v59  ;;  %v12650_v12 = vld [vmem:[%s20627_s5 + $0x1e8] sm:$0xff] }
 0x513   :  { %13907 = vmatprep.mubr.msk.f32.mxu0 %vm4158_vm14, %v4948_v48  ;;  %v14490_v48 = vpack.c.bf16 %v12652_v42, %v12650_v12 }
 0x515   :  { %14491 = vmatprep.subr.bf16.mxu1 %v14490_v48  ;;  %v5604_v48 = vld [vmem:[%s20627_s5 + $0x48] sm:$0xff] }
 0x516   :  { %13908 = vmatmul.mubr.msk.f32.gmra.mrb[54].mxu0 %vm4158_vm14, %v4950_v25  ;;  %v12651_v25 = vld [vmem:[%s20627_s5 + $0x1f0] sm:$0xff] }
 0x517   :  { %13910 = vmatprep.mubr.msk.f32.mxu0 %vm4158_vm14, %v4952_v63  ;;  %v14492_v45 = vpack.c.bf16 %v12651_v25, %v12649_v19  ;;  %v5596_v63 = vld [vmem:[%s20627_s5 + $0x8] sm:$0xff]  ;;  %v5606_v19 = vld [vmem:[%s20627_s5 + $0x58] sm:$0xff] }
 0x519   :  { %14493 = vmatpush1.bf16.msra.mxu1 %v14492_v45 }
 0x51a   :  { %13911 = vmatmul.mubr.msk.f32.gmra.mrb[56].mxu0 %vm4158_vm14, %v4954_v7  ;;  %v14494_v7 = vpack.c.bf16 %v5598_v37, %v5596_v63 }
 0x51b   :  { %13913 = vmatprep.mubr.msk.f32.mxu0 %vm4158_vm14, %v4956_v0 }
 0x51c   :  { %14495 = vmatprep.subr.bf16.mxu1 %v14494_v7 }
 0x51e   :  { %13914 = vmatmul.mubr.msk.f32.gmra.mrb[58].mxu0 %vm4158_vm14, %v4958_v44 }
 0x51f   :  { %13916 = vmatprep.mubr.msk.f32.mxu0 %vm4158_vm14, %v4960_v56 }
 0x522   :  { %13917 = vmatmul.mubr.msk.f32.gmra.mrb[60].mxu0 %vm4158_vm14, %v4962_v30 }
 0x523   :  { %13919 = vmatprep.mubr.msk.f32.mxu0 %vm4158_vm14, %v4964_v35 }
 0x526   :  { %13920 = vmatmul.mubr.msk.f32.gmra.mrb[62].mxu0 %vm4158_vm14, %v4966_v18 }
 0x527   :  { %13922 = vmatprep.mubr.msk.f32.mxu0 %vm4158_vm14, %v4969_v57 }
 0x52a   :  { %13923 = vmatmul.mubr.msk.f32.gmra.mrb[64].mxu0 %vm4158_vm14, %v4971_v8 }
 0x52b   :  { %13925 = vmatprep.mubr.msk.f32.mxu0 %vm4158_vm14, %v4973_v27 }
 0x52e   :  { %13926 = vmatmul.mubr.msk.f32.gmra.mrb[66].mxu0 %vm4158_vm14, %v4975_v58 }
 0x52f   :  { %13928 = vmatprep.mubr.msk.f32.mxu0 %vm4158_vm14, %v4977_v2 }
 0x532   :  { %13929 = vmatmul.mubr.msk.f32.gmra.mrb[68].mxu0 %vm4158_vm14, %v4979_v38 }
 0x533   :  { %13931 = vmatprep.mubr.msk.f32.mxu0 %vm4158_vm14, %v4981_v32  ;;  %v5597_v32 = vld [vmem:[%s20627_s5 + $0x10] sm:$0xff] }
 0x534   :  { %v14496_v5 = vpack.c.bf16 %v5597_v32, %v5595_v36  ;;  %v5607_v36 = vld [vmem:[%s20627_s5 + $0x60] sm:$0xff]  ;;  %v5609_v32 = vld [vmem:[%s20627_s5 + $0x70] sm:$0xff] }
 0x536   :  { %13932 = vmatmul.mubr.msk.f32.gmra.mrb[70].mxu0 %vm4158_vm14, %v4983_v50 }
 0x537   :  { %13934 = vmatprep.mubr.msk.f32.mxu0 %vm4158_vm14, %v4985_v61 }
 0x53a   :  { %13935 = vmatmul.mubr.msk.f32.gmra.mrb[72].mxu0 %vm4158_vm14, %v4987_v49  ;;  %v5600_v49 = vld [vmem:[%s20627_s5 + $0x28] sm:$0xff] }
 0x53b   :  { %13937 = vmatprep.mubr.msk.f32.mxu0 %vm4158_vm14, %v4989_v60  ;;  %v14498_v53 = vpack.c.bf16 %v5602_v13, %v5600_v49  ;;  %v5614_v49 = vld [vmem:[%s20627_s5 + $0x98] sm:$0xff] }
 0x53e   :  { %13938 = vmatmul.mubr.msk.f32.gmra.mrb[74].mxu0 %vm4158_vm14, %v4991_v26 }
 0x53f   :  { %13940 = vmatprep.mubr.msk.f32.mxu0 %vm4158_vm14, %v4993_v55 }
 0x542   :  { %13941 = vmatmul.mubr.msk.f32.gmra.mrb[76].mxu0 %vm4158_vm14, %v4995_v52 }
 0x543   :  { %13943 = vmatprep.mubr.msk.f32.mxu0 %vm4158_vm14, %v4997_v28 }
 0x546   :  { %13944 = vmatmul.mubr.msk.f32.gmra.mrb[78].mxu0 %vm4158_vm14, %v4999_v29 }
 0x5dd   :  { %v13900_v0 = vpop.f32.mrb[48].mxu0 }
 0x5de   :  { %v5338_v4 = vadd.f32 %v13900_v0, %v17529_v15  ;;  %v5139_v44 = vpop.f32.mrb[49].mxu0  ;;  %v14500_v0 = vpack.c.bf16 %v5601_v16, %v5599_v11 }
 0x5df   :  { %v5337_v54 = vadd.f32 %v17529_v15, %v5139_v44 }
 0x5e0   :  { %v5370_v56 = vmax.f32 %v5338_v4, 0.0 }
 0x5e1   :  { %v5369_v43 = vmax.f32 %v5337_v54, 0.0  ;;  %v13903_v9 = vpop.f32.mrb[50].mxu0 }
 0x5e2   :  { %v5434_v47 = vrot.slane %v5370_v56, 7  ;;  %v5340_v30 = vadd.f32 %v13903_v9, %v17529_v15  ;;  %v5149_v35 = vpop.f32.mrb[51].mxu0  ;;  %v14502_v56 = vpack.c.bf16 %v5606_v19, %v5604_v48  ;;  %v5605_v9 = vld [vmem:[%s20627_s5 + $0x50] sm:$0xff] }
 0x5e3   :  { %v5433_v23 = vrot.slane %v5369_v43, 7  ;;  %v5339_v33 = vadd.f32 %v17529_v15, %v5149_v35  ;;  %v5603_v43 = vld [vmem:[%s20627_s5 + $0x40] sm:$0xff] }
 0x5e4   :  { %v5372_v39 = vmax.f32 %v5340_v30, 0.0 }
 0x5e5   :  { %v17536_v18 = vsel %vm234_vm2, %v5433_v23, %v5434_v47  ;;  %5529 = vst [vmem:[#allocation2] sm:$0xfe] %v5433_v23  ;;  %v5371_v51 = vmax.f32 %v5339_v33, 0.0  ;;  %v13906_v57 = vpop.f32.mrb[52].mxu0  ;;  %v5608_v33 = vld [vmem:[%s20627_s5 + $0x68] sm:$0xff] }
 0x5e6   :  { %v5438_v24 = vrot.slane %v5372_v39, 7  ;;  %v5342_v8 = vadd.f32 %v13906_v57, %v17529_v15  ;;  %v5159_v6 = vpop.f32.mrb[53].mxu0  ;;  %v5666_v26 = vrot.slane %v17536_v18, 1  ;;  %v5610_v39 = vld [vmem:[%s20627_s5 + $0x78] sm:$0xff] }
 0x5e7   :  { %v5436_v27 = vrot.slane %v5371_v51, 7  ;;  %v5341_v14 = vadd.f32 %v17529_v15, %v5159_v6 }
 0x5e8   :  { %v5374_v58 = vmax.f32 %v5342_v8, 0.0 }
 0x5e9   :  { %v17541_v22 = vsel %vm234_vm2, %v5434_v47, %v5436_v27  ;;  %v17544_v2 = vsel %vm234_vm2, %v5436_v27, %v5438_v24  ;;  %v5373_v34 = vmax.f32 %v5341_v14, 0.0  ;;  %v13909_v38 = vpop.f32.mrb[54].mxu0  ;;  %v14504_v27 = vpack.c.bf16 %v5605_v9, %v5603_v43  ;;  %v5615_v43 = vld [vmem:[%s20627_s5 + $0xa0] sm:$0xff]  ;;  %v5617_v9 = vld [vmem:[%s20627_s5 + $0xb0] sm:$0xff] }
 0x5ea   :  { %v5442_v20 = vrot.slane %v5374_v58, 7  ;;  %v5344_v50 = vadd.f32 %v13909_v38, %v17529_v15  ;;  %v5169_v41 = vpop.f32.mrb[55].mxu0  ;;  %v5668_v42 = vrot.slane %v17541_v22, 1  ;;  %v5670_v23 = vrot.slane %v17544_v2, 1 }
 0x5eb   :  { %v5440_v61 = vrot.slane %v5373_v34, 7  ;;  %v5343_v10 = vadd.f32 %v17529_v15, %v5169_v41  ;;  %v14506_v38 = vpack.c.bf16 %v5610_v39, %v5608_v33  ;;  %v5620_v33 = vld [vmem:[%s20627_s5 + $0xc8] sm:$0xff]  ;;  %v5622_v39 = vld [vmem:[%s20627_s5 + $0xd8] sm:$0xff] }
 0x5ec   :  { %v5376_v60 = vmax.f32 %v5344_v50, 0.0  ;;  %v5627_v62 = vld [vmem:[#allocation2] sm:$0xfe]  ;;  %v5669_v35 = vsel %vm699_vm5, %v5666_v26, %v5668_v42  ;;  %v5671_v41 = vsel %vm699_vm5, %v5668_v42, %v5670_v23  ;;  %v5618_v42 = vld [vmem:[%s20627_s5 + $0xb8] sm:$0xff] }
 0x5ed   :  { %v17562_v55 = vsel %vm234_vm2, %v5438_v24, %v5440_v61  ;;  %v17565_v21 = vsel %vm234_vm2, %v5440_v61, %v5442_v20  ;;  %v5375_v17 = vmax.f32 %v5343_v10, 0.0  ;;  %v13912_v52 = vpop.f32.mrb[56].mxu0  ;;  %v5665_v28 = vrot.slane %v5627_v62, 1  ;;  %v5612_v10 = vld [vmem:[%s20627_s5 + $0x88] sm:$0xff] }
 0x5ee   :  { %v5446_v46 = vrot.slane %v5376_v60, 7  ;;  %v5346_v29 = vadd.f32 %v13912_v52, %v17529_v15  ;;  %v5179_v31 = vpop.f32.mrb[57].mxu0  ;;  %v5672_v61 = vrot.slane %v17562_v55, 1 }
 0x5ef   :  { %v5444_v40 = vrot.slane %v5375_v17, 7  ;;  %v5345_v59 = vadd.f32 %v17529_v15, %v5179_v31  ;;  %v5667_v12 = vsel %vm699_vm5, %v5665_v28, %v5666_v26  ;;  %v14508_v17 = vpack.c.bf16 %v5609_v32, %v5607_v36  ;;  %v5611_v31 = vld [vmem:[%s20627_s5 + $0x80] sm:$0xff] }
 0x5f0   :  { %v5378_v25 = vmax.f32 %v5346_v29, 0.0  ;;  %5861 = vmatmul.mubr.f32.vlgmr.msra.gmra.mrb[32].mxu1 %v5667_v12  ;;  %v14510_v29 = vpack.c.bf16 %v5614_v49, %v5612_v10  ;;  %v5616_v12 = vld [vmem:[%s20627_s5 + $0xa8] sm:$0xff]  ;;  %v14518_v32 = vpack.c.bf16 %v5622_v39, %v5620_v33 }
 0x5f1   :  { %v17584_v45 = vsel %vm234_vm2, %v5442_v20, %v5444_v40  ;;  %v17587_v63 = vsel %vm234_vm2, %v5444_v40, %v5446_v46  ;;  %v5377_v37 = vmax.f32 %v5345_v59, 0.0  ;;  %v13915_v7 = vpop.f32.mrb[58].mxu0  ;;  %14497 = vmatpush1.bf16.msra.mxu1 %v14496_v5  ;;  %5866 = vmatprep.mubr.f32.mxu1 %v15502_v3  ;;  %v5673_v40 = vsel %vm699_vm5, %v5670_v23, %v5672_v61 }
 0x5f2   :  { %v5450_v4 = vrot.slane %v5378_v25, 7  ;;  %v5348_v44 = vadd.f32 %v13915_v7, %v17529_v15  ;;  %v5189_v54 = vpop.f32.mrb[59].mxu0  ;;  %14499 = vmatprep.subr.bf16.mxu1 %v14498_v53  ;;  %v5613_v53 = vld [vmem:[%s20627_s5 + $0x90] sm:$0xff]  ;;  %v5674_v59 = vrot.slane %v17565_v21, 1  ;;  %v5676_v23 = vrot.slane %v17584_v45, 1 }
 0x5f3   :  { %v5448_v47 = vrot.slane %v5377_v37, 7  ;;  %v5347_v30 = vadd.f32 %v17529_v15, %v5189_v54  ;;  %v5678_v49 = vrot.slane %v17587_v63, 1 }
 0x5f4   :  { %v5380_v51 = vmax.f32 %v5348_v44, 0.0  ;;  %5867 = vmatmul.mubr.f32.gmra.mrb[34].mxu1 %v5669_v35  ;;  %v5675_v35 = vsel %vm699_vm5, %v5672_v61, %v5674_v59  ;;  %v5677_v10 = vsel %vm699_vm5, %v5674_v59, %v5676_v23 }
 0x5f5   :  { %v17607_v57 = vsel %vm234_vm2, %v5446_v46, %v5448_v47  ;;  %v17610_v24 = vsel %vm234_vm2, %v5448_v47, %v5450_v4  ;;  %v5379_v8 = vmax.f32 %v5347_v30, 0.0  ;;  %v13918_v6 = vpop.f32.mrb[60].mxu0  ;;  %5872 = vmatprep.mubr.f32.mxu1 %v15502_v3  ;;  %14501 = vmatpush1.bf16.msra.mxu1 %v14500_v0  ;;  %v14512_v0 = vpack.c.bf16 %v5613_v53, %v5611_v31 }
 0x5f6   :  { %v5454_v14 = vrot.slane %v5380_v51, 7  ;;  %v5350_v58 = vadd.f32 %v13918_v6, %v17529_v15  ;;  %v5199_v34 = vpop.f32.mrb[61].mxu0  ;;  %14503 = vmatprep.subr.bf16.mxu1 %v14502_v56  ;;  %v14514_v56 = vpack.c.bf16 %v5618_v42, %v5616_v12  ;;  %v5679_v42 = vsel %vm699_vm5, %v5676_v23, %v5678_v49 }
 0x5f7   :  { %v5452_v20 = vrot.slane %v5379_v8, 7  ;;  %v5349_v50 = vadd.f32 %v17529_v15, %v5199_v34 }
 0x5f8   :  { %v5382_v13 = vmax.f32 %v5350_v58, 0.0  ;;  %5873 = vmatmul.mubr.f32.gmra.mrb[36].mxu1 %v5671_v41  ;;  %v14516_v58 = vpack.c.bf16 %v5617_v9, %v5615_v43 }
 0x5f9   :  { %v17630_v60 = vsel %vm234_vm2, %v5450_v4, %v5452_v20  ;;  %v17633_v62 = vsel %vm234_vm2, %v5452_v20, %v5454_v14  ;;  %v5381_v26 = vmax.f32 %v5349_v50, 0.0  ;;  %v13921_v5 = vpop.f32.mrb[62].mxu0  ;;  %5878 = vmatprep.mubr.f32.mxu1 %v15502_v3  ;;  %14505 = vmatpush1.bf16.msra.mxu1 %v14504_v27  ;;  %v5619_v20 = vld [vmem:[%s20627_s5 + $0xc0] sm:$0xff]  ;;  %v5621_v50 = vld [vmem:[%s20627_s5 + $0xd0] sm:$0xff] }
 0x5fa   :  { %v5458_v52 = vrot.slane %v5382_v13, 7  ;;  %v5352_v28 = vadd.f32 %v13921_v5, %v17529_v15  ;;  %v5209_v46 = vpop.f32.mrb[63].mxu0  ;;  %14507 = vmatprep.subr.bf16.mxu1 %v14506_v38  ;;  %v5624_v13 = vld [vmem:[%s20627_s5 + $0xe8] sm:$0xff] }
 0x5fb   :  { %v5456_v11 = vrot.slane %v5381_v26, 7  ;;  %v5351_v16 = vadd.f32 %v17529_v15, %v5209_v46  ;;  %v5626_v26 = vld [vmem:[%s20627_s5 + $0xf8] sm:$0xff]  ;;  %v14520_v46 = vpack.c.bf16 %v5621_v50, %v5619_v20 }
 0x5fc   :  { %v5384_v48 = vmax.f32 %v5352_v28, 0.0  ;;  %5879 = vmatmul.mubr.f32.gmra.mrb[38].mxu1 %v5673_v40  ;;  %v5625_v40 = vld [vmem:[%s20627_s5 + $0xf0] sm:$0xff] }
 0x5fd   :  { %v17653_v19 = vsel %vm234_vm2, %v5454_v14, %v5456_v11  ;;  %v17656_v25 = vsel %vm234_vm2, %v5456_v11, %v5458_v52  ;;  %v5383_v37 = vmax.f32 %v5351_v16, 0.0  ;;  %v13924_v7 = vpop.f32.mrb[64].mxu0  ;;  %5884 = vmatprep.mubr.f32.mxu1 %v15502_v3  ;;  %14509 = vmatpush1.bf16.msra.mxu1 %v14508_v17  ;;  %v14522_v11 = vpack.c.bf16 %v5626_v26, %v5624_v13  ;;  %v5623_v16 = vld [vmem:[%s20627_s5 + $0xe0] sm:$0xff] }
 0x5fe   :  { %v5462_v4 = vrot.slane %v5384_v48, 7  ;;  %v5354_v44 = vadd.f32 %v13924_v7, %v17529_v15  ;;  %v5219_v54 = vpop.f32.mrb[65].mxu0  ;;  %14511 = vmatprep.subr.bf16.mxu1 %v14510_v29  ;;  %v5680_v48 = vrot.slane %v17607_v57, 1  ;;  %v12656_v7 = vld [vmem:[%s20627_s5 + $0x218] sm:$0xff]  ;;  %v14524_v43 = vpack.c.bf16 %v5625_v40, %v5623_v16 }
 0x5ff   :  { %v5460_v47 = vrot.slane %v5383_v37, 7  ;;  %v5353_v30 = vadd.f32 %v17529_v15, %v5219_v54  ;;  %v12654_v37 = vld [vmem:[%s20627_s5 + $0x208] sm:$0xff]  ;;  %v5686_v16 = vrot.slane %v17633_v62, 1 }
 0x600   :  { %5545 = vst [vmem:[#allocation2 + $0x100] sm:$0x1] %v5462_v4  ;;  %v5386_v51 = vmax.f32 %v5354_v44, 0.0  ;;  %5885 = vmatmul.mubr.f32.gmra.mrb[40].mxu1 %v5675_v35  ;;  %v14526_v35 = vpack.c.bf16 %v12656_v7, %v12654_v37  ;;  %v5681_v39 = vsel %vm699_vm5, %v5678_v49, %v5680_v48 }
 0x601   :  { %v17676_v8 = vsel %vm234_vm2, %v5458_v52, %v5460_v47  ;;  %v17679_v6 = vsel %vm234_vm2, %v5460_v47, %v5462_v4  ;;  %v5385_v27 = vmax.f32 %v5353_v30, 0.0  ;;  %v13927_v14 = vpop.f32.mrb[66].mxu0  ;;  %5890 = vmatprep.mubr.f32.mxu1 %v15502_v3  ;;  %14513 = vmatpush1.bf16.msra.mxu1 %v14512_v0 }
 0x602   :  { %v5465_v34 = vrot.slane %v5386_v51, 7  ;;  %v5356_v38 = vadd.f32 %v13927_v14, %v17529_v15  ;;  %v5229_v36 = vpop.f32.mrb[67].mxu0  ;;  %14515 = vmatprep.subr.bf16.mxu1 %v14514_v56  ;;  %v5682_v51 = vrot.slane %v17610_v24, 1 }
 0x603   :  { %v5464_v41 = vrot.slane %v5385_v27, 7  ;;  %v5355_v61 = vadd.f32 %v17529_v15, %v5229_v36 }
 0x604   :  { %v5388_v5 = vmax.f32 %v5356_v38, 0.0  ;;  %5891 = vmatmul.mubr.f32.gmra.mrb[42].mxu1 %v5677_v10  ;;  %v5684_v10 = vrot.slane %v17630_v60, 1 }
 0x605   :  { %v17699_v17 = vsel %vm234_vm2, %v5464_v41, %v5465_v34  ;;  %5546 = vst [vmem:[#allocation2 + $0x110] sm:$0xfe] %v5464_v41  ;;  %v5387_v52 = vmax.f32 %v5355_v61, 0.0  ;;  %v13930_v28 = vpop.f32.mrb[68].mxu0  ;;  %5896 = vmatprep.mubr.f32.mxu1 %v15502_v3  ;;  %14517 = vmatpush1.bf16.msra.mxu1 %v14516_v58  ;;  %v5683_v61 = vsel %vm699_vm5, %v5680_v48, %v5682_v51 }
 0x606   :  { %v5469_v29 = vrot.slane %v5388_v5, 7  ;;  %v5358_v31 = vadd.f32 %v13930_v28, %v17529_v15  ;;  %v5239_v53 = vpop.f32.mrb[69].mxu0  ;;  %14519 = vmatprep.subr.bf16.mxu1 %v14518_v32 }
 0x607   :  { %v5467_v59 = vrot.slane %v5387_v52, 7  ;;  %v5357_v12 = vadd.f32 %v17529_v15, %v5239_v53 }
 0x608   :  { %v5390_v0 = vmax.f32 %v5358_v31, 0.0  ;;  %5897 = vmatmul.mubr.f32.gmra.mrb[44].mxu1 %v5679_v42 }
 0x609   :  { %v17719_v4 = vsel %vm234_vm2, %v5465_v34, %v5467_v59  ;;  %v17722_v44 = vsel %vm234_vm2, %v5467_v59, %v5469_v29  ;;  %v5389_v54 = vmax.f32 %v5357_v12, 0.0  ;;  %v13933_v56 = vpop.f32.mrb[70].mxu0  ;;  %5902 = vmatprep.mubr.f32.mxu1 %v15502_v3  ;;  %14521 = vmatpush1.bf16.msra.mxu1 %v14520_v46 }
 0x60a   :  { %v5473_v9 = vrot.slane %v5390_v0, 7  ;;  %v5360_v47 = vadd.f32 %v13933_v56, %v17529_v15  ;;  %v5249_v30 = vpop.f32.mrb[71].mxu0  ;;  %14523 = vmatprep.subr.bf16.mxu1 %v14522_v11  ;;  %v5685_v11 = vsel %vm699_vm5, %v5682_v51, %v5684_v10 }
 0x60b   :  { %v5471_v23 = vrot.slane %v5389_v54, 7  ;;  %v5359_v33 = vadd.f32 %v17529_v15, %v5249_v30 }
 0x60c   :  { %v5392_v27 = vmax.f32 %v5360_v47, 0.0  ;;  %5903 = vmatmul.mubr.f32.gmra.mrb[46].mxu1 %v5681_v39 }
 0x60d   :  { %v17730_v14 = vsel %vm234_vm2, %v5469_v29, %v5471_v23  ;;  %v17733_v58 = vsel %vm234_vm2, %v5471_v23, %v5473_v9  ;;  %v5391_v34 = vmax.f32 %v5359_v33, 0.0  ;;  %v13936_v38 = vpop.f32.mrb[72].mxu0  ;;  %5908 = vmatprep.mubr.f32.mxu1 %v15502_v3  ;;  %14525 = vmatpush1.bf16.msra.mxu1 %v14524_v43  ;;  %v5687_v43 = vsel %vm699_vm5, %v5684_v10, %v5686_v16 }
 0x60e   :  { %v5477_v36 = vrot.slane %v5392_v27, 7  ;;  %v5362_v32 = vadd.f32 %v13936_v38, %v17529_v15  ;;  %v5259_v20 = vpop.f32.mrb[73].mxu0  ;;  %14527 = vmatprep.subr.bf16.mxu1 %v14526_v35 }
 0x60f   :  { %v5475_v50 = vrot.slane %v5391_v34, 7  ;;  %v5361_v41 = vadd.f32 %v17529_v15, %v5259_v20 }
 0x610   :  { %v5394_v49 = vmax.f32 %v5362_v32, 0.0  ;;  %5909 = vmatmul.mubr.f32.gmra.mrb[48].mxu1 %v5683_v61  ;;  %v5690_v32 = vrot.slane %v17656_v25, 1 }
 0x611   :  { %v17741_v13 = vsel %vm234_vm2, %v5473_v9, %v5475_v50  ;;  %v17744_v26 = vsel %vm234_vm2, %v5475_v50, %v5477_v36  ;;  %v5393_v5 = vmax.f32 %v5361_v41, 0.0  ;;  %v13939_v52 = vpop.f32.mrb[74].mxu0  ;;  %5914 = vmatprep.mubr.f32.mxu1 %v15502_v3  ;;  %v5688_v9 = vrot.slane %v17653_v19, 1 }
 0x612   :  { %v5481_v28 = vrot.slane %v5394_v49, 7  ;;  %v5364_v46 = vadd.f32 %v13939_v52, %v17529_v15  ;;  %v5269_v29 = vpop.f32.mrb[75].mxu0 }
 0x613   :  { %v5479_v31 = vrot.slane %v5393_v5, 7  ;;  %v5363_v53 = vadd.f32 %v17529_v15, %v5269_v29  ;;  %v5691_v5 = vsel %vm699_vm5, %v5688_v9, %v5690_v32  ;;  %v5694_v29 = vrot.slane %v17679_v6, 1 }
 0x614   :  { %v5396_v40 = vmax.f32 %v5364_v46, 0.0  ;;  %5915 = vmatmul.mubr.f32.gmra.mrb[50].mxu1 %v5685_v11 }
 0x615   :  { %v17752_v59 = vsel %vm234_vm2, %v5477_v36, %v5479_v31  ;;  %v17755_v12 = vsel %vm234_vm2, %v5479_v31, %v5481_v28  ;;  %v5395_v42 = vmax.f32 %v5363_v53, 0.0  ;;  %v13942_v48 = vpop.f32.mrb[76].mxu0  ;;  %5920 = vmatprep.mubr.f32.mxu1 %v15502_v3  ;;  %v5689_v36 = vsel %vm699_vm5, %v5686_v16, %v5688_v9  ;;  %v5628_v31 = vld [vmem:[#allocation2 + $0x100] sm:$0x1]  ;;  %v5629_v16 = vld [vmem:[#allocation2 + $0x110] sm:$0xfe] }
 0x616   :  { %v5485_v37 = vrot.slane %v5396_v40, 7  ;;  %v5366_v7 = vadd.f32 %v13942_v48, %v17529_v15  ;;  %v5279_v0 = vpop.f32.mrb[77].mxu0  ;;  %v5696_v11 = vrot.slane %v5628_v31, 1  ;;  %v5699_v48 = vrot.slane %v17699_v17, 1 }
 0x617   :  { %v5483_v54 = vrot.slane %v5395_v42, 7  ;;  %v5365_v56 = vadd.f32 %v17529_v15, %v5279_v0  ;;  %v5698_v42 = vrot.slane %v5629_v16, 1 }
 0x618   :  { %v5398_v47 = vmax.f32 %v5366_v7, 0.0  ;;  %5921 = vmatmul.mubr.f32.gmra.mrb[52].mxu1 %v5687_v43  ;;  %v5697_v40 = vsel %vm699_vm5, %v5694_v29, %v5696_v11  ;;  %v5701_v7 = vrot.slane %v17719_v4, 1  ;;  %v5705_v43 = vrot.slane %v17730_v14, 1 }
 0x619   :  { %v17763_v30 = vsel %vm234_vm2, %v5481_v28, %v5483_v54  ;;  %v17766_v35 = vsel %vm234_vm2, %v5483_v54, %v5485_v37  ;;  %v5397_v23 = vmax.f32 %v5365_v56, 0.0  ;;  %v13945_v33 = vpop.f32.mrb[78].mxu0  ;;  %5926 = vmatprep.mubr.f32.mxu1 %v15502_v3  ;;  %v5703_v54 = vrot.slane %v17722_v44, 1 }
 0x61a   :  { %v5489_v39 = vrot.slane %v5398_v47, 7  ;;  %v5368_v51 = vadd.f32 %v13945_v33, %v17529_v15  ;;  %v5289_v27 = vpop.f32.mrb[79].mxu0  ;;  %v5702_v0 = vsel %vm699_vm5, %v5699_v48, %v5701_v7  ;;  %v5707_v47 = vrot.slane %v17733_v58, 1 }
 0x61b   :  { %v5487_v34 = vrot.slane %v5397_v23, 7  ;;  %v5367_v38 = vadd.f32 %v17529_v15, %v5289_v27  ;;  %v5692_v15 = vrot.slane %v17676_v8, 1  ;;  %v5704_v56 = vsel %vm699_vm5, %v5701_v7, %v5703_v54 }
 0x61c   :  { %v5400_v20 = vmax.f32 %v5368_v51, 0.0  ;;  %5927 = vmatmul.mubr.f32.gmra.mrb[54].mxu1 %v5689_v36  ;;  %v5706_v9 = vsel %vm699_vm5, %v5703_v54, %v5705_v43  ;;  %v5708_v23 = vsel %vm699_vm5, %v5705_v43, %v5707_v47  ;;  %v5709_v33 = vrot.slane %v17741_v13, 1  ;;  %v12660_v54 = vld [vmem:[%s20627_s5 + $0x238] sm:$0xff] }
 0x61d   :  { %v17774_v50 = vsel %vm234_vm2, %v5485_v37, %v5487_v34  ;;  %v17777_v41 = vsel %vm234_vm2, %v5487_v34, %v5489_v39  ;;  %v5399_v61 = vmax.f32 %v5367_v38, 0.0  ;;  %5932 = vmatprep.mubr.f32.mxu1 %v15502_v3  ;;  %v5693_v46 = vsel %vm699_vm5, %v5690_v32, %v5692_v15 }
 0x61e   :  { %v5493_v10 = vrot.slane %v5400_v20, 7  ;;  %v5695_v53 = vsel %vm699_vm5, %v5692_v15, %v5694_v29  ;;  %v5700_v37 = vsel %vm699_vm5, %v5698_v42, %v5699_v48  ;;  %v5711_v51 = vrot.slane %v17744_v26, 1  ;;  %v12653_v48 = vld [vmem:[%s20627_s5 + $0x200] sm:$0xff] }
 0x61f   :  { %v5491_v49 = vrot.slane %v5399_v61, 7  ;;  %v5713_v34 = vrot.slane %v17752_v59, 1  ;;  %v5715_v36 = vrot.slane %v17755_v12, 1  ;;  %v5717_v20 = vrot.slane %v17763_v30, 1 }
 0x620   :  { %5562 = vst [vmem:[#allocation2 + $0x210] sm:$0x1] %v5493_v10  ;;  %5933 = vmatmul.mubr.f32.gmra.mrb[56].mxu1 %v5691_v5  ;;  %v5712_v27 = vsel %vm699_vm5, %v5709_v33, %v5711_v51  ;;  %v5721_v5 = vrot.slane %v17774_v50, 1 }
 0x621   :  { %v17783_v52 = vsel %vm234_vm2, %v5489_v39, %v5491_v49  ;;  %v17786_v28 = vsel %vm234_vm2, %v5491_v49, %v5493_v10  ;;  %5938 = vmatprep.mubr.f32.mxu1 %v15502_v3  ;;  %v5710_v39 = vsel %vm699_vm5, %v5707_v47, %v5709_v33  ;;  %v5714_v38 = vsel %vm699_vm5, %v5711_v51, %v5713_v34  ;;  %v12659_v47 = vld [vmem:[%s20627_s5 + $0x230] sm:$0xff]  ;;  %v12662_v33 = vld [vmem:[%s20627_s5 + $0x248] sm:$0xff] }
 0x622   :  { %v5716_v32 = vsel %vm699_vm5, %v5713_v34, %v5715_v36  ;;  %v5718_v61 = vsel %vm699_vm5, %v5715_v36, %v5717_v20  ;;  %v5719_v10 = vrot.slane %v17766_v35, 1  ;;  %v5725_v31 = vrot.slane %v17783_v52, 1  ;;  %v12661_v34 = vld [vmem:[%s20627_s5 + $0x240] sm:$0xff]  ;;  %v12666_v36 = vld [vmem:[%s20627_s5 + $0x268] sm:$0xff] }
 0x623   :  { %v5727_v11 = vrot.slane %v17786_v28, 1 }
 0x624   :  { %5939 = vmatmul.mubr.f32.gmra.mrb[58].mxu1 %v5693_v46  ;;  %v5720_v49 = vsel %vm699_vm5, %v5717_v20, %v5719_v10  ;;  %v5722_v15 = vsel %vm699_vm5, %v5719_v10, %v5721_v5  ;;  %v5723_v46 = vrot.slane %v17777_v41, 1  ;;  %v12665_v10 = vld [vmem:[%s20627_s5 + $0x260] sm:$0xff] }
 0x625   :  { %5944 = vmatprep.mubr.f32.mxu1 %v15502_v3 }
 0x626   :  { %v5724_v29 = vsel %vm699_vm5, %v5721_v5, %v5723_v46  ;;  %v12670_v5 = vld [vmem:[%s20627_s5 + $0x288] sm:$0xff] }
 0x627   :  { %v5630_v16 = vld [vmem:[#allocation2 + $0x210] sm:$0x1] }
 0x628   :  { %5945 = vmatmul.mubr.f32.gmra.mrb[60].mxu1 %v5695_v53  ;;  %v5726_v53 = vsel %vm699_vm5, %v5723_v46, %v5725_v31  ;;  %v5729_v42 = vrot.slane %v5630_v16, 1  ;;  %v12676_v16 = vld [vmem:[%s20627_s5 + $0x2b8] sm:$0xff] }
 0x629   :  { %5950 = vmatprep.mubr.f32.mxu1 %v15502_v3 }
 0x62a   :  { %v5730_v7 = vsel %vm699_vm5, %v5727_v11, %v5729_v42 }
 0x62c   :  { %5951 = vmatmul.mubr.f32.gmra.mrb[62].mxu1 %v5697_v40  ;;  %v5728_v40 = vsel %vm699_vm5, %v5725_v31, %v5727_v11  ;;  %v12669_v31 = vld [vmem:[%s20627_s5 + $0x280] sm:$0xff]  ;;  %v12674_v11 = vld [vmem:[%s20627_s5 + $0x2a8] sm:$0xff] }
 0x62d   :  { %5956 = vmatprep.mubr.f32.mxu1 %v15502_v3  ;;  %v14546_v42 = vpack.c.bf16 %v12676_v16, %v12674_v11  ;;  %v8300_v11 = vld [vmem:[#allocation10 + $0x210] sm:$0xff]  ;;  %v8301_v16 = vld [vmem:[#allocation10 + $0x218] sm:$0xff] }
 0x630   :  { %5957 = vmatmul.mubr.f32.gmra.mrb[64].mxu1 %v5700_v37  ;;  %v12655_v37 = vld [vmem:[%s20627_s5 + $0x210] sm:$0xff] }
 0x631   :  { %5962 = vmatprep.mubr.f32.mxu1 %v15502_v3 }
 0x634   :  { %5963 = vmatmul.mubr.f32.gmra.mrb[66].mxu1 %v5702_v0  ;;  %v12658_v0 = vld [vmem:[%s20627_s5 + $0x228] sm:$0xff] }
 0x635   :  { %5968 = vmatprep.mubr.f32.mxu1 %v15502_v3  ;;  %v14530_v43 = vpack.c.bf16 %v12660_v54, %v12658_v0  ;;  %v12680_v0 = vld [vmem:[%s20627_s5 + $0x2d8] sm:$0xff] }
 0x638   :  { %5969 = vmatmul.mubr.f32.gmra.mrb[68].mxu1 %v5704_v56  ;;  %v14528_v56 = vpack.c.bf16 %v12655_v37, %v12653_v48  ;;  %v12673_v48 = vld [vmem:[%s20627_s5 + $0x2a0] sm:$0xff]  ;;  %v12675_v37 = vld [vmem:[%s20627_s5 + $0x2b0] sm:$0xff] }
 0x639   :  { %5974 = vmatprep.mubr.f32.mxu1 %v15502_v3  ;;  %v14548_v54 = vpack.c.bf16 %v12675_v37, %v12673_v48  ;;  %v7608_v37 = vld [vmem:[#allocation10 + $0x128] sm:$0xff] }
 0x63c   :  { %5975 = vmatmul.mubr.f32.gmra.mrb[70].mxu1 %v5706_v9  ;;  %v12657_v9 = vld [vmem:[%s20627_s5 + $0x220] sm:$0xff] }
 0x63d   :  { %5980 = vmatprep.mubr.f32.mxu1 %v15502_v3  ;;  %v14532_v51 = vpack.c.bf16 %v12659_v47, %v12657_v9  ;;  %v12679_v9 = vld [vmem:[%s20627_s5 + $0x2d0] sm:$0xff]  ;;  %v12682_v47 = vld [vmem:[%s20627_s5 + $0x2e8] sm:$0xff] }
 0x640   :  { %5981 = vmatmul.mubr.f32.gmra.mrb[72].mxu1 %v5708_v23  ;;  %v5563_v23 = vld [vmem:[#allocation2] sm:$0xff] }
 0x641   :  { %5986 = vmatprep.mubr.f32.mxu1 %v15502_v3 }
 0x644   :  { %5987 = vmatmul.mubr.f32.gmra.mrb[74].mxu1 %v5710_v39  ;;  %v12664_v39 = vld [vmem:[%s20627_s5 + $0x258] sm:$0xff] }
 0x645   :  { %5992 = vmatprep.mubr.f32.mxu1 %v15502_v3 }
 0x648   :  { %5993 = vmatmul.mubr.f32.gmra.mrb[76].mxu1 %v5712_v27  ;;  %v14534_v27 = vpack.c.bf16 %v12664_v39, %v12662_v33 }
 0x649   :  { %5998 = vmatprep.mubr.f32.mxu1 %v15502_v3 }
 0x64c   :  { %5999 = vmatmul.mubr.f32.gmra.mrb[78].mxu1 %v5714_v38  ;;  %v12663_v38 = vld [vmem:[%s20627_s5 + $0x250] sm:$0xff] }
 0x64d   :  { %6004 = vmatprep.mubr.f32.mxu1 %v15502_v3  ;;  %v14536_v20 = vpack.c.bf16 %v12663_v38, %v12661_v34  ;;  %v5579_v38 = vld [vmem:[#allocation2 + $0x110] sm:$0xff] }
 0x650   :  { %6005 = vmatmul.mubr.f32.gmra.mrb[80].mxu1 %v5716_v32  ;;  %v12668_v32 = vld [vmem:[%s20627_s5 + $0x278] sm:$0xff] }
 0x651   :  { %6010 = vmatprep.mubr.f32.mxu1 %v15502_v3 }
 0x654   :  { %6011 = vmatmul.mubr.f32.gmra.mrb[82].mxu1 %v5718_v61  ;;  %v14538_v61 = vpack.c.bf16 %v12668_v32, %v12666_v36  ;;  %v6310_v36 = vld [vmem:[#allocation2] sm:$0xfc] }
 0x655   :  { %6016 = vmatprep.mubr.f32.mxu1 %v15502_v3  ;;  %v6318_v32 = vrot.slane %v6310_v36, 2 }
 0x658   :  { %6017 = vmatmul.mubr.f32.gmra.mrb[84].mxu1 %v5720_v49  ;;  %v12667_v49 = vld [vmem:[%s20627_s5 + $0x270] sm:$0xff] }
 0x659   :  { %6022 = vmatprep.mubr.f32.mxu1 %v15502_v3  ;;  %v14540_v46 = vpack.c.bf16 %v12667_v49, %v12665_v10  ;;  %v8298_v10 = vld [vmem:[#allocation10 + $0x200] sm:$0xff]  ;;  %v6319_v49 = vrot.slane %v17536_v18, 2 }
 0x65c   :  { %6023 = vmatmul.mubr.f32.gmra.mrb[86].mxu1 %v5722_v15  ;;  %v12672_v15 = vld [vmem:[%s20627_s5 + $0x298] sm:$0xff] }
 0x65d   :  { %6028 = vmatprep.mubr.f32.mxu1 %v15502_v3 }
 0x660   :  { %6029 = vmatmul.mubr.f32.gmra.mrb[88].mxu1 %v5724_v29  ;;  %v14542_v29 = vpack.c.bf16 %v12672_v15, %v12670_v5  ;;  %v15503_v5 = vmov 0.0|0.0  }
 0x661   :  { %6034 = vmatprep.mubr.f32.mxu1 %v15502_v3  ;;  %14558 = vmatprep.subr.bf16.mxu0 %v15503_v5 }
 0x664   :  { %6035 = vmatmul.mubr.f32.gmra.mrb[90].mxu1 %v5726_v53  ;;  %v12671_v53 = vld [vmem:[%s20627_s5 + $0x290] sm:$0xff] }
 0x665   :  { %6040 = vmatprep.mubr.f32.mxu1 %v15502_v3 }
 0x668   :  { %6041 = vmatmul.mubr.f32.gmra.mrb[92].mxu1 %v5728_v40  ;;  %v14544_v40 = vpack.c.bf16 %v12671_v53, %v12669_v31  ;;  %v7606_v31 = vld [vmem:[#allocation10 + $0x118] sm:$0xff] }
 0x669   :  { %6046 = vmatprep.mubr.f32.mxu1 %v15502_v3 }
 0x66c   :  { %6047 = vmatmul.mubr.f32.gmra.mrb[94].mxu1 %v5730_v7  ;;  %v12678_v7 = vld [vmem:[%s20627_s5 + $0x2c8] sm:$0xff] }
 0x66d   :  { %6117 = vmatprep.mubr.f32.mxu1 %v15502_v3 }
 0x670   :  { %6118 = vmatmul.mubr.f32.vlgmr.msra.gmra.mrb[32].mxu1 %v5563_v23  ;;  %v12684_v23 = vld [vmem:[%s20627_s5 + $0x2f8] sm:$0xff] }
 0x671   :  { %14529 = vmatpush1.bf16.msra.mxu1 %v14528_v56  ;;  %6123 = vmatprep.mubr.f32.mxu1 %v15502_v3  ;;  %v14550_v56 = vpack.c.bf16 %v12680_v0, %v12678_v7  ;;  %v14554_v39 = vpack.c.bf16 %v12684_v23, %v12682_v47  ;;  %v14658_v7 = vpack.c.bf16 %v8301_v16, %v8300_v11  ;;  %v8302_v0 = vld [vmem:[#allocation10 + $0x220] sm:$0xff]  ;;  %v7610_v47 = vld [vmem:[#allocation10 + $0x138] sm:$0xff]  ;;  %v6329_v11 = vrot.slane %v17584_v45, 2 }
 0x672   :  { %14531 = vmatprep.subr.bf16.mxu1 %v14530_v43  ;;  %v12677_v43 = vld [vmem:[%s20627_s5 + $0x2c0] sm:$0xff]  ;;  %v7615_v16 = vld [vmem:[#allocation10 + $0x160] sm:$0xff] }
 0x673   :  { %v14552_v33 = vpack.c.bf16 %v12679_v9, %v12677_v43  ;;  %v6323_v43 = vrot.slane %v17544_v2, 2  ;;  %v7609_v9 = vld [vmem:[#allocation10 + $0x130] sm:$0xff] }
 0x674   :  { %6124 = vmatmul.mubr.f32.gmra.mrb[34].mxu1 %v17536_v18  ;;  %v7607_v18 = vld [vmem:[#allocation10 + $0x120] sm:$0xff] }
 0x675   :  { %6129 = vmatprep.mubr.f32.mxu1 %v15502_v3  ;;  %14533 = vmatpush1.bf16.msra.mxu1 %v14532_v51  ;;  %v12681_v51 = vld [vmem:[%s20627_s5 + $0x2e0] sm:$0xff] }
 0x676   :  { %14535 = vmatprep.subr.bf16.mxu1 %v14534_v27  ;;  %v12683_v27 = vld [vmem:[%s20627_s5 + $0x2f0] sm:$0xff] }
 0x677   :  { %v14556_v34 = vpack.c.bf16 %v12683_v27, %v12681_v51  ;;  %v6325_v27 = vrot.slane %v17562_v55, 2 }
 0x678   :  { %6130 = vmatmul.mubr.f32.gmra.mrb[36].mxu1 %v17541_v22 }
 0x679   :  { %6135 = vmatprep.mubr.f32.mxu1 %v15502_v3  ;;  %14537 = vmatpush1.bf16.msra.mxu1 %v14536_v20  ;;  %v7603_v20 = vld [vmem:[#allocation10 + $0x100] sm:$0xff] }
 0x67a   :  { %14539 = vmatprep.subr.bf16.mxu1 %v14538_v61  ;;  %v7604_v61 = vld [vmem:[#allocation10 + $0x108] sm:$0xff] }
 0x67b   :  { %v14559_v15 = vpack.c.bf16 %v7604_v61, %v7603_v20  ;;  %v8307_v20 = vld [vmem:[#allocation10 + $0x248] sm:$0xff]  ;;  %v6326_v61 = vsel %vm974_vm6, %v6323_v43, %v6325_v27 }
 0x67c   :  { %6136 = vmatmul.mubr.f32.gmra.mrb[38].mxu1 %v17544_v2  ;;  %v14568_v2 = vpack.c.bf16 %v7610_v47, %v7609_v9  ;;  %v6333_v47 = vrot.slane %v17607_v57, 2 }
 0x67d   :  { %6141 = vmatprep.mubr.f32.mxu1 %v15502_v3  ;;  %14541 = vmatpush1.bf16.msra.mxu1 %v14540_v46  ;;  %v8299_v46 = vld [vmem:[#allocation10 + $0x208] sm:$0xff] }
 0x67e   :  { %14543 = vmatprep.subr.bf16.mxu1 %v14542_v29  ;;  %v7605_v29 = vld [vmem:[#allocation10 + $0x110] sm:$0xff]  ;;  %v14655_v53 = vpack.c.bf16 %v8299_v46, %v8298_v10  ;;  %14560 = vmatpush1.bf16.msra.mxu0 %v14559_v15  ;;  %v6327_v10 = vrot.slane %v17565_v21, 2  ;;  %v7614_v15 = vld [vmem:[#allocation10 + $0x158] sm:$0xff] }
 0x67f   :  { %v14562_v48 = vpack.c.bf16 %v7606_v31, %v7605_v29  ;;  %14561 = vmatprep.subr.bf16.mxu0 %v15503_v5  ;;  %v8308_v29 = vld [vmem:[#allocation10 + $0x250] sm:$0xff]  ;;  %v8309_v31 = vld [vmem:[#allocation10 + $0x258] sm:$0xff] }
 0x680   :  { %6142 = vmatmul.mubr.f32.gmra.mrb[40].mxu1 %v17562_v55 }
 0x681   :  { %6147 = vmatprep.mubr.f32.mxu1 %v15502_v3  ;;  %14545 = vmatpush1.bf16.msra.mxu1 %v14544_v40  ;;  %v6320_v40 = vsel %vm974_vm6, %v6318_v32, %v6319_v49  ;;  %v8306_v32 = vld [vmem:[#allocation10 + $0x240] sm:$0xff] }
 0x682   :  { %14547 = vmatprep.subr.bf16.mxu1 %v14546_v42  ;;  %v6321_v42 = vrot.slane %v17541_v22, 2  ;;  %14563 = vmatpush1.bf16.msra.mxu0 %v14562_v48  ;;  %v14565_v22 = vpack.c.bf16 %v7608_v37, %v7607_v18  ;;  %v14667_v46 = vpack.c.bf16 %v8307_v20, %v8306_v32  ;;  %v8310_v48 = vld [vmem:[#allocation10 + $0x260] sm:$0xff]  ;;  %v8311_v18 = vld [vmem:[#allocation10 + $0x268] sm:$0xff]  ;;  %v6330_v37 = vsel %vm974_vm6, %v6327_v10, %v6329_v11  ;;  %v8316_v20 = vld [vmem:[#allocation10 + $0x290] sm:$0xff] }
 0x683   :  { %14564 = vmatprep.subr.bf16.mxu0 %v15503_v5 }
 0x684   :  { %6148 = vmatmul.mubr.f32.gmra.mrb[42].mxu1 %v17565_v21  ;;  %v6324_v51 = vsel %vm974_vm6, %v6321_v42, %v6323_v43  ;;  %v8312_v43 = vld [vmem:[#allocation10 + $0x270] sm:$0xff] }
 0x685   :  { %6153 = vmatprep.mubr.f32.mxu1 %v15502_v3  ;;  %14549 = vmatpush1.bf16.msra.mxu1 %v14548_v54  ;;  %v8303_v54 = vld [vmem:[#allocation10 + $0x228] sm:$0xff] }
 0x686   :  { %14551 = vmatprep.subr.bf16.mxu1 %v14550_v56  ;;  %v6322_v56 = vsel %vm974_vm6, %v6319_v49, %v6321_v42  ;;  %v14661_v23 = vpack.c.bf16 %v8303_v54, %v8302_v0  ;;  %14566 = vmatpush1.bf16.msra.mxu0 %v14565_v22  ;;  %v7613_v49 = vld [vmem:[#allocation10 + $0x150] sm:$0xff]  ;;  %v14670_v42 = vpack.c.bf16 %v8309_v31, %v8308_v29  ;;  %v7618_v54 = vld [vmem:[#allocation10 + $0x178] sm:$0xff]  ;;  %v6341_v29 = vrot.slane %v17653_v19, 2 }
 0x687   :  { %14567 = vmatprep.subr.bf16.mxu0 %v15503_v5  ;;  %v14574_v21 = vpack.c.bf16 %v7614_v15, %v7613_v49  ;;  %v7617_v0 = vld [vmem:[#allocation10 + $0x170] sm:$0xff]  ;;  %v8313_v22 = vld [vmem:[#allocation10 + $0x278] sm:$0xff] }
 0x688   :  { %6154 = vmatmul.mubr.f32.gmra.mrb[44].mxu1 %v17584_v45 }
 0x689   :  { %6159 = vmatprep.mubr.f32.mxu1 %v15502_v3  ;;  %14553 = vmatpush1.bf16.msra.mxu1 %v14552_v33  ;;  %v8304_v33 = vld [vmem:[#allocation10 + $0x230] sm:$0xff] }
 0x68a   :  { %14555 = vmatprep.subr.bf16.mxu1 %v14554_v39  ;;  %v8305_v39 = vld [vmem:[#allocation10 + $0x238] sm:$0xff]  ;;  %14569 = vmatpush1.bf16.msra.mxu0 %v14568_v2 }
 0x68b   :  { %v14664_v36 = vpack.c.bf16 %v8305_v39, %v8304_v33  ;;  %14570 = vmatprep.subr.bf16.mxu0 %v15503_v5  ;;  %v7620_v33 = vld [vmem:[#allocation10 + $0x188] sm:$0xff]  ;;  %v14676_v39 = vpack.c.bf16 %v8313_v22, %v8312_v43 }
 0x68c   :  { %6160 = vmatmul.mubr.f32.gmra.mrb[46].mxu1 %v17587_v63 }
 0x68d   :  { %6165 = vmatprep.mubr.f32.mxu1 %v15502_v3  ;;  %14557 = vmatpush1.bf16.msra.mxu1 %v14556_v34  ;;  %v7611_v34 = vld [vmem:[#allocation10 + $0x140] sm:$0xff] }
 0x68e   :  { %14654 = vmatprep.subr.bf16.mxu1 %v15503_v5 }
 0x690   :  { %6166 = vmatmul.mubr.f32.gmra.mrb[48].mxu1 %v17607_v57 }
 0x691   :  { %6171 = vmatprep.mubr.f32.mxu1 %v15502_v3 }
 0x694   :  { %6172 = vmatmul.mubr.f32.gmra.mrb[50].mxu1 %v17610_v24 }
 0x695   :  { %6177 = vmatprep.mubr.f32.mxu1 %v15502_v3 }
 0x698   :  { %6178 = vmatmul.mubr.f32.gmra.mrb[52].mxu1 %v17630_v60 }
 0x699   :  { %6183 = vmatprep.mubr.f32.mxu1 %v15502_v3 }
 0x69c   :  { %6184 = vmatmul.mubr.f32.gmra.mrb[54].mxu1 %v17633_v62 }
 0x69d   :  { %6189 = vmatprep.mubr.f32.mxu1 %v15502_v3 }
 0x6a0   :  { %6190 = vmatmul.mubr.f32.gmra.mrb[56].mxu1 %v17653_v19  ;;  %v6347_v19 = vrot.slane %v17679_v6, 2 }
 0x6a1   :  { %6195 = vmatprep.mubr.f32.mxu1 %v15502_v3 }
 0x6a4   :  { %6196 = vmatmul.mubr.f32.gmra.mrb[58].mxu1 %v17656_v25 }
 0x6a5   :  { %6201 = vmatprep.mubr.f32.mxu1 %v15502_v3 }
 0x6a8   :  { %6202 = vmatmul.mubr.f32.gmra.mrb[60].mxu1 %v17676_v8 }
 0x6a9   :  { %6207 = vmatprep.mubr.f32.mxu1 %v15502_v3 }
 0x6ac   :  { %6208 = vmatmul.mubr.f32.gmra.mrb[62].mxu1 %v17679_v6 }
 0x6ad   :  { %6213 = vmatprep.mubr.f32.mxu1 %v15502_v3 }
 0x6b0   :  { %6214 = vmatmul.mubr.f32.gmra.mrb[64].mxu1 %v5579_v38  ;;  %v7612_v38 = vld [vmem:[#allocation10 + $0x148] sm:$0xff] }
 0x6b1   :  { %6219 = vmatprep.mubr.f32.mxu1 %v15502_v3  ;;  %v14571_v55 = vpack.c.bf16 %v7612_v38, %v7611_v34  ;;  %v6335_v34 = vrot.slane %v17610_v24, 2  ;;  %v7621_v38 = vld [vmem:[#allocation10 + $0x190] sm:$0xff] }
 0x6b3   :  { %14572 = vmatpush1.bf16.msra.mxu0 %v14571_v55  ;;  %v6337_v55 = vrot.slane %v17630_v60, 2 }
 0x6b4   :  { %6220 = vmatmul.mubr.f32.gmra.mrb[66].mxu1 %v17699_v17  ;;  %14573 = vmatprep.subr.bf16.mxu0 %v15503_v5 }
 0x6b5   :  { %6225 = vmatprep.mubr.f32.mxu1 %v15502_v3  ;;  %v6338_v15 = vsel %vm974_vm6, %v6335_v34, %v6337_v55 }
 0x6b7   :  { %14575 = vmatpush1.bf16.msra.mxu0 %v14574_v21 }
 0x6b8   :  { %6226 = vmatmul.mubr.f32.gmra.mrb[68].mxu1 %v17719_v4  ;;  %14576 = vmatprep.subr.bf16.mxu0 %v15503_v5 }
 0x6b9   :  { %6231 = vmatprep.mubr.f32.mxu1 %v15502_v3 }
 0x6bc   :  { %6232 = vmatmul.mubr.f32.gmra.mrb[70].mxu1 %v17722_v44 }
 0x6bd   :  { %6237 = vmatprep.mubr.f32.mxu1 %v15502_v3 }
 0x6c0   :  { %6238 = vmatmul.mubr.f32.gmra.mrb[72].mxu1 %v17730_v14 }
 0x6c1   :  { %6243 = vmatprep.mubr.f32.mxu1 %v15502_v3 }
 0x6c4   :  { %6244 = vmatmul.mubr.f32.gmra.mrb[74].mxu1 %v17733_v58 }
 0x6c5   :  { %6249 = vmatprep.mubr.f32.mxu1 %v15502_v3 }
 0x6c8   :  { %6250 = vmatmul.mubr.f32.gmra.mrb[76].mxu1 %v17741_v13 }
 0x6c9   :  { %6255 = vmatprep.mubr.f32.mxu1 %v15502_v3 }
 0x6cc   :  { %6256 = vmatmul.mubr.f32.gmra.mrb[78].mxu1 %v17744_v26 }
 0x6cd   :  { %6261 = vmatprep.mubr.f32.mxu1 %v15502_v3 }
 0x6d0   :  { %6262 = vmatmul.mubr.f32.gmra.mrb[80].mxu1 %v17752_v59 }
 0x6d1   :  { %6267 = vmatprep.mubr.f32.mxu1 %v15502_v3 }
 0x6d4   :  { %6268 = vmatmul.mubr.f32.gmra.mrb[82].mxu1 %v17755_v12 }
 0x6d5   :  { %6273 = vmatprep.mubr.f32.mxu1 %v15502_v3 }
 0x6d8   :  { %6274 = vmatmul.mubr.f32.gmra.mrb[84].mxu1 %v17763_v30 }
 0x6d9   :  { %6279 = vmatprep.mubr.f32.mxu1 %v15502_v3 }
 0x6dc   :  { %6280 = vmatmul.mubr.f32.gmra.mrb[86].mxu1 %v17766_v35 }
 0x6dd   :  { %6285 = vmatprep.mubr.f32.mxu1 %v15502_v3 }
 0x6e0   :  { %6286 = vmatmul.mubr.f32.gmra.mrb[88].mxu1 %v17774_v50 }
 0x6e1   :  { %6291 = vmatprep.mubr.f32.mxu1 %v15502_v3 }
 0x6e4   :  { %6292 = vmatmul.mubr.f32.gmra.mrb[90].mxu1 %v17777_v41 }
 0x6e5   :  { %6297 = vmatprep.mubr.f32.mxu1 %v15502_v3 }
 0x6e8   :  { %6298 = vmatmul.mubr.f32.gmra.mrb[92].mxu1 %v17783_v52 }
 0x6e9   :  { %6303 = vmatprep.mubr.f32.mxu1 %v15502_v3 }
 0x6ec   :  { %6304 = vmatmul.mubr.f32.gmra.mrb[94].mxu1 %v17786_v28 }
 0x6ed   :  { %6513 = vmatprep.mubr.f32.mxu1 %v15502_v3 }
 0x6f0   :  { %6514 = vmatmul.mubr.f32.vlgmr.msra.gmra.mrb[32].mxu1 %v6320_v40  ;;  %v7616_v40 = vld [vmem:[#allocation10 + $0x168] sm:$0xff] }
 0x6f1   :  { %6519 = vmatprep.mubr.f32.mxu1 %v15502_v3  ;;  %14656 = vmatpush1.bf16.msra.mxu1 %v14655_v53  ;;  %v6328_v53 = vsel %vm974_vm6, %v6325_v27, %v6327_v10  ;;  %v14577_v45 = vpack.c.bf16 %v7616_v40, %v7615_v16  ;;  %v8315_v27 = vld [vmem:[#allocation10 + $0x288] sm:$0xff]  ;;  %v6336_v10 = vsel %vm974_vm6, %v6333_v47, %v6335_v34 }
 0x6f2   :  { %14657 = vmatprep.subr.bf16.mxu1 %v15503_v5  ;;  %v6311_v16 = vld [vmem:[#allocation2 + $0x100] sm:$0x3] }
 0x6f3   :  { %14578 = vmatpush1.bf16.msra.mxu0 %v14577_v45  ;;  %v6349_v40 = vrot.slane %v6311_v16, 2  ;;  %v6356_v45 = vrot.slane %v17722_v44, 2  ;;  %v6362_v44 = vrot.slane %v17741_v13, 2  ;;  %v6368_v13 = vrot.slane %v17755_v12, 2  ;;  %v7626_v12 = vld [vmem:[#allocation10 + $0x1b8] sm:$0xff] }
 0x6f4   :  { %6520 = vmatmul.mubr.f32.gmra.mrb[34].mxu1 %v6322_v56  ;;  %v14673_v56 = vpack.c.bf16 %v8311_v18, %v8310_v48  ;;  %14579 = vmatprep.subr.bf16.mxu0 %v15503_v5  ;;  %v6352_v18 = vrot.slane %v17699_v17, 2 }
 0x6f5   :  { %6525 = vmatprep.mubr.f32.mxu1 %v15502_v3  ;;  %14659 = vmatpush1.bf16.msra.mxu1 %v14658_v7  ;;  %v6331_v7 = vrot.slane %v17587_v63, 2  ;;  %v14580_v63 = vpack.c.bf16 %v7618_v54, %v7617_v0  ;;  %v6358_v54 = vrot.slane %v17730_v14, 2  ;;  %v6364_v14 = vrot.slane %v17744_v26, 2  ;;  %v8319_v26 = vld [vmem:[#allocation10 + $0x2a8] sm:$0xff] }
 0x6f6   :  { %14660 = vmatprep.subr.bf16.mxu1 %v15503_v5 }
 0x6f7   :  { %v6332_v9 = vsel %vm974_vm6, %v6329_v11, %v6331_v7  ;;  %v6334_v2 = vsel %vm974_vm6, %v6331_v7, %v6333_v47  ;;  %14581 = vmatpush1.bf16.msra.mxu0 %v14580_v63  ;;  %v6345_v11 = vrot.slane %v17676_v8, 2  ;;  %v6350_v8 = vsel %vm974_vm6, %v6347_v19, %v6349_v40  ;;  %v7623_v47 = vld [vmem:[#allocation10 + $0x1a0] sm:$0xff]  ;;  %v7624_v63 = vld [vmem:[#allocation10 + $0x1a8] sm:$0xff] }
 0x6f8   :  { %6526 = vmatmul.mubr.f32.gmra.mrb[36].mxu1 %v6324_v51  ;;  %v8314_v51 = vld [vmem:[#allocation10 + $0x280] sm:$0xff]  ;;  %14582 = vmatprep.subr.bf16.mxu0 %v15503_v5  ;;  %v6359_v17 = vsel %vm974_vm6, %v6356_v45, %v6358_v54  ;;  %v6365_v22 = vsel %vm974_vm6, %v6362_v44, %v6364_v14 }
 0x6f9   :  { %6531 = vmatprep.mubr.f32.mxu1 %v15502_v3  ;;  %14662 = vmatpush1.bf16.msra.mxu1 %v14661_v23  ;;  %v7619_v23 = vld [vmem:[#allocation10 + $0x180] sm:$0xff]  ;;  %v14679_v32 = vpack.c.bf16 %v8315_v27, %v8314_v51  ;;  %v7625_v27 = vld [vmem:[#allocation10 + $0x1b0] sm:$0xff] }
 0x6fa   :  { %14663 = vmatprep.subr.bf16.mxu1 %v15503_v5  ;;  %v14583_v57 = vpack.c.bf16 %v7620_v33, %v7619_v23  ;;  %v8318_v23 = vld [vmem:[#allocation10 + $0x2a0] sm:$0xff]  ;;  %v14589_v33 = vpack.c.bf16 %v7624_v63, %v7623_v47  ;;  %v14592_v34 = vpack.c.bf16 %v7626_v12, %v7625_v27  ;;  %v18133_v63 = vld [vmem:[#allocation10 + $0x8] sm:$0xff]  ;;  %v18145_v12 = vld [vmem:[#allocation10 + $0x38] sm:$0xff] }
 0x6fb   :  { %v18131_v47 = vld [vmem:[#allocation10] sm:$0xff] }
 0x6fc   :  { %6532 = vmatmul.mubr.f32.gmra.mrb[38].mxu1 %v6326_v61  ;;  %v8317_v61 = vld [vmem:[#allocation10 + $0x298] sm:$0xff]  ;;  %14584 = vmatpush1.bf16.msra.mxu0 %v14583_v57 }
 0x6fd   :  { %6537 = vmatprep.mubr.f32.mxu1 %v15502_v3  ;;  %14665 = vmatpush1.bf16.msra.mxu1 %v14664_v36  ;;  %v7622_v36 = vld [vmem:[#allocation10 + $0x198] sm:$0xff]  ;;  %v14682_v49 = vpack.c.bf16 %v8317_v61, %v8316_v20  ;;  %v7628_v20 = vld [vmem:[#allocation10 + $0x1c8] sm:$0xff]  ;;  %v8322_v61 = vld [vmem:[#allocation10 + $0x2c0] sm:$0xff] }
 0x6fe   :  { %14666 = vmatprep.subr.bf16.mxu1 %v15503_v5  ;;  %v14586_v24 = vpack.c.bf16 %v7622_v36, %v7621_v38  ;;  %14585 = vmatprep.subr.bf16.mxu0 %v15503_v5  ;;  %v8321_v57 = vld [vmem:[#allocation10 + $0x2b8] sm:$0xff] }
 0x700   :  { %6538 = vmatmul.mubr.f32.gmra.mrb[40].mxu1 %v6328_v53  ;;  %14587 = vmatpush1.bf16.msra.mxu0 %v14586_v24 }
 0x701   :  { %6543 = vmatprep.mubr.f32.mxu1 %v15502_v3  ;;  %14668 = vmatpush1.bf16.msra.mxu1 %v14667_v46  ;;  %v6339_v46 = vrot.slane %v17633_v62, 2  ;;  %v6343_v62 = vrot.slane %v17656_v25, 2  ;;  %v6348_v25 = vsel %vm974_vm6, %v6345_v11, %v6347_v19  ;;  %v8326_v19 = vld [vmem:[#allocation10 + $0x2e0] sm:$0xff] }
 0x702   :  { %14669 = vmatprep.subr.bf16.mxu1 %v15503_v5  ;;  %14588 = vmatprep.subr.bf16.mxu0 %v15503_v5 }
 0x703   :  { %v6340_v60 = vsel %vm974_vm6, %v6337_v55, %v6339_v46  ;;  %v6342_v31 = vsel %vm974_vm6, %v6339_v46, %v6341_v29  ;;  %v6344_v53 = vsel %vm974_vm6, %v6341_v29, %v6343_v62  ;;  %v6346_v21 = vsel %vm974_vm6, %v6343_v62, %v6345_v11  ;;  %v8323_v55 = vld [vmem:[#allocation10 + $0x2c8] sm:$0xff]  ;;  %v7630_v46 = vld [vmem:[#allocation10 + $0x1d8] sm:$0xff] }
 0x704   :  { %6544 = vmatmul.mubr.f32.gmra.mrb[42].mxu1 %v6330_v37  ;;  %v6354_v37 = vrot.slane %v17719_v4, 2  ;;  %v6360_v4 = vrot.slane %v17733_v58, 2  ;;  %v6366_v58 = vrot.slane %v17752_v59, 2  ;;  %14590 = vmatpush1.bf16.msra.mxu0 %v14589_v33  ;;  %v6370_v59 = vrot.slane %v17763_v30, 2  ;;  %v7627_v30 = vld [vmem:[#allocation10 + $0x1c0] sm:$0xff] }
 0x705   :  { %6549 = vmatprep.mubr.f32.mxu1 %v15502_v3  ;;  %14671 = vmatpush1.bf16.msra.mxu1 %v14670_v42  ;;  %v6312_v42 = vld [vmem:[#allocation2 + $0x110] sm:$0xfc]  ;;  %v14691_v24 = vpack.c.bf16 %v8323_v55, %v8322_v61  ;;  %v6376_v11 = vrot.slane %v17777_v41, 2  ;;  %v7633_v41 = vld [vmem:[#allocation10 + $0x1f0] sm:$0xff]  ;;  %v18159_v55 = vld [vmem:[#allocation10 + $0x68] sm:$0xff] }
 0x706   :  { %14672 = vmatprep.subr.bf16.mxu1 %v15503_v5  ;;  %v6351_v48 = vrot.slane %v6312_v42, 2  ;;  %v6355_v7 = vsel %vm974_vm6, %v6352_v18, %v6354_v37  ;;  %v6357_v0 = vsel %vm974_vm6, %v6354_v37, %v6356_v45  ;;  %v6363_v43 = vsel %vm974_vm6, %v6360_v4, %v6362_v44  ;;  %14591 = vmatprep.subr.bf16.mxu0 %v15503_v5  ;;  %v8329_v37 = vld [vmem:[#allocation10 + $0x2f8] sm:$0xff]  ;;  %v6770_v44 = vld [vmem:[%s20636_s14] sm:$0x3] }
 0x707   :  { %v6369_v51 = vsel %vm974_vm6, %v6366_v58, %v6368_v13  ;;  %v6371_v36 = vsel %vm974_vm6, %v6368_v13, %v6370_v59 }
 0x708   :  { %6550 = vmatmul.mubr.f32.gmra.mrb[44].mxu1 %v6332_v9  ;;  %v6353_v6 = vsel %vm974_vm6, %v6351_v48, %v6352_v18  ;;  %v6367_v9 = vsel %vm974_vm6, %v6364_v14, %v6366_v58  ;;  %14593 = vmatpush1.bf16.msra.mxu0 %v14592_v34  ;;  %v7634_v48 = vld [vmem:[#allocation10 + $0x1f8] sm:$0xff]  ;;  %v8328_v18 = vld [vmem:[#allocation10 + $0x2f0] sm:$0xff]  ;;  %v18149_v34 = vld [vmem:[#allocation10 + $0x48] sm:$0xff] }
 0x709   :  { %6555 = vmatprep.mubr.f32.mxu1 %v15502_v3  ;;  %14674 = vmatpush1.bf16.msra.mxu1 %v14673_v56  ;;  %v6361_v56 = vsel %vm974_vm6, %v6358_v54, %v6360_v4 }
 0x70a   :  { %14675 = vmatprep.subr.bf16.mxu1 %v15503_v5  ;;  %14594 = vmatprep.subr.bf16.mxu0 %v15503_v5 }
 0x70c   :  { %6556 = vmatmul.mubr.f32.gmra.mrb[46].mxu1 %v6334_v2  ;;  %v8320_v2 = vld [vmem:[#allocation10 + $0x2b0] sm:$0xff] }
 0x70d   :  { %6561 = vmatprep.mubr.f32.mxu1 %v15502_v3  ;;  %14677 = vmatpush1.bf16.msra.mxu1 %v14676_v39  ;;  %v14685_v39 = vpack.c.bf16 %v8319_v26, %v8318_v23  ;;  %v14688_v38 = vpack.c.bf16 %v8321_v57, %v8320_v2  ;;  %v18137_v23 = vld [vmem:[#allocation10 + $0x18] sm:$0xff]  ;;  %v18139_v26 = vld [vmem:[#allocation10 + $0x20] sm:$0xff] }
 0x70e   :  { %14678 = vmatprep.subr.bf16.mxu1 %v15503_v5  ;;  %v18147_v2 = vld [vmem:[#allocation10 + $0x40] sm:$0xff] }
 0x710   :  { %6562 = vmatmul.mubr.f32.gmra.mrb[48].mxu1 %v6336_v10  ;;  %v14595_v10 = vpack.c.bf16 %v7628_v20, %v7627_v30  ;;  %v18154_v30 = vld [vmem:[#allocation10 + $0x58] sm:$0xff]  ;;  %v18156_v20 = vld [vmem:[#allocation10 + $0x60] sm:$0xff] }
 0x711   :  { %6567 = vmatprep.mubr.f32.mxu1 %v15502_v3  ;;  %14680 = vmatpush1.bf16.msra.mxu1 %v14679_v32  ;;  %v6372_v32 = vrot.slane %v17766_v35, 2  ;;  %v7629_v35 = vld [vmem:[#allocation10 + $0x1d0] sm:$0xff] }
 0x712   :  { %14681 = vmatprep.subr.bf16.mxu1 %v15503_v5  ;;  %14596 = vmatpush1.bf16.msra.mxu0 %v14595_v10  ;;  %v14598_v29 = vpack.c.bf16 %v7630_v46, %v7629_v35  ;;  %v14607_v35 = vpack.c.bf16 %v18133_v63, %v18131_v47 }
 0x713   :  { %14597 = vmatprep.subr.bf16.mxu0 %v15503_v5 }
 0x714   :  { %6568 = vmatmul.mubr.f32.gmra.mrb[50].mxu1 %v6338_v15  ;;  %v6374_v15 = vrot.slane %v17774_v50, 2  ;;  %v7631_v50 = vld [vmem:[#allocation10 + $0x1e0] sm:$0xff] }
 0x715   :  { %6573 = vmatprep.mubr.f32.mxu1 %v15502_v3  ;;  %14683 = vmatpush1.bf16.msra.mxu1 %v14682_v49  ;;  %v6373_v49 = vsel %vm974_vm6, %v6370_v59, %v6372_v32 }
 0x716   :  { %14684 = vmatprep.subr.bf16.mxu1 %v15503_v5  ;;  %14599 = vmatpush1.bf16.msra.mxu0 %v14598_v29  ;;  %v6377_v42 = vsel %vm974_vm6, %v6374_v15, %v6376_v11  ;;  %v18171_v29 = vld [vmem:[#allocation10 + $0x88] sm:$0xff] }
 0x717   :  { %14600 = vmatprep.subr.bf16.mxu0 %v15503_v5 }
 0x718   :  { %6574 = vmatmul.mubr.f32.gmra.mrb[52].mxu1 %v6340_v60  ;;  %v8324_v60 = vld [vmem:[#allocation10 + $0x2d0] sm:$0xff] }
 0x719   :  { %6579 = vmatprep.mubr.f32.mxu1 %v15502_v3  ;;  %14686 = vmatpush1.bf16.msra.mxu1 %v14685_v39  ;;  %v18141_v39 = vld [vmem:[#allocation10 + $0x28] sm:$0xff] }
 0x71a   :  { %14687 = vmatprep.subr.bf16.mxu1 %v15503_v5 }
 0x71c   :  { %6580 = vmatmul.mubr.f32.gmra.mrb[54].mxu1 %v6342_v31  ;;  %v8325_v31 = vld [vmem:[#allocation10 + $0x2d8] sm:$0xff] }
 0x71d   :  { %6585 = vmatprep.mubr.f32.mxu1 %v15502_v3  ;;  %14689 = vmatpush1.bf16.msra.mxu1 %v14688_v38  ;;  %v14694_v62 = vpack.c.bf16 %v8325_v31, %v8324_v60  ;;  %v18169_v60 = vld [vmem:[#allocation10 + $0x80] sm:$0xff]  ;;  %v18173_v31 = vld [vmem:[#allocation10 + $0x90] sm:$0xff] }
 0x71e   :  { %14690 = vmatprep.subr.bf16.mxu1 %v15503_v5 }
 0x720   :  { %6586 = vmatmul.mubr.f32.gmra.mrb[56].mxu1 %v6344_v53  ;;  %v6375_v53 = vsel %vm974_vm6, %v6372_v32, %v6374_v15  ;;  %v18152_v32 = vld [vmem:[#allocation10 + $0x50] sm:$0xff] }
 0x721   :  { %6591 = vmatprep.mubr.f32.mxu1 %v15502_v3  ;;  %14692 = vmatpush1.bf16.msra.mxu1 %v14691_v24  ;;  %v18161_v24 = vld [vmem:[#allocation10 + $0x70] sm:$0xff] }
 0x722   :  { %14693 = vmatprep.subr.bf16.mxu1 %v15503_v5 }
 0x724   :  { %6592 = vmatmul.mubr.f32.gmra.mrb[58].mxu1 %v6346_v21  ;;  %v7632_v21 = vld [vmem:[#allocation10 + $0x1e8] sm:$0xff] }
 0x725   :  { %6597 = vmatprep.mubr.f32.mxu1 %v15502_v3  ;;  %14695 = vmatpush1.bf16.msra.mxu1 %v14694_v62  ;;  %v14601_v16 = vpack.c.bf16 %v7632_v21, %v7631_v50  ;;  %v14619_v21 = vpack.c.bf16 %v18149_v34, %v18147_v2 }
 0x726   :  { %14696 = vmatprep.subr.bf16.mxu1 %v15503_v5 }
 0x727   :  { %14602 = vmatpush1.bf16.msra.mxu0 %v14601_v16  ;;  %v18183_v16 = vld [vmem:[#allocation10 + $0xa0] sm:$0xff] }
 0x728   :  { %6598 = vmatmul.mubr.f32.gmra.mrb[60].mxu1 %v6348_v25  ;;  %v8327_v25 = vld [vmem:[#allocation10 + $0x2e8] sm:$0xff]  ;;  %14603 = vmatprep.subr.bf16.mxu0 %v15503_v5 }
 0x729   :  { %6603 = vmatprep.mubr.f32.mxu1 %v15502_v3  ;;  %v14697_v40 = vpack.c.bf16 %v8327_v25, %v8326_v19  ;;  %v18181_v19 = vld [vmem:[#allocation10 + $0x98] sm:$0xff]  ;;  %v18185_v25 = vld [vmem:[#allocation10 + $0xa8] sm:$0xff] }
 0x72b   :  { %14698 = vmatpush1.bf16.msra.mxu1 %v14697_v40 }
 0x72c   :  { %6604 = vmatmul.mubr.f32.gmra.mrb[62].mxu1 %v6350_v8  ;;  %v6378_v8 = vrot.slane %v17783_v52, 2  ;;  %14699 = vmatprep.subr.bf16.mxu1 %v15503_v5  ;;  %v6313_v52 = vld [vmem:[#allocation2 + $0x210] sm:$0x3] }
 0x72d   :  { %6609 = vmatprep.mubr.f32.mxu1 %v15502_v3 }
 0x72e   :  { %v6379_v45 = vsel %vm974_vm6, %v6376_v11, %v6378_v8  ;;  %v14613_v11 = vpack.c.bf16 %v18141_v39, %v18139_v26 }
 0x730   :  { %6610 = vmatmul.mubr.f32.gmra.mrb[64].mxu1 %v6353_v6  ;;  %v14604_v6 = vpack.c.bf16 %v7634_v48, %v7633_v41  ;;  %v14622_v41 = vpack.c.bf16 %v18154_v30, %v18152_v32 }
 0x731   :  { %6615 = vmatprep.mubr.f32.mxu1 %v15502_v3 }
 0x732   :  { %14605 = vmatpush1.bf16.msra.mxu0 %v14604_v6  ;;  %v18194_v6 = vld [vmem:[#allocation10 + $0xb8] sm:$0xff] }
 0x733   :  { %14606 = vmatprep.subr.bf16.mxu0 %v15503_v5 }
 0x734   :  { %6616 = vmatmul.mubr.f32.gmra.mrb[66].mxu1 %v6355_v7  ;;  %v14700_v7 = vpack.c.bf16 %v8329_v37, %v8328_v18  ;;  %v18192_v18 = vld [vmem:[#allocation10 + $0xb0] sm:$0xff] }
 0x735   :  { %6621 = vmatprep.mubr.f32.mxu1 %v15502_v3 }
 0x736   :  { %14701 = vmatpush1.bf16.msra.mxu1 %v14700_v7 }
 0x738   :  { %6622 = vmatmul.mubr.f32.gmra.mrb[68].mxu1 %v6357_v0  ;;  %v6380_v0 = vrot.slane %v17786_v28, 2 }
 0x739   :  { %6627 = vmatprep.mubr.f32.mxu1 %v15502_v3 }
 0x73a   :  { %v6381_v54 = vsel %vm974_vm6, %v6378_v8, %v6380_v0 }
 0x73c   :  { %6628 = vmatmul.mubr.f32.gmra.mrb[70].mxu1 %v6359_v17  ;;  %v6382_v17 = vrot.slane %v6313_v52, 2 }
 0x73d   :  { %6633 = vmatprep.mubr.f32.mxu1 %v15502_v3 }
 0x73e   :  { %v6383_v4 = vsel %vm974_vm6, %v6380_v0, %v6382_v17 }
 0x740   :  { %6634 = vmatmul.mubr.f32.gmra.mrb[72].mxu1 %v6361_v56  ;;  %v6773_v56 = vshrl.u32 %v144_v1, 7  ;;  %v18135_v1 = vld [vmem:[#allocation10 + $0x10] sm:$0xff] }
 0x741   :  { %6639 = vmatprep.mubr.f32.mxu1 %v15502_v3  ;;  %v14610_v46 = vpack.c.bf16 %v18137_v23, %v18135_v1 }
 0x742   :  { %v6774_v28 = vsub.s32 0, %v6773_v56 }
 0x744   :  { %6640 = vmatmul.mubr.f32.gmra.mrb[74].mxu1 %v6363_v43  ;;  %v6778_v43 = vsub.s32 1, %v6773_v56  ;;  %v18125_v14 = vrot.slane %v6770_v44, %v6774_v28  ;;  %v18208_v56 = vld [vmem:[#allocation10 + $0xc0] sm:$0xff]  ;;  %v18210_v28 = vld [vmem:[#allocation10 + $0xc8] sm:$0xff] }
 0x745   :  { %6645 = vmatprep.mubr.f32.mxu1 %v15502_v3 }
 0x748   :  { %6646 = vmatmul.mubr.f32.gmra.mrb[76].mxu1 %v6365_v22  ;;  %v18127_v22 = vrot.slane %v6770_v44, %v6778_v43 }
 0x749   :  { %6651 = vmatprep.mubr.f32.mxu1 %v15502_v3 }
 0x74c   :  { %6652 = vmatmul.mubr.f32.gmra.mrb[78].mxu1 %v6367_v9 }
 0x74d   :  { %6657 = vmatprep.mubr.f32.mxu1 %v15502_v3 }
 0x750   :  { %6658 = vmatmul.mubr.f32.gmra.mrb[80].mxu1 %v6369_v51  ;;  %v18143_v51 = vld [vmem:[#allocation10 + $0x30] sm:$0xff] }
 0x751   :  { %6663 = vmatprep.mubr.f32.mxu1 %v15502_v3  ;;  %v14616_v50 = vpack.c.bf16 %v18145_v12, %v18143_v51 }
 0x754   :  { %6664 = vmatmul.mubr.f32.gmra.mrb[82].mxu1 %v6371_v36 }
 0x755   :  { %6669 = vmatprep.mubr.f32.mxu1 %v15502_v3 }
 0x758   :  { %6670 = vmatmul.mubr.f32.gmra.mrb[84].mxu1 %v6373_v49  ;;  %v18163_v49 = vld [vmem:[#allocation10 + $0x78] sm:$0xff] }
 0x759   :  { %6675 = vmatprep.mubr.f32.mxu1 %v15502_v3 }
 0x75c   :  { %6676 = vmatmul.mubr.f32.gmra.mrb[86].mxu1 %v6375_v53 }
 0x75d   :  { %6681 = vmatprep.mubr.f32.mxu1 %v15502_v3 }
 0x760   :  { %6682 = vmatmul.mubr.f32.gmra.mrb[88].mxu1 %v6377_v42 }
 0x761   :  { %6687 = vmatprep.mubr.f32.mxu1 %v15502_v3 }
 0x764   :  { %6688 = vmatmul.mubr.f32.gmra.mrb[90].mxu1 %v6379_v45 }
 0x765   :  { %6693 = vmatprep.mubr.f32.mxu1 %v15502_v3 }
 0x768   :  { %6694 = vmatmul.mubr.f32.gmra.mrb[92].mxu1 %v6381_v54 }
 0x769   :  { %6699 = vmatprep.mubr.f32.mxu1 %v15502_v3 }
 0x76c   :  { %6700 = vmatmul.mubr.f32.gmra.mrb[94].mxu1 %v6383_v4 }
 0x7c3   :  { %v6515_v58 = vpop.f32.mrb[32].mxu1 }
 0x7c4   :  { %v6782_v9 = vadd.f32 %v18125_v14, %v6515_v58  ;;  %v6517_v13 = vpop.f32.mrb[33].mxu1 }
 0x7c5   :  { %v6783_v3 = vadd.f32 %v18127_v22, %v6517_v13 }
 0x7c6   :  { %v6846_v33 = vmax.f32 %v6782_v9, 0.0 }
 0x7c7   :  { %v6847_v59 = vmax.f32 %v6783_v3, 0.0  ;;  %v6521_v27 = vpop.f32.mrb[34].mxu1  ;;  %v18219_v3 = vld [vmem:[#allocation10 + $0xd0] sm:$0xff] }
 0x7c8   :  { %v6974_v57 = vrot.slane %v6846_v33, 7  ;;  %v6784_v38 = vadd.f32 %v18125_v14, %v6521_v27  ;;  %v6523_v36 = vpop.f32.mrb[35].mxu1  ;;  %v18221_v33 = vld [vmem:[#allocation10 + $0xd8] sm:$0xff] }
 0x7c9   :  { %v6975_v61 = vrot.slane %v6847_v59, 7  ;;  %v6785_v10 = vadd.f32 %v18127_v22, %v6523_v36 }
 0x7ca   :  { %7166 = vst [vmem:[#allocation3] sm:$0xfe] %v6974_v57  ;;  %v6848_v15 = vmax.f32 %v6784_v38, 0.0 }
 0x7cb   :  { %7167 = vst [vmem:[#allocation3 + $0x8] sm:$0xfe] %v6975_v61  ;;  %v6849_v62 = vmax.f32 %v6785_v10, 0.0  ;;  %v6527_v53 = vpop.f32.mrb[36].mxu1 }
 0x7cc   :  { %v6976_v40 = vrot.slane %v6848_v15, 7  ;;  %v6786_v42 = vadd.f32 %v18125_v14, %v6527_v53  ;;  %v6529_v8 = vpop.f32.mrb[37].mxu1 }
 0x7cd   :  { %v6978_v37 = vrot.slane %v6849_v62, 7  ;;  %v6787_v7 = vadd.f32 %v18127_v22, %v6529_v8 }
 0x7ce   :  { %v18202_v52 = vsel %vm234_vm2, %v6974_v57, %v6976_v40  ;;  %v6850_v54 = vmax.f32 %v6786_v42, 0.0 }
 0x7cf   :  { %7168 = vst [vmem:[#allocation3 + $0x10] sm:$0xff] %v18202_v52  ;;  %v18214_v44 = vsel %vm234_vm2, %v6975_v61, %v6978_v37  ;;  %v6851_v43 = vmax.f32 %v6787_v7, 0.0  ;;  %v6533_v58 = vpop.f32.mrb[38].mxu1  ;;  %v7407_v9 = vrot.slane %v18202_v52, 1  ;;  %v8102_v36 = vrot.slane %v18202_v52, 2 }
 0x7d0   :  { %7169 = vst [vmem:[#allocation3 + $0x18] sm:$0xff] %v18214_v44  ;;  %v6980_v59 = vrot.slane %v6850_v54, 7  ;;  %v6788_v27 = vadd.f32 %v18125_v14, %v6533_v58  ;;  %v6535_v57 = vpop.f32.mrb[39].mxu1  ;;  %v7410_v38 = vrot.slane %v18214_v44, 1  ;;  %v8105_v15 = vrot.slane %v18214_v44, 2 }
 0x7d1   :  { %v6982_v61 = vrot.slane %v6851_v43, 7  ;;  %v6789_v10 = vadd.f32 %v18127_v22, %v6535_v57  ;;  %v7330_v62 = vld [vmem:[#allocation3] sm:$0xfe] }
 0x7d2   :  { %v8085_v53 = vld [vmem:[#allocation3] sm:$0xfc]  ;;  %v18232_v8 = vsel %vm234_vm2, %v6976_v40, %v6980_v59  ;;  %v6852_v7 = vmax.f32 %v6788_v27, 0.0  ;;  %v7331_v54 = vld [vmem:[#allocation3 + $0x8] sm:$0xfe]  ;;  %v7406_v13 = vrot.slane %v7330_v62, 1 }
 0x7d3   :  { %v8086_v58 = vld [vmem:[#allocation3 + $0x8] sm:$0xfc]  ;;  %7170 = vst [vmem:[#allocation3 + $0x20] sm:$0xff] %v18232_v8  ;;  %v18238_v43 = vsel %vm234_vm2, %v6978_v37, %v6982_v61  ;;  %v6853_v44 = vmax.f32 %v6789_v10, 0.0  ;;  %v6539_v57 = vpop.f32.mrb[40].mxu1  ;;  %v7409_v17 = vrot.slane %v7331_v54, 1 }
 0x7d4   :  { %v8104_v0 = vrot.slane %v8086_v58, 2  ;;  %7171 = vst [vmem:[#allocation3 + $0x28] sm:$0xff] %v18238_v43  ;;  %v6984_v40 = vrot.slane %v6852_v7, 7  ;;  %v6790_v27 = vadd.f32 %v18125_v14, %v6539_v57  ;;  %v6541_v42 = vpop.f32.mrb[41].mxu1  ;;  %v7408_v62 = vsel %vm699_vm5, %v7406_v13, %v7407_v9 }
 0x7d5   :  { %v8101_v4 = vrot.slane %v8085_v53, 2  ;;  %v6986_v45 = vrot.slane %v6853_v44, 7  ;;  %v6791_v48 = vadd.f32 %v18127_v22, %v6541_v42  ;;  %v7411_v37 = vsel %vm699_vm5, %v7409_v17, %v7410_v38 }
 0x7d6   :  { %v8106_v10 = vsel %vm974_vm6, %v8104_v0, %v8105_v15  ;;  %v18249_v54 = vsel %vm234_vm2, %v6980_v59, %v6984_v40  ;;  %v6854_v58 = vmax.f32 %v6790_v27, 0.0  ;;  %7699 = vmatprep.mubr.f32.mxu0 %v7411_v37  ;;  %v7414_v57 = vrot.slane %v18238_v43, 1 }
 0x7d7   :  { %8394 = vmatprep.mubr.f32.mxu1 %v8106_v10  ;;  %v8103_v7 = vsel %vm974_vm6, %v8101_v4, %v8102_v36  ;;  %7172 = vst [vmem:[#allocation3 + $0x30] sm:$0xff] %v18249_v54  ;;  %v18255_v13 = vsel %vm234_vm2, %v6982_v61, %v6986_v45  ;;  %v6855_v53 = vmax.f32 %v6791_v48, 0.0  ;;  %v6545_v42 = vpop.f32.mrb[42].mxu1  ;;  %7700 = vmatmul.mubr.f32.vlgmr.msra.gmra.mrb[80].mxu0 %v7408_v62  ;;  %v8109_v0 = vrot.slane %v18238_v43, 2 }
 0x7d8   :  { %8395 = vmatmul.mubr.f32.vlgmr.msra.gmra.mrb[96].mxu1 %v8103_v7  ;;  %v7412_v17 = vrot.slane %v18232_v8, 1  ;;  %7173 = vst [vmem:[#allocation3 + $0x38] sm:$0xff] %v18255_v13  ;;  %v6988_v59 = vrot.slane %v6854_v58, 7  ;;  %v6792_v4 = vadd.f32 %v18125_v14, %v6545_v42  ;;  %v6547_v44 = vpop.f32.mrb[43].mxu1  ;;  %14608 = vmatpush1.bf16.msra.mxu0 %v14607_v35  ;;  %v7415_v61 = vsel %vm699_vm5, %v7410_v38, %v7414_v57 }
 0x7d9   :  { %v8107_v48 = vrot.slane %v18232_v8, 2  ;;  %v6990_v27 = vrot.slane %v6855_v53, 7  ;;  %v6793_v62 = vadd.f32 %v18127_v22, %v6547_v44  ;;  %7704 = vmatprep.mubr.f32.mxu0 %v7415_v61  ;;  %v8110_v43 = vsel %vm974_vm6, %v8105_v15, %v8109_v0  ;;  %14609 = vmatprep.subr.bf16.mxu0 %v15503_v5 }
 0x7da   :  { %v7413_v37 = vsel %vm699_vm5, %v7407_v9, %v7412_v17  ;;  %v18273_v10 = vsel %vm234_vm2, %v6984_v40, %v6988_v59  ;;  %v6856_v47 = vmax.f32 %v6792_v4, 0.0  ;;  %8399 = vmatprep.mubr.f32.mxu1 %v8110_v43  ;;  %v7418_v35 = vrot.slane %v18255_v13, 1 }
 0x7db   :  { %v8108_v63 = vsel %vm974_vm6, %v8102_v36, %v8107_v48  ;;  %7174 = vst [vmem:[#allocation3 + $0x40] sm:$0xff] %v18273_v10  ;;  %v18279_v38 = vsel %vm234_vm2, %v6986_v45, %v6990_v27  ;;  %v6857_v15 = vmax.f32 %v6793_v62, 0.0  ;;  %v6551_v52 = vpop.f32.mrb[44].mxu1  ;;  %7705 = vmatmul.mubr.f32.gmra.mrb[82].mxu0 %v7413_v37  ;;  %v8113_v9 = vrot.slane %v18255_v13, 2 }
 0x7dc   :  { %8400 = vmatmul.mubr.f32.gmra.mrb[98].mxu1 %v8108_v63  ;;  %v7416_v8 = vrot.slane %v18249_v54, 1  ;;  %7175 = vst [vmem:[#allocation3 + $0x48] sm:$0xff] %v18279_v38  ;;  %v6992_v40 = vrot.slane %v6856_v47, 7  ;;  %v6794_v36 = vadd.f32 %v18125_v14, %v6551_v52  ;;  %v6553_v58 = vpop.f32.mrb[45].mxu1  ;;  %v7419_v7 = vsel %vm699_vm5, %v7414_v57, %v7418_v35  ;;  %14611 = vmatpush1.bf16.msra.mxu0 %v14610_v46 }
 0x7dd   :  { %v8111_v45 = vrot.slane %v18249_v54, 2  ;;  %v6994_v53 = vrot.slane %v6857_v15, 7  ;;  %v6795_v42 = vadd.f32 %v18127_v22, %v6553_v58  ;;  %7709 = vmatprep.mubr.f32.mxu0 %v7419_v7  ;;  %v8114_v13 = vsel %vm974_vm6, %v8109_v0, %v8113_v9  ;;  %14612 = vmatprep.subr.bf16.mxu0 %v15503_v5 }
 0x7de   :  { %v7417_v4 = vsel %vm699_vm5, %v7412_v17, %v7416_v8  ;;  %v18295_v44 = vsel %vm234_vm2, %v6988_v59, %v6992_v40  ;;  %v6858_v57 = vmax.f32 %v6794_v36, 0.0  ;;  %8404 = vmatprep.mubr.f32.mxu1 %v8114_v13  ;;  %v7422_v23 = vrot.slane %v18279_v38, 1 }
 0x7df   :  { %v8112_v1 = vsel %vm974_vm6, %v8107_v48, %v8111_v45  ;;  %7176 = vst [vmem:[#allocation3 + $0x50] sm:$0xff] %v18295_v44  ;;  %v18301_v46 = vsel %vm234_vm2, %v6990_v27, %v6994_v53  ;;  %v6859_v54 = vmax.f32 %v6795_v42, 0.0  ;;  %v6557_v0 = vpop.f32.mrb[46].mxu1  ;;  %7710 = vmatmul.mubr.f32.gmra.mrb[84].mxu0 %v7417_v4  ;;  %v8117_v17 = vrot.slane %v18279_v38, 2 }
 0x7e0   :  { %8405 = vmatmul.mubr.f32.gmra.mrb[100].mxu1 %v8112_v1  ;;  %v7420_v59 = vrot.slane %v18273_v10, 1  ;;  %7177 = vst [vmem:[#allocation3 + $0x58] sm:$0xff] %v18301_v46  ;;  %v6996_v61 = vrot.slane %v6858_v57, 7  ;;  %v6796_v48 = vadd.f32 %v18125_v14, %v6557_v0  ;;  %v6559_v62 = vpop.f32.mrb[47].mxu1  ;;  %v7423_v43 = vsel %vm699_vm5, %v7418_v35, %v7422_v23  ;;  %14614 = vmatpush1.bf16.msra.mxu0 %v14613_v11 }
 0x7e1   :  { %v8115_v37 = vrot.slane %v18273_v10, 2  ;;  %v6998_v27 = vrot.slane %v6859_v54, 7  ;;  %v6797_v47 = vadd.f32 %v18127_v22, %v6559_v62  ;;  %7714 = vmatprep.mubr.f32.mxu0 %v7423_v43  ;;  %v8118_v63 = vsel %vm974_vm6, %v8113_v9, %v8117_v17  ;;  %14615 = vmatprep.subr.bf16.mxu0 %v15503_v5 }
 0x7e2   :  { %v7421_v38 = vsel %vm699_vm5, %v7416_v8, %v7420_v59  ;;  %v18317_v15 = vsel %vm234_vm2, %v6992_v40, %v6996_v61  ;;  %v6860_v35 = vmax.f32 %v6796_v48, 0.0  ;;  %8409 = vmatprep.mubr.f32.mxu1 %v8118_v63  ;;  %v7426_v26 = vrot.slane %v18301_v46, 1 }
 0x7e3   :  { %v8116_v10 = vsel %vm974_vm6, %v8111_v45, %v8115_v37  ;;  %7178 = vst [vmem:[#allocation3 + $0x60] sm:$0xff] %v18317_v15  ;;  %v18323_v39 = vsel %vm234_vm2, %v6994_v53, %v6998_v27  ;;  %v6861_v11 = vmax.f32 %v6797_v47, 0.0  ;;  %v6563_v52 = vpop.f32.mrb[48].mxu1  ;;  %7715 = vmatmul.mubr.f32.gmra.mrb[86].mxu0 %v7421_v38  ;;  %v8121_v9 = vrot.slane %v18301_v46, 2 }
 0x7e4   :  { %8410 = vmatmul.mubr.f32.gmra.mrb[102].mxu1 %v8116_v10  ;;  %v7424_v8 = vrot.slane %v18295_v44, 1  ;;  %7179 = vst [vmem:[#allocation3 + $0x68] sm:$0xff] %v18323_v39  ;;  %v7000_v40 = vrot.slane %v6860_v35, 7  ;;  %v6798_v36 = vadd.f32 %v18125_v14, %v6563_v52  ;;  %v6565_v58 = vpop.f32.mrb[49].mxu1  ;;  %v7427_v7 = vsel %vm699_vm5, %v7422_v23, %v7426_v26  ;;  %14617 = vmatpush1.bf16.msra.mxu0 %v14616_v50 }
 0x7e5   :  { %v8119_v45 = vrot.slane %v18295_v44, 2  ;;  %v7002_v53 = vrot.slane %v6861_v11, 7  ;;  %v6799_v42 = vadd.f32 %v18127_v22, %v6565_v58  ;;  %7719 = vmatprep.mubr.f32.mxu0 %v7427_v7  ;;  %v8122_v13 = vsel %vm974_vm6, %v8117_v17, %v8121_v9  ;;  %14618 = vmatprep.subr.bf16.mxu0 %v15503_v5 }
 0x7e6   :  { %v7425_v4 = vsel %vm699_vm5, %v7420_v59, %v7424_v8  ;;  %v18339_v57 = vsel %vm234_vm2, %v6996_v61, %v7000_v40  ;;  %v6862_v1 = vmax.f32 %v6798_v36, 0.0  ;;  %8414 = vmatprep.mubr.f32.mxu1 %v8122_v13  ;;  %v7430_v51 = vrot.slane %v18323_v39, 1 }
 0x7e7   :  { %v8120_v44 = vsel %vm974_vm6, %v8115_v37, %v8119_v45  ;;  %7180 = vst [vmem:[#allocation3 + $0x70] sm:$0xff] %v18339_v57  ;;  %v18345_v12 = vsel %vm234_vm2, %v6998_v27, %v7002_v53  ;;  %v6863_v50 = vmax.f32 %v6799_v42, 0.0  ;;  %v6569_v23 = vpop.f32.mrb[50].mxu1  ;;  %7720 = vmatmul.mubr.f32.gmra.mrb[88].mxu0 %v7425_v4  ;;  %v8125_v46 = vrot.slane %v18323_v39, 2 }
 0x7e8   :  { %8415 = vmatmul.mubr.f32.gmra.mrb[104].mxu1 %v8120_v44  ;;  %v7428_v54 = vrot.slane %v18317_v15, 1  ;;  %7181 = vst [vmem:[#allocation3 + $0x78] sm:$0xff] %v18345_v12  ;;  %v7004_v0 = vrot.slane %v6862_v1, 7  ;;  %v6800_v17 = vadd.f32 %v18125_v14, %v6569_v23  ;;  %v6571_v59 = vpop.f32.mrb[51].mxu1  ;;  %v7431_v61 = vsel %vm699_vm5, %v7426_v26, %v7430_v51  ;;  %14620 = vmatpush1.bf16.msra.mxu0 %v14619_v21 }
 0x7e9   :  { %v8123_v48 = vrot.slane %v18317_v15, 2  ;;  %v7006_v62 = vrot.slane %v6863_v50, 7  ;;  %v6801_v43 = vadd.f32 %v18127_v22, %v6571_v59  ;;  %7724 = vmatprep.mubr.f32.mxu0 %v7431_v61  ;;  %v8126_v37 = vsel %vm974_vm6, %v8121_v9, %v8125_v46  ;;  %14621 = vmatprep.subr.bf16.mxu0 %v15503_v5 }
 0x7ea   :  { %v7429_v27 = vsel %vm699_vm5, %v7424_v8, %v7428_v54  ;;  %v18361_v47 = vsel %vm234_vm2, %v7000_v40, %v7004_v0  ;;  %v6864_v63 = vmax.f32 %v6800_v17, 0.0  ;;  %8419 = vmatprep.mubr.f32.mxu1 %v8126_v37  ;;  %v7434_v2 = vrot.slane %v18345_v12, 1 }
 0x7eb   :  { %v8124_v38 = vsel %vm974_vm6, %v8119_v45, %v8123_v48  ;;  %7182 = vst [vmem:[#allocation3 + $0x80] sm:$0xff] %v18361_v47  ;;  %v18367_v34 = vsel %vm234_vm2, %v7002_v53, %v7006_v62  ;;  %v6865_v21 = vmax.f32 %v6801_v43, 0.0  ;;  %v6575_v15 = vpop.f32.mrb[52].mxu1  ;;  %7725 = vmatmul.mubr.f32.gmra.mrb[90].mxu0 %v7429_v27  ;;  %v8129_v35 = vrot.slane %v18345_v12, 2 }
 0x7ec   :  { %8420 = vmatmul.mubr.f32.gmra.mrb[106].mxu1 %v8124_v38  ;;  %v7432_v10 = vrot.slane %v18339_v57, 1  ;;  %7183 = vst [vmem:[#allocation3 + $0x88] sm:$0xff] %v18367_v34  ;;  %v7008_v26 = vrot.slane %v6864_v63, 7  ;;  %v6802_v39 = vadd.f32 %v18125_v14, %v6575_v15  ;;  %v6577_v11 = vpop.f32.mrb[53].mxu1  ;;  %v7435_v52 = vsel %vm699_vm5, %v7430_v51, %v7434_v2  ;;  %14623 = vmatpush1.bf16.msra.mxu0 %v14622_v41 }
 0x7ed   :  { %v8127_v9 = vrot.slane %v18339_v57, 2  ;;  %v7010_v8 = vrot.slane %v6865_v21, 7  ;;  %v6803_v40 = vadd.f32 %v18127_v22, %v6577_v11  ;;  %7729 = vmatprep.mubr.f32.mxu0 %v7435_v52  ;;  %v8130_v36 = vsel %vm974_vm6, %v8125_v46, %v8129_v35  ;;  %14624 = vmatprep.subr.bf16.mxu0 %v15503_v5 }
 0x7ee   :  { %v7433_v58 = vsel %vm699_vm5, %v7428_v54, %v7432_v10  ;;  %v18383_v7 = vsel %vm234_vm2, %v7004_v0, %v7008_v26  ;;  %v6866_v45 = vmax.f32 %v6802_v39, 0.0  ;;  %8424 = vmatprep.mubr.f32.mxu1 %v8130_v36  ;;  %v7438_v32 = vrot.slane %v18367_v34, 1 }
 0x7ef   :  { %v8128_v53 = vsel %vm974_vm6, %v8123_v48, %v8127_v9  ;;  %7184 = vst [vmem:[#allocation3 + $0x90] sm:$0xff] %v18383_v7  ;;  %v18389_v30 = vsel %vm234_vm2, %v7006_v62, %v7010_v8  ;;  %v6867_v41 = vmax.f32 %v6803_v40, 0.0  ;;  %v6581_v42 = vpop.f32.mrb[54].mxu1  ;;  %7730 = vmatmul.mubr.f32.gmra.mrb[92].mxu0 %v7433_v58  ;;  %v8133_v13 = vrot.slane %v18367_v34, 2 }
 0x7f0   :  { %8425 = vmatmul.mubr.f32.gmra.mrb[108].mxu1 %v8128_v53  ;;  %v7436_v4 = vrot.slane %v18361_v47, 1  ;;  %7185 = vst [vmem:[#allocation3 + $0x98] sm:$0xff] %v18389_v30  ;;  %v7012_v57 = vrot.slane %v6866_v45, 7  ;;  %v6804_v1 = vadd.f32 %v18125_v14, %v6581_v42  ;;  %v6583_v44 = vpop.f32.mrb[55].mxu1  ;;  %v7439_v51 = vsel %vm699_vm5, %v7434_v2, %v7438_v32 }
 0x7f1   :  { %v8131_v12 = vrot.slane %v18361_v47, 2  ;;  %v20660_v50 = vpack.c.bf16 %v18159_v55, %v18156_v20  ;;  %v7014_v23 = vrot.slane %v6867_v41, 7  ;;  %v6805_v46 = vadd.f32 %v18127_v22, %v6583_v44  ;;  %7734 = vmatprep.mubr.f32.mxu0 %v7439_v51 }
 0x7f2   :  { %v8134_v54 = vsel %vm974_vm6, %v8129_v35, %v8133_v13  ;;  %v7437_v0 = vsel %vm699_vm5, %v7432_v10, %v7436_v4  ;;  %v18405_v17 = vsel %vm234_vm2, %v7008_v26, %v7012_v57  ;;  %v6868_v59 = vmax.f32 %v6804_v1, 0.0 }
 0x7f3   :  { %14626 = vmatpush1.bf16.msra.mxu0 %v20660_v50  ;;  %8429 = vmatprep.mubr.f32.mxu1 %v8134_v54  ;;  %v8132_v61 = vsel %vm974_vm6, %v8127_v9, %v8131_v12  ;;  %v7442_v20 = vrot.slane %v18389_v30, 1  ;;  %7186 = vst [vmem:[#allocation3 + $0xa0] sm:$0xff] %v18405_v17  ;;  %v18411_v55 = vsel %vm234_vm2, %v7010_v8, %v7014_v23  ;;  %v6869_v48 = vmax.f32 %v6805_v46, 0.0  ;;  %v6587_v62 = vpop.f32.mrb[56].mxu1 }
 0x7f4   :  { %14627 = vmatprep.subr.bf16.mxu0 %v15503_v5  ;;  %7735 = vmatmul.mubr.f32.gmra.mrb[94].mxu0 %v7437_v0  ;;  %v8137_v43 = vrot.slane %v18389_v30, 2  ;;  %v7440_v37 = vrot.slane %v18383_v7, 1  ;;  %7187 = vst [vmem:[#allocation3 + $0xa8] sm:$0xff] %v18411_v55  ;;  %v7016_v27 = vrot.slane %v6868_v59, 7  ;;  %v6806_v47 = vadd.f32 %v18125_v14, %v6587_v62  ;;  %v6589_v63 = vpop.f32.mrb[57].mxu1 }
 0x7f5   :  { %8430 = vmatmul.mubr.f32.gmra.mrb[110].mxu1 %v8132_v61  ;;  %v7443_v38 = vsel %vm699_vm5, %v7438_v32, %v7442_v20  ;;  %v8135_v2 = vrot.slane %v18383_v7, 2  ;;  %v20661_v34 = vpack.c.bf16 %v18163_v49, %v18161_v24  ;;  %v7018_v21 = vrot.slane %v6869_v48, 7 }
 0x7f6   :  { %v6807_v15 = vadd.f32 %v18127_v22, %v6589_v63  ;;  %7739 = vmatprep.mubr.f32.mxu0 %v7443_v38  ;;  %v8138_v35 = vsel %vm974_vm6, %v8133_v13, %v8137_v43  ;;  %v7441_v10 = vsel %vm699_vm5, %v7436_v4, %v7440_v37  ;;  %v18427_v26 = vsel %vm234_vm2, %v7012_v57, %v7016_v27 }
 0x7f7   :  { %14629 = vmatpush1.bf16.msra.mxu0 %v20661_v34  ;;  %v6870_v39 = vmax.f32 %v6806_v47, 0.0  ;;  %8434 = vmatprep.mubr.f32.mxu1 %v8138_v35  ;;  %v8136_v11 = vsel %vm974_vm6, %v8131_v12, %v8135_v2  ;;  %v7446_v24 = vrot.slane %v18411_v55, 1  ;;  %7188 = vst [vmem:[#allocation3 + $0xb0] sm:$0xff] %v18427_v26  ;;  %v18433_v49 = vsel %vm234_vm2, %v7014_v23, %v7018_v21  ;;  %v6593_v9 = vpop.f32.mrb[58].mxu1 }
 0x7f8   :  { %14630 = vmatprep.subr.bf16.mxu0 %v15503_v5  ;;  %v6871_v52 = vmax.f32 %v6807_v15, 0.0  ;;  %7740 = vmatmul.mubr.f32.gmra.mrb[96].mxu0 %v7441_v10  ;;  %v8141_v8 = vrot.slane %v18411_v55, 2  ;;  %v7444_v40 = vrot.slane %v18405_v17, 1  ;;  %7189 = vst [vmem:[#allocation3 + $0xb8] sm:$0xff] %v18433_v49  ;;  %v6808_v58 = vadd.f32 %v18125_v14, %v6593_v9  ;;  %v6595_v7 = vpop.f32.mrb[59].mxu1 }
 0x7f9   :  { %8435 = vmatmul.mubr.f32.gmra.mrb[112].mxu1 %v8136_v11  ;;  %v7020_v36 = vrot.slane %v6870_v39, 7  ;;  %v7447_v45 = vsel %vm699_vm5, %v7442_v20, %v7446_v24  ;;  %v8139_v53 = vrot.slane %v18405_v17, 2  ;;  %v20662_v32 = vpack.c.bf16 %v18171_v29, %v18169_v60 }
 0x7fa   :  { %v7022_v30 = vrot.slane %v6871_v52, 7  ;;  %v6809_v41 = vadd.f32 %v18127_v22, %v6595_v7  ;;  %7744 = vmatprep.mubr.f32.mxu0 %v7447_v45  ;;  %v8142_v42 = vsel %vm974_vm6, %v8137_v43, %v8141_v8  ;;  %v7445_v13 = vsel %vm699_vm5, %v7440_v37, %v7444_v40 }
 0x7fb   :  { %14632 = vmatpush1.bf16.msra.mxu0 %v20662_v32  ;;  %v18449_v4 = vsel %vm234_vm2, %v7016_v27, %v7020_v36  ;;  %v6872_v57 = vmax.f32 %v6808_v58, 0.0  ;;  %8439 = vmatprep.mubr.f32.mxu1 %v8142_v42  ;;  %v8140_v1 = vsel %vm974_vm6, %v8135_v2, %v8139_v53  ;;  %v7450_v60 = vrot.slane %v18433_v49, 1  ;;  %v6599_v51 = vpop.f32.mrb[60].mxu1 }
 0x7fc   :  { %14633 = vmatprep.subr.bf16.mxu0 %v15503_v5  ;;  %7190 = vst [vmem:[#allocation3 + $0xc0] sm:$0xff] %v18449_v4  ;;  %v18455_v29 = vsel %vm234_vm2, %v7018_v21, %v7022_v30  ;;  %v6873_v44 = vmax.f32 %v6809_v41, 0.0  ;;  %7745 = vmatmul.mubr.f32.gmra.mrb[98].mxu0 %v7445_v13  ;;  %v8145_v12 = vrot.slane %v18433_v49, 2  ;;  %v7448_v50 = vrot.slane %v18427_v26, 1  ;;  %v6601_v54 = vpop.f32.mrb[61].mxu1 }
 0x7fd   :  { %8440 = vmatmul.mubr.f32.gmra.mrb[114].mxu1 %v8140_v1  ;;  %7191 = vst [vmem:[#allocation3 + $0xc8] sm:$0xff] %v18455_v29  ;;  %v7024_v23 = vrot.slane %v6872_v57, 7  ;;  %v6810_v46 = vadd.f32 %v18125_v14, %v6599_v51  ;;  %v7451_v0 = vsel %vm699_vm5, %v7446_v24, %v7450_v60  ;;  %v8143_v17 = vrot.slane %v18427_v26, 2 }
 0x7fe   :  { %v20663_v59 = vpack.c.bf16 %v18181_v19, %v18173_v31  ;;  %v7026_v61 = vrot.slane %v6873_v44, 7  ;;  %v6811_v20 = vadd.f32 %v18127_v22, %v6601_v54  ;;  %7749 = vmatprep.mubr.f32.mxu0 %v7451_v0  ;;  %v8146_v55 = vsel %vm974_vm6, %v8141_v8, %v8145_v12 }
 0x7ff   :  { %v7449_v48 = vsel %vm699_vm5, %v7444_v40, %v7448_v50  ;;  %v18471_v62 = vsel %vm234_vm2, %v7020_v36, %v7024_v23  ;;  %v6874_v43 = vmax.f32 %v6810_v46, 0.0  ;;  %8444 = vmatprep.mubr.f32.mxu1 %v8146_v55  ;;  %v8144_v37 = vsel %vm974_vm6, %v8139_v53, %v8143_v17  ;;  %v6605_v47 = vpop.f32.mrb[62].mxu1 }
 0x800   :  { %14635 = vmatpush1.bf16.msra.mxu0 %v20663_v59  ;;  %v7454_v31 = vrot.slane %v18455_v29, 1  ;;  %7192 = vst [vmem:[#allocation3 + $0xd0] sm:$0xff] %v18471_v62  ;;  %v18477_v19 = vsel %vm234_vm2, %v7022_v30, %v7026_v61  ;;  %v6875_v27 = vmax.f32 %v6811_v20, 0.0  ;;  %v8149_v63 = vrot.slane %v18455_v29, 2  ;;  %v6607_v21 = vpop.f32.mrb[63].mxu1  ;;  %v7327_v20 = vld [vmem:[#allocation10 + $0xe8] sm:$0xff] }
 0x801   :  { %14636 = vmatprep.subr.bf16.mxu0 %v15503_v5  ;;  %7750 = vmatmul.mubr.f32.gmra.mrb[100].mxu0 %v7449_v48  ;;  %v7452_v38 = vrot.slane %v18449_v4, 1  ;;  %7193 = vst [vmem:[#allocation3 + $0xd8] sm:$0xff] %v18477_v19  ;;  %v7028_v2 = vrot.slane %v6874_v43, 7  ;;  %v6812_v34 = vadd.f32 %v18125_v14, %v6605_v47  ;;  %v8147_v35 = vrot.slane %v18449_v4, 2 }
 0x802   :  { %8445 = vmatmul.mubr.f32.gmra.mrb[116].mxu1 %v8144_v37  ;;  %v7455_v15 = vsel %vm699_vm5, %v7450_v60, %v7454_v31  ;;  %v20664_v10 = vpack.c.bf16 %v18185_v25, %v18183_v16  ;;  %v7030_v26 = vrot.slane %v6875_v27, 7  ;;  %v6813_v39 = vadd.f32 %v18127_v22, %v6607_v21  ;;  %v18539_v27 = vld [vmem:[#allocation10 + $0xf8] sm:$0xff] }
 0x803   :  { %7754 = vmatprep.mubr.f32.mxu0 %v7455_v15  ;;  %v8150_v11 = vsel %vm974_vm6, %v8145_v12, %v8149_v63  ;;  %v7453_v24 = vsel %vm699_vm5, %v7448_v50, %v7452_v38  ;;  %v18493_v49 = vsel %vm234_vm2, %v7024_v23, %v7028_v2  ;;  %v6876_v52 = vmax.f32 %v6812_v34, 0.0  ;;  %v6611_v40 = vpop.f32.mrb[64].mxu1 }
 0x804   :  { %14638 = vmatpush1.bf16.msra.mxu0 %v20664_v10  ;;  %8449 = vmatprep.mubr.f32.mxu1 %v8150_v11  ;;  %v8148_v9 = vsel %vm974_vm6, %v8143_v17, %v8147_v35  ;;  %v7458_v16 = vrot.slane %v18477_v19, 1  ;;  %7194 = vst [vmem:[#allocation3 + $0xe0] sm:$0xff] %v18493_v49  ;;  %v18499_v25 = vsel %vm234_vm2, %v7026_v61, %v7030_v26  ;;  %v6877_v8 = vmax.f32 %v6813_v39, 0.0  ;;  %v6613_v53 = vpop.f32.mrb[65].mxu1  ;;  %v7326_v61 = vld [vmem:[#allocation10 + $0xe0] sm:$0xff] }
 0x805   :  { %14639 = vmatprep.subr.bf16.mxu0 %v15503_v5  ;;  %7755 = vmatmul.mubr.f32.gmra.mrb[102].mxu0 %v7453_v24  ;;  %v8153_v36 = vrot.slane %v18477_v19, 2  ;;  %v7456_v58 = vrot.slane %v18471_v62, 1  ;;  %v7032_v7 = vrot.slane %v6876_v52, 7  ;;  %v6814_v45 = vadd.f32 %v18125_v14, %v6611_v40  ;;  %v18537_v19 = vld [vmem:[#allocation10 + $0xf0] sm:$0xff] }
 0x806   :  { %8450 = vmatmul.mubr.f32.gmra.mrb[118].mxu1 %v8148_v9  ;;  %v7459_v32 = vsel %vm699_vm5, %v7454_v31, %v7458_v16  ;;  %v8151_v30 = vrot.slane %v18471_v62, 2  ;;  %v20665_v41 = vpack.c.bf16 %v18194_v6, %v18192_v18  ;;  %v7034_v42 = vrot.slane %v6877_v8, 7 }
 0x807   :  { %v6815_v13 = vadd.f32 %v18127_v22, %v6613_v53  ;;  %7759 = vmatprep.mubr.f32.mxu0 %v7459_v32  ;;  %v8154_v4 = vsel %vm974_vm6, %v8149_v63, %v8153_v36  ;;  %v7457_v57 = vsel %vm699_vm5, %v7452_v38, %v7456_v58  ;;  %v18514_v1 = vsel %vm234_vm2, %v7028_v2, %v7032_v7  ;;  %v6617_v51 = vpop.f32.mrb[66].mxu1 }
 0x808   :  { %14641 = vmatpush1.bf16.msra.mxu0 %v20665_v41  ;;  %7198 = vst [vmem:[#allocation3 + $0x100] sm:$0x1] %v7032_v7  ;;  %v6878_v60 = vmax.f32 %v6814_v45, 0.0  ;;  %8454 = vmatprep.mubr.f32.mxu1 %v8154_v4  ;;  %v8152_v29 = vsel %vm974_vm6, %v8147_v35, %v8151_v30  ;;  %v7462_v18 = vrot.slane %v18499_v25, 1  ;;  %7196 = vst [vmem:[#allocation3 + $0xf0] sm:$0xff] %v18514_v1  ;;  %v8157_v12 = vrot.slane %v18499_v25, 2 }
 0x809   :  { %14642 = vmatprep.subr.bf16.mxu0 %v15503_v5  ;;  %v18520_v6 = vsel %vm234_vm2, %v7030_v26, %v7034_v42  ;;  %7199 = vst [vmem:[#allocation3 + $0x108] sm:$0x1] %v7034_v42  ;;  %v6879_v44 = vmax.f32 %v6815_v13, 0.0  ;;  %7760 = vmatmul.mubr.f32.gmra.mrb[104].mxu0 %v7457_v57  ;;  %v7460_v50 = vrot.slane %v18493_v49, 1  ;;  %v6816_v46 = vadd.f32 %v18125_v14, %v6617_v51  ;;  %v6619_v54 = vpop.f32.mrb[67].mxu1 }
 0x80a   :  { %8455 = vmatmul.mubr.f32.gmra.mrb[120].mxu1 %v8152_v29  ;;  %v7036_v23 = vrot.slane %v6878_v60, 7  ;;  %v7463_v0 = vsel %vm699_vm5, %v7458_v16, %v7462_v18  ;;  %v8155_v17 = vrot.slane %v18493_v49, 2  ;;  %v20666_v59 = vpack.c.bf16 %v18210_v28, %v18208_v56 }
 0x80b   :  { %v7037_v55 = vrot.slane %v6879_v44, 7  ;;  %v6817_v48 = vadd.f32 %v18127_v22, %v6619_v54  ;;  %7764 = vmatprep.mubr.f32.mxu0 %v7463_v0  ;;  %v8158_v62 = vsel %vm974_vm6, %v8153_v36, %v8157_v12  ;;  %v7461_v43 = vsel %vm699_vm5, %v7456_v58, %v7460_v50  ;;  %v6623_v63 = vpop.f32.mrb[68].mxu1 }
 0x80c   :  { %14644 = vmatpush1.bf16.msra.mxu0 %v20666_v59  ;;  %7200 = vst [vmem:[#allocation3 + $0x110] sm:$0xfe] %v7036_v23  ;;  %v6880_v37 = vmax.f32 %v6816_v46, 0.0  ;;  %8459 = vmatprep.mubr.f32.mxu1 %v8158_v62  ;;  %v8156_v31 = vsel %vm974_vm6, %v8151_v30, %v8155_v17  ;;  %v7466_v56 = vrot.slane %v18520_v6, 1  ;;  %v8161_v28 = vrot.slane %v18520_v6, 2  ;;  %v6625_v35 = vpop.f32.mrb[69].mxu1 }
 0x80d   :  { %14645 = vmatprep.subr.bf16.mxu0 %v15503_v5  ;;  %7201 = vst [vmem:[#allocation3 + $0x118] sm:$0xfe] %v7037_v55  ;;  %v6881_v47 = vmax.f32 %v6817_v48, 0.0  ;;  %7765 = vmatmul.mubr.f32.gmra.mrb[106].mxu0 %v7461_v43  ;;  %v7464_v38 = vrot.slane %v18514_v1, 1  ;;  %v8159_v2 = vrot.slane %v18514_v1, 2  ;;  %v14649_v34 = vpack.c.bf16 %v7327_v20, %v7326_v61 }
 0x80e   :  { %8460 = vmatmul.mubr.f32.gmra.mrb[122].mxu1 %v8156_v31  ;;  %v7038_v21 = vrot.slane %v6880_v37, 7  ;;  %v6818_v15 = vadd.f32 %v18125_v14, %v6623_v63  ;;  %v7467_v10 = vsel %vm699_vm5, %v7462_v18, %v7466_v56  ;;  %v8162_v26 = vsel %vm974_vm6, %v8157_v12, %v8161_v28 }
 0x80f   :  { %v20667_v39 = vpack.c.bf16 %v18221_v33, %v18219_v3  ;;  %v7040_v11 = vrot.slane %v6881_v47, 7  ;;  %v6819_v24 = vadd.f32 %v18127_v22, %v6625_v35  ;;  %7769 = vmatprep.mubr.f32.mxu0 %v7467_v10  ;;  %8464 = vmatprep.mubr.f32.mxu1 %v8162_v26  ;;  %v7465_v49 = vsel %vm699_vm5, %v7460_v50, %v7464_v38  ;;  %v7332_v52 = vld [vmem:[#allocation3 + $0x100] sm:$0x1]  ;;  %v6629_v53 = vpop.f32.mrb[70].mxu1 }
 0x810   :  { %v8087_v9 = vld [vmem:[#allocation3 + $0x100] sm:$0x3]  ;;  %v14652_v16 = vpack.c.bf16 %v18539_v27, %v18537_v19  ;;  %v18554_v8 = vsel %vm234_vm2, %v7036_v23, %v7038_v21  ;;  %v6882_v40 = vmax.f32 %v6818_v15, 0.0  ;;  %v8160_v36 = vsel %vm974_vm6, %v8155_v17, %v8159_v2  ;;  %v7333_v3 = vld [vmem:[#allocation3 + $0x108] sm:$0x1]  ;;  %v6631_v13 = vpop.f32.mrb[71].mxu1 }
 0x811   :  { %14647 = vmatpush1.bf16.msra.mxu0 %v20667_v39  ;;  %v8088_v33 = vld [vmem:[#allocation3 + $0x108] sm:$0x3]  ;;  %v7468_v58 = vrot.slane %v7332_v52, 1  ;;  %7202 = vst [vmem:[#allocation3 + $0x120] sm:$0xff] %v18554_v8  ;;  %v18560_v7 = vsel %vm234_vm2, %v7037_v55, %v7040_v11  ;;  %v6883_v45 = vmax.f32 %v6819_v24, 0.0  ;;  %v7470_v32 = vrot.slane %v7333_v3, 1 }
 0x812   :  { %14648 = vmatprep.subr.bf16.mxu0 %v15503_v5  ;;  %7770 = vmatmul.mubr.f32.gmra.mrb[108].mxu0 %v7465_v49  ;;  %v8165_v30 = vrot.slane %v8088_v33, 2  ;;  %v7042_v41 = vrot.slane %v6882_v40, 7  ;;  %v6820_v42 = vadd.f32 %v18125_v14, %v6629_v53  ;;  %v8163_v57 = vrot.slane %v8087_v9, 2 }
 0x813   :  { %8465 = vmatmul.mubr.f32.gmra.mrb[124].mxu1 %v8160_v36  ;;  %v7469_v4 = vsel %vm699_vm5, %v7464_v38, %v7468_v58  ;;  %v7044_v60 = vrot.slane %v6883_v45, 7  ;;  %v6821_v29 = vadd.f32 %v18127_v22, %v6631_v13  ;;  %v7471_v18 = vsel %vm699_vm5, %v7466_v56, %v7470_v32  ;;  %v7334_v51 = vld [vmem:[#allocation3 + $0x110] sm:$0xfe]  ;;  %v6635_v61 = vpop.f32.mrb[72].mxu1 }
 0x814   :  { %v8166_v44 = vsel %vm974_vm6, %v8161_v28, %v8165_v30  ;;  %v18569_v12 = vsel %vm234_vm2, %v7038_v21, %v7042_v41  ;;  %v6884_v50 = vmax.f32 %v6820_v42, 0.0  ;;  %7774 = vmatprep.mubr.f32.mxu0 %v7471_v18  ;;  %v8164_v23 = vsel %vm974_vm6, %v8159_v2, %v8163_v57  ;;  %v7335_v46 = vld [vmem:[#allocation3 + $0x118] sm:$0xfe]  ;;  %v8089_v55 = vld [vmem:[#allocation3 + $0x110] sm:$0xfc]  ;;  %v6637_v43 = vpop.f32.mrb[73].mxu1 }
 0x815   :  { %14650 = vmatpush1.bf16.msra.mxu0 %v14649_v34  ;;  %8469 = vmatprep.mubr.f32.mxu1 %v8166_v44  ;;  %v7476_v54 = vrot.slane %v18560_v7, 1  ;;  %v8090_v0 = vld [vmem:[#allocation3 + $0x118] sm:$0xfc]  ;;  %7204 = vst [vmem:[#allocation3 + $0x130] sm:$0xff] %v18569_v12  ;;  %v18575_v17 = vsel %vm234_vm2, %v7040_v11, %v7044_v60  ;;  %v6885_v59 = vmax.f32 %v6821_v29, 0.0  ;;  %v6822_v62 = vadd.f32 %v18125_v14, %v6635_v61 }
 0x816   :  { %14651 = vmatprep.subr.bf16.mxu0 %v15503_v5  ;;  %7775 = vmatmul.mubr.f32.gmra.mrb[110].mxu0 %v7469_v4  ;;  %v7475_v5 = vrot.slane %v7335_v46, 1  ;;  %v8170_v20 = vrot.slane %v8090_v0, 2  ;;  %v7046_v48 = vrot.slane %v6884_v50, 7  ;;  %v8171_v37 = vrot.slane %v18560_v7, 2 }
 0x817   :  { %8470 = vmatmul.mubr.f32.gmra.mrb[126].mxu1 %v8164_v23  ;;  %v7472_v31 = vrot.slane %v7334_v51, 1  ;;  %v7048_v56 = vrot.slane %v6885_v59, 7  ;;  %v6823_v28 = vadd.f32 %v18127_v22, %v6637_v43  ;;  %v7473_v27 = vrot.slane %v18554_v8, 1  ;;  %v6641_v15 = vpop.f32.mrb[74].mxu1 }
 0x818   :  { %v7477_v19 = vsel %vm699_vm5, %v7475_v5, %v7476_v54  ;;  %v18583_v47 = vsel %vm234_vm2, %v7042_v41, %v7046_v48  ;;  %v6886_v63 = vmax.f32 %v6822_v62, 0.0  ;;  %v8172_v38 = vsel %vm974_vm6, %v8170_v20, %v8171_v37  ;;  %v6643_v11 = vpop.f32.mrb[75].mxu1 }
 0x819   :  { %14653 = vmatpush1.bf16.msra.mxu0 %v14652_v16  ;;  %7779 = vmatprep.mubr.f32.mxu0 %v7477_v19  ;;  %v8167_v2 = vrot.slane %v8089_v55, 2  ;;  %7206 = vst [vmem:[#allocation3 + $0x140] sm:$0xff] %v18583_v47  ;;  %v18588_v34 = vsel %vm234_vm2, %v7044_v60, %v7048_v56  ;;  %v6887_v21 = vmax.f32 %v6823_v28, 0.0  ;;  %v7474_v35 = vsel %vm699_vm5, %v7472_v31, %v7473_v27 }
 0x81a   :  { %8474 = vmatprep.mubr.f32.mxu1 %v8172_v38  ;;  %v8168_v10 = vrot.slane %v18554_v8, 2  ;;  %v7050_v26 = vrot.slane %v6886_v63, 7  ;;  %v6824_v39 = vadd.f32 %v18125_v14, %v6641_v15  ;;  %7780 = vmatmul.mubr.f32.gmra.mrb[112].mxu0 %v7474_v35  ;;  %v7480_v24 = vrot.slane %v18575_v17, 1 }
 0x81b   :  { %v8175_v49 = vrot.slane %v18575_v17, 2  ;;  %v7052_v52 = vrot.slane %v6887_v21, 7  ;;  %v6825_v9 = vadd.f32 %v18127_v22, %v6643_v11  ;;  %v7478_v40 = vrot.slane %v18569_v12, 1  ;;  %v6647_v32 = vpop.f32.mrb[76].mxu1 }
 0x81c   :  { %v8169_v16 = vsel %vm974_vm6, %v8167_v2, %v8168_v10  ;;  %v18599_v36 = vsel %vm234_vm2, %v7046_v48, %v7050_v26  ;;  %v6888_v3 = vmax.f32 %v6824_v39, 0.0  ;;  %v7481_v33 = vsel %vm699_vm5, %v7476_v54, %v7480_v24  ;;  %v6649_v4 = vpop.f32.mrb[77].mxu1 }
 0x81d   :  { %8475 = vmatmul.mubr.f32.gmra.mrb[128].mxu1 %v8169_v16  ;;  %v8176_v58 = vsel %vm974_vm6, %v8171_v37, %v8175_v49  ;;  %7208 = vst [vmem:[#allocation3 + $0x150] sm:$0xff] %v18599_v36  ;;  %v18605_v45 = vsel %vm234_vm2, %v7048_v56, %v7052_v52  ;;  %v6889_v53 = vmax.f32 %v6825_v9, 0.0  ;;  %7784 = vmatprep.mubr.f32.mxu0 %v7481_v33  ;;  %v8173_v41 = vrot.slane %v18569_v12, 2 }
 0x81e   :  { %8479 = vmatprep.mubr.f32.mxu1 %v8176_v58  ;;  %v7479_v30 = vsel %vm699_vm5, %v7473_v27, %v7478_v40  ;;  %v7054_v42 = vrot.slane %v6888_v3, 7  ;;  %v6826_v13 = vadd.f32 %v18125_v14, %v6647_v32  ;;  %v7484_v57 = vrot.slane %v18588_v34, 1 }
 0x81f   :  { %7785 = vmatmul.mubr.f32.gmra.mrb[114].mxu0 %v7479_v30  ;;  %v8179_v60 = vrot.slane %v18588_v34, 2  ;;  %v7056_v29 = vrot.slane %v6889_v53, 7  ;;  %v6827_v18 = vadd.f32 %v18127_v22, %v6649_v4  ;;  %v8174_v44 = vsel %vm974_vm6, %v8168_v10, %v8173_v41  ;;  %v6653_v61 = vpop.f32.mrb[78].mxu1 }
 0x820   :  { %v7482_v51 = vrot.slane %v18583_v47, 1  ;;  %v18616_v50 = vsel %vm234_vm2, %v7050_v26, %v7054_v42  ;;  %v6890_v23 = vmax.f32 %v6826_v13, 0.0  ;;  %v7485_v46 = vsel %vm699_vm5, %v7480_v24, %v7484_v57  ;;  %v6655_v62 = vpop.f32.mrb[79].mxu1 }
 0x821   :  { %8480 = vmatmul.mubr.f32.gmra.mrb[130].mxu1 %v8174_v44  ;;  %v8180_v54 = vsel %vm974_vm6, %v8175_v49, %v8179_v60  ;;  %7210 = vst [vmem:[#allocation3 + $0x160] sm:$0xff] %v18616_v50  ;;  %v18622_v0 = vsel %vm234_vm2, %v7052_v52, %v7056_v29  ;;  %v6891_v59 = vmax.f32 %v6827_v18, 0.0  ;;  %7789 = vmatprep.mubr.f32.mxu0 %v7485_v46  ;;  %v8177_v20 = vrot.slane %v18583_v47, 2 }
 0x822   :  { %8484 = vmatprep.mubr.f32.mxu1 %v8180_v54  ;;  %v7483_v5 = vsel %vm699_vm5, %v7478_v40, %v7482_v51  ;;  %v7058_v55 = vrot.slane %v6890_v23, 7  ;;  %v6828_v48 = vadd.f32 %v18125_v14, %v6653_v61  ;;  %v7488_v43 = vrot.slane %v18605_v45, 1 }
 0x823   :  { %7790 = vmatmul.mubr.f32.gmra.mrb[116].mxu0 %v7483_v5  ;;  %v8183_v37 = vrot.slane %v18605_v45, 2  ;;  %v7060_v31 = vrot.slane %v6891_v59, 7  ;;  %v6829_v56 = vadd.f32 %v18127_v22, %v6655_v62  ;;  %v8178_v28 = vsel %vm974_vm6, %v8173_v41, %v8177_v20  ;;  %v6659_v35 = vpop.f32.mrb[80].mxu1 }
 0x824   :  { %v7486_v19 = vrot.slane %v18599_v36, 1  ;;  %v18633_v27 = vsel %vm234_vm2, %v7054_v42, %v7058_v55  ;;  %v6892_v63 = vmax.f32 %v6828_v48, 0.0  ;;  %v7489_v38 = vsel %vm699_vm5, %v7484_v57, %v7488_v43  ;;  %v6661_v24 = vpop.f32.mrb[81].mxu1 }
 0x825   :  { %8485 = vmatmul.mubr.f32.gmra.mrb[132].mxu1 %v8178_v28  ;;  %v8184_v2 = vsel %vm974_vm6, %v8179_v60, %v8183_v37  ;;  %7212 = vst [vmem:[#allocation3 + $0x170] sm:$0xff] %v18633_v27  ;;  %v18639_v21 = vsel %vm234_vm2, %v7056_v29, %v7060_v31  ;;  %v6893_v15 = vmax.f32 %v6829_v56, 0.0  ;;  %7794 = vmatprep.mubr.f32.mxu0 %v7489_v38  ;;  %v8181_v26 = vrot.slane %v18599_v36, 2 }
 0x826   :  { %8489 = vmatprep.mubr.f32.mxu1 %v8184_v2  ;;  %v7487_v10 = vsel %vm699_vm5, %v7482_v51, %v7486_v19  ;;  %v7062_v39 = vrot.slane %v6892_v63, 7  ;;  %v6830_v11 = vadd.f32 %v18125_v14, %v6659_v35  ;;  %v7492_v49 = vrot.slane %v18622_v0, 1 }
 0x827   :  { %7795 = vmatmul.mubr.f32.gmra.mrb[118].mxu0 %v7487_v10  ;;  %v8187_v52 = vrot.slane %v18622_v0, 2  ;;  %v7064_v9 = vrot.slane %v6893_v15, 7  ;;  %v6831_v16 = vadd.f32 %v18127_v22, %v6661_v24  ;;  %v8182_v40 = vsel %vm974_vm6, %v8177_v20, %v8181_v26  ;;  %v6665_v42 = vpop.f32.mrb[82].mxu1 }
 0x828   :  { %v7490_v3 = vrot.slane %v18616_v50, 1  ;;  %v18650_v33 = vsel %vm234_vm2, %v7058_v55, %v7062_v39  ;;  %v6894_v58 = vmax.f32 %v6830_v11, 0.0  ;;  %v7493_v53 = vsel %vm699_vm5, %v7488_v43, %v7492_v49  ;;  %v6667_v29 = vpop.f32.mrb[83].mxu1 }
 0x829   :  { %8490 = vmatmul.mubr.f32.gmra.mrb[134].mxu1 %v8182_v40  ;;  %v8188_v32 = vsel %vm974_vm6, %v8183_v37, %v8187_v52  ;;  %7214 = vst [vmem:[#allocation3 + $0x180] sm:$0xff] %v18650_v33  ;;  %v18656_v30 = vsel %vm234_vm2, %v7060_v31, %v7064_v9  ;;  %v6895_v41 = vmax.f32 %v6831_v16, 0.0  ;;  %7799 = vmatprep.mubr.f32.mxu0 %v7493_v53  ;;  %v8185_v4 = vrot.slane %v18616_v50, 2 }
 0x82a   :  { %8494 = vmatprep.mubr.f32.mxu1 %v8188_v32  ;;  %v7491_v13 = vsel %vm699_vm5, %v7486_v19, %v7490_v3  ;;  %v7066_v57 = vrot.slane %v6894_v58, 7  ;;  %v6832_v60 = vadd.f32 %v18125_v14, %v6665_v42  ;;  %v7496_v18 = vrot.slane %v18639_v21, 1 }
 0x82b   :  { %7800 = vmatmul.mubr.f32.gmra.mrb[120].mxu0 %v7491_v13  ;;  %v8191_v44 = vrot.slane %v18639_v21, 2  ;;  %v7068_v51 = vrot.slane %v6895_v41, 7  ;;  %v6833_v23 = vadd.f32 %v18127_v22, %v6667_v29  ;;  %v8186_v46 = vsel %vm974_vm6, %v8181_v26, %v8185_v4  ;;  %v6671_v62 = vpop.f32.mrb[84].mxu1 }
 0x82c   :  { %v7494_v54 = vrot.slane %v18633_v27, 1  ;;  %v18667_v59 = vsel %vm234_vm2, %v7062_v39, %v7066_v57  ;;  %v6896_v61 = vmax.f32 %v6832_v60, 0.0  ;;  %v7497_v5 = vsel %vm699_vm5, %v7492_v49, %v7496_v18  ;;  %v6673_v28 = vpop.f32.mrb[85].mxu1 }
 0x82d   :  { %8495 = vmatmul.mubr.f32.gmra.mrb[136].mxu1 %v8186_v46  ;;  %v8192_v20 = vsel %vm974_vm6, %v8187_v52, %v8191_v44  ;;  %7216 = vst [vmem:[#allocation3 + $0x190] sm:$0xff] %v18667_v59  ;;  %v18673_v55 = vsel %vm234_vm2, %v7064_v9, %v7068_v51  ;;  %v6897_v48 = vmax.f32 %v6833_v23, 0.0  ;;  %7804 = vmatprep.mubr.f32.mxu0 %v7497_v5  ;;  %v8189_v37 = vrot.slane %v18633_v27, 2 }
 0x82e   :  { %8499 = vmatprep.mubr.f32.mxu1 %v8192_v20  ;;  %v7495_v43 = vsel %vm699_vm5, %v7490_v3, %v7494_v54  ;;  %v7070_v31 = vrot.slane %v6896_v61, 7  ;;  %v6834_v56 = vadd.f32 %v18125_v14, %v6671_v62  ;;  %v7500_v19 = vrot.slane %v18656_v30, 1 }
 0x82f   :  { %7805 = vmatmul.mubr.f32.gmra.mrb[122].mxu0 %v7495_v43  ;;  %v8195_v63 = vrot.slane %v18656_v30, 2  ;;  %v7072_v38 = vrot.slane %v6897_v48, 7  ;;  %v6835_v2 = vadd.f32 %v18127_v22, %v6673_v28  ;;  %v8190_v15 = vsel %vm974_vm6, %v8185_v4, %v8189_v37  ;;  %v6677_v52 = vpop.f32.mrb[86].mxu1 }
 0x830   :  { %v7498_v35 = vrot.slane %v18650_v33, 1  ;;  %v18684_v10 = vsel %vm234_vm2, %v7066_v57, %v7070_v31  ;;  %v6898_v26 = vmax.f32 %v6834_v56, 0.0  ;;  %v7501_v39 = vsel %vm699_vm5, %v7496_v18, %v7500_v19  ;;  %v6679_v58 = vpop.f32.mrb[87].mxu1 }
 0x831   :  { %8500 = vmatmul.mubr.f32.gmra.mrb[138].mxu1 %v8190_v15  ;;  %v8196_v11 = vsel %vm974_vm6, %v8191_v44, %v8195_v63  ;;  %7218 = vst [vmem:[#allocation3 + $0x1a0] sm:$0xff] %v18684_v10  ;;  %v18690_v24 = vsel %vm234_vm2, %v7068_v51, %v7072_v38  ;;  %v6899_v49 = vmax.f32 %v6835_v2, 0.0  ;;  %7809 = vmatprep.mubr.f32.mxu0 %v7501_v39  ;;  %v8193_v16 = vrot.slane %v18650_v33, 2 }
 0x832   :  { %8504 = vmatprep.mubr.f32.mxu1 %v8196_v11  ;;  %v7499_v9 = vsel %vm699_vm5, %v7494_v54, %v7498_v35  ;;  %v7074_v40 = vrot.slane %v6898_v26, 7  ;;  %v6836_v3 = vadd.f32 %v18125_v14, %v6677_v52  ;;  %v7504_v53 = vrot.slane %v18673_v55, 1 }
 0x833   :  { %7810 = vmatmul.mubr.f32.gmra.mrb[124].mxu0 %v7499_v9  ;;  %v8199_v32 = vrot.slane %v18673_v55, 2  ;;  %v7076_v41 = vrot.slane %v6899_v49, 7  ;;  %v6837_v42 = vadd.f32 %v18127_v22, %v6679_v58  ;;  %v8194_v13 = vsel %vm974_vm6, %v8189_v37, %v8193_v16  ;;  %v6683_v23 = vpop.f32.mrb[88].mxu1 }
 0x834   :  { %v7502_v4 = vrot.slane %v18667_v59, 1  ;;  %v18701_v57 = vsel %vm234_vm2, %v7070_v31, %v7074_v40  ;;  %v6900_v60 = vmax.f32 %v6836_v3, 0.0  ;;  %v7505_v29 = vsel %vm699_vm5, %v7500_v19, %v7504_v53  ;;  %v6685_v20 = vpop.f32.mrb[89].mxu1 }
 0x835   :  { %8505 = vmatmul.mubr.f32.gmra.mrb[140].mxu1 %v8194_v13  ;;  %v8200_v18 = vsel %vm974_vm6, %v8195_v63, %v8199_v32  ;;  %7220 = vst [vmem:[#allocation3 + $0x1b0] sm:$0xff] %v18701_v57  ;;  %v18707_v44 = vsel %vm234_vm2, %v7072_v38, %v7076_v41  ;;  %v6901_v51 = vmax.f32 %v6837_v42, 0.0  ;;  %7814 = vmatprep.mubr.f32.mxu0 %v7505_v29  ;;  %v8197_v54 = vrot.slane %v18667_v59, 2 }
 0x836   :  { %8509 = vmatprep.mubr.f32.mxu1 %v8200_v18  ;;  %v7503_v46 = vsel %vm699_vm5, %v7498_v35, %v7502_v4  ;;  %v7078_v61 = vrot.slane %v6900_v60, 7  ;;  %v6838_v5 = vadd.f32 %v18125_v14, %v6683_v23  ;;  %v7508_v48 = vrot.slane %v18690_v24, 1 }
 0x837   :  { %7815 = vmatmul.mubr.f32.gmra.mrb[126].mxu0 %v7503_v46  ;;  %v8203_v62 = vrot.slane %v18690_v24, 2  ;;  %v7080_v43 = vrot.slane %v6901_v51, 7  ;;  %v6839_v37 = vadd.f32 %v18127_v22, %v6685_v20  ;;  %v8198_v31 = vsel %vm974_vm6, %v8193_v16, %v8197_v54  ;;  %v6689_v35 = vpop.f32.mrb[90].mxu1 }
 0x838   :  { %v7506_v56 = vrot.slane %v18684_v10, 1  ;;  %v18718_v28 = vsel %vm234_vm2, %v7074_v40, %v7078_v61  ;;  %v6902_v19 = vmax.f32 %v6838_v5, 0.0  ;;  %v7509_v63 = vsel %vm699_vm5, %v7504_v53, %v7508_v48  ;;  %v6691_v52 = vpop.f32.mrb[91].mxu1 }
 0x839   :  { %8510 = vmatmul.mubr.f32.gmra.mrb[142].mxu1 %v8198_v31  ;;  %v8204_v38 = vsel %vm974_vm6, %v8199_v32, %v8203_v62  ;;  %7222 = vst [vmem:[#allocation3 + $0x1c0] sm:$0xff] %v18718_v28  ;;  %v18724_v2 = vsel %vm234_vm2, %v7076_v41, %v7080_v43  ;;  %v6903_v15 = vmax.f32 %v6839_v37, 0.0  ;;  %7819 = vmatprep.mubr.f32.mxu0 %v7509_v63  ;;  %v8201_v39 = vrot.slane %v18684_v10, 2 }
 0x83a   :  { %8514 = vmatprep.mubr.f32.mxu1 %v8204_v38  ;;  %v7507_v26 = vsel %vm699_vm5, %v7502_v4, %v7506_v56  ;;  %v7082_v11 = vrot.slane %v6902_v19, 7  ;;  %v6840_v49 = vadd.f32 %v18125_v14, %v6689_v35  ;;  %v7512_v9 = vrot.slane %v18707_v44, 1 }
 0x83b   :  { %7820 = vmatmul.mubr.f32.gmra.mrb[128].mxu0 %v7507_v26  ;;  %v8207_v16 = vrot.slane %v18707_v44, 2  ;;  %v7084_v40 = vrot.slane %v6903_v15, 7  ;;  %v6841_v3 = vadd.f32 %v18127_v22, %v6691_v52  ;;  %v8202_v58 = vsel %vm974_vm6, %v8197_v54, %v8201_v39  ;;  %v6695_v29 = vpop.f32.mrb[92].mxu1 }
 0x83c   :  { %v7510_v53 = vrot.slane %v18701_v57, 1  ;;  %v18735_v32 = vsel %vm234_vm2, %v7078_v61, %v7082_v11  ;;  %v6904_v41 = vmax.f32 %v6840_v49, 0.0  ;;  %v7513_v42 = vsel %vm699_vm5, %v7508_v48, %v7512_v9  ;;  %v6697_v54 = vpop.f32.mrb[93].mxu1 }
 0x83d   :  { %8515 = vmatmul.mubr.f32.gmra.mrb[144].mxu1 %v8202_v58  ;;  %v8208_v13 = vsel %vm974_vm6, %v8203_v62, %v8207_v16  ;;  %7224 = vst [vmem:[#allocation3 + $0x1d0] sm:$0xff] %v18735_v32  ;;  %v18741_v4 = vsel %vm234_vm2, %v7080_v43, %v7084_v40  ;;  %v6905_v60 = vmax.f32 %v6841_v3, 0.0  ;;  %7824 = vmatprep.mubr.f32.mxu0 %v7513_v42  ;;  %v8205_v51 = vrot.slane %v18701_v57, 2 }
 0x83e   :  { %8519 = vmatprep.mubr.f32.mxu1 %v8208_v13  ;;  %v7511_v18 = vsel %vm699_vm5, %v7506_v56, %v7510_v53  ;;  %v7086_v23 = vrot.slane %v6904_v41, 7  ;;  %v6842_v46 = vadd.f32 %v18125_v14, %v6695_v29  ;;  %v7516_v61 = vrot.slane %v18724_v2, 1 }
 0x83f   :  { %7825 = vmatmul.mubr.f32.gmra.mrb[130].mxu0 %v7511_v18  ;;  %v8211_v5 = vrot.slane %v18724_v2, 2  ;;  %v7088_v20 = vrot.slane %v6905_v60, 7  ;;  %v6843_v48 = vadd.f32 %v18127_v22, %v6697_v54  ;;  %v8206_v62 = vsel %vm974_vm6, %v8201_v39, %v8205_v51  ;;  %v6701_v15 = vpop.f32.mrb[94].mxu1 }
 0x840   :  { %v7514_v43 = vrot.slane %v18718_v28, 1  ;;  %v18752_v37 = vsel %vm234_vm2, %v7082_v11, %v7086_v23  ;;  %v6906_v31 = vmax.f32 %v6842_v46, 0.0  ;;  %v7517_v56 = vsel %vm699_vm5, %v7512_v9, %v7516_v61  ;;  %v6703_v49 = vpop.f32.mrb[95].mxu1 }
 0x841   :  { %8520 = vmatmul.mubr.f32.gmra.mrb[146].mxu1 %v8206_v62  ;;  %v8212_v19 = vsel %vm974_vm6, %v8207_v16, %v8211_v5  ;;  %7226 = vst [vmem:[#allocation3 + $0x1e0] sm:$0xff] %v18752_v37  ;;  %v18758_v63 = vsel %vm234_vm2, %v7084_v40, %v7088_v20  ;;  %v6907_v38 = vmax.f32 %v6843_v48, 0.0  ;;  %7829 = vmatprep.mubr.f32.mxu0 %v7517_v56  ;;  %v8209_v26 = vrot.slane %v18718_v28, 2 }
 0x842   :  { %8524 = vmatprep.mubr.f32.mxu1 %v8212_v19  ;;  %v7515_v35 = vsel %vm699_vm5, %v7510_v53, %v7514_v43  ;;  %v7090_v39 = vrot.slane %v6906_v31, 7  ;;  %v6844_v11 = vadd.f32 %v18125_v14, %v6701_v15  ;;  %v7520_v52 = vrot.slane %v18741_v4, 1 }
 0x843   :  { %7830 = vmatmul.mubr.f32.gmra.mrb[132].mxu0 %v7515_v35  ;;  %v8215_v9 = vrot.slane %v18741_v4, 2  ;;  %v7092_v16 = vrot.slane %v6907_v38, 7  ;;  %v6845_v40 = vadd.f32 %v18127_v22, %v6703_v49  ;;  %v8210_v3 = vsel %vm974_vm6, %v8205_v51, %v8209_v26 }
 0x844   :  { %v7518_v58 = vrot.slane %v18735_v32, 1  ;;  %v18769_v53 = vsel %vm234_vm2, %v7086_v23, %v7090_v39  ;;  %v6908_v41 = vmax.f32 %v6844_v11, 0.0  ;;  %v7521_v14 = vsel %vm699_vm5, %v7516_v61, %v7520_v52 }
 0x845   :  { %8525 = vmatmul.mubr.f32.gmra.mrb[148].mxu1 %v8210_v3  ;;  %v8216_v42 = vsel %vm974_vm6, %v8211_v5, %v8215_v9  ;;  %7228 = vst [vmem:[#allocation3 + $0x1f0] sm:$0xff] %v18769_v53  ;;  %v18775_v13 = vsel %vm234_vm2, %v7088_v20, %v7092_v16  ;;  %v6909_v60 = vmax.f32 %v6845_v40, 0.0  ;;  %7834 = vmatprep.mubr.f32.mxu0 %v7521_v14  ;;  %v8213_v29 = vrot.slane %v18735_v32, 2 }
 0x846   :  { %8529 = vmatprep.mubr.f32.mxu1 %v8216_v42  ;;  %v7519_v22 = vsel %vm699_vm5, %v7514_v43, %v7518_v58  ;;  %v7094_v18 = vrot.slane %v6908_v41, 7  ;;  %v7524_v51 = vrot.slane %v18758_v63, 1  ;;  %v8219_v23 = vrot.slane %v18758_v63, 2 }
 0x847   :  { %7835 = vmatmul.mubr.f32.gmra.mrb[134].mxu0 %v7519_v22  ;;  %v7522_v46 = vrot.slane %v18752_v37, 1  ;;  %v7096_v54 = vrot.slane %v6909_v60, 7  ;;  %v8214_v61 = vsel %vm974_vm6, %v8209_v26, %v8213_v29  ;;  %v8217_v5 = vrot.slane %v18752_v37, 2 }
 0x848   :  { %v7528_v20 = vrot.slane %v18775_v13, 1  ;;  %v18786_v48 = vsel %vm234_vm2, %v7090_v39, %v7094_v18  ;;  %7232 = vst [vmem:[#allocation3 + $0x210] sm:$0x1] %v7094_v18  ;;  %v7525_v62 = vsel %vm699_vm5, %v7520_v52, %v7524_v51  ;;  %v8220_v43 = vsel %vm974_vm6, %v8215_v9, %v8219_v23 }
 0x849   :  { %8530 = vmatmul.mubr.f32.gmra.mrb[150].mxu1 %v8214_v61  ;;  %7230 = vst [vmem:[#allocation3 + $0x200] sm:$0xff] %v18786_v48  ;;  %v18792_v31 = vsel %vm234_vm2, %v7092_v16, %v7096_v54  ;;  %7233 = vst [vmem:[#allocation3 + $0x218] sm:$0x1] %v7096_v54  ;;  %7839 = vmatprep.mubr.f32.mxu0 %v7525_v62  ;;  %v7523_v56 = vsel %vm699_vm5, %v7518_v58, %v7522_v46  ;;  %v8223_v38 = vrot.slane %v18775_v13, 2 }
 0x84a   :  { %8534 = vmatprep.mubr.f32.mxu1 %v8220_v43  ;;  %v7529_v19 = vsel %vm699_vm5, %v7524_v51, %v7528_v20  ;;  %v7526_v15 = vrot.slane %v18769_v53, 1  ;;  %v7532_v35 = vrot.slane %v18792_v31, 1  ;;  %v8227_v26 = vrot.slane %v18792_v31, 2  ;;  %v7234_v43 = vld [vmem:[#allocation3] sm:$0xff] }
 0x84b   :  { %7840 = vmatmul.mubr.f32.gmra.mrb[136].mxu0 %v7523_v56  ;;  %v8218_v39 = vsel %vm974_vm6, %v8213_v29, %v8217_v5  ;;  %v8224_v11 = vsel %vm974_vm6, %v8219_v23, %v8223_v38  ;;  %v8221_v49 = vrot.slane %v18769_v53, 2  ;;  %v7530_v16 = vrot.slane %v18786_v48, 1  ;;  %v15321_v56 = vld [vmem:[#allocation3 + $0x18] sm:$0xff] }
 0x84c   :  { %7844 = vmatprep.mubr.f32.mxu0 %v7529_v19  ;;  %v7533_v52 = vsel %vm699_vm5, %v7528_v20, %v7532_v35  ;;  %v7527_v9 = vsel %vm699_vm5, %v7522_v46, %v7526_v15  ;;  %v8228_v40 = vsel %vm974_vm6, %v8223_v38, %v8227_v26  ;;  %v8225_v58 = vrot.slane %v18786_v48, 2  ;;  %v7235_v20 = vld [vmem:[#allocation3 + $0x8] sm:$0xff]  ;;  %v15322_v19 = vld [vmem:[#allocation3 + $0x10] sm:$0xff] }
 0x84d   :  { %8535 = vmatmul.mubr.f32.gmra.mrb[152].mxu1 %v8218_v39  ;;  %v8222_v3 = vsel %vm974_vm6, %v8217_v5, %v8221_v49  ;;  %v7531_v22 = vsel %vm699_vm5, %v7526_v15, %v7530_v16  ;;  %v15323_v38 = vld [vmem:[#allocation3 + $0x28] sm:$0xff]  ;;  %v15324_v15 = vld [vmem:[#allocation3 + $0x20] sm:$0xff] }
 0x84e   :  { %8539 = vmatprep.mubr.f32.mxu1 %v8224_v11  ;;  %v8226_v23 = vsel %vm974_vm6, %v8221_v49, %v8225_v58  ;;  %v15327_v39 = vld [vmem:[#allocation3 + $0x48] sm:$0xff]  ;;  %v15328_v11 = vld [vmem:[#allocation3 + $0x40] sm:$0xff]  ;;  %v15329_v49 = vld [vmem:[#allocation3 + $0x58] sm:$0xff] }
 0x84f   :  { %7845 = vmatmul.mubr.f32.gmra.mrb[138].mxu0 %v7527_v9  ;;  %v7336_v41 = vld [vmem:[#allocation3 + $0x210] sm:$0x1]  ;;  %v15331_v9 = vld [vmem:[#allocation3 + $0x68] sm:$0xff] }
 0x850   :  { %7849 = vmatprep.mubr.f32.mxu0 %v7533_v52  ;;  %v7337_v14 = vld [vmem:[#allocation3 + $0x218] sm:$0x1]  ;;  %v8091_v60 = vld [vmem:[#allocation3 + $0x210] sm:$0x3]  ;;  %v7534_v51 = vrot.slane %v7336_v41, 1  ;;  %v15336_v41 = vld [vmem:[#allocation3 + $0x80] sm:$0xff] }
 0x851   :  { %8540 = vmatmul.mubr.f32.gmra.mrb[154].mxu1 %v8222_v3  ;;  %v8092_v42 = vld [vmem:[#allocation3 + $0x218] sm:$0x3]  ;;  %v7536_v29 = vrot.slane %v7337_v14, 1  ;;  %v8229_v61 = vrot.slane %v8091_v60, 2  ;;  %v15330_v52 = vld [vmem:[#allocation3 + $0x50] sm:$0xff]  ;;  %v15339_v60 = vld [vmem:[#allocation3 + $0xa8] sm:$0xff] }
 0x852   :  { %8544 = vmatprep.mubr.f32.mxu1 %v8228_v40  ;;  %v8231_v18 = vrot.slane %v8092_v42, 2  ;;  %v7535_v5 = vsel %vm699_vm5, %v7530_v16, %v7534_v51  ;;  %v15332_v16 = vld [vmem:[#allocation3 + $0x60] sm:$0xff]  ;;  %v15333_v40 = vld [vmem:[#allocation3 + $0x78] sm:$0xff]  ;;  %v15334_v3 = vld [vmem:[#allocation3 + $0x70] sm:$0xff] }
 0x853   :  { %7850 = vmatmul.mubr.f32.gmra.mrb[140].mxu0 %v7531_v22  ;;  %v7537_v46 = vsel %vm699_vm5, %v7532_v35, %v7536_v29  ;;  %v8230_v62 = vsel %vm974_vm6, %v8225_v58, %v8229_v61  ;;  %v15325_v35 = vld [vmem:[#allocation3 + $0x38] sm:$0xff]  ;;  %v15335_v58 = vld [vmem:[#allocation3 + $0x88] sm:$0xff]  ;;  %v15338_v42 = vld [vmem:[#allocation3 + $0x90] sm:$0xff] }
 0x854   :  { %v8232_v54 = vsel %vm974_vm6, %v8227_v26, %v8231_v18  ;;  %7854 = vmatprep.mubr.f32.mxu0 %v7537_v46  ;;  %v15326_v26 = vld [vmem:[#allocation3 + $0x30] sm:$0xff]  ;;  %v15337_v14 = vld [vmem:[#allocation3 + $0x98] sm:$0xff]  ;;  %v15340_v22 = vld [vmem:[#allocation3 + $0xa0] sm:$0xff] }
 0x855   :  { %8545 = vmatmul.mubr.f32.gmra.mrb[156].mxu1 %v8226_v23  ;;  %v15341_v29 = vld [vmem:[#allocation3 + $0xb8] sm:$0xff]  ;;  %v12686_v18 = vld [vmem:[%s20629_s7 + $0x80] sm:$0xff]  ;;  %v12687_v51 = vld [vmem:[%s20629_s7 + $0x88] sm:$0xff] }
 0x856   :  { %8549 = vmatprep.mubr.f32.mxu1 %v8232_v54  ;;  %v14702_v23 = vpack.c.bf16 %v12687_v51, %v12686_v18  ;;  %v15342_v46 = vld [vmem:[#allocation3 + $0xb0] sm:$0xff]  ;;  %v15343_v54 = vld [vmem:[#allocation3 + $0xc8] sm:$0xff]  ;;  %v15344_v61 = vld [vmem:[#allocation3 + $0xc0] sm:$0xff] }
 0x857   :  { %7855 = vmatmul.mubr.f32.gmra.mrb[142].mxu0 %v7535_v5  ;;  %v15345_v5 = vld [vmem:[#allocation3 + $0xd8] sm:$0xff] }
 0x858   :  { %7924 = vmatprep.mubr.f32.mxu0 %v7235_v20  ;;  %14703 = vmatprep.subr.bf16.mxu0 %v14702_v23  ;;  %v15346_v20 = vld [vmem:[#allocation3 + $0xd0] sm:$0xff] }
 0x859   :  { %8550 = vmatmul.mubr.f32.gmra.mrb[158].mxu1 %v8230_v62  ;;  %v15347_v62 = vld [vmem:[#allocation3 + $0xe0] sm:$0xff] }
 0x85b   :  { %7925 = vmatmul.mubr.f32.vlgmr.msra.gmra.mrb[144].mxu0 %v7234_v43  ;;  %v12688_v43 = vld [vmem:[%s20629_s7 + $0x90] sm:$0xff] }
 0x85c   :  { %7929 = vmatprep.mubr.f32.mxu0 %v15321_v56  ;;  %14705 = vmatpush3.bf16.msra.mxu0 %v14702_v23  ;;  %v12689_v56 = vld [vmem:[%s20629_s7 + $0x98] sm:$0xff] }
 0x85f   :  { %7930 = vmatmul.mubr.f32.gmra.mrb[146].mxu0 %v15322_v19  ;;  %v14706_v19 = vpack.c.bf16 %v12689_v56, %v12688_v43  ;;  %v12701_v43 = vld [vmem:[%s20629_s7 + $0xf8] sm:$0xff] }
 0x860   :  { %7934 = vmatprep.mubr.f32.mxu0 %v15323_v38  ;;  %v7267_v38 = vld [vmem:[#allocation3 + $0x118] sm:$0xff] }
 0x861   :  { %14707 = vmatprep.subr.bf16.mxu0 %v14706_v19 }
 0x862   :  { %14709 = vmatpush3.bf16.msra.mxu0 %v14706_v19 }
 0x863   :  { %7935 = vmatmul.mubr.f32.gmra.mrb[148].mxu0 %v15324_v15 }
 0x864   :  { %7939 = vmatprep.mubr.f32.mxu0 %v15325_v35 }
 0x867   :  { %7940 = vmatmul.mubr.f32.gmra.mrb[150].mxu0 %v15326_v26 }
 0x868   :  { %7944 = vmatprep.mubr.f32.mxu0 %v15327_v39 }
 0x86b   :  { %7945 = vmatmul.mubr.f32.gmra.mrb[152].mxu0 %v15328_v11 }
 0x86c   :  { %7949 = vmatprep.mubr.f32.mxu0 %v15329_v49 }
 0x86f   :  { %7950 = vmatmul.mubr.f32.gmra.mrb[154].mxu0 %v15330_v52 }
 0x870   :  { %7954 = vmatprep.mubr.f32.mxu0 %v15331_v9 }
 0x873   :  { %7955 = vmatmul.mubr.f32.gmra.mrb[156].mxu0 %v15332_v16 }
 0x874   :  { %7959 = vmatprep.mubr.f32.mxu0 %v15333_v40 }
 0x877   :  { %7960 = vmatmul.mubr.f32.gmra.mrb[158].mxu0 %v15334_v3 }
 0x878   :  { %7964 = vmatprep.mubr.f32.mxu0 %v15335_v58  ;;  %v12694_v58 = vld [vmem:[%s20629_s7 + $0xc0] sm:$0xff] }
 0x87b   :  { %7965 = vmatmul.mubr.f32.gmra.mrb[160].mxu0 %v15336_v41  ;;  %v12695_v41 = vld [vmem:[%s20629_s7 + $0xc8] sm:$0xff] }
 0x87c   :  { %7969 = vmatprep.mubr.f32.mxu0 %v15337_v14 }
 0x87f   :  { %7970 = vmatmul.mubr.f32.gmra.mrb[162].mxu0 %v15338_v42 }
 0x880   :  { %7974 = vmatprep.mubr.f32.mxu0 %v15339_v60 }
 0x883   :  { %7975 = vmatmul.mubr.f32.gmra.mrb[164].mxu0 %v15340_v22  ;;  %v12696_v22 = vld [vmem:[%s20629_s7 + $0xd0] sm:$0xff] }
 0x884   :  { %7979 = vmatprep.mubr.f32.mxu0 %v15341_v29  ;;  %v12697_v29 = vld [vmem:[%s20629_s7 + $0xd8] sm:$0xff] }
 0x887   :  { %7980 = vmatmul.mubr.f32.gmra.mrb[166].mxu0 %v15342_v46  ;;  %v12698_v46 = vld [vmem:[%s20629_s7 + $0xe0] sm:$0xff] }
 0x888   :  { %7984 = vmatprep.mubr.f32.mxu0 %v15343_v54  ;;  %v12699_v54 = vld [vmem:[%s20629_s7 + $0xe8] sm:$0xff] }
 0x88b   :  { %7985 = vmatmul.mubr.f32.gmra.mrb[168].mxu0 %v15344_v61 }
 0x88c   :  { %7989 = vmatprep.mubr.f32.mxu0 %v15345_v5 }
 0x88f   :  { %7990 = vmatmul.mubr.f32.gmra.mrb[170].mxu0 %v15346_v20 }
 0x890   :  { %7994 = vmatprep.mubr.f32.mxu0 %v18499_v25  ;;  %v7266_v25 = vld [vmem:[#allocation3 + $0x110] sm:$0xff] }
 0x893   :  { %7995 = vmatmul.mubr.f32.gmra.mrb[172].mxu0 %v15347_v62  ;;  %v12700_v62 = vld [vmem:[%s20629_s7 + $0xf0] sm:$0xff] }
 0x894   :  { %7999 = vmatprep.mubr.f32.mxu0 %v18520_v6  ;;  %v12691_v6 = vld [vmem:[%s20629_s7 + $0xa8] sm:$0xff] }
 0x897   :  { %8000 = vmatmul.mubr.f32.gmra.mrb[174].mxu0 %v18514_v1  ;;  %v12690_v1 = vld [vmem:[%s20629_s7 + $0xa0] sm:$0xff] }
 0x898   :  { %8004 = vmatprep.mubr.f32.mxu0 %v7267_v38  ;;  %v14710_v15 = vpack.c.bf16 %v12691_v6, %v12690_v1 }
 0x89a   :  { %14711 = vmatprep.subr.bf16.mxu0 %v14710_v15 }
 0x89b   :  { %8005 = vmatmul.mubr.f32.gmra.mrb[176].mxu0 %v7266_v25 }
 0x89c   :  { %8009 = vmatprep.mubr.f32.mxu0 %v18560_v7  ;;  %14713 = vmatpush3.bf16.msra.mxu0 %v14710_v15 }
 0x89f   :  { %8010 = vmatmul.mubr.f32.gmra.mrb[178].mxu0 %v18554_v8 }
 0x8a0   :  { %8014 = vmatprep.mubr.f32.mxu0 %v18575_v17 }
 0x8a3   :  { %8015 = vmatmul.mubr.f32.gmra.mrb[180].mxu0 %v18569_v12 }
 0x8a4   :  { %8019 = vmatprep.mubr.f32.mxu0 %v18588_v34 }
 0x8a7   :  { %8020 = vmatmul.mubr.f32.gmra.mrb[182].mxu0 %v18583_v47 }
 0x8a8   :  { %8024 = vmatprep.mubr.f32.mxu0 %v18605_v45 }
 0x8aa   :  { %v18845_v8 = vpop.f32.mrb[80].mxu0 }
 0x8ab   :  { %8025 = vmatmul.mubr.f32.gmra.mrb[184].mxu0 %v18599_v36  ;;  %v18847_v7 = vpop.f32.mrb[96].mxu1  ;;  %v7703_v12 = vpop.f32.mrb[81].mxu0 }
 0x8ac   :  { %8029 = vmatprep.mubr.f32.mxu0 %v18622_v0  ;;  %v8398_v17 = vpop.f32.mrb[97].mxu1 }
 0x8ae   :  { %v18851_v34 = vpop.f32.mrb[82].mxu0 }
 0x8af   :  { %8030 = vmatmul.mubr.f32.gmra.mrb[186].mxu0 %v18616_v50  ;;  %v18853_v47 = vpop.f32.mrb[98].mxu1  ;;  %v7708_v45 = vpop.f32.mrb[83].mxu0 }
 0x8b0   :  { %8034 = vmatprep.mubr.f32.mxu0 %v18639_v21  ;;  %v8403_v35 = vpop.f32.mrb[99].mxu1 }
 0x8b2   :  { %v18857_v36 = vpop.f32.mrb[84].mxu0 }
 0x8b3   :  { %8035 = vmatmul.mubr.f32.gmra.mrb[188].mxu0 %v18633_v27  ;;  %v18859_v0 = vpop.f32.mrb[100].mxu1  ;;  %v7713_v26 = vpop.f32.mrb[85].mxu0 }
 0x8b4   :  { %8039 = vmatprep.mubr.f32.mxu0 %v18656_v30  ;;  %v8408_v39 = vpop.f32.mrb[101].mxu1 }
 0x8b6   :  { %v18863_v50 = vpop.f32.mrb[86].mxu0 }
 0x8b7   :  { %8040 = vmatmul.mubr.f32.gmra.mrb[190].mxu0 %v18650_v33  ;;  %v18865_v21 = vpop.f32.mrb[102].mxu1  ;;  %v7718_v11 = vpop.f32.mrb[87].mxu0  ;;  %v12692_v33 = vld [vmem:[%s20629_s7 + $0xb0] sm:$0xff] }
 0x8b8   :  { %8044 = vmatprep.mubr.f32.mxu0 %v18673_v55  ;;  %v8413_v49 = vpop.f32.mrb[103].mxu1  ;;  %v12693_v55 = vld [vmem:[%s20629_s7 + $0xb8] sm:$0xff] }
 0x8b9   :  { %v14714_v16 = vpack.c.bf16 %v12693_v55, %v12692_v33 }
 0x8ba   :  { %v18869_v27 = vpop.f32.mrb[88].mxu0 }
 0x8bb   :  { %8045 = vmatmul.mubr.f32.gmra.mrb[192].mxu0 %v18667_v59  ;;  %v18871_v30 = vpop.f32.mrb[104].mxu1  ;;  %v7723_v52 = vpop.f32.mrb[89].mxu0  ;;  %14715 = vmatprep.subr.bf16.mxu0 %v14714_v16 }
 0x8bc   :  { %8049 = vmatprep.mubr.f32.mxu0 %v18690_v24  ;;  %v8418_v9 = vpop.f32.mrb[105].mxu1  ;;  %14717 = vmatpush3.bf16.msra.mxu0 %v14714_v16 }
 0x8be   :  { %v18881_v59 = vpop.f32.mrb[90].mxu0 }
 0x8bf   :  { %8050 = vmatmul.mubr.f32.gmra.mrb[194].mxu0 %v18684_v10  ;;  %v18883_v24 = vpop.f32.mrb[106].mxu1  ;;  %v7728_v40 = vpop.f32.mrb[91].mxu0  ;;  %v14718_v10 = vpack.c.bf16 %v12695_v41, %v12694_v58 }
 0x8c0   :  { %8054 = vmatprep.mubr.f32.mxu0 %v18707_v44  ;;  %v8423_v3 = vpop.f32.mrb[107].mxu1 }
 0x8c1   :  { %14719 = vmatprep.subr.bf16.mxu0 %v14718_v10 }
 0x8c2   :  { %v18893_v44 = vpop.f32.mrb[92].mxu0  ;;  %14721 = vmatpush3.bf16.msra.mxu0 %v14718_v10 }
 0x8c3   :  { %8055 = vmatmul.mubr.f32.gmra.mrb[196].mxu0 %v18701_v57  ;;  %v18895_v14 = vpop.f32.mrb[108].mxu1  ;;  %v7733_v42 = vpop.f32.mrb[93].mxu0  ;;  %v14722_v57 = vpack.c.bf16 %v12697_v29, %v12696_v22 }
 0x8c4   :  { %8059 = vmatprep.mubr.f32.mxu0 %v18724_v2  ;;  %v8428_v60 = vpop.f32.mrb[109].mxu1 }
 0x8c5   :  { %14723 = vmatprep.subr.bf16.mxu0 %v14722_v57 }
 0x8c6   :  { %14725 = vmatpush3.bf16.msra.mxu0 %v14722_v57 }
 0x8c7   :  { %8060 = vmatmul.mubr.f32.gmra.mrb[198].mxu0 %v18718_v28  ;;  %v18905_v2 = vpop.f32.mrb[94].mxu0  ;;  %v14726_v28 = vpack.c.bf16 %v12699_v54, %v12698_v46 }
 0x8c8   :  { %8064 = vmatprep.mubr.f32.mxu0 %v18741_v4  ;;  %v18907_v18 = vpop.f32.mrb[110].mxu1  ;;  %v7738_v51 = vpop.f32.mrb[95].mxu0 }
 0x8c9   :  { %v8433_v23 = vpop.f32.mrb[111].mxu1  ;;  %14727 = vmatprep.subr.bf16.mxu0 %v14726_v28 }
 0x8ca   :  { %14729 = vmatpush3.bf16.msra.mxu0 %v14726_v28 }
 0x8cb   :  { %8065 = vmatmul.mubr.f32.gmra.mrb[200].mxu0 %v18735_v32  ;;  %v18917_v4 = vpop.f32.mrb[96].mxu0  ;;  %v14730_v32 = vpack.c.bf16 %v12701_v43, %v12700_v62 }
 0x8cc   :  { %8069 = vmatprep.mubr.f32.mxu0 %v18758_v63  ;;  %v18919_v61 = vpop.f32.mrb[112].mxu1  ;;  %v7743_v5 = vpop.f32.mrb[97].mxu0 }
 0x8cd   :  { %v8438_v20 = vpop.f32.mrb[113].mxu1  ;;  %14731 = vmatprep.subr.bf16.mxu0 %v14730_v32 }
 0x8ce   :  { %14733 = vmatpush3.bf16.msra.mxu0 %v14730_v32 }
 0x8cf   :  { %8070 = vmatmul.mubr.f32.gmra.mrb[202].mxu0 %v18752_v37  ;;  %v18929_v63 = vpop.f32.mrb[98].mxu0 }
 0x8d0   :  { %8074 = vmatprep.mubr.f32.mxu0 %v18775_v13  ;;  %v18931_v56 = vpop.f32.mrb[114].mxu1  ;;  %v7748_v19 = vpop.f32.mrb[99].mxu0 }
 0x8d1   :  { %v8443_v38 = vpop.f32.mrb[115].mxu1 }
 0x8d3   :  { %8075 = vmatmul.mubr.f32.gmra.mrb[204].mxu0 %v18769_v53 }
 0x8d4   :  { %8079 = vmatprep.mubr.f32.mxu0 %v18792_v31  ;;  %v18935_v25 = vpop.f32.mrb[100].mxu0 }
 0x8d5   :  { %v18937_v1 = vpop.f32.mrb[116].mxu1  ;;  %v7753_v37 = vpop.f32.mrb[101].mxu0 }
 0x8d6   :  { %v8448_v6 = vpop.f32.mrb[117].mxu1 }
 0x8d7   :  { %8080 = vmatmul.mubr.f32.gmra.mrb[206].mxu0 %v18786_v48 }
 0x8d8   :  { %v18940_v13 = vpop.f32.mrb[102].mxu0 }
 0x8d9   :  { %v18942_v15 = vpop.f32.mrb[118].mxu1  ;;  %v7758_v12 = vpop.f32.mrb[103].mxu0 }
 0x8da   :  { %v8453_v17 = vpop.f32.mrb[119].mxu1 }
 0x8dc   :  { %v18944_v45 = vpop.f32.mrb[104].mxu0 }
 0x8dd   :  { %v18946_v35 = vpop.f32.mrb[120].mxu1  ;;  %v7763_v53 = vpop.f32.mrb[105].mxu0 }
 0x8de   :  { %v8458_v31 = vpop.f32.mrb[121].mxu1 }
 0x8e0   :  { %v18948_v26 = vpop.f32.mrb[106].mxu0 }
 0x8e1   :  { %v18950_v39 = vpop.f32.mrb[122].mxu1  ;;  %v7768_v11 = vpop.f32.mrb[107].mxu0 }
 0x8e2   :  { %v8463_v49 = vpop.f32.mrb[123].mxu1 }
 0x8e5   :  { %v18952_v52 = vpop.f32.mrb[108].mxu0 }
 0x8e6   :  { %v18954_v48 = vpop.f32.mrb[124].mxu1  ;;  %v7773_v9 = vpop.f32.mrb[109].mxu0 }
 0x8e7   :  { %v8468_v33 = vpop.f32.mrb[125].mxu1 }
 0x8e9   :  { %v18956_v55 = vpop.f32.mrb[110].mxu0 }
 0x8ea   :  { %v18958_v16 = vpop.f32.mrb[126].mxu1  ;;  %v7778_v40 = vpop.f32.mrb[111].mxu0 }
 0x8eb   :  { %v8473_v3 = vpop.f32.mrb[127].mxu1 }
 0x8ed   :  { %v18960_v58 = vpop.f32.mrb[112].mxu0 }
 0x8ee   :  { %v7783_v41 = vpop.f32.mrb[113].mxu0 }
 0x8f0   :  { %v18962_v10 = vpop.f32.mrb[128].mxu1 }
 0x8f1   :  { %v8478_v42 = vpop.f32.mrb[129].mxu1 }
 0x8f2   :  { %v18964_v60 = vpop.f32.mrb[114].mxu0  ;;  %v8852_v42 = vld [vmem:[%s20629_s7] sm:$0xff] }
 0x8f3   :  { %v7788_v22 = vpop.f32.mrb[115].mxu0 }
 0x8f4   :  { %v18966_v29 = vpop.f32.mrb[130].mxu1  ;;  %v8853_v22 = vld [vmem:[%s20629_s7 + $0x8] sm:$0xff] }
 0x8f5   :  { %v8483_v57 = vpop.f32.mrb[131].mxu1 }
 0x8f6   :  { %v18968_v51 = vpop.f32.mrb[116].mxu0 }
 0x8f7   :  { %v7793_v23 = vpop.f32.mrb[117].mxu0 }
 0x8f8   :  { %v18970_v46 = vpop.f32.mrb[132].mxu1  ;;  %v19000_v23 = vpack.c.bf16 %v8853_v22, %v8852_v42 }
 0x8f9   :  { %v8488_v54 = vpop.f32.mrb[133].mxu1 }
 0x8fa   :  { %v18972_v28 = vpop.f32.mrb[118].mxu0  ;;  %14735 = vmatprep.subr.bf16.mxu0 %v19000_v23 }
 0x8fb   :  { %v7798_v5 = vpop.f32.mrb[119].mxu0 }
 0x8fc   :  { %v18974_v20 = vpop.f32.mrb[134].mxu1 }
 0x8fd   :  { %v8493_v62 = vpop.f32.mrb[135].mxu1 }
 0x8fe   :  { %v18976_v43 = vpop.f32.mrb[120].mxu0 }
 0x8ff   :  { %v7803_v32 = vpop.f32.mrb[121].mxu0 }
 0x900   :  { %v18978_v19 = vpop.f32.mrb[136].mxu1 }
 0x901   :  { %v8498_v38 = vpop.f32.mrb[137].mxu1 }
 0x902   :  { %v18980_v37 = vpop.f32.mrb[122].mxu0 }
 0x903   :  { %v7808_v6 = vpop.f32.mrb[123].mxu0 }
 0x904   :  { %v18982_v12 = vpop.f32.mrb[138].mxu1 }
 0x905   :  { %v8503_v17 = vpop.f32.mrb[139].mxu1 }
 0x906   :  { %v18984_v53 = vpop.f32.mrb[124].mxu0 }
 0x907   :  { %v7813_v31 = vpop.f32.mrb[125].mxu0 }
 0x908   :  { %v18986_v11 = vpop.f32.mrb[140].mxu1 }
 0x909   :  { %v8508_v49 = vpop.f32.mrb[141].mxu1 }
 0x90a   :  { %v18988_v9 = vpop.f32.mrb[126].mxu0 }
 0x90b   :  { %v7818_v33 = vpop.f32.mrb[127].mxu0 }
 0x90c   :  { %v18990_v40 = vpop.f32.mrb[142].mxu1 }
 0x90d   :  { %v8513_v3 = vpop.f32.mrb[143].mxu1 }
 0x90e   :  { %v18992_v41 = vpop.f32.mrb[128].mxu0 }
 0x90f   :  { %20668 = vst [vmem:[#allocation19_spill] sm:$0xff] %v18992_v41  ;;  %v7823_v57 = vpop.f32.mrb[129].mxu0 }
 0x910   :  { %v19002_v54 = vpop.f32.mrb[144].mxu1 }
 0x911   :  { %20669 = vst [vmem:[#allocation20_spill] sm:$0xff] %v19002_v54  ;;  %v8518_v5 = vpop.f32.mrb[145].mxu1 }
 0x912   :  { %v19005_v62 = vpop.f32.mrb[130].mxu0 }
 0x913   :  { %20670 = vst [vmem:[#allocation21_spill] sm:$0xff] %v19005_v62  ;;  %v7828_v32 = vpop.f32.mrb[131].mxu0 }
 0x914   :  { %v19007_v38 = vpop.f32.mrb[146].mxu1 }
 0x915   :  { %20671 = vst [vmem:[#allocation22_spill] sm:$0xff] %v19007_v38  ;;  %v8523_v6 = vpop.f32.mrb[147].mxu1 }
 0x916   :  { %v19009_v17 = vpop.f32.mrb[132].mxu0 }
 0x917   :  { %20672 = vst [vmem:[#allocation23_spill] sm:$0xff] %v19009_v17  ;;  %v7833_v31 = vpop.f32.mrb[133].mxu0 }
 0x918   :  { %v19011_v49 = vpop.f32.mrb[148].mxu1 }
 0x919   :  { %20673 = vst [vmem:[#allocation24_spill] sm:$0xff] %v19011_v49  ;;  %v8528_v33 = vpop.f32.mrb[149].mxu1 }
 0x91a   :  { %v19013_v3 = vpop.f32.mrb[134].mxu0 }
 0x91b   :  { %20674 = vst [vmem:[#allocation25_spill] sm:$0xff] %v19013_v3  ;;  %v7838_v42 = vpop.f32.mrb[135].mxu0 }
 0x91c   :  { %v19015_v22 = vpop.f32.mrb[150].mxu1 }
 0x91d   :  { %20675 = vst [vmem:[#allocation26_spill] sm:$0xff] %v19015_v22  ;;  %v8533_v57 = vpop.f32.mrb[151].mxu1 }
 0x91e   :  { %v19017_v5 = vpop.f32.mrb[136].mxu0 }
 0x91f   :  { %20676 = vst [vmem:[#allocation27_spill] sm:$0xff] %v19017_v5  ;;  %v7843_v54 = vpop.f32.mrb[137].mxu0 }
 0x920   :  { %v19019_v62 = vpop.f32.mrb[152].mxu1 }
 0x921   :  { %20677 = vst [vmem:[#allocation28_spill] sm:$0xff] %v19019_v62  ;;  %v8538_v32 = vpop.f32.mrb[153].mxu1 }
 0x922   :  { %v19021_v38 = vpop.f32.mrb[138].mxu0 }
 0x923   :  { %20678 = vst [vmem:[#allocation29_spill] sm:$0xff] %v19021_v38  ;;  %v7848_v6 = vpop.f32.mrb[139].mxu0 }
 0x924   :  { %v19023_v17 = vpop.f32.mrb[154].mxu1  ;;  %v19037_v6 = vld [vmem:[%s20637_s15] ss:$0 sm:$0xff]  ;;  %s20700_s15 = sld [smem:[#allocation39_spill]] }
 0x925   :  { %20679 = vst [vmem:[#allocation30_spill] sm:$0xff] %v19023_v17  ;;  %v8543_v31 = vpop.f32.mrb[155].mxu1 }
 0x926   :  { %v19025_v49 = vpop.f32.mrb[140].mxu0 }
 0x927   :  { %20680 = vst [vmem:[#allocation31_spill] sm:$0xff] %v19025_v49  ;;  %v7853_v33 = vpop.f32.mrb[141].mxu0 }
 0x928   :  { %v19027_v3 = vpop.f32.mrb[156].mxu1 }
 0x929   :  { %20681 = vst [vmem:[#allocation32_spill] sm:$0xff] %v19027_v3  ;;  %v8548_v42 = vpop.f32.mrb[157].mxu1 }
 0x92a   :  { %v19029_v22 = vpop.f32.mrb[142].mxu0 }
 0x92b   :  { %20682 = vst [vmem:[#allocation33_spill] sm:$0xff] %v19029_v22  ;;  %v7858_v57 = vpop.f32.mrb[143].mxu0 }
 0x92c   :  { %v19031_v5 = vpop.f32.mrb[158].mxu1 }
 0x92d   :  { %20683 = vst [vmem:[#allocation34_spill] sm:$0xff] %v19031_v5  ;;  %v8553_v54 = vpop.f32.mrb[159].mxu1 }
 0x92e   :  { %v7926_v62 = vpop.f32.mrb[144].mxu0 }
 0x92f   :  { %v7927_v32 = vadd.f32 %v7926_v62, %v18845_v8  ;;  %v7928_v38 = vpop.f32.mrb[145].mxu0 }
 0x931   :  { %v8555_v31 = vadd.f32 %v18847_v7, %v7927_v32 }
 0x932   :  { %v7931_v33 = vpop.f32.mrb[146].mxu0 }
 0x933   :  { %v8594_v42 = vadd.f32 %v19037_v6, %v8555_v31  ;;  %v7932_v22 = vadd.f32 %v7931_v33, %v18851_v34  ;;  %v7933_v57 = vpop.f32.mrb[147].mxu0 }
 0x935   :  { %v8626_v3 = vmax.f32 %v8594_v42, 0.0  ;;  %v8556_v54 = vadd.f32 %v18853_v47, %v7932_v22 }
 0x936   :  { %v7936_v5 = vpop.f32.mrb[148].mxu0 }
 0x937   :  { %v8690_v49 = vrot.slane %v8626_v3, 7  ;;  %v8595_v8 = vadd.f32 %v19037_v6, %v8556_v54  ;;  %v7937_v62 = vadd.f32 %v7936_v5, %v18857_v36  ;;  %v7938_v38 = vpop.f32.mrb[149].mxu0 }
 0x939   :  { %8786 = vst [vmem:[#allocation2] sm:$0xfe] %v8690_v49  ;;  %v8627_v17 = vmax.f32 %v8595_v8, 0.0  ;;  %v8557_v7 = vadd.f32 %v18859_v0, %v7937_v62 }
 0x93a   :  { %v7941_v32 = vpop.f32.mrb[150].mxu0 }
 0x93b   :  { %v8691_v41 = vrot.slane %v8627_v17, 7  ;;  %v8596_v31 = vadd.f32 %v19037_v6, %v8557_v7  ;;  %v7942_v34 = vadd.f32 %v7941_v32, %v18863_v50  ;;  %v7943_v33 = vpop.f32.mrb[151].mxu0  ;;  %v8854_v50 = vld [vmem:[%s20629_s7 + $0x10] sm:$0xff] }
 0x93d   :  { %v19049_v47 = vsel %vm234_vm2, %v8690_v49, %v8691_v41  ;;  %v8628_v3 = vmax.f32 %v8596_v31, 0.0  ;;  %v8558_v22 = vadd.f32 %v18865_v21, %v7942_v34  ;;  %v8855_v49 = vld [vmem:[%s20629_s7 + $0x18] sm:$0xff] }
 0x93e   :  { %8787 = vst [vmem:[#allocation2 + $0x10] sm:$0xff] %v19049_v47  ;;  %v7946_v36 = vpop.f32.mrb[152].mxu0  ;;  %v8907_v21 = vrot.slane %v19049_v47, 1  ;;  %v14738_v32 = vpack.c.bf16 %v8855_v49, %v8854_v50 }
 0x93f   :  { %v8693_v5 = vrot.slane %v8628_v3, 7  ;;  %v8597_v42 = vadd.f32 %v19037_v6, %v8558_v22  ;;  %v7947_v0 = vadd.f32 %v7946_v36, %v18869_v27  ;;  %v7948_v17 = vpop.f32.mrb[153].mxu0  ;;  %v8857_v36 = vld [vmem:[%s20629_s7 + $0x28] sm:$0xff] }
 0x940   :  { %v8868_v57 = vld [vmem:[#allocation2] sm:$0xfe] }
 0x941   :  { %v19063_v54 = vsel %vm234_vm2, %v8691_v41, %v8693_v5  ;;  %v8629_v8 = vmax.f32 %v8597_v42, 0.0  ;;  %v8559_v62 = vadd.f32 %v18871_v30, %v7947_v0  ;;  %v8906_v38 = vrot.slane %v8868_v57, 1  ;;  %v8856_v30 = vld [vmem:[%s20629_s7 + $0x20] sm:$0xff] }
 0x942   :  { %8788 = vst [vmem:[#allocation2 + $0x20] sm:$0xff] %v19063_v54  ;;  %v7951_v27 = vpop.f32.mrb[154].mxu0  ;;  %v8909_v7 = vrot.slane %v19063_v54, 1 }
 0x943   :  { %v8695_v31 = vrot.slane %v8629_v8, 7  ;;  %v8598_v34 = vadd.f32 %v19037_v6, %v8559_v62  ;;  %v7952_v33 = vadd.f32 %v7951_v27, %v18881_v59  ;;  %v7953_v3 = vpop.f32.mrb[155].mxu0  ;;  %v8908_v22 = vsel %vm699_vm5, %v8906_v38, %v8907_v21  ;;  %v8859_v38 = vld [vmem:[%s20629_s7 + $0x38] sm:$0xff] }
 0x944   :  { %13978 = vmatprep.mubr.f32.mxu0 %v8908_v22  ;;  %v8910_v41 = vsel %vm699_vm5, %v8907_v21, %v8909_v7 }
 0x945   :  { %v19079_v42 = vsel %vm234_vm2, %v8693_v5, %v8695_v31  ;;  %v8630_v0 = vmax.f32 %v8598_v34, 0.0  ;;  %v8560_v59 = vadd.f32 %v18883_v24, %v7952_v33  ;;  %13979 = vmatmul.mubr.f32.vlgmr.msra.gmra.mrb[208].mxu0 %v8910_v41  ;;  %v14742_v5 = vpack.c.bf16 %v8857_v36, %v8856_v30  ;;  %v8858_v24 = vld [vmem:[%s20629_s7 + $0x30] sm:$0xff]  ;;  %v8861_v36 = vld [vmem:[%s20629_s7 + $0x48] sm:$0xff] }
 0x946   :  { %8789 = vst [vmem:[#allocation2 + $0x30] sm:$0xff] %v19079_v42  ;;  %v7956_v17 = vpop.f32.mrb[156].mxu0  ;;  %v8911_v50 = vrot.slane %v19079_v42, 1  ;;  %14737 = vmatpush3.bf16.msra.mxu0 %v19000_v23  ;;  %v14746_v30 = vpack.c.bf16 %v8859_v38, %v8858_v24  ;;  %v8863_v24 = vld [vmem:[%s20629_s7 + $0x58] sm:$0xff] }
 0x947   :  { %v8697_v49 = vrot.slane %v8630_v0, 7  ;;  %v8599_v57 = vadd.f32 %v19037_v6, %v8560_v59  ;;  %v7957_v21 = vadd.f32 %v7956_v17, %v18893_v44  ;;  %v7958_v8 = vpop.f32.mrb[157].mxu0  ;;  %14739 = vmatprep.subr.bf16.mxu0 %v14738_v32 }
 0x948   :  { %v8912_v62 = vsel %vm699_vm5, %v8909_v7, %v8911_v50 }
 0x949   :  { %v19095_v23 = vsel %vm234_vm2, %v8695_v31, %v8697_v49  ;;  %v8631_v27 = vmax.f32 %v8599_v57, 0.0  ;;  %v8561_v34 = vadd.f32 %v18895_v14, %v7957_v21  ;;  %13981 = vmatprep.mubr.f32.mxu0 %v8912_v62  ;;  %v8860_v14 = vld [vmem:[%s20629_s7 + $0x40] sm:$0xff] }
 0x94a   :  { %8790 = vst [vmem:[#allocation2 + $0x40] sm:$0xff] %v19095_v23  ;;  %v7961_v44 = vpop.f32.mrb[158].mxu0  ;;  %v8913_v7 = vrot.slane %v19095_v23, 1  ;;  %14741 = vmatpush3.bf16.msra.mxu0 %v14738_v32  ;;  %v14750_v62 = vpack.c.bf16 %v8861_v36, %v8860_v14 }
 0x94b   :  { %v8699_v33 = vrot.slane %v8631_v27, 7  ;;  %v8600_v3 = vadd.f32 %v19037_v6, %v8561_v34  ;;  %v7962_v22 = vadd.f32 %v7961_v44, %v18905_v2  ;;  %v7963_v41 = vpop.f32.mrb[159].mxu0  ;;  %14743 = vmatprep.subr.bf16.mxu0 %v14742_v5 }
 0x94c   :  { %v8914_v31 = vsel %vm699_vm5, %v8911_v50, %v8913_v7 }
 0x94d   :  { %v19110_v32 = vsel %vm234_vm2, %v8697_v49, %v8699_v33  ;;  %v8632_v0 = vmax.f32 %v8600_v3, 0.0  ;;  %v8562_v59 = vadd.f32 %v18907_v18, %v7962_v22  ;;  %13982 = vmatmul.mubr.f32.gmra.mrb[210].mxu0 %v8914_v31  ;;  %v8862_v18 = vld [vmem:[%s20629_s7 + $0x50] sm:$0xff]  ;;  %v8865_v31 = vld [vmem:[%s20629_s7 + $0x68] sm:$0xff] }
 0x94e   :  { %8791 = vst [vmem:[#allocation2 + $0x50] sm:$0xff] %v19110_v32  ;;  %v7966_v2 = vpop.f32.mrb[160].mxu0  ;;  %v8915_v17 = vrot.slane %v19110_v32, 1  ;;  %14745 = vmatpush3.bf16.msra.mxu0 %v14742_v5  ;;  %v14754_v41 = vpack.c.bf16 %v8863_v24, %v8862_v18 }
 0x94f   :  { %v8701_v50 = vrot.slane %v8632_v0, 7  ;;  %v8601_v57 = vadd.f32 %v19037_v6, %v8562_v59  ;;  %v7967_v21 = vadd.f32 %v7966_v2, %v18917_v4  ;;  %v7968_v8 = vpop.f32.mrb[161].mxu0  ;;  %14747 = vmatprep.subr.bf16.mxu0 %v14746_v30 }
 0x950   :  { %v8916_v49 = vsel %vm699_vm5, %v8913_v7, %v8915_v17  ;;  %v8867_v8 = vld [vmem:[%s20629_s7 + $0x78] sm:$0xff] }
 0x951   :  { %v19125_v5 = vsel %vm234_vm2, %v8699_v33, %v8701_v50  ;;  %v8633_v38 = vmax.f32 %v8601_v57, 0.0  ;;  %v8563_v27 = vadd.f32 %v18919_v61, %v7967_v21  ;;  %13984 = vmatprep.mubr.f32.mxu0 %v8916_v49  ;;  %v8864_v61 = vld [vmem:[%s20629_s7 + $0x60] sm:$0xff] }
 0x952   :  { %8792 = vst [vmem:[#allocation2 + $0x60] sm:$0xff] %v19125_v5  ;;  %v7971_v4 = vpop.f32.mrb[162].mxu0  ;;  %v8917_v34 = vrot.slane %v19125_v5, 1  ;;  %14749 = vmatpush3.bf16.msra.mxu0 %v14746_v30  ;;  %v14758_v21 = vpack.c.bf16 %v8865_v31, %v8864_v61 }
 0x953   :  { %v8703_v44 = vrot.slane %v8633_v38, 7  ;;  %v8602_v7 = vadd.f32 %v19037_v6, %v8563_v27  ;;  %v7972_v3 = vadd.f32 %v7971_v4, %v18929_v63  ;;  %v7973_v22 = vpop.f32.mrb[163].mxu0  ;;  %14751 = vmatprep.subr.bf16.mxu0 %v14750_v62 }
 0x954   :  { %v8918_v33 = vsel %vm699_vm5, %v8915_v17, %v8917_v34 }
 0x955   :  { %v19140_v30 = vsel %vm234_vm2, %v8701_v50, %v8703_v44  ;;  %v8634_v14 = vmax.f32 %v8602_v7, 0.0  ;;  %v8564_v36 = vadd.f32 %v18931_v56, %v7972_v3  ;;  %13985 = vmatmul.mubr.f32.gmra.mrb[212].mxu0 %v8918_v33  ;;  %v8866_v56 = vld [vmem:[%s20629_s7 + $0x70] sm:$0xff]  ;;  %v12703_v3 = vld [vmem:[%s20629_s7 + $0x108] sm:$0xff] }
 0x956   :  { %8793 = vst [vmem:[#allocation2 + $0x70] sm:$0xff] %v19140_v30  ;;  %v7976_v63 = vpop.f32.mrb[164].mxu0  ;;  %v8919_v0 = vrot.slane %v19140_v30, 1  ;;  %14753 = vmatpush3.bf16.msra.mxu0 %v14750_v62  ;;  %v14762_v7 = vpack.c.bf16 %v8867_v8, %v8866_v56 }
 0x957   :  { %v8705_v59 = vrot.slane %v8634_v14, 7  ;;  %v8603_v2 = vadd.f32 %v19037_v6, %v8564_v36  ;;  %v7977_v17 = vadd.f32 %v7976_v63, %v18935_v25  ;;  %v7978_v57 = vpop.f32.mrb[165].mxu0  ;;  %14755 = vmatprep.subr.bf16.mxu0 %v14754_v41 }
 0x958   :  { %v8920_v50 = vsel %vm699_vm5, %v8917_v34, %v8919_v0 }
 0x959   :  { %v19155_v62 = vsel %vm234_vm2, %v8703_v44, %v8705_v59  ;;  %v8635_v49 = vmax.f32 %v8603_v2, 0.0  ;;  %v8565_v18 = vadd.f32 %v18937_v1, %v7977_v17  ;;  %13987 = vmatprep.mubr.f32.mxu0 %v8920_v50  ;;  %v12702_v1 = vld [vmem:[%s20629_s7 + $0x100] sm:$0xff] }
 0x95a   :  { %8794 = vst [vmem:[#allocation2 + $0x80] sm:$0xff] %v19155_v62  ;;  %v7981_v25 = vpop.f32.mrb[166].mxu0  ;;  %v8921_v24 = vrot.slane %v19155_v62, 1  ;;  %14757 = vmatpush3.bf16.msra.mxu0 %v14754_v41 }
 0x95b   :  { %v8707_v38 = vrot.slane %v8635_v49, 7  ;;  %v8604_v27 = vadd.f32 %v19037_v6, %v8565_v18  ;;  %v7982_v4 = vadd.f32 %v7981_v25, %v18940_v13  ;;  %v7983_v34 = vpop.f32.mrb[167].mxu0  ;;  %14759 = vmatprep.subr.bf16.mxu0 %v14758_v21 }
 0x95c   :  { %v8922_v44 = vsel %vm699_vm5, %v8919_v0, %v8921_v24  ;;  %v19177_v0 = vpack.c.bf16 %v12703_v3, %v12702_v1 }
 0x95d   :  { %v19170_v22 = vsel %vm234_vm2, %v8705_v59, %v8707_v38  ;;  %v8636_v41 = vmax.f32 %v8604_v27, 0.0  ;;  %v8566_v33 = vadd.f32 %v18942_v15, %v7982_v4  ;;  %13988 = vmatmul.mubr.f32.gmra.mrb[214].mxu0 %v8922_v44 }
 0x95e   :  { %8795 = vst [vmem:[#allocation2 + $0x90] sm:$0xff] %v19170_v22  ;;  %v7986_v13 = vpop.f32.mrb[168].mxu0  ;;  %v8923_v61 = vrot.slane %v19170_v22, 1  ;;  %14761 = vmatpush3.bf16.msra.mxu0 %v14758_v21 }
 0x95f   :  { %v8709_v31 = vrot.slane %v8636_v41, 7  ;;  %v8605_v14 = vadd.f32 %v19037_v6, %v8566_v33  ;;  %v7987_v36 = vadd.f32 %v7986_v13, %v18944_v45  ;;  %v7988_v63 = vpop.f32.mrb[169].mxu0  ;;  %14763 = vmatprep.subr.bf16.mxu0 %v14762_v7 }
 0x960   :  { %v8924_v59 = vsel %vm699_vm5, %v8921_v24, %v8923_v61 }
 0x961   :  { %v19181_v15 = vsel %vm234_vm2, %v8707_v38, %v8709_v31  ;;  %v8637_v2 = vmax.f32 %v8605_v14, 0.0  ;;  %v8567_v17 = vadd.f32 %v18946_v35, %v7987_v36  ;;  %13990 = vmatprep.mubr.f32.mxu0 %v8924_v59 }
 0x962   :  { %8796 = vst [vmem:[#allocation2 + $0xa0] sm:$0xff] %v19181_v15  ;;  %v7991_v57 = vpop.f32.mrb[170].mxu0  ;;  %v8925_v21 = vrot.slane %v19181_v15, 1  ;;  %14765 = vmatpush3.bf16.msra.mxu0 %v14762_v7 }
 0x963   :  { %v8711_v45 = vrot.slane %v8637_v2, 7  ;;  %v8606_v50 = vadd.f32 %v19037_v6, %v8567_v17  ;;  %v7992_v56 = vadd.f32 %v7991_v57, %v18948_v26  ;;  %v7993_v8 = vpop.f32.mrb[171].mxu0  ;;  %14767 = vmatprep.subr.bf16.mxu0 %v19177_v0 }
 0x964   :  { %v8926_v49 = vsel %vm699_vm5, %v8923_v61, %v8925_v21 }
 0x965   :  { %v19191_v18 = vsel %vm234_vm2, %v8709_v31, %v8711_v45  ;;  %v8638_v35 = vmax.f32 %v8606_v50, 0.0  ;;  %v8568_v25 = vadd.f32 %v18950_v39, %v7992_v56  ;;  %13991 = vmatmul.mubr.f32.gmra.mrb[216].mxu0 %v8926_v49 }
 0x966   :  { %8797 = vst [vmem:[#allocation2 + $0xb0] sm:$0xff] %v19191_v18  ;;  %v7996_v24 = vpop.f32.mrb[172].mxu0  ;;  %v8927_v38 = vrot.slane %v19191_v18, 1 }
 0x967   :  { %v8713_v27 = vrot.slane %v8638_v35, 7  ;;  %v8607_v26 = vadd.f32 %v19037_v6, %v8568_v25  ;;  %v7997_v4 = vadd.f32 %v7996_v24, %v18952_v52  ;;  %v7998_v34 = vpop.f32.mrb[173].mxu0 }
 0x968   :  { %v8928_v7 = vsel %vm699_vm5, %v8925_v21, %v8927_v38 }
 0x969   :  { %v19200_v44 = vsel %vm234_vm2, %v8711_v45, %v8713_v27  ;;  %v8639_v1 = vmax.f32 %v8607_v26, 0.0  ;;  %v8569_v39 = vadd.f32 %v18954_v48, %v7997_v4  ;;  %13993 = vmatprep.mubr.f32.mxu0 %v8928_v7 }
 0x96a   :  { %8798 = vst [vmem:[#allocation2 + $0xc0] sm:$0xff] %v19200_v44  ;;  %v8001_v3 = vpop.f32.mrb[174].mxu0  ;;  %v8929_v41 = vrot.slane %v19200_v44, 1 }
 0x96b   :  { %v8715_v33 = vrot.slane %v8639_v1, 7  ;;  %v8608_v13 = vadd.f32 %v19037_v6, %v8569_v39  ;;  %v8002_v52 = vadd.f32 %v8001_v3, %v18956_v55  ;;  %v8003_v61 = vpop.f32.mrb[175].mxu0 }
 0x96c   :  { %v8930_v31 = vsel %vm699_vm5, %v8927_v38, %v8929_v41 }
 0x96d   :  { %v19209_v14 = vsel %vm234_vm2, %v8713_v27, %v8715_v33  ;;  %v8640_v36 = vmax.f32 %v8608_v13, 0.0  ;;  %v8570_v48 = vadd.f32 %v18958_v16, %v8002_v52  ;;  %13994 = vmatmul.mubr.f32.gmra.mrb[218].mxu0 %v8930_v31 }
 0x96e   :  { %8799 = vst [vmem:[#allocation2 + $0xd0] sm:$0xff] %v19209_v14  ;;  %v8006_v63 = vpop.f32.mrb[176].mxu0  ;;  %v8931_v59 = vrot.slane %v19209_v14, 1 }
 0x96f   :  { %v8717_v2 = vrot.slane %v8640_v36, 7  ;;  %v8609_v17 = vadd.f32 %v19037_v6, %v8570_v48  ;;  %v8007_v55 = vadd.f32 %v8006_v63, %v18960_v58  ;;  %v8008_v57 = vpop.f32.mrb[177].mxu0 }
 0x970   :  { %v8932_v21 = vsel %vm699_vm5, %v8929_v41, %v8931_v59 }
 0x971   :  { %v19218_v45 = vsel %vm234_vm2, %v8715_v33, %v8717_v2  ;;  %v8641_v50 = vmax.f32 %v8609_v17, 0.0  ;;  %v8571_v16 = vadd.f32 %v18962_v10, %v8007_v55  ;;  %13996 = vmatprep.mubr.f32.mxu0 %v8932_v21 }
 0x972   :  { %8800 = vst [vmem:[#allocation2 + $0xe0] sm:$0xff] %v19218_v45  ;;  %v8011_v56 = vpop.f32.mrb[178].mxu0  ;;  %v8933_v8 = vrot.slane %v19218_v45, 1 }
 0x973   :  { %v8719_v49 = vrot.slane %v8641_v50, 7  ;;  %v8610_v35 = vadd.f32 %v19037_v6, %v8571_v16  ;;  %v8012_v58 = vadd.f32 %v8011_v56, %v18964_v60  ;;  %v8013_v25 = vpop.f32.mrb[179].mxu0 }
 0x974   :  { %v8934_v24 = vsel %vm699_vm5, %v8931_v59, %v8933_v8 }
 0x975   :  { %v19227_v38 = vsel %vm234_vm2, %v8717_v2, %v8719_v49  ;;  %8802 = vst [vmem:[#allocation2 + $0x100] sm:$0x1] %v8719_v49  ;;  %v8642_v27 = vmax.f32 %v8610_v35, 0.0  ;;  %v8572_v10 = vadd.f32 %v18966_v29, %v8012_v58  ;;  %13997 = vmatmul.mubr.f32.gmra.mrb[220].mxu0 %v8934_v24 }
 0x976   :  { %8801 = vst [vmem:[#allocation2 + $0xf0] sm:$0xff] %v19227_v38  ;;  %v8016_v26 = vpop.f32.mrb[180].mxu0  ;;  %v8935_v4 = vrot.slane %v19227_v38, 1 }
 0x977   :  { %v8721_v34 = vrot.slane %v8642_v27, 7  ;;  %v8611_v7 = vadd.f32 %v19037_v6, %v8572_v10  ;;  %v8017_v60 = vadd.f32 %v8016_v26, %v18968_v51  ;;  %v8018_v1 = vpop.f32.mrb[181].mxu0 }
 0x978   :  { %v8936_v39 = vsel %vm699_vm5, %v8933_v8, %v8935_v4 }
 0x979   :  { %8803 = vst [vmem:[#allocation2 + $0x110] sm:$0xfe] %v8721_v34  ;;  %v8643_v3 = vmax.f32 %v8611_v7, 0.0  ;;  %v8573_v41 = vadd.f32 %v18970_v46, %v8017_v60  ;;  %13999 = vmatprep.mubr.f32.mxu0 %v8936_v39 }
 0x97a   :  { %v8021_v29 = vpop.f32.mrb[182].mxu0 }
 0x97b   :  { %v8722_v33 = vrot.slane %v8643_v3, 7  ;;  %v8612_v13 = vadd.f32 %v19037_v6, %v8573_v41  ;;  %v8022_v52 = vadd.f32 %v8021_v29, %v18972_v28  ;;  %v8023_v61 = vpop.f32.mrb[183].mxu0 }
 0x97c   :  { %v8869_v31 = vld [vmem:[#allocation2 + $0x100] sm:$0x1] }
 0x97d   :  { %v19239_v36 = vsel %vm234_vm2, %v8721_v34, %v8722_v33  ;;  %v8644_v51 = vmax.f32 %v8612_v13, 0.0  ;;  %v8574_v48 = vadd.f32 %v18974_v20, %v8022_v52  ;;  %v8937_v63 = vrot.slane %v8869_v31, 1 }
 0x97e   :  { %8804 = vst [vmem:[#allocation2 + $0x120] sm:$0xff] %v19239_v36  ;;  %v8026_v59 = vpop.f32.mrb[184].mxu0  ;;  %v8940_v21 = vrot.slane %v19239_v36, 1 }
 0x97f   :  { %v8724_v46 = vrot.slane %v8644_v51, 7  ;;  %v8613_v2 = vadd.f32 %v19037_v6, %v8574_v48  ;;  %v8027_v17 = vadd.f32 %v8026_v59, %v18976_v43  ;;  %v8028_v55 = vpop.f32.mrb[185].mxu0  ;;  %v8938_v28 = vsel %vm699_vm5, %v8935_v4, %v8937_v63 }
 0x980   :  { %14000 = vmatmul.mubr.f32.gmra.mrb[222].mxu0 %v8938_v28  ;;  %v8870_v57 = vld [vmem:[#allocation2 + $0x110] sm:$0xfe] }
 0x981   :  { %v19248_v50 = vsel %vm234_vm2, %v8722_v33, %v8724_v46  ;;  %v8645_v20 = vmax.f32 %v8613_v2, 0.0  ;;  %v8575_v16 = vadd.f32 %v18978_v19, %v8027_v17  ;;  %v8939_v56 = vrot.slane %v8870_v57, 1  ;;  %v20684_v17 = vld [vmem:[#allocation19_spill] sm:$0xff] }
 0x982   :  { %8805 = vst [vmem:[#allocation2 + $0x130] sm:$0xff] %v19248_v50  ;;  %v8031_v8 = vpop.f32.mrb[186].mxu0  ;;  %v8942_v49 = vrot.slane %v19248_v50, 1 }
 0x983   :  { %v8726_v43 = vrot.slane %v8645_v20, 7  ;;  %v8614_v35 = vadd.f32 %v19037_v6, %v8575_v16  ;;  %v8032_v58 = vadd.f32 %v8031_v8, %v18980_v37  ;;  %v8033_v25 = vpop.f32.mrb[187].mxu0  ;;  %v8941_v24 = vsel %vm699_vm5, %v8939_v56, %v8940_v21  ;;  %v20685_v20 = vld [vmem:[#allocation20_spill] sm:$0xff] }
 0x984   :  { %14002 = vmatprep.mubr.f32.mxu0 %v8941_v24  ;;  %v8943_v27 = vsel %vm699_vm5, %v8940_v21, %v8942_v49 }
 0x985   :  { %v19258_v10 = vsel %vm234_vm2, %v8724_v46, %v8726_v43  ;;  %v8646_v19 = vmax.f32 %v8614_v35, 0.0  ;;  %v8576_v26 = vadd.f32 %v18982_v12, %v8032_v58  ;;  %14003 = vmatmul.mubr.f32.gmra.mrb[224].mxu0 %v8943_v27 }
 0x986   :  { %8806 = vst [vmem:[#allocation2 + $0x140] sm:$0xff] %v19258_v10  ;;  %v8036_v4 = vpop.f32.mrb[188].mxu0  ;;  %v8944_v34 = vrot.slane %v19258_v10, 1 }
 0x987   :  { %v8728_v7 = vrot.slane %v8646_v19, 7  ;;  %v8615_v37 = vadd.f32 %v19037_v6, %v8576_v26  ;;  %v8037_v60 = vadd.f32 %v8036_v4, %v18984_v53  ;;  %v8038_v1 = vpop.f32.mrb[189].mxu0  ;;  %v20687_v19 = vld [vmem:[#allocation22_spill] sm:$0xff] }
 0x988   :  { %v8945_v39 = vsel %vm699_vm5, %v8942_v49, %v8944_v34 }
 0x989   :  { %v19267_v3 = vsel %vm234_vm2, %v8726_v43, %v8728_v7  ;;  %v8647_v41 = vmax.f32 %v8615_v37, 0.0  ;;  %v8577_v12 = vadd.f32 %v18986_v11, %v8037_v60  ;;  %14005 = vmatprep.mubr.f32.mxu0 %v8945_v39  ;;  %v20686_v43 = vld [vmem:[#allocation21_spill] sm:$0xff]  ;;  %v20688_v60 = vld [vmem:[#allocation23_spill] sm:$0xff] }
 0x98a   :  { %8807 = vst [vmem:[#allocation2 + $0x150] sm:$0xff] %v19267_v3  ;;  %v8041_v29 = vpop.f32.mrb[190].mxu0  ;;  %v8946_v33 = vrot.slane %v19267_v3, 1 }
 0x98b   :  { %v8730_v13 = vrot.slane %v8647_v41, 7  ;;  %v8616_v52 = vadd.f32 %v19037_v6, %v8577_v12  ;;  %v8042_v53 = vadd.f32 %v8041_v29, %v18988_v9  ;;  %v8043_v61 = vpop.f32.mrb[191].mxu0 }
 0x98c   :  { %v8947_v31 = vsel %vm699_vm5, %v8944_v34, %v8946_v33 }
 0x98d   :  { %v19276_v51 = vsel %vm234_vm2, %v8728_v7, %v8730_v13  ;;  %v8648_v48 = vmax.f32 %v8616_v52, 0.0  ;;  %v8578_v11 = vadd.f32 %v18990_v40, %v8042_v53  ;;  %14006 = vmatmul.mubr.f32.gmra.mrb[226].mxu0 %v8947_v31 }
 0x98e   :  { %8808 = vst [vmem:[#allocation2 + $0x160] sm:$0xff] %v19276_v51  ;;  %v8046_v63 = vpop.f32.mrb[192].mxu0  ;;  %v8948_v59 = vrot.slane %v19276_v51, 1 }
 0x98f   :  { %v8732_v46 = vrot.slane %v8648_v48, 7  ;;  %v8617_v2 = vadd.f32 %v19037_v6, %v8578_v11  ;;  %v8047_v9 = vadd.f32 %v8046_v63, %v20684_v17  ;;  %v8048_v55 = vpop.f32.mrb[193].mxu0  ;;  %v20690_v48 = vld [vmem:[#allocation25_spill] sm:$0xff]  ;;  %v20691_v17 = vld [vmem:[#allocation26_spill] sm:$0xff] }
 0x990   :  { %v8949_v28 = vsel %vm699_vm5, %v8946_v33, %v8948_v59  ;;  %v20689_v33 = vld [vmem:[#allocation24_spill] sm:$0xff] }
 0x991   :  { %v19285_v57 = vsel %vm234_vm2, %v8730_v13, %v8732_v46  ;;  %v8649_v21 = vmax.f32 %v8617_v2, 0.0  ;;  %v8579_v40 = vadd.f32 %v20685_v20, %v8047_v9  ;;  %14008 = vmatprep.mubr.f32.mxu0 %v8949_v28 }
 0x992   :  { %8809 = vst [vmem:[#allocation2 + $0x170] sm:$0xff] %v19285_v57  ;;  %v8051_v16 = vpop.f32.mrb[194].mxu0  ;;  %v8950_v56 = vrot.slane %v19285_v57, 1 }
 0x993   :  { %v8734_v8 = vrot.slane %v8649_v21, 7  ;;  %v8618_v49 = vadd.f32 %v19037_v6, %v8579_v40  ;;  %v8052_v35 = vadd.f32 %v8051_v16, %v20686_v43  ;;  %v8053_v58 = vpop.f32.mrb[195].mxu0  ;;  %v20692_v40 = vld [vmem:[#allocation27_spill] sm:$0xff] }
 0x994   :  { %v8951_v25 = vsel %vm699_vm5, %v8948_v59, %v8950_v56 }
 0x995   :  { %v19294_v24 = vsel %vm234_vm2, %v8732_v46, %v8734_v8  ;;  %v8650_v27 = vmax.f32 %v8618_v49, 0.0  ;;  %v8580_v26 = vadd.f32 %v20687_v19, %v8052_v35  ;;  %14009 = vmatmul.mubr.f32.gmra.mrb[228].mxu0 %v8951_v25  ;;  %v20693_v35 = vld [vmem:[#allocation28_spill] sm:$0xff] }
 0x996   :  { %8810 = vst [vmem:[#allocation2 + $0x180] sm:$0xff] %v19294_v24  ;;  %v8056_v4 = vpop.f32.mrb[196].mxu0  ;;  %v8952_v34 = vrot.slane %v19294_v24, 1 }
 0x997   :  { %v8736_v7 = vrot.slane %v8650_v27, 7  ;;  %v8619_v37 = vadd.f32 %v19037_v6, %v8580_v26  ;;  %v8057_v1 = vadd.f32 %v8056_v4, %v20688_v60  ;;  %v8058_v39 = vpop.f32.mrb[197].mxu0  ;;  %v20694_v4 = vld [vmem:[#allocation29_spill] sm:$0xff] }
 0x998   :  { %v8953_v41 = vsel %vm699_vm5, %v8950_v56, %v8952_v34  ;;  %v20695_v39 = vld [vmem:[#allocation30_spill] sm:$0xff] }
 0x999   :  { %v19303_v12 = vsel %vm234_vm2, %v8734_v8, %v8736_v7  ;;  %v8651_v29 = vmax.f32 %v8619_v37, 0.0  ;;  %v8581_v13 = vadd.f32 %v20689_v33, %v8057_v1  ;;  %14011 = vmatprep.mubr.f32.mxu0 %v8953_v41 }
 0x99a   :  { %8811 = vst [vmem:[#allocation2 + $0x190] sm:$0xff] %v19303_v12  ;;  %v8061_v52 = vpop.f32.mrb[198].mxu0  ;;  %v8954_v53 = vrot.slane %v19303_v12, 1 }
 0x99b   :  { %v8738_v61 = vrot.slane %v8651_v29, 7  ;;  %v8620_v31 = vadd.f32 %v19037_v6, %v8581_v13  ;;  %v8062_v11 = vadd.f32 %v8061_v52, %v20690_v48  ;;  %v8063_v63 = vpop.f32.mrb[199].mxu0 }
 0x99c   :  { %v8955_v59 = vsel %vm699_vm5, %v8952_v34, %v8954_v53 }
 0x99d   :  { %v19312_v46 = vsel %vm234_vm2, %v8736_v7, %v8738_v61  ;;  %v8652_v2 = vmax.f32 %v8620_v31, 0.0  ;;  %v8582_v9 = vadd.f32 %v20691_v17, %v8062_v11  ;;  %14012 = vmatmul.mubr.f32.gmra.mrb[230].mxu0 %v8955_v59  ;;  %v20697_v59 = vld [vmem:[#allocation32_spill] sm:$0xff] }
 0x99e   :  { %8812 = vst [vmem:[#allocation2 + $0x1a0] sm:$0xff] %v19312_v46  ;;  %v8066_v55 = vpop.f32.mrb[200].mxu0  ;;  %v8956_v28 = vrot.slane %v19312_v46, 1 }
 0x99f   :  { %v8740_v21 = vrot.slane %v8652_v2, 7  ;;  %v8621_v20 = vadd.f32 %v19037_v6, %v8582_v9  ;;  %v8067_v16 = vadd.f32 %v8066_v55, %v20692_v40  ;;  %v8068_v56 = vpop.f32.mrb[201].mxu0 }
 0x9a0   :  { %v8957_v8 = vsel %vm699_vm5, %v8954_v53, %v8956_v28  ;;  %v20696_v53 = vld [vmem:[#allocation31_spill] sm:$0xff] }
 0x9a1   :  { %v19321_v49 = vsel %vm234_vm2, %v8738_v61, %v8740_v21  ;;  %v8653_v43 = vmax.f32 %v8621_v20, 0.0  ;;  %v8583_v58 = vadd.f32 %v20693_v35, %v8067_v16  ;;  %14014 = vmatprep.mubr.f32.mxu0 %v8957_v8 }
 0x9a2   :  { %8813 = vst [vmem:[#allocation2 + $0x1b0] sm:$0xff] %v19321_v49  ;;  %v8071_v25 = vpop.f32.mrb[202].mxu0  ;;  %v8958_v27 = vrot.slane %v19321_v49, 1 }
 0x9a3   :  { %v8742_v19 = vrot.slane %v8653_v43, 7  ;;  %v8622_v26 = vadd.f32 %v19037_v6, %v8583_v58  ;;  %v8072_v34 = vadd.f32 %v8071_v25, %v20694_v4  ;;  %v8073_v7 = vpop.f32.mrb[203].mxu0  ;;  %v20699_v43 = vld [vmem:[#allocation34_spill] sm:$0xff] }
 0x9a4   :  { %v8959_v37 = vsel %vm699_vm5, %v8956_v28, %v8958_v27 }
 0x9a5   :  { %v19330_v60 = vsel %vm234_vm2, %v8740_v21, %v8742_v19  ;;  %v8654_v1 = vmax.f32 %v8622_v26, 0.0  ;;  %v8584_v41 = vadd.f32 %v20695_v39, %v8072_v34  ;;  %14015 = vmatmul.mubr.f32.gmra.mrb[232].mxu0 %v8959_v37  ;;  %v20698_v21 = vld [vmem:[#allocation33_spill] sm:$0xff] }
 0x9a6   :  { %8814 = vst [vmem:[#allocation2 + $0x1c0] sm:$0xff] %v19330_v60  ;;  %v8076_v29 = vpop.f32.mrb[204].mxu0  ;;  %v8960_v33 = vrot.slane %v19330_v60, 1 }
 0x9a7   :  { %v8744_v13 = vrot.slane %v8654_v1, 7  ;;  %v8623_v52 = vadd.f32 %v19037_v6, %v8584_v41  ;;  %v8077_v61 = vadd.f32 %v8076_v29, %v20696_v53  ;;  %v8078_v31 = vpop.f32.mrb[205].mxu0  ;;  %v12705_v53 = vld [vmem:[%s20629_s7 + $0x118] sm:$0xff] }
 0x9a8   :  { %v8961_v48 = vsel %vm699_vm5, %v8958_v27, %v8960_v33  ;;  %v12720_v31 = vld [vmem:[%s20630_s8 + $0x48] sm:$0xff] }
 0x9a9   :  { %v19339_v11 = vsel %vm234_vm2, %v8742_v19, %v8744_v13  ;;  %v8655_v63 = vmax.f32 %v8623_v52, 0.0  ;;  %v8585_v2 = vadd.f32 %v20697_v59, %v8077_v61  ;;  %14017 = vmatprep.mubr.f32.mxu0 %v8961_v48  ;;  %v12704_v52 = vld [vmem:[%s20629_s7 + $0x110] sm:$0xff]  ;;  %v12719_v61 = vld [vmem:[%s20630_s8 + $0x40] sm:$0xff]  ;;  %v12722_v59 = vld [vmem:[%s20630_s8 + $0x58] sm:$0xff] }
 0x9aa   :  { %8815 = vst [vmem:[#allocation2 + $0x1d0] sm:$0xff] %v19339_v11  ;;  %v8081_v17 = vpop.f32.mrb[206].mxu0  ;;  %v8962_v9 = vrot.slane %v19339_v11, 1  ;;  %v12721_v48 = vld [vmem:[%s20630_s8 + $0x50] sm:$0xff] }
 0x9ab   :  { %v8746_v55 = vrot.slane %v8655_v63, 7  ;;  %v8624_v28 = vadd.f32 %v19037_v6, %v8585_v2  ;;  %v8082_v20 = vadd.f32 %v8081_v17, %v20698_v21  ;;  %v8083_v40 = vpop.f32.mrb[207].mxu0  ;;  %v14798_v63 = vpack.c.bf16 %v12720_v31, %v12719_v61  ;;  %v12706_v17 = vld [vmem:[%s20629_s7 + $0x120] sm:$0xff]  ;;  %v12724_v21 = vld [vmem:[%s20630_s8 + $0x68] sm:$0xff] }
 0x9ac   :  { %v8963_v16 = vsel %vm699_vm5, %v8960_v33, %v8962_v9  ;;  %v14770_v2 = vpack.c.bf16 %v12705_v53, %v12704_v52  ;;  %v12708_v40 = vld [vmem:[%s20629_s7 + $0x130] sm:$0xff]  ;;  %v9471_v52 = vld [vmem:[#allocation2] sm:$0xfc]  ;;  %v9480_v61 = vrot.slane %v19049_v47, 2  ;;  %v9482_v31 = vrot.slane %v19063_v54, 2 }
 0x9ad   :  { %v19348_v56 = vsel %vm234_vm2, %v8744_v13, %v8746_v55  ;;  %v8656_v8 = vmax.f32 %v8624_v28, 0.0  ;;  %v8586_v35 = vadd.f32 %v20699_v43, %v8082_v20  ;;  %14018 = vmatmul.mubr.f32.gmra.mrb[234].mxu0 %v8963_v16  ;;  %v8820_v13 = vld [vmem:[#allocation2] sm:$0xff]  ;;  %14799 = vmatprep.subr.bf16.mxu1 %v14798_v63  ;;  %v12725_v43 = vld [vmem:[%s20630_s8 + $0x70] sm:$0xff]  ;;  %v9479_v53 = vrot.slane %v9471_v52, 2 }
 0x9ae   :  { %8816 = vst [vmem:[#allocation2 + $0x1e0] sm:$0xff] %v19348_v56  ;;  %v8964_v58 = vrot.slane %v19348_v56, 1  ;;  %v12723_v28 = vld [vmem:[%s20630_s8 + $0x60] sm:$0xff]  ;;  %14801 = vmatpush3.bf16.msra.mxu1 %v14798_v63  ;;  %v9484_v63 = vrot.slane %v19079_v42, 2 }
 0x9af   :  { %v8748_v25 = vrot.slane %v8656_v8, 7  ;;  %v8625_v27 = vadd.f32 %v19037_v6, %v8586_v35  ;;  %v14806_v16 = vpack.c.bf16 %v12724_v21, %v12723_v28  ;;  %v12709_v8 = vld [vmem:[%s20629_s7 + $0x138] sm:$0xff] }
 0x9b0   :  { %v8965_v19 = vsel %vm699_vm5, %v8962_v9, %v8964_v58  ;;  %v14802_v9 = vpack.c.bf16 %v12722_v59, %v12721_v48  ;;  %v14778_v35 = vpack.c.bf16 %v12709_v8, %v12708_v40  ;;  %v9481_v48 = vsel %vm974_vm6, %v9479_v53, %v9480_v61 }
 0x9b1   :  { %v19356_v26 = vsel %vm234_vm2, %v8746_v55, %v8748_v25  ;;  %v8657_v4 = vmax.f32 %v8625_v27, 0.0  ;;  %14020 = vmatprep.mubr.f32.mxu0 %v8965_v19  ;;  %v12707_v55 = vld [vmem:[%s20629_s7 + $0x128] sm:$0xff]  ;;  %v9483_v59 = vsel %vm974_vm6, %v9480_v61, %v9482_v31 }
 0x9b2   :  { %8817 = vst [vmem:[#allocation2 + $0x1f0] sm:$0xff] %v19356_v26  ;;  %v8966_v34 = vrot.slane %v19356_v26, 1  ;;  %v14774_v20 = vpack.c.bf16 %v12707_v55, %v12706_v17  ;;  %14803 = vmatprep.subr.bf16.mxu1 %v14802_v9  ;;  %v12711_v27 = vld [vmem:[%s20629_s7 + $0x148] sm:$0xff]  ;;  %v9485_v17 = vsel %vm974_vm6, %v9482_v31, %v9484_v63 }
 0x9b3   :  { %v8750_v7 = vrot.slane %v8657_v4, 7  ;;  %14805 = vmatpush3.bf16.msra.mxu1 %v14802_v9  ;;  %v12712_v4 = vld [vmem:[%s20629_s7 + $0x150] sm:$0xff]  ;;  %v9488_v9 = vrot.slane %v19110_v32, 2 }
 0x9b4   :  { %v8967_v37 = vsel %vm699_vm5, %v8964_v58, %v8966_v34  ;;  %14807 = vmatprep.subr.bf16.mxu1 %v14806_v16 }
 0x9b5   :  { %v19362_v1 = vsel %vm234_vm2, %v8748_v25, %v8750_v7  ;;  %8819 = vst [vmem:[#allocation2 + $0x210] sm:$0x1] %v8750_v7  ;;  %14021 = vmatmul.mubr.f32.gmra.mrb[236].mxu0 %v8967_v37  ;;  %v12710_v25 = vld [vmem:[%s20629_s7 + $0x140] sm:$0xff] }
 0x9b6   :  { %8818 = vst [vmem:[#allocation2 + $0x200] sm:$0xff] %v19362_v1  ;;  %v8968_v6 = vrot.slane %v19362_v1, 1  ;;  %v14782_v19 = vpack.c.bf16 %v12711_v27, %v12710_v25  ;;  %v12714_v37 = vld [vmem:[%s20629_s7 + $0x160] sm:$0xff] }
 0x9b7   :  { %14809 = vmatpush3.bf16.msra.mxu1 %v14806_v16 }
 0x9b8   :  { %v8969_v39 = vsel %vm699_vm5, %v8966_v34, %v8968_v6  ;;  %v12713_v34 = vld [vmem:[%s20629_s7 + $0x158] sm:$0xff] }
 0x9b9   :  { %14023 = vmatprep.mubr.f32.mxu0 %v8969_v39  ;;  %v14786_v7 = vpack.c.bf16 %v12713_v34, %v12712_v4  ;;  %v9515_v4 = vrot.slane %v19248_v50, 2  ;;  %v9517_v34 = vrot.slane %v19258_v10, 2 }
 0x9bc   :  { %v8871_v41 = vld [vmem:[#allocation2 + $0x210] sm:$0x1] }
 0x9bd   :  { %v8970_v29 = vrot.slane %v8871_v41, 1  ;;  %v12716_v41 = vld [vmem:[%s20629_s7 + $0x170] sm:$0xff] }
 0x9bf   :  { %v8971_v33 = vsel %vm699_vm5, %v8968_v6, %v8970_v29  ;;  %v12715_v6 = vld [vmem:[%s20629_s7 + $0x168] sm:$0xff]  ;;  %v12717_v29 = vld [vmem:[%s20629_s7 + $0x178] sm:$0xff] }
 0x9c0   :  { %14024 = vmatmul.mubr.f32.gmra.mrb[238].mxu0 %v8971_v33  ;;  %v14790_v39 = vpack.c.bf16 %v12715_v6, %v12714_v37  ;;  %v14794_v33 = vpack.c.bf16 %v12717_v29, %v12716_v41  ;;  %v9519_v37 = vrot.slane %v19267_v3, 2  ;;  %v9518_v6 = vsel %vm974_vm6, %v9515_v4, %v9517_v34 }
 0x9c1   :  { %14058 = vmatprep.mubr.f32.mxu0 %v8820_v13  ;;  %v8836_v13 = vld [vmem:[#allocation2 + $0x110] sm:$0xff] }
 0x9c4   :  { %14059 = vmatmul.mubr.f32.vlgmr.msra.gmra.mrb[208].mxu0 %v19049_v47 }
 0x9c5   :  { %14769 = vmatpush3.bf16.msra.mxu0 %v19177_v0  ;;  %14061 = vmatprep.mubr.f32.mxu0 %v19063_v54  ;;  %v12726_v0 = vld [vmem:[%s20630_s8 + $0x78] sm:$0xff]  ;;  %v9490_v54 = vrot.slane %v19125_v5, 2 }
 0x9c6   :  { %14771 = vmatprep.subr.bf16.mxu0 %v14770_v2  ;;  %v14810_v58 = vpack.c.bf16 %v12726_v0, %v12725_v43 }
 0x9c7   :  { %v9491_v28 = vsel %vm974_vm6, %v9488_v9, %v9490_v54 }
 0x9c8   :  { %14062 = vmatmul.mubr.f32.gmra.mrb[210].mxu0 %v19079_v42  ;;  %14811 = vmatprep.subr.bf16.mxu1 %v14810_v58  ;;  %v9492_v42 = vrot.slane %v19140_v30, 2 }
 0x9c9   :  { %14064 = vmatprep.mubr.f32.mxu0 %v19095_v23  ;;  %14773 = vmatpush3.bf16.msra.mxu0 %v14770_v2  ;;  %v9486_v2 = vrot.slane %v19095_v23, 2  ;;  %v9494_v23 = vrot.slane %v19155_v62, 2 }
 0x9ca   :  { %14775 = vmatprep.subr.bf16.mxu0 %v14774_v20  ;;  %14813 = vmatpush3.bf16.msra.mxu1 %v14810_v58  ;;  %v9493_v21 = vsel %vm974_vm6, %v9490_v54, %v9492_v42  ;;  %v9473_v58 = vld [vmem:[#allocation2 + $0x110] sm:$0xfc] }
 0x9cb   :  { %v9487_v47 = vsel %vm974_vm6, %v9484_v63, %v9486_v2  ;;  %v9489_v55 = vsel %vm974_vm6, %v9486_v2, %v9488_v9  ;;  %v9474_v63 = vld [vmem:[#allocation2 + $0x210] sm:$0x3]  ;;  %v19539_v9 = vld [vmem:[%s20638_s16] ss:$0 sm:$0xff] }
 0x9cc   :  { %14065 = vmatmul.mubr.f32.gmra.mrb[212].mxu0 %v19110_v32  ;;  %v9496_v32 = vrot.slane %v19170_v22, 2 }
 0x9cd   :  { %14067 = vmatprep.mubr.f32.mxu0 %v19125_v5  ;;  %14777 = vmatpush3.bf16.msra.mxu0 %v14774_v20  ;;  %v9495_v20 = vsel %vm974_vm6, %v9492_v42, %v9494_v23  ;;  %v9498_v5 = vrot.slane %v19181_v15, 2 }
 0x9ce   :  { %14779 = vmatprep.subr.bf16.mxu0 %v14778_v35  ;;  %v9497_v40 = vsel %vm974_vm6, %v9494_v23, %v9496_v32 }
 0x9cf   :  { %v9499_v16 = vsel %vm974_vm6, %v9496_v32, %v9498_v5 }
 0x9d0   :  { %14068 = vmatmul.mubr.f32.gmra.mrb[214].mxu0 %v19140_v30  ;;  %v9500_v30 = vrot.slane %v19191_v18, 2 }
 0x9d1   :  { %14070 = vmatprep.mubr.f32.mxu0 %v19155_v62  ;;  %14781 = vmatpush3.bf16.msra.mxu0 %v14778_v35  ;;  %v9502_v62 = vrot.slane %v19200_v44, 2  ;;  %v9472_v35 = vld [vmem:[#allocation2 + $0x100] sm:$0x3] }
 0x9d2   :  { %14783 = vmatprep.subr.bf16.mxu0 %v14782_v19  ;;  %v9501_v8 = vsel %vm974_vm6, %v9498_v5, %v9500_v30  ;;  %v9510_v25 = vrot.slane %v9472_v35, 2 }
 0x9d3   :  { %v9503_v43 = vsel %vm974_vm6, %v9500_v30, %v9502_v62 }
 0x9d4   :  { %14071 = vmatmul.mubr.f32.gmra.mrb[216].mxu0 %v19170_v22  ;;  %v9504_v22 = vrot.slane %v19209_v14, 2 }
 0x9d5   :  { %14073 = vmatprep.mubr.f32.mxu0 %v19181_v15  ;;  %14785 = vmatpush3.bf16.msra.mxu0 %v14782_v19  ;;  %v9506_v15 = vrot.slane %v19218_v45, 2  ;;  %v9513_v19 = vrot.slane %v19239_v36, 2 }
 0x9d6   :  { %14787 = vmatprep.subr.bf16.mxu0 %v14786_v7  ;;  %v9505_v0 = vsel %vm974_vm6, %v9502_v62, %v9504_v22 }
 0x9d8   :  { %14074 = vmatmul.mubr.f32.gmra.mrb[218].mxu0 %v19191_v18  ;;  %v9508_v18 = vrot.slane %v19227_v38, 2 }
 0x9d9   :  { %14076 = vmatprep.mubr.f32.mxu0 %v19200_v44  ;;  %14789 = vmatpush3.bf16.msra.mxu0 %v14786_v7  ;;  %v9507_v44 = vsel %vm974_vm6, %v9504_v22, %v9506_v15  ;;  %v9516_v7 = vsel %vm974_vm6, %v9513_v19, %v9515_v4 }
 0x9da   :  { %14791 = vmatprep.subr.bf16.mxu0 %v14790_v39  ;;  %v9509_v27 = vsel %vm974_vm6, %v9506_v15, %v9508_v18 }
 0x9dc   :  { %14077 = vmatmul.mubr.f32.gmra.mrb[220].mxu0 %v19209_v14  ;;  %v9512_v14 = vrot.slane %v9473_v58, 2 }
 0x9dd   :  { %14079 = vmatprep.mubr.f32.mxu0 %v19218_v45  ;;  %14793 = vmatpush3.bf16.msra.mxu0 %v14790_v39  ;;  %v9511_v45 = vsel %vm974_vm6, %v9508_v18, %v9510_v25  ;;  %v9521_v39 = vrot.slane %v19276_v51, 2 }
 0x9de   :  { %14795 = vmatprep.subr.bf16.mxu0 %v14794_v33 }
 0x9df   :  { %v9522_v41 = vsel %vm974_vm6, %v9519_v37, %v9521_v39 }
 0x9e0   :  { %14080 = vmatmul.mubr.f32.gmra.mrb[222].mxu0 %v19227_v38  ;;  %v9514_v38 = vsel %vm974_vm6, %v9512_v14, %v9513_v19 }
 0x9e1   :  { %14082 = vmatprep.mubr.f32.mxu0 %v8836_v13  ;;  %14797 = vmatpush3.bf16.msra.mxu0 %v14794_v33 }
 0x9e4   :  { %14083 = vmatmul.mubr.f32.gmra.mrb[224].mxu0 %v19239_v36  ;;  %v9520_v36 = vsel %vm974_vm6, %v9517_v34, %v9519_v37 }
 0x9e5   :  { %14085 = vmatprep.mubr.f32.mxu0 %v19248_v50  ;;  %v9523_v50 = vrot.slane %v19285_v57, 2 }
 0x9e7   :  { %v9524_v29 = vsel %vm974_vm6, %v9521_v39, %v9523_v50 }
 0x9e8   :  { %14086 = vmatmul.mubr.f32.gmra.mrb[226].mxu0 %v19258_v10  ;;  %v9525_v10 = vrot.slane %v19294_v24, 2 }
 0x9e9   :  { %14088 = vmatprep.mubr.f32.mxu0 %v19267_v3  ;;  %v9527_v3 = vrot.slane %v19303_v12, 2 }
 0x9ea   :  { %v9526_v33 = vsel %vm974_vm6, %v9523_v50, %v9525_v10 }
 0x9eb   :  { %v9528_v13 = vsel %vm974_vm6, %v9525_v10, %v9527_v3 }
 0x9ec   :  { %14089 = vmatmul.mubr.f32.gmra.mrb[228].mxu0 %v19276_v51  ;;  %v9529_v51 = vrot.slane %v19312_v46, 2 }
 0x9ed   :  { %14091 = vmatprep.mubr.f32.mxu0 %v19285_v57  ;;  %v9531_v57 = vrot.slane %v19321_v49, 2 }
 0x9ee   :  { %v9530_v52 = vsel %vm974_vm6, %v9527_v3, %v9529_v51 }
 0x9ef   :  { %v9532_v53 = vsel %vm974_vm6, %v9529_v51, %v9531_v57 }
 0x9f0   :  { %14092 = vmatmul.mubr.f32.gmra.mrb[230].mxu0 %v19294_v24  ;;  %v9533_v24 = vrot.slane %v19330_v60, 2 }
 0x9f1   :  { %14094 = vmatprep.mubr.f32.mxu0 %v19303_v12  ;;  %v9535_v12 = vrot.slane %v19339_v11, 2 }
 0x9f2   :  { %v9534_v61 = vsel %vm974_vm6, %v9531_v57, %v9533_v24 }
 0x9f3   :  { %v9536_v31 = vsel %vm974_vm6, %v9533_v24, %v9535_v12 }
 0x9f4   :  { %14095 = vmatmul.mubr.f32.gmra.mrb[232].mxu0 %v19312_v46  ;;  %v9537_v46 = vrot.slane %v19348_v56, 2 }
 0x9f5   :  { %14097 = vmatprep.mubr.f32.mxu0 %v19321_v49  ;;  %v9539_v49 = vrot.slane %v19356_v26, 2 }
 0x9f8   :  { %14098 = vmatmul.mubr.f32.gmra.mrb[234].mxu0 %v19330_v60  ;;  %v9541_v60 = vrot.slane %v19362_v1, 2 }
 0x9f9   :  { %14100 = vmatprep.mubr.f32.mxu0 %v19339_v11  ;;  %v9543_v11 = vrot.slane %v9474_v63, 2 }
 0x9fa   :  { %v9542_v2 = vsel %vm974_vm6, %v9539_v49, %v9541_v60 }
 0x9fc   :  { %14101 = vmatmul.mubr.f32.gmra.mrb[236].mxu0 %v19348_v56  ;;  %v9544_v56 = vsel %vm974_vm6, %v9541_v60, %v9543_v11 }
 0x9fd   :  { %14103 = vmatprep.mubr.f32.mxu0 %v19356_v26  ;;  %v10116_v26 = vld [vmem:[%s20630_s8] sm:$0xff] }
 0xa00   :  { %14104 = vmatmul.mubr.f32.gmra.mrb[238].mxu0 %v19362_v1  ;;  %v10117_v1 = vld [vmem:[%s20630_s8 + $0x8] sm:$0xff] }
 0xa01   :  { %14138 = vmatprep.mubr.f32.mxu0 %v9481_v48  ;;  %v9538_v48 = vsel %vm974_vm6, %v9535_v12, %v9537_v46  ;;  %v10119_v12 = vld [vmem:[%s20630_s8 + $0x18] sm:$0xff] }
 0xa04   :  { %14139 = vmatmul.mubr.f32.vlgmr.msra.gmra.mrb[208].mxu0 %v9483_v59  ;;  %v9540_v59 = vsel %vm974_vm6, %v9537_v46, %v9539_v49 }
 0xa05   :  { %14141 = vmatprep.mubr.f32.mxu0 %v9485_v17  ;;  %v19533_v17 = vpack.c.bf16 %v10117_v1, %v10116_v26 }
 0xa07   :  { %14815 = vmatprep.subr.bf16.mxu1 %v19533_v17 }
 0xa08   :  { %14142 = vmatmul.mubr.f32.gmra.mrb[210].mxu0 %v9487_v47 }
 0xa09   :  { %14144 = vmatprep.mubr.f32.mxu0 %v9489_v55 }
 0xa0c   :  { %14145 = vmatmul.mubr.f32.gmra.mrb[212].mxu0 %v9491_v28 }
 0xa0d   :  { %14147 = vmatprep.mubr.f32.mxu0 %v9493_v21 }
 0xa10   :  { %14148 = vmatmul.mubr.f32.gmra.mrb[214].mxu0 %v9495_v20 }
 0xa11   :  { %14150 = vmatprep.mubr.f32.mxu0 %v9497_v40 }
 0xa14   :  { %14151 = vmatmul.mubr.f32.gmra.mrb[216].mxu0 %v9499_v16 }
 0xa15   :  { %14153 = vmatprep.mubr.f32.mxu0 %v9501_v8 }
 0xa18   :  { %14154 = vmatmul.mubr.f32.gmra.mrb[218].mxu0 %v9503_v43 }
 0xa19   :  { %14156 = vmatprep.mubr.f32.mxu0 %v9505_v0 }
 0xa1c   :  { %14157 = vmatmul.mubr.f32.gmra.mrb[220].mxu0 %v9507_v44 }
 0xa1d   :  { %14159 = vmatprep.mubr.f32.mxu0 %v9509_v27 }
 0xa20   :  { %14160 = vmatmul.mubr.f32.gmra.mrb[222].mxu0 %v9511_v45 }
 0xa21   :  { %14162 = vmatprep.mubr.f32.mxu0 %v9514_v38 }
 0xa24   :  { %14163 = vmatmul.mubr.f32.gmra.mrb[224].mxu0 %v9516_v7 }
 0xa25   :  { %14165 = vmatprep.mubr.f32.mxu0 %v9518_v6 }
 0xa28   :  { %14166 = vmatmul.mubr.f32.gmra.mrb[226].mxu0 %v9520_v36 }
 0xa29   :  { %14168 = vmatprep.mubr.f32.mxu0 %v9522_v41 }
 0xa2c   :  { %14169 = vmatmul.mubr.f32.gmra.mrb[228].mxu0 %v9524_v29 }
 0xa2d   :  { %14171 = vmatprep.mubr.f32.mxu0 %v9526_v33 }
 0xa30   :  { %14172 = vmatmul.mubr.f32.gmra.mrb[230].mxu0 %v9528_v13 }
 0xa31   :  { %14174 = vmatprep.mubr.f32.mxu0 %v9530_v52 }
 0xa34   :  { %14175 = vmatmul.mubr.f32.gmra.mrb[232].mxu0 %v9532_v53  ;;  %v10118_v53 = vld [vmem:[%s20630_s8 + $0x10] sm:$0xff] }
 0xa35   :  { %14177 = vmatprep.mubr.f32.mxu0 %v9534_v61 }
 0xa38   :  { %14178 = vmatmul.mubr.f32.gmra.mrb[234].mxu0 %v9536_v31 }
 0xa39   :  { %14180 = vmatprep.mubr.f32.mxu0 %v9538_v48 }
 0xa3c   :  { %14181 = vmatmul.mubr.f32.gmra.mrb[236].mxu0 %v9540_v59 }
 0xa3d   :  { %14183 = vmatprep.mubr.f32.mxu0 %v9542_v2 }
 0xa40   :  { %14184 = vmatmul.mubr.f32.gmra.mrb[238].mxu0 %v9544_v56 }
 0xad7   :  { %v14140_v47 = vpop.f32.mrb[208].mxu0 }
 0xad8   :  { %v9859_v54 = vadd.f32 %v14140_v47, %v19539_v9  ;;  %v9660_v55 = vpop.f32.mrb[209].mxu0  ;;  %v14818_v47 = vpack.c.bf16 %v10119_v12, %v10118_v53 }
 0xad9   :  { %v9858_v42 = vadd.f32 %v19539_v9, %v9660_v55 }
 0xada   :  { %v9891_v28 = vmax.f32 %v9859_v54, 0.0 }
 0xadb   :  { %v9890_v23 = vmax.f32 %v9858_v42, 0.0  ;;  %v14143_v21 = vpop.f32.mrb[210].mxu0 }
 0xadc   :  { %v9955_v32 = vrot.slane %v9891_v28, 7  ;;  %v9861_v20 = vadd.f32 %v14143_v21, %v19539_v9  ;;  %v9670_v5 = vpop.f32.mrb[211].mxu0  ;;  %v10120_v28 = vld [vmem:[%s20630_s8 + $0x20] sm:$0xff] }
 0xadd   :  { %v9954_v40 = vrot.slane %v9890_v23, 7  ;;  %v9860_v30 = vadd.f32 %v19539_v9, %v9670_v5  ;;  %v10121_v23 = vld [vmem:[%s20630_s8 + $0x28] sm:$0xff] }
 0xade   :  { %v9893_v16 = vmax.f32 %v9861_v20, 0.0 }
 0xadf   :  { %v9956_v62 = vsel %vm234_vm2, %v9954_v40, %v9955_v32  ;;  %10050 = vst.msk [vmem:[#allocation3] sm:$0xfe] %vm4156_vm13, %v9954_v40  ;;  %v9892_v8 = vmax.f32 %v9860_v30, 0.0  ;;  %v14146_v22 = vpop.f32.mrb[212].mxu0 }
 0xae0   :  { %10051 = vst.msk [vmem:[#allocation3 + $0x10] sm:$0xff] %vm4158_vm14, %v9956_v62  ;;  %v9959_v43 = vrot.slane %v9893_v16, 7  ;;  %v9863_v15 = vadd.f32 %v14146_v22, %v19539_v9  ;;  %v9680_v0 = vpop.f32.mrb[213].mxu0 }
 0xae1   :  { %v9957_v18 = vrot.slane %v9892_v8, 7  ;;  %v9862_v35 = vadd.f32 %v19539_v9, %v9680_v0 }
 0xae2   :  { %v9895_v58 = vmax.f32 %v9863_v15, 0.0 }
 0xae3   :  { %v9958_v44 = vsel %vm234_vm2, %v9955_v32, %v9957_v18  ;;  %v9960_v25 = vsel %vm234_vm2, %v9957_v18, %v9959_v43  ;;  %v9894_v27 = vmax.f32 %v9862_v35, 0.0  ;;  %v14149_v14 = vpop.f32.mrb[214].mxu0  ;;  %v14822_v18 = vpack.c.bf16 %v10121_v23, %v10120_v28 }
 0xae4   :  { %10052 = vst.msk [vmem:[#allocation3 + $0x20] sm:$0xff] %vm4158_vm14, %v9958_v44  ;;  %10053 = vst.msk [vmem:[#allocation3 + $0x30] sm:$0xff] %vm4158_vm14, %v9960_v25  ;;  %v9963_v19 = vrot.slane %v9895_v58, 7  ;;  %v9865_v45 = vadd.f32 %v14149_v14, %v19539_v9  ;;  %v9690_v4 = vpop.f32.mrb[215].mxu0  ;;  %v10123_v25 = vld [vmem:[%s20630_s8 + $0x38] sm:$0xff] }
 0xae5   :  { %v9961_v38 = vrot.slane %v9894_v27, 7  ;;  %v9864_v34 = vadd.f32 %v19539_v9, %v9690_v4 }
 0xae6   :  { %v9897_v7 = vmax.f32 %v9865_v45, 0.0  ;;  %v10124_v37 = vld [vmem:[#allocation3] sm:$0xfe] }
 0xae7   :  { %v9962_v6 = vsel %vm234_vm2, %v9959_v43, %v9961_v38  ;;  %v9964_v39 = vsel %vm234_vm2, %v9961_v38, %v9963_v19  ;;  %v9896_v36 = vmax.f32 %v9864_v34, 0.0  ;;  %v14152_v50 = vpop.f32.mrb[216].mxu0  ;;  %v19558_v41 = vld [vmem:[#allocation3 + $0x10] sm:$0xff]  ;;  %v10162_v10 = vrot.slane %v10124_v37, 1 }
 0xae8   :  { %10054 = vst.msk [vmem:[#allocation3 + $0x40] sm:$0xff] %vm4158_vm14, %v9962_v6  ;;  %10055 = vst.msk [vmem:[#allocation3 + $0x50] sm:$0xff] %vm4158_vm14, %v9964_v39  ;;  %v9967_v29 = vrot.slane %v9897_v7, 7  ;;  %v9867_v3 = vadd.f32 %v14152_v50, %v19539_v9  ;;  %v9700_v33 = vpop.f32.mrb[217].mxu0  ;;  %v10163_v51 = vrot.slane %v19558_v41, 1 }
 0xae9   :  { %v9965_v13 = vrot.slane %v9896_v36, 7  ;;  %v9866_v57 = vadd.f32 %v19539_v9, %v9700_v33 }
 0xaea   :  { %v9899_v52 = vmax.f32 %v9867_v3, 0.0  ;;  %v10164_v24 = vsel %vm699_vm5, %v10162_v10, %v10163_v51 }
 0xaeb   :  { %v9966_v61 = vsel %vm234_vm2, %v9963_v19, %v9965_v13  ;;  %v9968_v46 = vsel %vm234_vm2, %v9965_v13, %v9967_v29  ;;  %v9898_v31 = vmax.f32 %v9866_v57, 0.0  ;;  %v14155_v49 = vpop.f32.mrb[218].mxu0  ;;  %14202 = vmatprep.mubr.msk.f32.mxu1 %vm4158_vm14, %v10164_v24  ;;  %v19575_v48 = vld [vmem:[#allocation3 + $0x20] sm:$0xff]  ;;  %v19577_v60 = vld [vmem:[#allocation3 + $0x30] sm:$0xff]  ;;  %v12792_v13 = vld [vmem:[%s20630_s8 + $0x88] sm:$0xff] }
 0xaec   :  { %10056 = vst.msk [vmem:[#allocation3 + $0x60] sm:$0xff] %vm4158_vm14, %v9966_v61  ;;  %10057 = vst.msk [vmem:[#allocation3 + $0x70] sm:$0xff] %vm4158_vm14, %v9968_v46  ;;  %v9971_v63 = vrot.slane %v9899_v52, 7  ;;  %v9869_v59 = vadd.f32 %v14155_v49, %v19539_v9  ;;  %v9710_v11 = vpop.f32.mrb[219].mxu0  ;;  %v10165_v2 = vrot.slane %v19575_v48, 1  ;;  %v10167_v56 = vrot.slane %v19577_v60, 1 }
 0xaed   :  { %v9969_v26 = vrot.slane %v9898_v31, 7  ;;  %v9868_v1 = vadd.f32 %v19539_v9, %v9710_v11 }
 0xaee   :  { %v9901_v54 = vmax.f32 %v9869_v59, 0.0  ;;  %v10166_v55 = vsel %vm699_vm5, %v10163_v51, %v10165_v2  ;;  %v10168_v42 = vsel %vm699_vm5, %v10165_v2, %v10167_v56  ;;  %v12791_v51 = vld [vmem:[%s20630_s8 + $0x80] sm:$0xff] }
 0xaef   :  { %v9970_v21 = vsel %vm234_vm2, %v9967_v29, %v9969_v26  ;;  %v9972_v32 = vsel %vm234_vm2, %v9969_v26, %v9971_v63  ;;  %v9900_v20 = vmax.f32 %v9868_v1, 0.0  ;;  %v14158_v5 = vpop.f32.mrb[220].mxu0  ;;  %14203 = vmatmul.mubr.msk.f32.vlgmr.msra.gmra.mrb[160].mxu1 %vm4158_vm14, %v10166_v55  ;;  %v19596_v40 = vld [vmem:[#allocation3 + $0x40] sm:$0xff]  ;;  %v19598_v30 = vld [vmem:[#allocation3 + $0x50] sm:$0xff] }
 0xaf0   :  { %10058 = vst.msk [vmem:[#allocation3 + $0x80] sm:$0xff] %vm4158_vm14, %v9970_v21  ;;  %10059 = vst.msk [vmem:[#allocation3 + $0x90] sm:$0xff] %vm4158_vm14, %v9972_v32  ;;  %v9975_v16 = vrot.slane %v9901_v54, 7  ;;  %v9871_v62 = vadd.f32 %v14158_v5, %v19539_v9  ;;  %14817 = vmatpush3.bf16.msra.mxu1 %v19533_v17  ;;  %v9720_v8 = vpop.f32.mrb[221].mxu0  ;;  %14205 = vmatprep.mubr.msk.f32.mxu1 %vm4158_vm14, %v10168_v42  ;;  %v10169_v22 = vrot.slane %v19596_v40, 1  ;;  %v10171_v43 = vrot.slane %v19598_v30, 1 }
 0xaf1   :  { %v9973_v15 = vrot.slane %v9900_v20, 7  ;;  %v9870_v0 = vadd.f32 %v19539_v9, %v9720_v8  ;;  %14819 = vmatprep.subr.bf16.mxu1 %v14818_v47  ;;  %v10122_v17 = vld [vmem:[%s20630_s8 + $0x30] sm:$0xff] }
 0xaf2   :  { %v9903_v35 = vmax.f32 %v9871_v62, 0.0  ;;  %v10170_v58 = vsel %vm699_vm5, %v10167_v56, %v10169_v22  ;;  %v10172_v44 = vsel %vm699_vm5, %v10169_v22, %v10171_v43  ;;  %v14826_v10 = vpack.c.bf16 %v10123_v25, %v10122_v17 }
 0xaf3   :  { %v9974_v27 = vsel %vm234_vm2, %v9971_v63, %v9973_v15  ;;  %v9976_v14 = vsel %vm234_vm2, %v9973_v15, %v9975_v16  ;;  %v9902_v19 = vmax.f32 %v9870_v0, 0.0  ;;  %v14161_v45 = vpop.f32.mrb[222].mxu0  ;;  %14206 = vmatmul.mubr.msk.f32.gmra.mrb[162].mxu1 %vm4158_vm14, %v10170_v58  ;;  %v19619_v4 = vld [vmem:[#allocation3 + $0x60] sm:$0xff]  ;;  %v19621_v38 = vld [vmem:[#allocation3 + $0x70] sm:$0xff]  ;;  %v19652_v56 = vpack.c.bf16 %v12792_v13, %v12791_v51 }
 0xaf4   :  { %10060 = vst.msk [vmem:[#allocation3 + $0xa0] sm:$0xff] %vm4158_vm14, %v9974_v27  ;;  %10061 = vst.msk [vmem:[#allocation3 + $0xb0] sm:$0xff] %vm4158_vm14, %v9976_v14  ;;  %v9979_v34 = vrot.slane %v9903_v35, 7  ;;  %v9873_v7 = vadd.f32 %v14161_v45, %v19539_v9  ;;  %v9730_v37 = vpop.f32.mrb[223].mxu0  ;;  %14208 = vmatprep.mubr.msk.f32.mxu1 %vm4158_vm14, %v10172_v44  ;;  %v10173_v6 = vrot.slane %v19619_v4, 1  ;;  %v10175_v39 = vrot.slane %v19621_v38, 1  ;;  %14821 = vmatpush3.bf16.msra.mxu1 %v14818_v47 }
 0xaf5   :  { %v9977_v36 = vrot.slane %v9902_v19, 7  ;;  %v9872_v50 = vadd.f32 %v19539_v9, %v9730_v37  ;;  %14823 = vmatprep.subr.bf16.mxu1 %v14822_v18 }
 0xaf6   :  { %v9905_v29 = vmax.f32 %v9873_v7, 0.0  ;;  %v10174_v3 = vsel %vm699_vm5, %v10171_v43, %v10173_v6  ;;  %v10176_v33 = vsel %vm699_vm5, %v10173_v6, %v10175_v39 }
 0xaf7   :  { %v9978_v57 = vsel %vm234_vm2, %v9975_v16, %v9977_v36  ;;  %v9980_v52 = vsel %vm234_vm2, %v9977_v36, %v9979_v34  ;;  %v9904_v24 = vmax.f32 %v9872_v50, 0.0  ;;  %v14164_v53 = vpop.f32.mrb[224].mxu0  ;;  %14209 = vmatmul.mubr.msk.f32.gmra.mrb[164].mxu1 %vm4158_vm14, %v10174_v3  ;;  %v19641_v12 = vld [vmem:[#allocation3 + $0x80] sm:$0xff]  ;;  %v19643_v61 = vld [vmem:[#allocation3 + $0x90] sm:$0xff] }
 0xaf8   :  { %10062 = vst.msk [vmem:[#allocation3 + $0xc0] sm:$0xff] %vm4158_vm14, %v9978_v57  ;;  %10063 = vst.msk [vmem:[#allocation3 + $0xd0] sm:$0xff] %vm4158_vm14, %v9980_v52  ;;  %v9983_v46 = vrot.slane %v9905_v29, 7  ;;  %v9875_v31 = vadd.f32 %v14164_v53, %v19539_v9  ;;  %v9740_v49 = vpop.f32.mrb[225].mxu0  ;;  %14211 = vmatprep.mubr.msk.f32.mxu1 %vm4158_vm14, %v10176_v33  ;;  %v10177_v63 = vrot.slane %v19641_v12, 1  ;;  %v10179_v59 = vrot.slane %v19643_v61, 1  ;;  %14825 = vmatpush3.bf16.msra.mxu1 %v14822_v18 }
 0xaf9   :  { %v9981_v11 = vrot.slane %v9904_v24, 7  ;;  %v9874_v2 = vadd.f32 %v19539_v9, %v9740_v49  ;;  %14827 = vmatprep.subr.bf16.mxu1 %v14826_v10 }
 0xafa   :  { %10066 = vst.msk [vmem:[#allocation3 + $0x100] sm:$0x1] %vm4174_vm15, %v9983_v46  ;;  %v9907_v26 = vmax.f32 %v9875_v31, 0.0  ;;  %v10178_v1 = vsel %vm699_vm5, %v10175_v39, %v10177_v63  ;;  %v10180_v47 = vsel %vm699_vm5, %v10177_v63, %v10179_v59 }
 0xafb   :  { %v9982_v54 = vsel %vm234_vm2, %v9979_v34, %v9981_v11  ;;  %v9984_v55 = vsel %vm234_vm2, %v9981_v11, %v9983_v46  ;;  %v9906_v42 = vmax.f32 %v9874_v2, 0.0  ;;  %v14167_v28 = vpop.f32.mrb[226].mxu0  ;;  %14212 = vmatmul.mubr.msk.f32.gmra.mrb[166].mxu1 %vm4158_vm14, %v10178_v1  ;;  %v19660_v23 = vld [vmem:[#allocation3 + $0xa0] sm:$0xff]  ;;  %v19662_v21 = vld [vmem:[#allocation3 + $0xb0] sm:$0xff] }
 0xafc   :  { %10064 = vst.msk [vmem:[#allocation3 + $0xe0] sm:$0xff] %vm4158_vm14, %v9982_v54  ;;  %10065 = vst.msk [vmem:[#allocation3 + $0xf0] sm:$0xff] %vm4158_vm14, %v9984_v55  ;;  %v9986_v32 = vrot.slane %v9907_v26, 7  ;;  %v9877_v20 = vadd.f32 %v14167_v28, %v19539_v9  ;;  %v9750_v5 = vpop.f32.mrb[227].mxu0  ;;  %14214 = vmatprep.mubr.msk.f32.mxu1 %vm4158_vm14, %v10180_v47  ;;  %v10181_v16 = vrot.slane %v19660_v23, 1  ;;  %v10183_v62 = vrot.slane %v19662_v21, 1  ;;  %14829 = vmatpush3.bf16.msra.mxu1 %v14826_v10 }
 0xafd   :  { %v9985_v8 = vrot.slane %v9906_v42, 7  ;;  %v9876_v22 = vadd.f32 %v19539_v9, %v9750_v5  ;;  %14831 = vmatprep.subr.bf16.mxu1 %v19652_v56 }
 0xafe   :  { %v9909_v43 = vmax.f32 %v9877_v20, 0.0  ;;  %v10182_v15 = vsel %vm699_vm5, %v10179_v59, %v10181_v16  ;;  %v10184_v0 = vsel %vm699_vm5, %v10181_v16, %v10183_v62 }
 0xaff   :  { %v9987_v18 = vsel %vm234_vm2, %v9985_v8, %v9986_v32  ;;  %10067 = vst.msk [vmem:[#allocation3 + $0x110] sm:$0xfe] %vm4156_vm13, %v9985_v8  ;;  %v9908_v35 = vmax.f32 %v9876_v22, 0.0  ;;  %v14170_v58 = vpop.f32.mrb[228].mxu0  ;;  %14215 = vmatmul.mubr.msk.f32.gmra.mrb[168].mxu1 %vm4158_vm14, %v10182_v15  ;;  %v19677_v44 = vld [vmem:[#allocation3 + $0xc0] sm:$0xff]  ;;  %v19679_v17 = vld [vmem:[#allocation3 + $0xd0] sm:$0xff] }
 0xb00   :  { %10068 = vst.msk [vmem:[#allocation3 + $0x120] sm:$0xff] %vm4158_vm14, %v9987_v18  ;;  %v9990_v25 = vrot.slane %v9909_v43, 7  ;;  %v9879_v27 = vadd.f32 %v14170_v58, %v19539_v9  ;;  %v9760_v14 = vpop.f32.mrb[229].mxu0  ;;  %14217 = vmatprep.mubr.msk.f32.mxu1 %vm4158_vm14, %v10184_v0  ;;  %v10185_v19 = vrot.slane %v19677_v44, 1  ;;  %v10187_v45 = vrot.slane %v19679_v17, 1 }
 0xb01   :  { %v9988_v34 = vrot.slane %v9908_v35, 7  ;;  %v9878_v7 = vadd.f32 %v19539_v9, %v9760_v14  ;;  %v10125_v31 = vld [vmem:[#allocation3 + $0x100] sm:$0x1] }
 0xb02   :  { %v9911_v37 = vmax.f32 %v9879_v27, 0.0  ;;  %v10186_v6 = vsel %vm699_vm5, %v10183_v62, %v10185_v19  ;;  %v10188_v39 = vsel %vm699_vm5, %v10185_v19, %v10187_v45  ;;  %v10193_v20 = vrot.slane %v10125_v31, 1 }
 0xb03   :  { %v9989_v36 = vsel %vm234_vm2, %v9986_v32, %v9988_v34  ;;  %v9991_v50 = vsel %vm234_vm2, %v9988_v34, %v9990_v25  ;;  %v9910_v10 = vmax.f32 %v9878_v7, 0.0  ;;  %v14173_v29 = vpop.f32.mrb[230].mxu0  ;;  %14218 = vmatmul.mubr.msk.f32.gmra.mrb[170].mxu1 %vm4158_vm14, %v10186_v6  ;;  %v19692_v3 = vld [vmem:[#allocation3 + $0xe0] sm:$0xff]  ;;  %v19694_v33 = vld [vmem:[#allocation3 + $0xf0] sm:$0xff] }
 0xb04   :  { %10069 = vst.msk [vmem:[#allocation3 + $0x130] sm:$0xff] %vm4158_vm14, %v9989_v36  ;;  %10070 = vst.msk [vmem:[#allocation3 + $0x140] sm:$0xff] %vm4158_vm14, %v9991_v50  ;;  %v9994_v51 = vrot.slane %v9911_v37, 7  ;;  %v9881_v13 = vadd.f32 %v14173_v29, %v19539_v9  ;;  %v9770_v57 = vpop.f32.mrb[231].mxu0  ;;  %14220 = vmatprep.mubr.msk.f32.mxu1 %vm4158_vm14, %v10188_v39  ;;  %v10189_v52 = vrot.slane %v19692_v3, 1  ;;  %v10191_v24 = vrot.slane %v19694_v33, 1 }
 0xb05   :  { %v9992_v53 = vrot.slane %v9910_v10, 7  ;;  %v9880_v46 = vadd.f32 %v19539_v9, %v9770_v57 }
 0xb06   :  { %v9913_v49 = vmax.f32 %v9881_v13, 0.0  ;;  %v10190_v63 = vsel %vm699_vm5, %v10187_v45, %v10189_v52  ;;  %v10192_v59 = vsel %vm699_vm5, %v10189_v52, %v10191_v24  ;;  %v10126_v11 = vld [vmem:[#allocation3 + $0x110] sm:$0xfe]  ;;  %v10194_v22 = vsel %vm699_vm5, %v10191_v24, %v10193_v20 }
 0xb07   :  { %v9993_v2 = vsel %vm234_vm2, %v9990_v25, %v9992_v53  ;;  %v9995_v26 = vsel %vm234_vm2, %v9992_v53, %v9994_v51  ;;  %v9912_v1 = vmax.f32 %v9880_v46, 0.0  ;;  %v14176_v47 = vpop.f32.mrb[232].mxu0  ;;  %14221 = vmatmul.mubr.msk.f32.gmra.mrb[172].mxu1 %vm4158_vm14, %v10190_v63  ;;  %v19708_v54 = vld [vmem:[#allocation3 + $0x120] sm:$0xff]  ;;  %v10195_v55 = vrot.slane %v10126_v11, 1 }
 0xb08   :  { %10071 = vst.msk [vmem:[#allocation3 + $0x150] sm:$0xff] %vm4158_vm14, %v9993_v2  ;;  %10072 = vst.msk [vmem:[#allocation3 + $0x160] sm:$0xff] %vm4158_vm14, %v9995_v26  ;;  %v9998_v42 = vrot.slane %v9913_v49, 7  ;;  %v9883_v28 = vadd.f32 %v14176_v47, %v19539_v9  ;;  %v9780_v32 = vpop.f32.mrb[233].mxu0  ;;  %14223 = vmatprep.mubr.msk.f32.mxu1 %vm4158_vm14, %v10192_v59  ;;  %v10196_v5 = vrot.slane %v19708_v54, 1 }
 0xb09   :  { %v9996_v16 = vrot.slane %v9912_v1, 7  ;;  %v9882_v62 = vadd.f32 %v19539_v9, %v9780_v32 }
 0xb0a   :  { %v9915_v8 = vmax.f32 %v9883_v28, 0.0  ;;  %v10197_v43 = vsel %vm699_vm5, %v10195_v55, %v10196_v5 }
 0xb0b   :  { %v9997_v15 = vsel %vm234_vm2, %v9994_v51, %v9996_v16  ;;  %v9999_v0 = vsel %vm234_vm2, %v9996_v16, %v9998_v42  ;;  %v9914_v18 = vmax.f32 %v9882_v62, 0.0  ;;  %v14179_v35 = vpop.f32.mrb[234].mxu0  ;;  %14224 = vmatmul.mubr.msk.f32.gmra.mrb[174].mxu1 %vm4158_vm14, %v10194_v22  ;;  %v19721_v58 = vld [vmem:[#allocation3 + $0x130] sm:$0xff]  ;;  %v19723_v25 = vld [vmem:[#allocation3 + $0x140] sm:$0xff] }
 0xb0c   :  { %10073 = vst.msk [vmem:[#allocation3 + $0x170] sm:$0xff] %vm4158_vm14, %v9997_v15  ;;  %10074 = vst.msk [vmem:[#allocation3 + $0x180] sm:$0xff] %vm4158_vm14, %v9999_v0  ;;  %v10002_v27 = vrot.slane %v9915_v8, 7  ;;  %v9885_v14 = vadd.f32 %v14179_v35, %v19539_v9  ;;  %v9790_v19 = vpop.f32.mrb[235].mxu0  ;;  %14226 = vmatprep.mubr.msk.f32.mxu1 %vm4158_vm14, %v10197_v43  ;;  %v10198_v45 = vrot.slane %v19721_v58, 1  ;;  %v10200_v34 = vrot.slane %v19723_v25, 1 }
 0xb0d   :  { %v10000_v7 = vrot.slane %v9914_v18, 7  ;;  %v9884_v37 = vadd.f32 %v19539_v9, %v9790_v19 }
 0xb0e   :  { %v9917_v6 = vmax.f32 %v9885_v14, 0.0  ;;  %v10199_v39 = vsel %vm699_vm5, %v10196_v5, %v10198_v45  ;;  %v10201_v36 = vsel %vm699_vm5, %v10198_v45, %v10200_v34 }
 0xb0f   :  { %v10001_v50 = vsel %vm234_vm2, %v9998_v42, %v10000_v7  ;;  %v10003_v10 = vsel %vm234_vm2, %v10000_v7, %v10002_v27  ;;  %v9916_v29 = vmax.f32 %v9884_v37, 0.0  ;;  %v14182_v51 = vpop.f32.mrb[236].mxu0  ;;  %14227 = vmatmul.mubr.msk.f32.gmra.mrb[176].mxu1 %vm4158_vm14, %v10199_v39  ;;  %v19737_v13 = vld [vmem:[#allocation3 + $0x150] sm:$0xff]  ;;  %v19739_v57 = vld [vmem:[#allocation3 + $0x160] sm:$0xff] }
 0xb10   :  { %10075 = vst.msk [vmem:[#allocation3 + $0x190] sm:$0xff] %vm4158_vm14, %v10001_v50  ;;  %10076 = vst.msk [vmem:[#allocation3 + $0x1a0] sm:$0xff] %vm4158_vm14, %v10003_v10  ;;  %v10006_v52 = vrot.slane %v9917_v6, 7  ;;  %v9887_v24 = vadd.f32 %v14182_v51, %v19539_v9  ;;  %v9800_v53 = vpop.f32.mrb[237].mxu0  ;;  %14229 = vmatprep.mubr.msk.f32.mxu1 %vm4158_vm14, %v10201_v36  ;;  %v10202_v46 = vrot.slane %v19737_v13, 1  ;;  %v10204_v31 = vrot.slane %v19739_v57, 1 }
 0xb11   :  { %v10004_v49 = vrot.slane %v9916_v29, 7  ;;  %v9886_v63 = vadd.f32 %v19539_v9, %v9800_v53 }
 0xb12   :  { %v9919_v59 = vmax.f32 %v9887_v24, 0.0  ;;  %v10203_v11 = vsel %vm699_vm5, %v10200_v34, %v10202_v46  ;;  %v10205_v2 = vsel %vm699_vm5, %v10202_v46, %v10204_v31 }
 0xb13   :  { %v10005_v26 = vsel %vm234_vm2, %v10002_v27, %v10004_v49  ;;  %v10007_v1 = vsel %vm234_vm2, %v10004_v49, %v10006_v52  ;;  %v9918_v47 = vmax.f32 %v9886_v63, 0.0  ;;  %v14185_v55 = vpop.f32.mrb[238].mxu0  ;;  %14230 = vmatmul.mubr.msk.f32.gmra.mrb[178].mxu1 %vm4158_vm14, %v10203_v11  ;;  %v19753_v42 = vld [vmem:[#allocation3 + $0x170] sm:$0xff]  ;;  %v19755_v28 = vld [vmem:[#allocation3 + $0x180] sm:$0xff] }
 0xb14   :  { %10077 = vst.msk [vmem:[#allocation3 + $0x1b0] sm:$0xff] %vm4158_vm14, %v10005_v26  ;;  %10078 = vst.msk [vmem:[#allocation3 + $0x1c0] sm:$0xff] %vm4158_vm14, %v10007_v1  ;;  %v10010_v32 = vrot.slane %v9919_v59, 7  ;;  %v9889_v20 = vadd.f32 %v14185_v55, %v19539_v9  ;;  %v9810_v5 = vpop.f32.mrb[239].mxu0  ;;  %14232 = vmatprep.mubr.msk.f32.mxu1 %vm4158_vm14, %v10205_v2  ;;  %v10206_v16 = vrot.slane %v19753_v42, 1  ;;  %v10208_v62 = vrot.slane %v19755_v28, 1 }
 0xb15   :  { %v10008_v8 = vrot.slane %v9918_v47, 7  ;;  %v9888_v22 = vadd.f32 %v19539_v9, %v9810_v5 }
 0xb16   :  { %v9921_v43 = vmax.f32 %v9889_v20, 0.0  ;;  %v10207_v15 = vsel %vm699_vm5, %v10204_v31, %v10206_v16  ;;  %v10209_v0 = vsel %vm699_vm5, %v10206_v16, %v10208_v62  ;;  %v12793_v16 = vld [vmem:[%s20630_s8 + $0x90] sm:$0xff] }
 0xb17   :  { %v10009_v18 = vsel %vm234_vm2, %v10006_v52, %v10008_v8  ;;  %v10011_v35 = vsel %vm234_vm2, %v10008_v8, %v10010_v32  ;;  %v9920_v27 = vmax.f32 %v9888_v22, 0.0  ;;  %14233 = vmatmul.mubr.msk.f32.gmra.mrb[180].mxu1 %vm4158_vm14, %v10207_v15  ;;  %v19769_v14 = vld [vmem:[#allocation3 + $0x190] sm:$0xff]  ;;  %v19771_v19 = vld [vmem:[#allocation3 + $0x1a0] sm:$0xff]  ;;  %v12796_v15 = vld [vmem:[%s20630_s8 + $0xa8] sm:$0xff] }
 0xb18   :  { %10079 = vst.msk [vmem:[#allocation3 + $0x1d0] sm:$0xff] %vm4158_vm14, %v10009_v18  ;;  %10080 = vst.msk [vmem:[#allocation3 + $0x1e0] sm:$0xff] %vm4158_vm14, %v10011_v35  ;;  %v10014_v9 = vrot.slane %v9921_v43, 7  ;;  %14235 = vmatprep.mubr.msk.f32.mxu1 %vm4158_vm14, %v10209_v0  ;;  %v10210_v45 = vrot.slane %v19769_v14, 1  ;;  %v10212_v34 = vrot.slane %v19771_v19, 1  ;;  %v10084_v8 = vld [vmem:[#allocation3] sm:$0xff] }
 0xb19   :  { %v10012_v7 = vrot.slane %v9920_v27, 7  ;;  %v12795_v43 = vld [vmem:[%s20630_s8 + $0xa0] sm:$0xff]  ;;  %v12797_v18 = vld [vmem:[%s20630_s8 + $0xb0] sm:$0xff]  ;;  %v12798_v35 = vld [vmem:[%s20630_s8 + $0xb8] sm:$0xff] }
 0xb1a   :  { %10083 = vst.msk [vmem:[#allocation3 + $0x210] sm:$0x1] %vm4174_vm15, %v10014_v9  ;;  %v10211_v37 = vsel %vm699_vm5, %v10208_v62, %v10210_v45  ;;  %v10213_v6 = vsel %vm699_vm5, %v10210_v45, %v10212_v34  ;;  %v12794_v62 = vld [vmem:[%s20630_s8 + $0x98] sm:$0xff]  ;;  %v14838_v0 = vpack.c.bf16 %v12796_v15, %v12795_v43  ;;  %v10100_v27 = vld [vmem:[#allocation3 + $0x110] sm:$0xff]  ;;  %v10865_v43 = vrot.slane %v19737_v13, 2 }
 0xb1b   :  { %v10013_v39 = vsel %vm234_vm2, %v10010_v32, %v10012_v7  ;;  %v10015_v36 = vsel %vm234_vm2, %v10012_v7, %v10014_v9  ;;  %14236 = vmatmul.mubr.msk.f32.gmra.mrb[182].mxu1 %vm4158_vm14, %v10211_v37  ;;  %v19784_v50 = vld [vmem:[#allocation3 + $0x1b0] sm:$0xff]  ;;  %v19786_v10 = vld [vmem:[#allocation3 + $0x1c0] sm:$0xff]  ;;  %v14834_v22 = vpack.c.bf16 %v12794_v62, %v12793_v16  ;;  %v10828_v7 = vrot.slane %v19575_v48, 2 }
 0xb1c   :  { %10081 = vst.msk [vmem:[#allocation3 + $0x1f0] sm:$0xff] %vm4158_vm14, %v10013_v39  ;;  %10082 = vst.msk [vmem:[#allocation3 + $0x200] sm:$0xff] %vm4158_vm14, %v10015_v36  ;;  %14238 = vmatprep.mubr.msk.f32.mxu1 %vm4158_vm14, %v10213_v6  ;;  %v10214_v29 = vrot.slane %v19784_v50, 1  ;;  %v10216_v51 = vrot.slane %v19786_v10, 1  ;;  %v10817_v9 = vld [vmem:[#allocation3] sm:$0xfc] }
 0xb1d   :  { %v10825_v45 = vrot.slane %v10817_v9, 2  ;;  %v10830_v6 = vrot.slane %v19577_v60, 2  ;;  %v10832_v36 = vrot.slane %v19596_v40, 2  ;;  %v10867_v15 = vrot.slane %v19739_v57, 2 }
 0xb1e   :  { %v10215_v52 = vsel %vm699_vm5, %v10212_v34, %v10214_v29  ;;  %v10217_v24 = vsel %vm699_vm5, %v10214_v29, %v10216_v51  ;;  %v10826_v34 = vrot.slane %v19558_v41, 2  ;;  %v10834_v29 = vrot.slane %v19598_v30, 2 }
 0xb1f   :  { %14239 = vmatmul.mubr.msk.f32.gmra.mrb[184].mxu1 %vm4158_vm14, %v10215_v52  ;;  %v19796_v53 = vld [vmem:[#allocation3 + $0x1d0] sm:$0xff]  ;;  %v19798_v46 = vld [vmem:[#allocation3 + $0x1e0] sm:$0xff]  ;;  %v10838_v52 = vrot.slane %v19621_v38, 2  ;;  %v10879_v9 = vrot.slane %v19786_v10, 2 }
 0xb20   :  { %14241 = vmatprep.mubr.msk.f32.mxu1 %vm4158_vm14, %v10217_v24  ;;  %v10218_v31 = vrot.slane %v19796_v53, 1  ;;  %v10220_v49 = vrot.slane %v19798_v46, 1  ;;  %v10827_v37 = vsel %vm974_vm6, %v10825_v45, %v10826_v34  ;;  %v10829_v39 = vsel %vm974_vm6, %v10826_v34, %v10828_v7 }
 0xb21   :  { %v10127_v47 = vld [vmem:[#allocation3 + $0x210] sm:$0x1]  ;;  %v10840_v24 = vrot.slane %v19641_v12, 2  ;;  %v10881_v45 = vrot.slane %v19796_v53, 2  ;;  %v10883_v34 = vrot.slane %v19798_v46, 2 }
 0xb22   :  { %v10219_v63 = vsel %vm699_vm5, %v10216_v51, %v10218_v31  ;;  %v10221_v59 = vsel %vm699_vm5, %v10218_v31, %v10220_v49  ;;  %v10226_v20 = vrot.slane %v10127_v47, 1  ;;  %v10836_v51 = vrot.slane %v19619_v4, 2 }
 0xb23   :  { %14242 = vmatmul.mubr.msk.f32.gmra.mrb[186].mxu1 %vm4158_vm14, %v10219_v63  ;;  %v19806_v11 = vld [vmem:[#allocation3 + $0x1f0] sm:$0xff]  ;;  %v19808_v2 = vld [vmem:[#allocation3 + $0x200] sm:$0xff]  ;;  %v10842_v31 = vrot.slane %v19643_v61, 2  ;;  %v10846_v63 = vrot.slane %v19662_v21, 2  ;;  %v10854_v47 = vrot.slane %v19694_v33, 2 }
 0xb24   :  { %14244 = vmatprep.mubr.msk.f32.mxu1 %vm4158_vm14, %v10221_v59  ;;  %v10222_v26 = vrot.slane %v19806_v11, 1  ;;  %v10224_v1 = vrot.slane %v19808_v2, 1  ;;  %v10848_v59 = vrot.slane %v19677_v44, 2 }
 0xb26   :  { %v10223_v55 = vsel %vm699_vm5, %v10220_v49, %v10222_v26  ;;  %v10225_v32 = vsel %vm699_vm5, %v10222_v26, %v10224_v1  ;;  %v10227_v5 = vsel %vm699_vm5, %v10224_v1, %v10226_v20  ;;  %v10844_v49 = vrot.slane %v19660_v23, 2 }
 0xb27   :  { %14245 = vmatmul.mubr.msk.f32.gmra.mrb[188].mxu1 %vm4158_vm14, %v10223_v55  ;;  %v10850_v26 = vrot.slane %v19679_v17, 2  ;;  %v10852_v1 = vrot.slane %v19692_v3, 2  ;;  %v10818_v55 = vld [vmem:[#allocation3 + $0x100] sm:$0x3] }
 0xb28   :  { %14247 = vmatprep.mubr.msk.f32.mxu1 %vm4158_vm14, %v10225_v32 }
 0xb29   :  { %v10853_v32 = vsel %vm974_vm6, %v10850_v26, %v10852_v1 }
 0xb2b   :  { %14248 = vmatmul.mubr.msk.f32.gmra.mrb[190].mxu1 %vm4158_vm14, %v10227_v5  ;;  %v10859_v5 = vrot.slane %v19708_v54, 2 }
 0xb2c   :  { %14266 = vmatprep.mubr.msk.f32.mxu1 %vm4158_vm14, %v10084_v8  ;;  %v10863_v8 = vrot.slane %v19723_v25, 2 }
 0xb2f   :  { %14267 = vmatmul.mubr.msk.f32.vlgmr.msra.gmra.mrb[160].mxu1 %vm4158_vm14, %v19558_v41  ;;  %v10831_v41 = vsel %vm974_vm6, %v10828_v7, %v10830_v6  ;;  %v10885_v7 = vrot.slane %v19806_v11, 2 }
 0xb30   :  { %14833 = vmatpush3.bf16.msra.mxu1 %v19652_v56  ;;  %14269 = vmatprep.mubr.msk.f32.mxu1 %vm4158_vm14, %v19575_v48  ;;  %v14842_v56 = vpack.c.bf16 %v12798_v35, %v12797_v18  ;;  %v10833_v48 = vsel %vm974_vm6, %v10830_v6, %v10832_v36  ;;  %v10871_v18 = vrot.slane %v19755_v28, 2  ;;  %v10873_v35 = vrot.slane %v19769_v14, 2 }
 0xb31   :  { %14835 = vmatprep.subr.bf16.mxu1 %v14834_v22  ;;  %v10886_v6 = vsel %vm974_vm6, %v10883_v34, %v10885_v7 }
 0xb33   :  { %14270 = vmatmul.mubr.msk.f32.gmra.mrb[162].mxu1 %vm4158_vm14, %v19577_v60  ;;  %v10835_v60 = vsel %vm974_vm6, %v10832_v36, %v10834_v29 }
 0xb34   :  { %14272 = vmatprep.mubr.msk.f32.mxu1 %vm4158_vm14, %v19596_v40  ;;  %14837 = vmatpush3.bf16.msra.mxu1 %v14834_v22  ;;  %v10837_v40 = vsel %vm974_vm6, %v10834_v29, %v10836_v51 }
 0xb35   :  { %14839 = vmatprep.subr.bf16.mxu1 %v14838_v0 }
 0xb37   :  { %14273 = vmatmul.mubr.msk.f32.gmra.mrb[164].mxu1 %vm4158_vm14, %v19598_v30  ;;  %v10839_v30 = vsel %vm974_vm6, %v10836_v51, %v10838_v52 }
 0xb38   :  { %14275 = vmatprep.mubr.msk.f32.mxu1 %vm4158_vm14, %v19619_v4  ;;  %14841 = vmatpush3.bf16.msra.mxu1 %v14838_v0  ;;  %v10841_v4 = vsel %vm974_vm6, %v10838_v52, %v10840_v24  ;;  %v10869_v0 = vrot.slane %v19753_v42, 2 }
 0xb39   :  { %14843 = vmatprep.subr.bf16.mxu1 %v14842_v56 }
 0xb3b   :  { %14276 = vmatmul.mubr.msk.f32.gmra.mrb[166].mxu1 %vm4158_vm14, %v19621_v38  ;;  %v10843_v38 = vsel %vm974_vm6, %v10840_v24, %v10842_v31 }
 0xb3c   :  { %14278 = vmatprep.mubr.msk.f32.mxu1 %vm4158_vm14, %v19641_v12  ;;  %14845 = vmatpush3.bf16.msra.mxu1 %v14842_v56  ;;  %v10845_v12 = vsel %vm974_vm6, %v10842_v31, %v10844_v49  ;;  %v10875_v56 = vrot.slane %v19771_v19, 2 }
 0xb3f   :  { %14279 = vmatmul.mubr.msk.f32.gmra.mrb[168].mxu1 %vm4158_vm14, %v19643_v61  ;;  %v10847_v61 = vsel %vm974_vm6, %v10844_v49, %v10846_v63 }
 0xb40   :  { %14281 = vmatprep.mubr.msk.f32.mxu1 %vm4158_vm14, %v19660_v23  ;;  %v10849_v23 = vsel %vm974_vm6, %v10846_v63, %v10848_v59 }
 0xb43   :  { %14282 = vmatmul.mubr.msk.f32.gmra.mrb[170].mxu1 %vm4158_vm14, %v19662_v21  ;;  %v10851_v21 = vsel %vm974_vm6, %v10848_v59, %v10850_v26 }
 0xb44   :  { %14284 = vmatprep.mubr.msk.f32.mxu1 %vm4158_vm14, %v19677_v44  ;;  %v10819_v44 = vld [vmem:[#allocation3 + $0x110] sm:$0xfc] }
 0xb45   :  { %v10858_v20 = vrot.slane %v10819_v44, 2 }
 0xb47   :  { %14285 = vmatmul.mubr.msk.f32.gmra.mrb[172].mxu1 %vm4158_vm14, %v19679_v17  ;;  %v10855_v17 = vsel %vm974_vm6, %v10852_v1, %v10854_v47  ;;  %v10860_v62 = vsel %vm974_vm6, %v10858_v20, %v10859_v5 }
 0xb48   :  { %14287 = vmatprep.mubr.msk.f32.mxu1 %vm4158_vm14, %v19692_v3  ;;  %v10856_v3 = vrot.slane %v10818_v55, 2 }
 0xb4a   :  { %v10857_v16 = vsel %vm974_vm6, %v10854_v47, %v10856_v3  ;;  %v20013_v3 = vld [vmem:[#allocation12] ss:$0 sm:$0xff] }
 0xb4b   :  { %14288 = vmatmul.mubr.msk.f32.gmra.mrb[174].mxu1 %vm4158_vm14, %v19694_v33  ;;  %v10861_v33 = vrot.slane %v19721_v58, 2 }
 0xb4c   :  { %14290 = vmatprep.mubr.msk.f32.mxu1 %vm4158_vm14, %v10100_v27  ;;  %v10877_v27 = vrot.slane %v19784_v50, 2 }
 0xb4d   :  { %v10862_v22 = vsel %vm974_vm6, %v10859_v5, %v10861_v33 }
 0xb4f   :  { %14291 = vmatmul.mubr.msk.f32.gmra.mrb[176].mxu1 %vm4158_vm14, %v19708_v54  ;;  %v10864_v54 = vsel %vm974_vm6, %v10861_v33, %v10863_v8 }
 0xb50   :  { %14293 = vmatprep.mubr.msk.f32.mxu1 %vm4158_vm14, %v19721_v58  ;;  %v10866_v58 = vsel %vm974_vm6, %v10863_v8, %v10865_v43 }
 0xb53   :  { %14294 = vmatmul.mubr.msk.f32.gmra.mrb[178].mxu1 %vm4158_vm14, %v19723_v25  ;;  %v10868_v25 = vsel %vm974_vm6, %v10865_v43, %v10867_v15 }
 0xb54   :  { %14296 = vmatprep.mubr.msk.f32.mxu1 %vm4158_vm14, %v19737_v13  ;;  %v10870_v13 = vsel %vm974_vm6, %v10867_v15, %v10869_v0 }
 0xb57   :  { %14297 = vmatmul.mubr.msk.f32.gmra.mrb[180].mxu1 %vm4158_vm14, %v19739_v57  ;;  %v10872_v57 = vsel %vm974_vm6, %v10869_v0, %v10871_v18 }
 0xb58   :  { %14299 = vmatprep.mubr.msk.f32.mxu1 %vm4158_vm14, %v19753_v42  ;;  %v10874_v42 = vsel %vm974_vm6, %v10871_v18, %v10873_v35 }
 0xb5b   :  { %14300 = vmatmul.mubr.msk.f32.gmra.mrb[182].mxu1 %vm4158_vm14, %v19755_v28  ;;  %v10876_v28 = vsel %vm974_vm6, %v10873_v35, %v10875_v56 }
 0xb5c   :  { %14302 = vmatprep.mubr.msk.f32.mxu1 %vm4158_vm14, %v19769_v14  ;;  %v10878_v14 = vsel %vm974_vm6, %v10875_v56, %v10877_v27 }
 0xb5f   :  { %14303 = vmatmul.mubr.msk.f32.gmra.mrb[184].mxu1 %vm4158_vm14, %v19771_v19  ;;  %v10880_v19 = vsel %vm974_vm6, %v10877_v27, %v10879_v9 }
 0xb60   :  { %14305 = vmatprep.mubr.msk.f32.mxu1 %vm4158_vm14, %v19784_v50  ;;  %v10882_v50 = vsel %vm974_vm6, %v10879_v9, %v10881_v45 }
 0xb63   :  { %14306 = vmatmul.mubr.msk.f32.gmra.mrb[186].mxu1 %vm4158_vm14, %v19786_v10  ;;  %v10884_v10 = vsel %vm974_vm6, %v10881_v45, %v10883_v34 }
 0xb64   :  { %14308 = vmatprep.mubr.msk.f32.mxu1 %vm4158_vm14, %v19796_v53  ;;  %v10820_v53 = vld [vmem:[#allocation3 + $0x210] sm:$0x3] }
 0xb67   :  { %14309 = vmatmul.mubr.msk.f32.gmra.mrb[188].mxu1 %vm4158_vm14, %v19798_v46 }
 0xb68   :  { %14311 = vmatprep.mubr.msk.f32.mxu1 %vm4158_vm14, %v19806_v11 }
 0xb6b   :  { %14312 = vmatmul.mubr.msk.f32.gmra.mrb[190].mxu1 %vm4158_vm14, %v19808_v2 }
 0xb6c   :  { %14330 = vmatprep.mubr.msk.f32.mxu1 %vm4158_vm14, %v10827_v37  ;;  %v10887_v37 = vrot.slane %v19808_v2, 2  ;;  %v19997_v2 = vld [vmem:[%s20639_s17] ss:$0 sm:$0xff] }
 0xb6e   :  { %v10888_v46 = vsel %vm974_vm6, %v10885_v7, %v10887_v37 }
 0xb6f   :  { %14331 = vmatmul.mubr.msk.f32.vlgmr.msra.gmra.mrb[160].mxu1 %vm4158_vm14, %v10829_v39  ;;  %v10889_v39 = vrot.slane %v10820_v53, 2 }
 0xb70   :  { %14333 = vmatprep.mubr.msk.f32.mxu1 %vm4158_vm14, %v10831_v41 }
 0xb71   :  { %v10890_v11 = vsel %vm974_vm6, %v10887_v37, %v10889_v39 }
 0xb73   :  { %14334 = vmatmul.mubr.msk.f32.gmra.mrb[162].mxu1 %vm4158_vm14, %v10833_v48 }
 0xb74   :  { %14336 = vmatprep.mubr.msk.f32.mxu1 %vm4158_vm14, %v10835_v60 }
 0xb77   :  { %14337 = vmatmul.mubr.msk.f32.gmra.mrb[164].mxu1 %vm4158_vm14, %v10837_v40 }
 0xb78   :  { %14339 = vmatprep.mubr.msk.f32.mxu1 %vm4158_vm14, %v10839_v30 }
 0xb7b   :  { %14340 = vmatmul.mubr.msk.f32.gmra.mrb[166].mxu1 %vm4158_vm14, %v10841_v4 }
 0xb7c   :  { %14342 = vmatprep.mubr.msk.f32.mxu1 %vm4158_vm14, %v10843_v38 }
 0xb7f   :  { %14343 = vmatmul.mubr.msk.f32.gmra.mrb[168].mxu1 %vm4158_vm14, %v10845_v12 }
 0xb80   :  { %14345 = vmatprep.mubr.msk.f32.mxu1 %vm4158_vm14, %v10847_v61 }
 0xb83   :  { %14346 = vmatmul.mubr.msk.f32.gmra.mrb[170].mxu1 %vm4158_vm14, %v10849_v23 }
 0xb84   :  { %14348 = vmatprep.mubr.msk.f32.mxu1 %vm4158_vm14, %v10851_v21 }
 0xb87   :  { %14349 = vmatmul.mubr.msk.f32.gmra.mrb[172].mxu1 %vm4158_vm14, %v10853_v32 }
 0xb88   :  { %14351 = vmatprep.mubr.msk.f32.mxu1 %vm4158_vm14, %v10855_v17 }
 0xb8b   :  { %14352 = vmatmul.mubr.msk.f32.gmra.mrb[174].mxu1 %vm4158_vm14, %v10857_v16 }
 0xb8c   :  { %14354 = vmatprep.mubr.msk.f32.mxu1 %vm4158_vm14, %v10860_v62 }
 0xb8f   :  { %14355 = vmatmul.mubr.msk.f32.gmra.mrb[176].mxu1 %vm4158_vm14, %v10862_v22 }
 0xb90   :  { %14357 = vmatprep.mubr.msk.f32.mxu1 %vm4158_vm14, %v10864_v54 }
 0xb93   :  { %14358 = vmatmul.mubr.msk.f32.gmra.mrb[178].mxu1 %vm4158_vm14, %v10866_v58 }
 0xb94   :  { %14360 = vmatprep.mubr.msk.f32.mxu1 %vm4158_vm14, %v10868_v25 }
 0xb97   :  { %14361 = vmatmul.mubr.msk.f32.gmra.mrb[180].mxu1 %vm4158_vm14, %v10870_v13 }
 0xb98   :  { %14363 = vmatprep.mubr.msk.f32.mxu1 %vm4158_vm14, %v10872_v57 }
 0xb9b   :  { %14364 = vmatmul.mubr.msk.f32.gmra.mrb[182].mxu1 %vm4158_vm14, %v10874_v42 }
 0xb9c   :  { %14366 = vmatprep.mubr.msk.f32.mxu1 %vm4158_vm14, %v10876_v28 }
 0xb9f   :  { %14367 = vmatmul.mubr.msk.f32.gmra.mrb[184].mxu1 %vm4158_vm14, %v10878_v14 }
 0xba0   :  { %14369 = vmatprep.mubr.msk.f32.mxu1 %vm4158_vm14, %v10880_v19 }
 0xba3   :  { %14370 = vmatmul.mubr.msk.f32.gmra.mrb[186].mxu1 %vm4158_vm14, %v10882_v50  ;;  %v20031_v50 = vld [vmem:[#allocation12 + $0x1] ss:$0 sm:$0xff] }
 0xba4   :  { %14372 = vmatprep.mubr.msk.f32.mxu1 %vm4158_vm14, %v10884_v10 }
 0xba7   :  { %14373 = vmatmul.mubr.msk.f32.gmra.mrb[188].mxu1 %vm4158_vm14, %v10886_v6 }
 0xba8   :  { %14375 = vmatprep.mubr.msk.f32.mxu1 %vm4158_vm14, %v10888_v46 }
 0xbab   :  { %14376 = vmatmul.mubr.msk.f32.gmra.mrb[190].mxu1 %vm4158_vm14, %v10890_v11 }
 0xc42   :  { %v14332_v36 = vpop.f32.mrb[160].mxu1 }
 0xc43   :  { %v11229_v41 = vadd.f32 %v14332_v36, %v19997_v2  ;;  %v11030_v29 = vpop.f32.mrb[161].mxu1 }
 0xc44   :  { %v11228_v48 = vadd.f32 %v19997_v2, %v11030_v29 }
 0xc45   :  { %v11261_v51 = vmax.f32 %v11229_v41, 0.0 }
 0xc46   :  { %v11260_v60 = vmax.f32 %v11228_v48, 0.0  ;;  %v14335_v52 = vpop.f32.mrb[162].mxu1 }
 0xc47   :  { %v11325_v40 = vrot.slane %v11261_v51, 7  ;;  %v11231_v24 = vadd.f32 %v14335_v52, %v19997_v2  ;;  %v11040_v30 = vpop.f32.mrb[163].mxu1 }
 0xc48   :  { %v11324_v31 = vrot.slane %v11260_v60, 7  ;;  %v11230_v4 = vadd.f32 %v19997_v2, %v11040_v30 }
 0xc49   :  { %v11263_v49 = vmax.f32 %v11231_v24, 0.0 }
 0xc4a   :  { %v11326_v38 = vsel %vm234_vm2, %v11324_v31, %v11325_v40  ;;  %11420 = vst.msk [vmem:[#allocation2] sm:$0xfe] %vm2795_vm10, %v11324_v31  ;;  %v11262_v63 = vmax.f32 %v11230_v4, 0.0  ;;  %v14338_v12 = vpop.f32.mrb[164].mxu1 }
 0xc4b   :  { %11421 = vst.msk [vmem:[#allocation2 + $0x10] sm:$0xff] %vm2797_vm11, %v11326_v38  ;;  %v11329_v59 = vrot.slane %v11263_v49, 7  ;;  %v11233_v61 = vadd.f32 %v14338_v12, %v19997_v2  ;;  %v11050_v26 = vpop.f32.mrb[165].mxu1 }
 0xc4c   :  { %v11327_v23 = vrot.slane %v11262_v63, 7  ;;  %v11232_v1 = vadd.f32 %v19997_v2, %v11050_v26 }
 0xc4d   :  { %v11265_v21 = vmax.f32 %v11233_v61, 0.0 }
 0xc4e   :  { %v11328_v47 = vsel %vm234_vm2, %v11325_v40, %v11327_v23  ;;  %v11330_v44 = vsel %vm234_vm2, %v11327_v23, %v11329_v59  ;;  %v11264_v55 = vmax.f32 %v11232_v1, 0.0  ;;  %v14341_v32 = vpop.f32.mrb[166].mxu1  ;;  %v20042_v40 = vld [vmem:[#allocation12 + $0x2] ss:$0 sm:$0xff] }
 0xc4f   :  { %11422 = vst.msk [vmem:[#allocation2 + $0x20] sm:$0xff] %vm2797_vm11, %v11328_v47  ;;  %11423 = vst.msk [vmem:[#allocation2 + $0x30] sm:$0xff] %vm2797_vm11, %v11330_v44  ;;  %v11333_v17 = vrot.slane %v11265_v21, 7  ;;  %v11235_v20 = vadd.f32 %v14341_v32, %v19997_v2  ;;  %v11060_v5 = vpop.f32.mrb[167].mxu1 }
 0xc50   :  { %v11331_v16 = vrot.slane %v11264_v55, 7  ;;  %v11234_v33 = vadd.f32 %v19997_v2, %v11060_v5 }
 0xc51   :  { %v11267_v62 = vmax.f32 %v11235_v20, 0.0  ;;  %v11454_v8 = vld [vmem:[#allocation2] sm:$0xff] }
 0xc52   :  { %v11653_v22 = vld [vmem:[#allocation2] sm:$0xfe]  ;;  %v11332_v43 = vsel %vm234_vm2, %v11329_v59, %v11331_v16  ;;  %v11334_v54 = vsel %vm234_vm2, %v11331_v16, %v11333_v17  ;;  %v11266_v15 = vmax.f32 %v11234_v33, 0.0  ;;  %v14344_v58 = vpop.f32.mrb[168].mxu1  ;;  %v11493_v0 = vmul.f32 %v20013_v3, %v11454_v8  ;;  %v20019_v25 = vld [vmem:[#allocation2 + $0x10] sm:$0xff] }
 0xc53   :  { %v11957_v18 = vld [vmem:[#allocation2] sm:$0xfc]  ;;  %11424 = vst.msk [vmem:[#allocation2 + $0x40] sm:$0xff] %vm2797_vm11, %v11332_v43  ;;  %11425 = vst.msk [vmem:[#allocation2 + $0x50] sm:$0xff] %vm2797_vm11, %v11334_v54  ;;  %v11337_v13 = vrot.slane %v11267_v62, 7  ;;  %v11237_v35 = vadd.f32 %v14344_v58, %v19997_v2  ;;  %v11070_v57 = vpop.f32.mrb[169].mxu1  ;;  %v11494_v56 = vmul.f32 %v20013_v3, %v20019_v25 }
 0xc54   :  { %v11692_v42 = vrot.slane %v20019_v25, 1  ;;  %v11335_v27 = vrot.slane %v11266_v15, 7  ;;  %v11236_v28 = vadd.f32 %v19997_v2, %v11070_v57  ;;  %v11525_v9 = vsel %vm2797_vm11, %v11493_v0, 0.0 }
 0xc55   :  { %v11966_v14 = vrot.slane %v20019_v25, 2  ;;  %v11269_v45 = vmax.f32 %v11237_v35, 0.0  ;;  %11526 = vadd.xlane.f32.xlu0 %v11525_v9  ;;  %v11528_v19 = vsel %vm2797_vm11, %v11494_v56, 0.0  ;;  %v11691_v34 = vrot.slane %v11653_v22, 1 }
 0xc56   :  { %v11965_v7 = vrot.slane %v11957_v18, 2  ;;  %v11336_v10 = vsel %vm234_vm2, %v11333_v17, %v11335_v27  ;;  %v11338_v37 = vsel %vm234_vm2, %v11335_v27, %v11337_v13  ;;  %v11268_v53 = vmax.f32 %v11236_v28, 0.0  ;;  %11529 = vadd.xlane.f32.xlu1 %v11528_v19  ;;  %v14347_v6 = vpop.f32.mrb[170].mxu1  ;;  %v11456_v46 = vld [vmem:[#allocation2 + $0x20] sm:$0xff]  ;;  %v20044_v24 = vld [vmem:[#allocation2 + $0x30] sm:$0xff] }
 0xc57   :  { %11426 = vst.msk [vmem:[#allocation2 + $0x60] sm:$0xff] %vm2797_vm11, %v11336_v10  ;;  %11427 = vst.msk [vmem:[#allocation2 + $0x70] sm:$0xff] %vm2797_vm11, %v11338_v37  ;;  %v11341_v39 = vrot.slane %v11269_v45, 7  ;;  %v11239_v11 = vadd.f32 %v14347_v6, %v19997_v2  ;;  %v11080_v36 = vpop.f32.mrb[171].mxu1  ;;  %v11693_v41 = vsel %vm699_vm5, %v11691_v34, %v11692_v42  ;;  %v11495_v29 = vmul.f32 %v20013_v3, %v11456_v46 }
 0xc58   :  { %v11339_v48 = vrot.slane %v11268_v53, 7  ;;  %v11238_v51 = vadd.f32 %v19997_v2, %v11080_v36  ;;  %v11797_v60 = vmul.f32 %v20031_v50, %v11693_v41  ;;  %v11694_v52 = vrot.slane %v11456_v46, 1 }
 0xc59   :  { %v11271_v30 = vmax.f32 %v11239_v11, 0.0  ;;  %v11531_v31 = vsel %vm2797_vm11, %v11495_v29, 0.0  ;;  %v11968_v4 = vrot.slane %v11456_v46, 2  ;;  %v11967_v49 = vsel %vm974_vm6, %v11965_v7, %v11966_v14 }
 0xc5a   :  { %v11340_v38 = vsel %vm234_vm2, %v11337_v13, %v11339_v48  ;;  %v11342_v63 = vsel %vm234_vm2, %v11339_v48, %v11341_v39  ;;  %v11270_v12 = vmax.f32 %v11238_v51, 0.0  ;;  %v11829_v59 = vsel %vm2797_vm11, %v11797_v60, 0.0  ;;  %11532 = vadd.xlane.f32.xlu0 %v11531_v31  ;;  %v14350_v61 = vpop.f32.mrb[172].mxu1  ;;  %v20082_v27 = vld [vmem:[#allocation2 + $0x50] sm:$0xff]  ;;  %v11458_v53 = vld [vmem:[#allocation2 + $0x40] sm:$0xff] }
 0xc5b   :  { %11428 = vst.msk [vmem:[#allocation2 + $0x80] sm:$0xff] %vm2797_vm11, %v11340_v38  ;;  %11429 = vst.msk [vmem:[#allocation2 + $0x90] sm:$0xff] %vm2797_vm11, %v11342_v63  ;;  %v11345_v26 = vrot.slane %v11271_v30, 7  ;;  %11830 = vadd.xlane.f32.xlu1 %v11829_v59  ;;  %v11241_v23 = vadd.f32 %v14350_v61, %v19997_v2  ;;  %v11090_v1 = vpop.f32.mrb[173].mxu1  ;;  %v12071_v21 = vmul.f32 %v20042_v40, %v11967_v49  ;;  %v11696_v32 = vrot.slane %v20044_v24, 1 }
 0xc5c   :  { %v11496_v47 = vmul.f32 %v20013_v3, %v20044_v24  ;;  %v11343_v44 = vrot.slane %v11270_v12, 7  ;;  %v11240_v55 = vadd.f32 %v19997_v2, %v11090_v1  ;;  %v11970_v17 = vrot.slane %v20044_v24, 2 }
 0xc5d   :  { %v11273_v20 = vmax.f32 %v11241_v23, 0.0  ;;  %v12103_v5 = vsel %vm2797_vm11, %v12071_v21, 0.0  ;;  %v11695_v33 = vsel %vm699_vm5, %v11692_v42, %v11694_v52  ;;  %v11697_v54 = vsel %vm699_vm5, %v11694_v52, %v11696_v32 }
 0xc5e   :  { %v11534_v16 = vsel %vm2797_vm11, %v11496_v47, 0.0  ;;  %v11344_v62 = vsel %vm234_vm2, %v11341_v39, %v11343_v44  ;;  %v11346_v8 = vsel %vm234_vm2, %v11343_v44, %v11345_v26  ;;  %v11272_v22 = vmax.f32 %v11240_v55, 0.0  ;;  %v14353_v43 = vpop.f32.mrb[174].mxu1 }
 0xc5f   :  { %11535 = vadd.xlane.f32.xlu0 %v11534_v16  ;;  %11430 = vst.msk [vmem:[#allocation2 + $0xa0] sm:$0xff] %vm2797_vm11, %v11344_v62  ;;  %11431 = vst.msk [vmem:[#allocation2 + $0xb0] sm:$0xff] %vm2797_vm11, %v11346_v8  ;;  %v11349_v15 = vrot.slane %v11273_v20, 7  ;;  %12104 = vadd.xlane.f32.xlu1 %v12103_v5  ;;  %v11243_v58 = vadd.f32 %v14353_v43, %v19997_v2  ;;  %v11100_v0 = vpop.f32.mrb[175].mxu1  ;;  %v11799_v18 = vmul.f32 %v20031_v50, %v11697_v54 }
 0xc60   :  { %v11798_v13 = vmul.f32 %v20031_v50, %v11695_v33  ;;  %v11347_v35 = vrot.slane %v11272_v22, 7  ;;  %v11242_v57 = vadd.f32 %v19997_v2, %v11100_v0  ;;  %v11971_v56 = vsel %vm974_vm6, %v11968_v4, %v11970_v17 }
 0xc61   :  { %v11969_v42 = vsel %vm974_vm6, %v11966_v14, %v11968_v4  ;;  %v11275_v28 = vmax.f32 %v11243_v58, 0.0  ;;  %v11835_v9 = vsel %vm2797_vm11, %v11799_v18, 0.0  ;;  %v12073_v19 = vmul.f32 %v20042_v40, %v11971_v56  ;;  %v20130_v58 = vld [vmem:[#allocation2 + $0x70] sm:$0xff] }
 0xc62   :  { %v11832_v45 = vsel %vm2797_vm11, %v11798_v13, 0.0  ;;  %v11348_v34 = vsel %vm234_vm2, %v11345_v26, %v11347_v35  ;;  %v11350_v7 = vsel %vm234_vm2, %v11347_v35, %v11349_v15  ;;  %v11274_v10 = vmax.f32 %v11242_v57, 0.0  ;;  %v14356_v37 = vpop.f32.mrb[176].mxu1  ;;  %v11460_v57 = vld [vmem:[#allocation2 + $0x60] sm:$0xff] }
 0xc63   :  { %11833 = vadd.xlane.f32.xlu0 %v11832_v45  ;;  %v12072_v25 = vmul.f32 %v20042_v40, %v11969_v42  ;;  %11432 = vst.msk [vmem:[#allocation2 + $0xc0] sm:$0xff] %vm2797_vm11, %v11348_v34  ;;  %11433 = vst.msk [vmem:[#allocation2 + $0xd0] sm:$0xff] %vm2797_vm11, %v11350_v7  ;;  %v11353_v14 = vrot.slane %v11275_v28, 7  ;;  %11836 = vadd.xlane.f32.xlu1 %v11835_v9  ;;  %v11245_v6 = vadd.f32 %v14356_v37, %v19997_v2  ;;  %v11110_v46 = vpop.f32.mrb[177].mxu1 }
 0xc64   :  { %v12109_v39 = vsel %vm2797_vm11, %v12073_v19, 0.0  ;;  %v11498_v11 = vmul.f32 %v20013_v3, %v20082_v27  ;;  %v11351_v36 = vrot.slane %v11274_v10, 7  ;;  %v11244_v41 = vadd.f32 %v19997_v2, %v11110_v46 }
 0xc65   :  { %v12106_v29 = vsel %vm2797_vm11, %v12072_v25, 0.0  ;;  %v11700_v48 = vrot.slane %v20082_v27, 1  ;;  %11436 = vst.msk [vmem:[#allocation2 + $0x100] sm:$0x1] %vm2813_vm12, %v11353_v14  ;;  %v11277_v51 = vmax.f32 %v11245_v6, 0.0  ;;  %v11974_v52 = vrot.slane %v20082_v27, 2 }
 0xc66   :  { %v11540_v60 = vsel %vm2797_vm11, %v11498_v11, 0.0  ;;  %v11497_v30 = vmul.f32 %v20013_v3, %v11458_v53  ;;  %v11352_v31 = vsel %vm234_vm2, %v11349_v15, %v11351_v36  ;;  %v11354_v4 = vsel %vm234_vm2, %v11351_v36, %v11353_v14  ;;  %v14359_v38 = vpop.f32.mrb[178].mxu1 }
 0xc67   :  { %v11276_v49 = vmax.f32 %v11244_v41, 0.0  ;;  %12107 = vadd.xlane.f32.xlu0 %v12106_v29  ;;  %v11698_v63 = vrot.slane %v11458_v53, 1  ;;  %11434 = vst.msk [vmem:[#allocation2 + $0xe0] sm:$0xff] %vm2797_vm11, %v11352_v31  ;;  %11435 = vst.msk [vmem:[#allocation2 + $0xf0] sm:$0xff] %vm2797_vm11, %v11354_v4  ;;  %v11356_v12 = vrot.slane %v11277_v51, 7  ;;  %12110 = vadd.xlane.f32.xlu1 %v12109_v39  ;;  %v11247_v59 = vadd.f32 %v14359_v38, %v19997_v2  ;;  %v11120_v61 = vpop.f32.mrb[179].mxu1 }
 0xc68   :  { %v11537_v26 = vsel %vm2797_vm11, %v11497_v30, 0.0  ;;  %v11972_v23 = vrot.slane %v11458_v53, 2  ;;  %v11246_v21 = vadd.f32 %v19997_v2, %v11120_v61  ;;  %v11500_v10 = vmul.f32 %v20013_v3, %v20130_v58 }
 0xc69   :  { %v11355_v1 = vrot.slane %v11276_v49, 7  ;;  %v11699_v47 = vsel %vm699_vm5, %v11696_v32, %v11698_v63  ;;  %v11701_v44 = vsel %vm699_vm5, %v11698_v63, %v11700_v48  ;;  %v11279_v55 = vmax.f32 %v11247_v59, 0.0 }
 0xc6a   :  { %v11800_v20 = vmul.f32 %v20031_v50, %v11699_v47  ;;  %v11801_v5 = vmul.f32 %v20031_v50, %v11701_v44  ;;  %v11973_v16 = vsel %vm974_vm6, %v11970_v17, %v11972_v23  ;;  %v11278_v62 = vmax.f32 %v11246_v21, 0.0  ;;  %v14362_v32 = vpop.f32.mrb[180].mxu1 }
 0xc6b   :  { %v11357_v33 = vsel %vm234_vm2, %v11355_v1, %v11356_v12  ;;  %11437 = vst.msk [vmem:[#allocation2 + $0x110] sm:$0xfe] %vm2795_vm10, %v11355_v1  ;;  %11541 = vadd.xlane.f32.xlu0 %v11540_v60  ;;  %v12074_v8 = vmul.f32 %v20042_v40, %v11973_v16  ;;  %v11975_v22 = vsel %vm974_vm6, %v11972_v23, %v11974_v52  ;;  %v11360_v43 = vrot.slane %v11279_v55, 7  ;;  %v11130_v17 = vpop.f32.mrb[181].mxu1  ;;  %v20174_v16 = vld [vmem:[#allocation2 + $0x80] sm:$0xff] }
 0xc6c   :  { %11438 = vst.msk [vmem:[#allocation2 + $0x120] sm:$0xff] %vm2797_vm11, %v11357_v33  ;;  %11538 = vadd.xlane.f32.xlu1 %v11537_v26  ;;  %v11249_v24 = vadd.f32 %v14362_v32, %v19997_v2  ;;  %v11358_v54 = vrot.slane %v11278_v62, 7  ;;  %v11248_v15 = vadd.f32 %v19997_v2, %v11130_v17  ;;  %v11838_v18 = vsel %vm2797_vm11, %v11800_v20, 0.0 }
 0xc6d   :  { %v11841_v13 = vsel %vm2797_vm11, %v11801_v5, 0.0  ;;  %v12075_v35 = vmul.f32 %v20042_v40, %v11975_v22  ;;  %v12112_v45 = vsel %vm2797_vm11, %v12074_v8, 0.0  ;;  %v11704_v37 = vrot.slane %v20130_v58, 1  ;;  %v20172_v5 = vld [vmem:[#allocation2 + $0x90] sm:$0xff] }
 0xc6e   :  { %v11281_v0 = vmax.f32 %v11249_v24, 0.0  ;;  %v11359_v56 = vsel %vm234_vm2, %v11356_v12, %v11358_v54  ;;  %v11361_v42 = vsel %vm234_vm2, %v11358_v54, %v11360_v43  ;;  %v11280_v28 = vmax.f32 %v11248_v15, 0.0  ;;  %v14365_v9 = vpop.f32.mrb[182].mxu1 }
 0xc6f   :  { %11839 = vadd.xlane.f32.xlu0 %v11838_v18  ;;  %11439 = vst.msk [vmem:[#allocation2 + $0x130] sm:$0xff] %vm2797_vm11, %v11359_v56  ;;  %11440 = vst.msk [vmem:[#allocation2 + $0x140] sm:$0xff] %vm2797_vm11, %v11361_v42  ;;  %v11251_v34 = vadd.f32 %v14365_v9, %v19997_v2  ;;  %v11140_v7 = vpop.f32.mrb[183].mxu1  ;;  %v11499_v14 = vmul.f32 %v20013_v3, %v11460_v57  ;;  %v11702_v6 = vrot.slane %v11460_v57, 1  ;;  %v12115_v39 = vsel %vm2797_vm11, %v12075_v35, 0.0 }
 0xc70   :  { %v11364_v19 = vrot.slane %v11281_v0, 7  ;;  %11842 = vadd.xlane.f32.xlu1 %v11841_v13  ;;  %v11362_v25 = vrot.slane %v11280_v28, 7  ;;  %v11250_v53 = vadd.f32 %v19997_v2, %v11140_v7  ;;  %v11978_v11 = vrot.slane %v20130_v58, 2 }
 0xc71   :  { %v11283_v46 = vmax.f32 %v11251_v34, 0.0  ;;  %v11976_v36 = vrot.slane %v11460_v57, 2  ;;  %v11703_v30 = vsel %vm699_vm5, %v11700_v48, %v11702_v6  ;;  %v11705_v38 = vsel %vm699_vm5, %v11702_v6, %v11704_v37 }
 0xc72   :  { %v11363_v41 = vsel %vm234_vm2, %v11360_v43, %v11362_v25  ;;  %v11365_v29 = vsel %vm234_vm2, %v11362_v25, %v11364_v19  ;;  %v11282_v51 = vmax.f32 %v11250_v53, 0.0  ;;  %v14368_v60 = vpop.f32.mrb[184].mxu1  ;;  %v11546_v59 = vsel %vm2797_vm11, %v11500_v10, 0.0 }
 0xc73   :  { %12113 = vadd.xlane.f32.xlu0 %v12112_v45  ;;  %11441 = vst.msk [vmem:[#allocation2 + $0x150] sm:$0xff] %vm2797_vm11, %v11363_v41  ;;  %11442 = vst.msk [vmem:[#allocation2 + $0x160] sm:$0xff] %vm2797_vm11, %v11365_v29  ;;  %v11368_v31 = vrot.slane %v11283_v46, 7  ;;  %v11253_v4 = vadd.f32 %v14368_v60, %v19997_v2  ;;  %v11150_v49 = vpop.f32.mrb[185].mxu1  ;;  %v11543_v48 = vsel %vm2797_vm11, %v11499_v14, 0.0  ;;  %v11802_v26 = vmul.f32 %v20031_v50, %v11703_v30 }
 0xc74   :  { %12116 = vadd.xlane.f32.xlu1 %v12115_v39  ;;  %v11366_v63 = vrot.slane %v11282_v51, 7  ;;  %v11252_v12 = vadd.f32 %v19997_v2, %v11150_v49  ;;  %v11977_v23 = vsel %vm974_vm6, %v11974_v52, %v11976_v36  ;;  %v11979_v1 = vsel %vm974_vm6, %v11976_v36, %v11978_v11 }
 0xc75   :  { %v11285_v61 = vmax.f32 %v11253_v4, 0.0  ;;  %v11803_v20 = vmul.f32 %v20031_v50, %v11705_v38  ;;  %v12076_v8 = vmul.f32 %v20042_v40, %v11977_v23  ;;  %v12077_v22 = vmul.f32 %v20042_v40, %v11979_v1  ;;  %v11464_v23 = vld [vmem:[#allocation2 + $0xa0] sm:$0xff] }
 0xc76   :  { %v11367_v21 = vsel %vm234_vm2, %v11364_v19, %v11366_v63  ;;  %v11369_v47 = vsel %vm234_vm2, %v11366_v63, %v11368_v31  ;;  %v11284_v44 = vmax.f32 %v11252_v12, 0.0  ;;  %v14371_v55 = vpop.f32.mrb[186].mxu1  ;;  %v11844_v24 = vsel %vm2797_vm11, %v11802_v26, 0.0 }
 0xc77   :  { %11547 = vadd.xlane.f32.xlu0 %v11546_v59  ;;  %11443 = vst.msk [vmem:[#allocation2 + $0x170] sm:$0xff] %vm2797_vm11, %v11367_v21  ;;  %11444 = vst.msk [vmem:[#allocation2 + $0x180] sm:$0xff] %vm2797_vm11, %v11369_v47  ;;  %v11372_v27 = vrot.slane %v11285_v61, 7  ;;  %v11255_v52 = vadd.f32 %v14371_v55, %v19997_v2  ;;  %v11160_v33 = vpop.f32.mrb[187].mxu1  ;;  %v11708_v17 = vrot.slane %v20172_v5, 1  ;;  %v11706_v54 = vrot.slane %v20174_v16, 1 }
 0xc78   :  { %11544 = vadd.xlane.f32.xlu1 %v11543_v48  ;;  %v11370_v62 = vrot.slane %v11284_v44, 7  ;;  %v11254_v32 = vadd.f32 %v19997_v2, %v11160_v33  ;;  %v11847_v13 = vsel %vm2797_vm11, %v11803_v20, 0.0  ;;  %v11502_v28 = vmul.f32 %v20013_v3, %v20172_v5  ;;  %v11465_v21 = vld [vmem:[#allocation2 + $0xb0] sm:$0xff] }
 0xc79   :  { %v11287_v43 = vmax.f32 %v11255_v52, 0.0  ;;  %v12118_v19 = vsel %vm2797_vm11, %v12076_v8, 0.0  ;;  %v12121_v34 = vsel %vm2797_vm11, %v12077_v22, 0.0  ;;  %v11501_v10 = vmul.f32 %v20013_v3, %v20174_v16 }
 0xc7a   :  { %v11371_v15 = vsel %vm234_vm2, %v11368_v31, %v11370_v62  ;;  %v11373_v0 = vsel %vm234_vm2, %v11370_v62, %v11372_v27  ;;  %v11286_v18 = vmax.f32 %v11254_v32, 0.0  ;;  %v14374_v35 = vpop.f32.mrb[188].mxu1  ;;  %v11980_v25 = vrot.slane %v20174_v16, 2 }
 0xc7b   :  { %11845 = vadd.xlane.f32.xlu0 %v11844_v24  ;;  %11445 = vst.msk [vmem:[#allocation2 + $0x190] sm:$0xff] %vm2797_vm11, %v11371_v15  ;;  %11446 = vst.msk [vmem:[#allocation2 + $0x1a0] sm:$0xff] %vm2797_vm11, %v11373_v0  ;;  %v11376_v57 = vrot.slane %v11287_v43, 7  ;;  %v11257_v56 = vadd.f32 %v14374_v35, %v19997_v2  ;;  %v11170_v42 = vpop.f32.mrb[189].mxu1  ;;  %v11707_v53 = vsel %vm699_vm5, %v11704_v37, %v11706_v54  ;;  %v11982_v51 = vrot.slane %v20172_v5, 2  ;;  %v11466_v35 = vld [vmem:[#allocation2 + $0xc0] sm:$0xff] }
 0xc7c   :  { %11848 = vadd.xlane.f32.xlu1 %v11847_v13  ;;  %v11374_v9 = vrot.slane %v11286_v18, 7  ;;  %v11256_v45 = vadd.f32 %v19997_v2, %v11170_v42  ;;  %v11709_v36 = vsel %vm699_vm5, %v11706_v54, %v11708_v17  ;;  %v11552_v31 = vsel %vm2797_vm11, %v11502_v28, 0.0 }
 0xc7d   :  { %v11289_v7 = vmax.f32 %v11257_v56, 0.0  ;;  %v11549_v49 = vsel %vm2797_vm11, %v11501_v10, 0.0  ;;  %v11804_v38 = vmul.f32 %v20031_v50, %v11707_v53  ;;  %v11805_v63 = vmul.f32 %v20031_v50, %v11709_v36 }
 0xc7e   :  { %v11375_v14 = vsel %vm234_vm2, %v11372_v27, %v11374_v9  ;;  %v11377_v6 = vsel %vm234_vm2, %v11374_v9, %v11376_v57  ;;  %v11288_v46 = vmax.f32 %v11256_v45, 0.0  ;;  %v14377_v39 = vpop.f32.mrb[190].mxu1  ;;  %v11981_v61 = vsel %vm974_vm6, %v11978_v11, %v11980_v25 }
 0xc7f   :  { %12119 = vadd.xlane.f32.xlu0 %v12118_v19  ;;  %11447 = vst.msk [vmem:[#allocation2 + $0x1b0] sm:$0xff] %vm2797_vm11, %v11375_v14  ;;  %11448 = vst.msk [vmem:[#allocation2 + $0x1c0] sm:$0xff] %vm2797_vm11, %v11377_v6  ;;  %v11380_v41 = vrot.slane %v11289_v7, 7  ;;  %v11259_v29 = vadd.f32 %v14377_v39, %v19997_v2  ;;  %v11180_v37 = vpop.f32.mrb[191].mxu1  ;;  %v11983_v26 = vsel %vm974_vm6, %v11980_v25, %v11982_v51  ;;  %v11850_v47 = vsel %vm2797_vm11, %v11804_v38, 0.0 }
 0xc80   :  { %12122 = vadd.xlane.f32.xlu1 %v12121_v34  ;;  %v11378_v60 = vrot.slane %v11288_v46, 7  ;;  %v11258_v30 = vadd.f32 %v19997_v2, %v11180_v37  ;;  %v11853_v44 = vsel %vm2797_vm11, %v11805_v63, 0.0  ;;  %v12078_v58 = vmul.f32 %v20042_v40, %v11981_v61 }
 0xc81   :  { %v11291_v4 = vmax.f32 %v11259_v29, 0.0  ;;  %v12079_v20 = vmul.f32 %v20042_v40, %v11983_v26  ;;  %v11710_v16 = vrot.slane %v11464_v23, 1  ;;  %v11712_v27 = vrot.slane %v11465_v21, 1 }
 0xc82   :  { %v11379_v12 = vsel %vm234_vm2, %v11376_v57, %v11378_v60  ;;  %v11381_v59 = vsel %vm234_vm2, %v11378_v60, %v11380_v41  ;;  %v11290_v48 = vmax.f32 %v11258_v30, 0.0  ;;  %v12124_v52 = vsel %vm2797_vm11, %v12078_v58, 0.0 }
 0xc83   :  { %11553 = vadd.xlane.f32.xlu0 %v11552_v31  ;;  %11449 = vst.msk [vmem:[#allocation2 + $0x1d0] sm:$0xff] %vm2797_vm11, %v11379_v12  ;;  %11450 = vst.msk [vmem:[#allocation2 + $0x1e0] sm:$0xff] %vm2797_vm11, %v11381_v59  ;;  %v11384_v2 = vrot.slane %v11291_v4, 7  ;;  %v11504_v33 = vmul.f32 %v20013_v3, %v11465_v21  ;;  %v12127_v62 = vsel %vm2797_vm11, %v12079_v20, 0.0  ;;  %v11503_v32 = vmul.f32 %v20013_v3, %v11464_v23  ;;  %v11654_v59 = vld [vmem:[#allocation2 + $0x100] sm:$0x1] }
 0xc84   :  { %11550 = vadd.xlane.f32.xlu1 %v11549_v49  ;;  %v11382_v1 = vrot.slane %v11290_v48, 7  ;;  %v11984_v8 = vrot.slane %v11464_v23, 2  ;;  %v11711_v22 = vsel %vm699_vm5, %v11708_v17, %v11710_v16  ;;  %v11986_v43 = vrot.slane %v11465_v21, 2  ;;  %v20247_v17 = vld [vmem:[#allocation2 + $0xd0] sm:$0xff] }
 0xc85   :  { %11453 = vst.msk [vmem:[#allocation2 + $0x210] sm:$0x1] %vm2813_vm12, %v11384_v2  ;;  %v11713_v24 = vsel %vm699_vm5, %v11710_v16, %v11712_v27  ;;  %v11558_v54 = vsel %vm2797_vm11, %v11504_v33, 0.0  ;;  %v11806_v15 = vmul.f32 %v20031_v50, %v11711_v22  ;;  %v11555_v0 = vsel %vm2797_vm11, %v11503_v32, 0.0  ;;  %v11469_v49 = vld [vmem:[#allocation2 + $0xf0] sm:$0xff] }
 0xc86   :  { %v11383_v11 = vsel %vm234_vm2, %v11380_v41, %v11382_v1  ;;  %v11385_v55 = vsel %vm234_vm2, %v11382_v1, %v11384_v2  ;;  %v11807_v18 = vmul.f32 %v20031_v50, %v11713_v24  ;;  %v11985_v13 = vsel %vm974_vm6, %v11982_v51, %v11984_v8  ;;  %v11468_v51 = vld [vmem:[#allocation2 + $0xe0] sm:$0xff]  ;;  %v11470_v23 = vld [vmem:[#allocation2 + $0x110] sm:$0xff] }
 0xc87   :  { %11851 = vadd.xlane.f32.xlu0 %v11850_v47  ;;  %11451 = vst.msk [vmem:[#allocation2 + $0x1f0] sm:$0xff] %vm2797_vm11, %v11383_v11  ;;  %11452 = vst.msk [vmem:[#allocation2 + $0x200] sm:$0xff] %vm2797_vm11, %v11385_v55  ;;  %v11987_v5 = vsel %vm974_vm6, %v11984_v8, %v11986_v43  ;;  %v11856_v57 = vsel %vm2797_vm11, %v11806_v15, 0.0  ;;  %v12080_v56 = vmul.f32 %v20042_v40, %v11985_v13  ;;  %v11714_v9 = vrot.slane %v11466_v35, 1  ;;  %v11958_v32 = vld [vmem:[#allocation2 + $0x100] sm:$0x3] }
 0xc88   :  { %11854 = vadd.xlane.f32.xlu1 %v11853_v44  ;;  %v11859_v42 = vsel %vm2797_vm11, %v11807_v18, 0.0  ;;  %v12081_v28 = vmul.f32 %v20042_v40, %v11987_v5  ;;  %v11716_v45 = vrot.slane %v20247_v17, 1  ;;  %v11506_v34 = vmul.f32 %v20013_v3, %v20247_v17  ;;  %v11959_v18 = vld [vmem:[#allocation2 + $0x110] sm:$0xfc] }
 0xc89   :  { %v12130_v19 = vsel %vm2797_vm11, %v12080_v56, 0.0  ;;  %v11505_v10 = vmul.f32 %v20013_v3, %v11466_v35  ;;  %v11988_v25 = vrot.slane %v11466_v35, 2  ;;  %v11715_v53 = vsel %vm699_vm5, %v11712_v27, %v11714_v9  ;;  %v11471_v27 = vld [vmem:[#allocation2 + $0x120] sm:$0xff] }
 0xc8a   :  { %v12133_v7 = vsel %vm2797_vm11, %v12081_v28, 0.0  ;;  %v11990_v14 = vrot.slane %v20247_v17, 2  ;;  %v11717_v6 = vsel %vm699_vm5, %v11714_v9, %v11716_v45  ;;  %v11564_v46 = vsel %vm2797_vm11, %v11506_v34, 0.0 }
 0xc8b   :  { %12125 = vadd.xlane.f32.xlu0 %v12124_v52  ;;  %v11808_v39 = vmul.f32 %v20031_v50, %v11715_v53  ;;  %v11561_v36 = vsel %vm2797_vm11, %v11505_v10, 0.0  ;;  %v11809_v41 = vmul.f32 %v20031_v50, %v11717_v6  ;;  %v11989_v29 = vsel %vm974_vm6, %v11986_v43, %v11988_v25  ;;  %v11655_v52 = vld [vmem:[#allocation2 + $0x110] sm:$0xfe] }
 0xc8c   :  { %12128 = vadd.xlane.f32.xlu1 %v12127_v62  ;;  %v11991_v37 = vsel %vm974_vm6, %v11988_v25, %v11990_v14  ;;  %v12082_v30 = vmul.f32 %v20042_v40, %v11989_v29  ;;  %v11718_v38 = vrot.slane %v11468_v51, 1  ;;  %v11508_v12 = vmul.f32 %v20013_v3, %v11469_v49  ;;  %v11472_v10 = vld [vmem:[#allocation2 + $0x130] sm:$0xff]  ;;  %v11473_v25 = vld [vmem:[#allocation2 + $0x140] sm:$0xff] }
 0xc8d   :  { %v11862_v60 = vsel %vm2797_vm11, %v11808_v39, 0.0  ;;  %v11865_v31 = vsel %vm2797_vm11, %v11809_v41, 0.0  ;;  %v12083_v4 = vmul.f32 %v20042_v40, %v11991_v37  ;;  %v11720_v61 = vrot.slane %v11469_v49, 1 }
 0xc8e   :  { %v12136_v63 = vsel %vm2797_vm11, %v12082_v30, 0.0  ;;  %v11507_v2 = vmul.f32 %v20013_v3, %v11468_v51  ;;  %v11719_v26 = vsel %vm699_vm5, %v11716_v45, %v11718_v38  ;;  %v11722_v1 = vrot.slane %v11654_v59, 1 }
 0xc8f   :  { %11559 = vadd.xlane.f32.xlu0 %v11558_v54  ;;  %v12139_v48 = vsel %vm2797_vm11, %v12083_v4, 0.0  ;;  %v11570_v21 = vsel %vm2797_vm11, %v11508_v12, 0.0  ;;  %v11810_v47 = vmul.f32 %v20031_v50, %v11719_v26  ;;  %v11992_v58 = vrot.slane %v11468_v51, 2 }
 0xc90   :  { %11556 = vadd.xlane.f32.xlu1 %v11555_v0  ;;  %v11567_v44 = vsel %vm2797_vm11, %v11507_v2, 0.0  ;;  %v11509_v11 = vmul.f32 %v20013_v3, %v11470_v23  ;;  %v11723_v55 = vsel %vm699_vm5, %v11720_v61, %v11722_v1  ;;  %v11994_v20 = vrot.slane %v11469_v49, 2  ;;  %v11475_v2 = vld [vmem:[#allocation2 + $0x160] sm:$0xff] }
 0xc91   :  { %v11721_v16 = vsel %vm699_vm5, %v11718_v38, %v11720_v61  ;;  %v11868_v33 = vsel %vm2797_vm11, %v11810_v47, 0.0  ;;  %v11812_v62 = vmul.f32 %v20031_v50, %v11723_v55  ;;  %v11993_v43 = vsel %vm974_vm6, %v11990_v14, %v11992_v58  ;;  %v11474_v61 = vld [vmem:[#allocation2 + $0x150] sm:$0xff] }
 0xc92   :  { %v11573_v8 = vsel %vm2797_vm11, %v11509_v11, 0.0  ;;  %v11811_v22 = vmul.f32 %v20031_v50, %v11721_v16  ;;  %v11995_v24 = vsel %vm974_vm6, %v11992_v58, %v11994_v20  ;;  %v11724_v54 = vrot.slane %v11655_v52, 1 }
 0xc93   :  { %11857 = vadd.xlane.f32.xlu0 %v11856_v57  ;;  %v11725_v15 = vrot.slane %v11471_v27, 1  ;;  %v11996_v0 = vrot.slane %v11958_v32, 2  ;;  %v11874_v13 = vsel %vm2797_vm11, %v11812_v62, 0.0  ;;  %v12084_v5 = vmul.f32 %v20042_v40, %v11993_v43 }
 0xc94   :  { %11860 = vadd.xlane.f32.xlu1 %v11859_v42  ;;  %v11871_v35 = vsel %vm2797_vm11, %v11811_v22, 0.0  ;;  %v12085_v17 = vmul.f32 %v20042_v40, %v11995_v24  ;;  %v11998_v42 = vrot.slane %v11959_v18, 2  ;;  %v11999_v28 = vrot.slane %v11471_v27, 2 }
 0xc95   :  { %v11997_v57 = vsel %vm974_vm6, %v11994_v20, %v11996_v0  ;;  %v11726_v56 = vsel %vm699_vm5, %v11724_v54, %v11725_v15  ;;  %v12142_v9 = vsel %vm2797_vm11, %v12084_v5, 0.0  ;;  %v11510_v14 = vmul.f32 %v20013_v3, %v11471_v27  ;;  %v11476_v54 = vld [vmem:[#allocation2 + $0x170] sm:$0xff] }
 0xc96   :  { %v12086_v45 = vmul.f32 %v20042_v40, %v11997_v57  ;;  %v11813_v34 = vmul.f32 %v20031_v50, %v11726_v56  ;;  %v11727_v39 = vrot.slane %v11472_v10, 1  ;;  %v11512_v29 = vmul.f32 %v20013_v3, %v11473_v25 }
 0xc97   :  { %12131 = vadd.xlane.f32.xlu0 %v12130_v19  ;;  %v12145_v19 = vsel %vm2797_vm11, %v12085_v17, 0.0  ;;  %v11576_v41 = vsel %vm2797_vm11, %v11510_v14, 0.0  ;;  %v11511_v51 = vmul.f32 %v20013_v3, %v11472_v10  ;;  %v11731_v47 = vrot.slane %v11474_v61, 1 }
 0xc98   :  { %12134 = vadd.xlane.f32.xlu1 %v12133_v7  ;;  %v12000_v7 = vsel %vm974_vm6, %v11998_v42, %v11999_v28  ;;  %v12148_v53 = vsel %vm2797_vm11, %v12086_v45, 0.0  ;;  %v11877_v6 = vsel %vm2797_vm11, %v11813_v34, 0.0  ;;  %v11728_v30 = vsel %vm699_vm5, %v11725_v15, %v11727_v39  ;;  %v11477_v15 = vld [vmem:[#allocation2 + $0x180] sm:$0xff] }
 0xc99   :  { %v11582_v49 = vsel %vm2797_vm11, %v11512_v29, 0.0  ;;  %v11814_v38 = vmul.f32 %v20031_v50, %v11728_v30  ;;  %v11514_v11 = vmul.f32 %v20013_v3, %v11475_v2  ;;  %v11513_v20 = vmul.f32 %v20013_v3, %v11474_v61 }
 0xc9a   :  { %v12005_v16 = vrot.slane %v11474_v61, 2  ;;  %v12007_v52 = vrot.slane %v11475_v2, 2  ;;  %v11737_v17 = vrot.slane %v11477_v15, 1  ;;  %v11516_v56 = vmul.f32 %v20013_v3, %v11477_v15 }
 0xc9b   :  { %11565 = vadd.xlane.f32.xlu0 %v11564_v46  ;;  %v12087_v46 = vmul.f32 %v20042_v40, %v12000_v7  ;;  %v11880_v26 = vsel %vm2797_vm11, %v11814_v38, 0.0  ;;  %v11588_v62 = vsel %vm2797_vm11, %v11514_v11, 0.0 }
 0xc9c   :  { %11562 = vadd.xlane.f32.xlu1 %v11561_v36  ;;  %v11729_v36 = vrot.slane %v11473_v25, 1  ;;  %v12008_v24 = vsel %vm974_vm6, %v12005_v16, %v12007_v52  ;;  %v11594_v7 = vsel %vm2797_vm11, %v11516_v56, 0.0 }
 0xc9d   :  { %v12151_v37 = vsel %vm2797_vm11, %v12087_v46, 0.0  ;;  %v12091_v5 = vmul.f32 %v20042_v40, %v12008_v24  ;;  %v11478_v46 = vld [vmem:[#allocation2 + $0x190] sm:$0xff] }
 0xc9e   :  { %v11730_v4 = vsel %vm699_vm5, %v11727_v39, %v11729_v36  ;;  %v11732_v27 = vsel %vm699_vm5, %v11729_v36, %v11731_v47  ;;  %v20348_v39 = vld [vmem:[#allocation2 + $0x1a0] sm:$0xff]  ;;  %v12013_v38 = vrot.slane %v11478_v46, 2 }
 0xc9f   :  { %11863 = vadd.xlane.f32.xlu0 %v11862_v60  ;;  %v12001_v60 = vrot.slane %v11472_v10, 2  ;;  %v11815_v12 = vmul.f32 %v20031_v50, %v11730_v4  ;;  %v11816_v32 = vmul.f32 %v20031_v50, %v11732_v27  ;;  %v12163_v42 = vsel %vm2797_vm11, %v12091_v5, 0.0 }
 0xca0   :  { %11866 = vadd.xlane.f32.xlu1 %v11865_v31  ;;  %v12003_v31 = vrot.slane %v11473_v25, 2 }
 0xca1   :  { %v12002_v59 = vsel %vm974_vm6, %v11999_v28, %v12001_v60  ;;  %v11883_v1 = vsel %vm2797_vm11, %v11815_v12, 0.0  ;;  %v11886_v0 = vsel %vm2797_vm11, %v11816_v32, 0.0  ;;  %v11515_v28 = vmul.f32 %v20013_v3, %v11476_v54 }
 0xca2   :  { %v12088_v23 = vmul.f32 %v20042_v40, %v12002_v59  ;;  %v12006_v43 = vsel %vm974_vm6, %v12003_v31, %v12005_v16  ;;  %v12015_v12 = vrot.slane %v20348_v39, 2 }
 0xca3   :  { %12137 = vadd.xlane.f32.xlu0 %v12136_v63  ;;  %v11579_v63 = vsel %vm2797_vm11, %v11511_v51, 0.0  ;;  %v12090_v18 = vmul.f32 %v20042_v40, %v12006_v43  ;;  %v11591_v25 = vsel %vm2797_vm11, %v11515_v28, 0.0  ;;  %v11739_v51 = vrot.slane %v11478_v46, 1 }
 0xca4   :  { %12140 = vadd.xlane.f32.xlu1 %v12139_v48  ;;  %v12004_v48 = vsel %vm974_vm6, %v12001_v60, %v12003_v31  ;;  %v12154_v58 = vsel %vm2797_vm11, %v12088_v23, 0.0  ;;  %v11741_v60 = vrot.slane %v20348_v39, 1  ;;  %v11518_v31 = vmul.f32 %v20013_v3, %v20348_v39 }
 0xca5   :  { %v12160_v57 = vsel %vm2797_vm11, %v12090_v18, 0.0  ;;  %v20388_v18 = vld [vmem:[#allocation4] ss:$0 sm:$0xff] }
 0xca6   :  { %v11742_v59 = vsel %vm699_vm5, %v11739_v51, %v11741_v60 }
 0xca7   :  { %11571 = vadd.xlane.f32.xlu0 %v11570_v21  ;;  %v12089_v21 = vmul.f32 %v20042_v40, %v12004_v48  ;;  %v11600_v48 = vsel %vm2797_vm11, %v11518_v31, 0.0  ;;  %v11821_v23 = vmul.f32 %v20031_v50, %v11742_v59 }
 0xca8   :  { %11568 = vadd.xlane.f32.xlu1 %v11567_v44  ;;  %v11733_v44 = vrot.slane %v11475_v2, 1 }
 0xca9   :  { %v12157_v55 = vsel %vm2797_vm11, %v12089_v21, 0.0  ;;  %v12016_v21 = vsel %vm974_vm6, %v12013_v38, %v12015_v12 }
 0xcab   :  { %11869 = vadd.xlane.f32.xlu0 %v11868_v33  ;;  %v11734_v33 = vsel %vm699_vm5, %v11731_v47, %v11733_v44  ;;  %v11480_v47 = vld [vmem:[#allocation2 + $0x1b0] sm:$0xff] }
 0xcac   :  { %11574 = vadd.xlane.f32.xlu1 %v11573_v8  ;;  %v11585_v8 = vsel %vm2797_vm11, %v11513_v20, 0.0  ;;  %v11817_v22 = vmul.f32 %v20031_v50, %v11734_v33  ;;  %v12095_v20 = vmul.f32 %v20042_v40, %v12016_v21  ;;  %v11743_v16 = vrot.slane %v11480_v47, 1 }
 0xcad   :  { %v12017_v43 = vrot.slane %v11480_v47, 2 }
 0xcaf   :  { %11875 = vadd.xlane.f32.xlu0 %v11874_v13  ;;  %v11889_v13 = vsel %vm2797_vm11, %v11817_v22, 0.0  ;;  %v12018_v28 = vsel %vm974_vm6, %v12015_v12, %v12017_v43 }
 0xcb0   :  { %11872 = vadd.xlane.f32.xlu1 %v11871_v35  ;;  %v11735_v35 = vrot.slane %v11476_v54, 1 }
 0xcb2   :  { %v11736_v45 = vsel %vm699_vm5, %v11733_v44, %v11735_v35  ;;  %v11738_v34 = vsel %vm699_vm5, %v11735_v35, %v11737_v17  ;;  %v20369_v44 = vld [vmem:[#allocation2 + $0x1c0] sm:$0xff] }
 0xcb3   :  { %12143 = vadd.xlane.f32.xlu0 %v12142_v9  ;;  %v12009_v9 = vrot.slane %v11476_v54, 2  ;;  %v11818_v10 = vmul.f32 %v20031_v50, %v11736_v45  ;;  %v11745_v27 = vrot.slane %v20369_v44, 1 }
 0xcb4   :  { %12146 = vadd.xlane.f32.xlu1 %v12145_v19  ;;  %v12011_v19 = vrot.slane %v11477_v15, 2  ;;  %v12019_v15 = vrot.slane %v20369_v44, 2 }
 0xcb5   :  { %v12010_v14 = vsel %vm974_vm6, %v12007_v52, %v12009_v9  ;;  %v11892_v36 = vsel %vm2797_vm11, %v11818_v10, 0.0  ;;  %v20399_v10 = vld [vmem:[#allocation2 + $0x1e0] sm:$0xff] }
 0xcb7   :  { %12149 = vadd.xlane.f32.xlu0 %v12148_v53  ;;  %v11819_v53 = vmul.f32 %v20031_v50, %v11738_v34  ;;  %v11482_v34 = vld [vmem:[#allocation2 + $0x1d0] sm:$0xff] }
 0xcb8   :  { %11878 = vadd.xlane.f32.xlu1 %v11877_v6  ;;  %v12012_v6 = vsel %vm974_vm6, %v12009_v9, %v12011_v19  ;;  %v12021_v12 = vrot.slane %v11482_v34, 2 }
 0xcb9   :  { %v11895_v29 = vsel %vm2797_vm11, %v11819_v53, 0.0  ;;  %v20406_v53 = vld [vmem:[#allocation12 + $0x2] ss:$0 sm:$0xff] }
 0xcbb   :  { %11577 = vadd.xlane.f32.xlu0 %v11576_v41  ;;  %v12092_v41 = vmul.f32 %v20042_v40, %v12010_v14  ;;  %v12096_v14 = vmul.f32 %v20406_v53, %v12018_v28 }
 0xcbc   :  { %12152 = vadd.xlane.f32.xlu1 %v12151_v37  ;;  %v12093_v37 = vmul.f32 %v20042_v40, %v12012_v6 }
 0xcbd   :  { %v12166_v30 = vsel %vm2797_vm11, %v12092_v41, 0.0  ;;  %v12178_v31 = vsel %vm2797_vm11, %v12096_v14, 0.0 }
 0xcbe   :  { %v12169_v4 = vsel %vm2797_vm11, %v12093_v37, 0.0  ;;  %v11749_v37 = vrot.slane %v20399_v10, 1 }
 0xcbf   :  { %11583 = vadd.xlane.f32.xlu0 %v11582_v49  ;;  %v11517_v49 = vmul.f32 %v20013_v3, %v11478_v46  ;;  %v12014_v3 = vsel %vm974_vm6, %v12011_v19, %v12013_v38  ;;  %v12020_v19 = vsel %vm974_vm6, %v12017_v43, %v12019_v15 }
 0xcc0   :  { %11580 = vadd.xlane.f32.xlu1 %v11579_v63  ;;  %v11740_v63 = vsel %vm699_vm5, %v11737_v17, %v11739_v51  ;;  %v12094_v11 = vmul.f32 %v20042_v40, %v12014_v3  ;;  %v11744_v40 = vsel %vm699_vm5, %v11741_v60, %v11743_v16  ;;  %v20391_v17 = vld [vmem:[#allocation12 + $0x1] ss:$0 sm:$0xff]  ;;  %v12097_v39 = vmul.f32 %v20406_v53, %v12020_v19 }
 0xcc1   :  { %v11820_v61 = vmul.f32 %v20031_v50, %v11740_v63 }
 0xcc2   :  { %v12172_v33 = vsel %vm2797_vm11, %v12094_v11, 0.0  ;;  %v12181_v63 = vsel %vm2797_vm11, %v12097_v39, 0.0 }
 0xcc3   :  { %11881 = vadd.xlane.f32.xlu0 %v11880_v26  ;;  %v11597_v26 = vsel %vm2797_vm11, %v11517_v49, 0.0 }
 0xcc4   :  { %11884 = vadd.xlane.f32.xlu1 %v11883_v1 }
 0xcc7   :  { %12155 = vadd.xlane.f32.xlu0 %v12154_v58  ;;  %v11898_v58 = vsel %vm2797_vm11, %v11820_v61, 0.0 }
 0xcc8   :  { %12158 = vadd.xlane.f32.xlu1 %v12157_v55  ;;  %v11901_v55 = vsel %vm2797_vm11, %v11821_v23, 0.0 }
 0xccb   :  { %11589 = vadd.xlane.f32.xlu0 %v11588_v62  ;;  %v20377_v62 = vld [vmem:[#allocation12] ss:$0 sm:$0xff] }
 0xccc   :  { %11586 = vadd.xlane.f32.xlu1 %v11585_v8  ;;  %v11520_v32 = vmul.f32 %v20377_v62, %v20369_v44  ;;  %v12175_v8 = vsel %vm2797_vm11, %v12095_v20, 0.0  ;;  %v11519_v22 = vmul.f32 %v20377_v62, %v11480_v47  ;;  %v11521_v49 = vmul.f32 %v20377_v62, %v11482_v34 }
 0xccd   :  { %v12022_v44 = vsel %vm974_vm6, %v12019_v15, %v12021_v12 }
 0xcce   :  { %v11606_v35 = vsel %vm2797_vm11, %v11520_v32, 0.0  ;;  %v11603_v56 = vsel %vm2797_vm11, %v11519_v22, 0.0  ;;  %v11609_v21 = vsel %vm2797_vm11, %v11521_v49, 0.0 }
 0xccf   :  { %11887 = vadd.xlane.f32.xlu0 %v11886_v0  ;;  %v11746_v0 = vsel %vm699_vm5, %v11743_v16, %v11745_v27  ;;  %v20440_v16 = vld [vmem:[#allocation2 + $0x200] sm:$0xff] }
 0xcd0   :  { %11890 = vadd.xlane.f32.xlu1 %v11889_v13 }
 0xcd3   :  { %12161 = vadd.xlane.f32.xlu0 %v12160_v57  ;;  %v11822_v57 = vmul.f32 %v20391_v17, %v11744_v40  ;;  %v11753_v40 = vrot.slane %v20440_v16, 1 }
 0xcd4   :  { %12164 = vadd.xlane.f32.xlu1 %v12163_v42  ;;  %v11823_v42 = vmul.f32 %v20391_v17, %v11746_v0 }
 0xcd6   :  { %v11907_v46 = vsel %vm2797_vm11, %v11823_v42, 0.0 }
 0xcd7   :  { %11595 = vadd.xlane.f32.xlu0 %v11594_v7 }
 0xcd8   :  { %11592 = vadd.xlane.f32.xlu1 %v11591_v25  ;;  %v11904_v25 = vsel %vm2797_vm11, %v11822_v57, 0.0 }
 0xcdb   :  { %11893 = vadd.xlane.f32.xlu0 %v11892_v36  ;;  %v11747_v36 = vrot.slane %v11482_v34, 1 }
 0xcdc   :  { %11896 = vadd.xlane.f32.xlu1 %v11895_v29 }
 0xcdd   :  { %v11748_v59 = vsel %vm699_vm5, %v11745_v27, %v11747_v36  ;;  %v12098_v27 = vmul.f32 %v20406_v53, %v12022_v44 }
 0xcdf   :  { %12167 = vadd.xlane.f32.xlu0 %v12166_v30 }
 0xce0   :  { %12170 = vadd.xlane.f32.xlu1 %v12169_v4  ;;  %v11522_v4 = vmul.f32 %v20377_v62, %v20399_v10 }
 0xce2   :  { %v11527_v2 = vpop.xlane.xlu0 %11526  ;;  %v11612_v3 = vsel %vm2797_vm11, %v11522_v4, 0.0 }
 0xce3   :  { %11601 = vadd.xlane.f32.xlu0 %v11600_v48  ;;  %v11530_v1 = vpop.xlane.xlu1 %11529 }
 0xce4   :  { %11598 = vadd.xlane.f32.xlu1 %v11597_v26  ;;  %v11750_v26 = vsel %vm699_vm5, %v11747_v36, %v11749_v37 }
 0xce5   :  { %v11825_v47 = vmul.f32 %v20391_v17, %v11750_v26 }
 0xce7   :  { %11899 = vadd.xlane.f32.xlu0 %v11898_v58  ;;  %v11533_v50 = vpop.xlane.xlu0 %11532 }
 0xce8   :  { %11902 = vadd.xlane.f32.xlu1 %v11901_v55  ;;  %v11831_v52 = vpop.xlane.xlu1 %11830  ;;  %v11484_v55 = vld [vmem:[#allocation2 + $0x1f0] sm:$0xff] }
 0xce9   :  { %v11925_v24 = vadd.f32 %v11831_v52, %v11527_v2  ;;  %v12023_v2 = vrot.slane %v20399_v10, 2  ;;  %v12025_v19 = vrot.slane %v11484_v55, 2 }
 0xceb   :  { %12173 = vadd.xlane.f32.xlu0 %v12172_v33  ;;  %v12024_v11 = vsel %vm974_vm6, %v12021_v12, %v12023_v2  ;;  %v11913_v33 = vsel %vm2797_vm11, %v11825_v47, 0.0  ;;  %v12026_v49 = vsel %vm974_vm6, %v12023_v2, %v12025_v19 }
 0xcec   :  { %12176 = vadd.xlane.f32.xlu1 %v12175_v8  ;;  %v20384_v54 = vpop.xlane.xlu0 %11535  ;;  %v12105_v13 = vpop.xlane.xlu1 %12104  ;;  %v12099_v32 = vmul.f32 %v20406_v53, %v12024_v11  ;;  %v11751_v8 = vrot.slane %v11484_v55, 1 }
 0xced   :  { %v12199_v5 = vadd.f32 %v12105_v13, %v11925_v24  ;;  %v12184_v13 = vsel %vm2797_vm11, %v12098_v27, 0.0 }
 0xcee   :  { %v12187_v57 = vsel %vm2797_vm11, %v12099_v32, 0.0  ;;  %v11752_v42 = vsel %vm699_vm5, %v11749_v37, %v11751_v8  ;;  %v11754_v34 = vsel %vm699_vm5, %v11751_v8, %v11753_v40 }
 0xcef   :  { %11607 = vadd.xlane.f32.xlu0 %v11606_v35  ;;  %v12238_v9 = vadd.f32 %v20388_v18, %v12199_v5  ;;  %v11524_v5 = vmul.f32 %v20377_v62, %v20440_v16  ;;  %v11826_v14 = vmul.f32 %v20391_v17, %v11752_v42 }
 0xcf0   :  { %11604 = vadd.xlane.f32.xlu1 %v11603_v56  ;;  %v11834_v45 = vpop.xlane.xlu0 %11833  ;;  %v11837_v7 = vpop.xlane.xlu1 %11836  ;;  %v11523_v56 = vmul.f32 %v20377_v62, %v11484_v55 }
 0xcf1   :  { %12270 = vst.msk [vmem:[%s20700_s15] sm:$0xff] %vm333_vm3, %v12238_v9  ;;  %v11926_v6 = vadd.f32 %v11834_v45, %v11530_v1  ;;  %v11927_v41 = vadd.f32 %v11837_v7, %v11533_v50  ;;  %v11824_v1 = vmul.f32 %v20391_v17, %v11748_v59  ;;  %v12027_v45 = vrot.slane %v20440_v16, 2 }
 0xcf2   :  { %v11618_v62 = vsel %vm2797_vm11, %v11524_v5, 0.0  ;;  %v11916_v37 = vsel %vm2797_vm11, %v11826_v14, 0.0 }
 0xcf3   :  { %11905 = vadd.xlane.f32.xlu0 %v11904_v25  ;;  %v11910_v50 = vsel %vm2797_vm11, %v11824_v1, 0.0 }
 0xcf4   :  { %11908 = vadd.xlane.f32.xlu1 %v11907_v46  ;;  %v12108_v29 = vpop.xlane.xlu0 %12107  ;;  %v12111_v51 = vpop.xlane.xlu1 %12110  ;;  %v11827_v46 = vmul.f32 %v20391_v17, %v11754_v34 }
 0xcf5   :  { %v12200_v60 = vadd.f32 %v12108_v29, %v11926_v6  ;;  %v12201_v30 = vadd.f32 %v12111_v51, %v11927_v41  ;;  %v11615_v6 = vsel %vm2797_vm11, %v11523_v56, 0.0  ;;  %v12028_v41 = vsel %vm974_vm6, %v12025_v19, %v12027_v45 }
 0xcf6   :  { %v12101_v4 = vmul.f32 %v20406_v53, %v12028_v41 }
 0xcf7   :  { %v12239_v38 = vadd.f32 %v20388_v18, %v12200_v60  ;;  %12179 = vadd.xlane.f32.xlu0 %v12178_v31  ;;  %v12240_v48 = vadd.f32 %v20388_v18, %v12201_v30  ;;  %v11960_v60 = vld [vmem:[#allocation2 + $0x210] sm:$0x3]  ;;  %v11919_v31 = vsel %vm2797_vm11, %v11827_v46, 0.0 }
 0xcf8   :  { %12182 = vadd.xlane.f32.xlu1 %v12181_v63  ;;  %v20420_v61 = vpop.xlane.xlu0 %11541 }
 0xcf9   :  { %12271 = vst.msk [vmem:[%s20700_s15 + $0x8] sm:$0xff] %vm333_vm3, %v12239_v38  ;;  %v11539_v23 = vpop.xlane.xlu1 %11538  ;;  %12272 = vst.msk [vmem:[%s20700_s15 + $0x10] sm:$0xff] %vm333_vm3, %v12240_v48  ;;  %v12029_v48 = vrot.slane %v11960_v60, 2 }
 0xcfb   :  { %11613 = vadd.xlane.f32.xlu0 %v11612_v3  ;;  %v12193_v3 = vsel %vm2797_vm11, %v12101_v4, 0.0  ;;  %v12030_v10 = vsel %vm974_vm6, %v12027_v45, %v12029_v48 }
 0xcfc   :  { %11610 = vadd.xlane.f32.xlu1 %v11609_v21  ;;  %v11840_v58 = vpop.xlane.xlu0 %11839  ;;  %v12102_v44 = vmul.f32 %v20406_v53, %v12030_v10 }
 0xcfd   :  { %v11843_v20 = vpop.xlane.xlu1 %11842  ;;  %v11928_v52 = vadd.f32 %v11840_v58, %v20384_v54  ;;  %v11656_v54 = vld [vmem:[#allocation2 + $0x210] sm:$0x1] }
 0xcfe   :  { %v11929_v22 = vadd.f32 %v11843_v20, %v11539_v23  ;;  %v11755_v25 = vrot.slane %v11656_v54, 1  ;;  %v12196_v55 = vsel %vm2797_vm11, %v12102_v44, 0.0 }
 0xcff   :  { %11911 = vadd.xlane.f32.xlu0 %v11910_v50 }
 0xd00   :  { %11914 = vadd.xlane.f32.xlu1 %v11913_v33  ;;  %v12114_v43 = vpop.xlane.xlu0 %12113  ;;  %v11756_v39 = vsel %vm699_vm5, %v11753_v40, %v11755_v25 }
 0xd01   :  { %v12202_v24 = vadd.f32 %v12114_v43, %v11928_v52  ;;  %v12117_v15 = vpop.xlane.xlu1 %12116  ;;  %v11828_v51 = vmul.f32 %v20391_v17, %v11756_v39 }
 0xd02   :  { %v12203_v0 = vadd.f32 %v12117_v15, %v11929_v22 }
 0xd03   :  { %v12241_v35 = vadd.f32 %v20388_v18, %v12202_v24  ;;  %12185 = vadd.xlane.f32.xlu0 %v12184_v13  ;;  %v11922_v17 = vsel %vm2797_vm11, %v11828_v51, 0.0 }
 0xd04   :  { %v12242_v28 = vadd.f32 %v20388_v18, %v12203_v0  ;;  %12188 = vadd.xlane.f32.xlu1 %v12187_v57  ;;  %v11548_v9 = vpop.xlane.xlu0 %11547 }
 0xd05   :  { %12273 = vst.msk [vmem:[%s20700_s15 + $0x18] sm:$0xff] %vm333_vm3, %v12241_v35  ;;  %v11545_v7 = vpop.xlane.xlu1 %11544 }
 0xd06   :  { %12274 = vst.msk [vmem:[%s20700_s15 + $0x20] sm:$0xff] %vm333_vm3, %v12242_v28 }
 0xd07   :  { %11619 = vadd.xlane.f32.xlu0 %v11618_v62 }
 0xd08   :  { %11616 = vadd.xlane.f32.xlu1 %v11615_v6  ;;  %v11846_v36 = vpop.xlane.xlu0 %11845 }
 0xd09   :  { %v11849_v29 = vpop.xlane.xlu1 %11848  ;;  %v11930_v30 = vadd.f32 %v11846_v36, %v20420_v61  ;;  %v12100_v61 = vmul.f32 %v20406_v53, %v12026_v49 }
 0xd0a   :  { %v11931_v38 = vadd.f32 %v11849_v29, %v11545_v7 }
 0xd0b   :  { %11917 = vadd.xlane.f32.xlu0 %v11916_v37  ;;  %v12190_v47 = vsel %vm2797_vm11, %v12100_v61, 0.0 }
 0xd0c   :  { %11920 = vadd.xlane.f32.xlu1 %v11919_v31  ;;  %v12120_v63 = vpop.xlane.xlu0 %12119 }
 0xd0d   :  { %v12204_v12 = vadd.f32 %v12120_v63, %v11930_v30  ;;  %v12123_v59 = vpop.xlane.xlu1 %12122 }
 0xd0e   :  { %v12205_v26 = vadd.f32 %v12123_v59, %v11931_v38 }
 0xd0f   :  { %v12243_v23 = vadd.f32 %v20388_v18, %v12204_v12  ;;  %11923 = vadd.xlane.f32.xlu0 %v11922_v17 }
 0xd10   :  { %v12244_v2 = vadd.f32 %v20388_v18, %v12205_v26  ;;  %12194 = vadd.xlane.f32.xlu1 %v12193_v3  ;;  %v11554_v1 = vpop.xlane.xlu0 %11553 }
 0xd11   :  { %12275 = vst.msk [vmem:[%s20700_s15 + $0x28] sm:$0xff] %vm333_vm3, %v12243_v23  ;;  %v11551_v21 = vpop.xlane.xlu1 %11550 }
 0xd12   :  { %12276 = vst.msk [vmem:[%s20700_s15 + $0x30] sm:$0xff] %vm333_vm3, %v12244_v2 }
 0xd13   :  { %12191 = vadd.xlane.f32.xlu0 %v12190_v47 }
 0xd14   :  { %v11852_v58 = vpop.xlane.xlu0 %11851 }
 0xd15   :  { %v11855_v11 = vpop.xlane.xlu1 %11854  ;;  %v11932_v20 = vadd.f32 %v11852_v58, %v11548_v9 }
 0xd16   :  { %v11933_v16 = vadd.f32 %v11855_v11, %v11551_v21 }
 0xd17   :  { %12197 = vadd.xlane.f32.xlu0 %v12196_v55 }
 0xd18   :  { %v12126_v50 = vpop.xlane.xlu0 %12125 }
 0xd19   :  { %v12206_v27 = vadd.f32 %v12126_v50, %v11932_v20  ;;  %v12129_v52 = vpop.xlane.xlu1 %12128 }
 0xd1a   :  { %v12207_v33 = vadd.f32 %v12129_v52, %v11933_v16 }
 0xd1b   :  { %v12245_v32 = vadd.f32 %v20388_v18, %v12206_v27 }
 0xd1c   :  { %v12246_v8 = vadd.f32 %v20388_v18, %v12207_v33  ;;  %v11560_v22 = vpop.xlane.xlu0 %11559 }
 0xd1d   :  { %12277 = vst.msk [vmem:[%s20700_s15 + $0x38] sm:$0xff] %vm333_vm3, %v12245_v32  ;;  %v11557_v53 = vpop.xlane.xlu1 %11556 }
 0xd1e   :  { %12278 = vst.msk [vmem:[%s20700_s15 + $0x40] sm:$0xff] %vm333_vm3, %v12246_v8 }
 0xd20   :  { %v11858_v43 = vpop.xlane.xlu0 %11857 }
 0xd21   :  { %v11861_v40 = vpop.xlane.xlu1 %11860  ;;  %v11934_v24 = vadd.f32 %v11858_v43, %v11554_v1 }
 0xd22   :  { %v11935_v15 = vadd.f32 %v11861_v40, %v11557_v53 }
 0xd24   :  { %v12132_v0 = vpop.xlane.xlu0 %12131 }
 0xd25   :  { %v12208_v13 = vadd.f32 %v12132_v0, %v11934_v24  ;;  %v12135_v5 = vpop.xlane.xlu1 %12134 }
 0xd26   :  { %v12209_v54 = vadd.f32 %v12135_v5, %v11935_v15 }
 0xd27   :  { %v12247_v35 = vadd.f32 %v20388_v18, %v12208_v13 }
 0xd28   :  { %v12248_v57 = vadd.f32 %v20388_v18, %v12209_v54  ;;  %v11566_v56 = vpop.xlane.xlu0 %11565 }
 0xd29   :  { %12279 = vst.msk [vmem:[%s20700_s15 + $0x48] sm:$0xff] %vm333_vm3, %v12247_v35  ;;  %v11563_v42 = vpop.xlane.xlu1 %11562 }
 0xd2a   :  { %12280 = vst.msk [vmem:[%s20700_s15 + $0x50] sm:$0xff] %vm333_vm3, %v12248_v57 }
 0xd2c   :  { %v11864_v28 = vpop.xlane.xlu0 %11863 }
 0xd2d   :  { %v11867_v9 = vpop.xlane.xlu1 %11866  ;;  %v11936_v45 = vadd.f32 %v11864_v28, %v11560_v22 }
 0xd2e   :  { %v11937_v19 = vadd.f32 %v11867_v9, %v11563_v42 }
 0xd30   :  { %v12138_v34 = vpop.xlane.xlu0 %12137 }
 0xd31   :  { %v12210_v7 = vadd.f32 %v12138_v34, %v11936_v45  ;;  %v12141_v25 = vpop.xlane.xlu1 %12140 }
 0xd32   :  { %v12211_v62 = vadd.f32 %v12141_v25, %v11937_v19 }
 0xd33   :  { %v12249_v14 = vadd.f32 %v20388_v18, %v12210_v7 }
 0xd34   :  { %v12250_v6 = vadd.f32 %v20388_v18, %v12211_v62  ;;  %v11572_v46 = vpop.xlane.xlu0 %11571 }
 0xd35   :  { %12281 = vst.msk [vmem:[%s20700_s15 + $0x58] sm:$0xff] %vm333_vm3, %v12249_v14  ;;  %v11569_v39 = vpop.xlane.xlu1 %11568 }
 0xd36   :  { %12282 = vst.msk [vmem:[%s20700_s15 + $0x60] sm:$0xff] %vm333_vm3, %v12250_v6 }
 0xd38   :  { %v11870_v36 = vpop.xlane.xlu0 %11869 }
 0xd39   :  { %v11575_v41 = vpop.xlane.xlu1 %11574  ;;  %v11938_v51 = vadd.f32 %v11870_v36, %v11566_v56 }
 0xd3c   :  { %v11876_v29 = vpop.xlane.xlu0 %11875 }
 0xd3d   :  { %v11873_v37 = vpop.xlane.xlu1 %11872  ;;  %v11940_v38 = vadd.f32 %v11876_v29, %v11572_v46 }
 0xd3e   :  { %v11939_v60 = vadd.f32 %v11873_v37, %v11569_v39 }
 0xd40   :  { %v12144_v30 = vpop.xlane.xlu0 %12143 }
 0xd41   :  { %v12212_v31 = vadd.f32 %v12144_v30, %v11938_v51  ;;  %v12147_v4 = vpop.xlane.xlu1 %12146 }
 0xd42   :  { %v12213_v49 = vadd.f32 %v12147_v4, %v11939_v60 }
 0xd43   :  { %v12251_v63 = vadd.f32 %v20388_v18, %v12212_v31 }
 0xd44   :  { %v12252_v12 = vadd.f32 %v20388_v18, %v12213_v49  ;;  %v12150_v59 = vpop.xlane.xlu0 %12149 }
 0xd45   :  { %12283 = vst.msk [vmem:[%s20700_s15 + $0x68] sm:$0xff] %vm333_vm3, %v12251_v63  ;;  %v12214_v48 = vadd.f32 %v12150_v59, %v11940_v38  ;;  %v11879_v26 = vpop.xlane.xlu1 %11878 }
 0xd46   :  { %12284 = vst.msk [vmem:[%s20700_s15 + $0x70] sm:$0xff] %vm333_vm3, %v12252_v12  ;;  %v11941_v61 = vadd.f32 %v11879_v26, %v11575_v41 }
 0xd47   :  { %v12253_v17 = vadd.f32 %v20388_v18, %v12214_v48 }
 0xd48   :  { %v11578_v23 = vpop.xlane.xlu0 %11577 }
 0xd49   :  { %12285 = vst.msk [vmem:[%s20700_s15 + $0x78] sm:$0xff] %vm333_vm3, %v12253_v17  ;;  %v12153_v3 = vpop.xlane.xlu1 %12152 }
 0xd4a   :  { %v12215_v10 = vadd.f32 %v12153_v3, %v11941_v61 }
 0xd4c   :  { %v12254_v2 = vadd.f32 %v20388_v18, %v12215_v10  ;;  %v11584_v1 = vpop.xlane.xlu0 %11583 }
 0xd4d   :  { %v11581_v21 = vpop.xlane.xlu1 %11580 }
 0xd4e   :  { %12286 = vst.msk [vmem:[%s20700_s15 + $0x80] sm:$0xff] %vm333_vm3, %v12254_v2 }
 0xd50   :  { %v11882_v47 = vpop.xlane.xlu0 %11881 }
 0xd51   :  { %v11885_v44 = vpop.xlane.xlu1 %11884  ;;  %v11942_v58 = vadd.f32 %v11882_v47, %v11578_v23 }
 0xd52   :  { %v11943_v11 = vadd.f32 %v11885_v44, %v11581_v21 }
 0xd54   :  { %v12156_v55 = vpop.xlane.xlu0 %12155 }
 0xd55   :  { %v12216_v20 = vadd.f32 %v12156_v55, %v11942_v58  ;;  %v12159_v16 = vpop.xlane.xlu1 %12158 }
 0xd56   :  { %v12217_v50 = vadd.f32 %v12159_v16, %v11943_v11 }
 0xd57   :  { %v12255_v27 = vadd.f32 %v20388_v18, %v12216_v20 }
 0xd58   :  { %v12256_v52 = vadd.f32 %v20388_v18, %v12217_v50  ;;  %v11590_v33 = vpop.xlane.xlu0 %11589 }
 0xd59   :  { %12287 = vst.msk [vmem:[%s20700_s15 + $0x88] sm:$0xff] %vm333_vm3, %v12255_v27  ;;  %v11587_v32 = vpop.xlane.xlu1 %11586 }
 0xd5a   :  { %12288 = vst.msk [vmem:[%s20700_s15 + $0x90] sm:$0xff] %vm333_vm3, %v12256_v52 }
 0xd5c   :  { %v11888_v8 = vpop.xlane.xlu0 %11887 }
 0xd5d   :  { %v11891_v22 = vpop.xlane.xlu1 %11890  ;;  %v11944_v53 = vadd.f32 %v11888_v8, %v11584_v1 }
 0xd5e   :  { %v11945_v43 = vadd.f32 %v11891_v22, %v11587_v32 }
 0xd60   :  { %v12162_v40 = vpop.xlane.xlu0 %12161 }
 0xd61   :  { %v12218_v24 = vadd.f32 %v12162_v40, %v11944_v53  ;;  %v12165_v15 = vpop.xlane.xlu1 %12164 }
 0xd62   :  { %v12219_v0 = vadd.f32 %v12165_v15, %v11945_v43 }
 0xd63   :  { %v12257_v13 = vadd.f32 %v20388_v18, %v12218_v24 }
 0xd64   :  { %v12258_v5 = vadd.f32 %v20388_v18, %v12219_v0  ;;  %v11596_v54 = vpop.xlane.xlu0 %11595 }
 0xd65   :  { %12289 = vst.msk [vmem:[%s20700_s15 + $0x98] sm:$0xff] %vm333_vm3, %v12257_v13  ;;  %v11593_v35 = vpop.xlane.xlu1 %11592 }
 0xd66   :  { %12290 = vst.msk [vmem:[%s20700_s15 + $0xa0] sm:$0xff] %vm333_vm3, %v12258_v5 }
 0xd68   :  { %v11894_v57 = vpop.xlane.xlu0 %11893 }
 0xd69   :  { %v11897_v56 = vpop.xlane.xlu1 %11896  ;;  %v11946_v42 = vadd.f32 %v11894_v57, %v11590_v33 }
 0xd6a   :  { %v11947_v28 = vadd.f32 %v11897_v56, %v11593_v35 }
 0xd6c   :  { %v12168_v9 = vpop.xlane.xlu0 %12167 }
 0xd6d   :  { %v12220_v45 = vadd.f32 %v12168_v9, %v11946_v42  ;;  %v12171_v19 = vpop.xlane.xlu1 %12170 }
 0xd6e   :  { %v12221_v34 = vadd.f32 %v12171_v19, %v11947_v28 }
 0xd6f   :  { %v12259_v7 = vadd.f32 %v20388_v18, %v12220_v45 }
 0xd70   :  { %v12260_v25 = vadd.f32 %v20388_v18, %v12221_v34  ;;  %v11602_v62 = vpop.xlane.xlu0 %11601 }
 0xd71   :  { %12291 = vst.msk [vmem:[%s20700_s15 + $0xa8] sm:$0xff] %vm333_vm3, %v12259_v7  ;;  %v11599_v14 = vpop.xlane.xlu1 %11598 }
 0xd72   :  { %12292 = vst.msk [vmem:[%s20700_s15 + $0xb0] sm:$0xff] %vm333_vm3, %v12260_v25 }
 0xd74   :  { %v11900_v6 = vpop.xlane.xlu0 %11899 }
 0xd75   :  { %v11903_v46 = vpop.xlane.xlu1 %11902  ;;  %v11948_v39 = vadd.f32 %v11900_v6, %v11596_v54 }
 0xd76   :  { %v11949_v36 = vadd.f32 %v11903_v46, %v11599_v14 }
 0xd78   :  { %v12174_v41 = vpop.xlane.xlu0 %12173 }
 0xd79   :  { %v12222_v29 = vadd.f32 %v12174_v41, %v11948_v39  ;;  %v12177_v37 = vpop.xlane.xlu1 %12176 }
 0xd7a   :  { %v12223_v51 = vadd.f32 %v12177_v37, %v11949_v36 }
 0xd7b   :  { %v12261_v60 = vadd.f32 %v20388_v18, %v12222_v29 }
 0xd7c   :  { %v12262_v30 = vadd.f32 %v20388_v18, %v12223_v51  ;;  %v11608_v31 = vpop.xlane.xlu0 %11607 }
 0xd7d   :  { %12293 = vst.msk [vmem:[%s20700_s15 + $0xb8] sm:$0xff] %vm333_vm3, %v12261_v60  ;;  %v11605_v4 = vpop.xlane.xlu1 %11604 }
 0xd7e   :  { %12294 = vst.msk [vmem:[%s20700_s15 + $0xc0] sm:$0xff] %vm333_vm3, %v12262_v30 }
 0xd80   :  { %v11906_v49 = vpop.xlane.xlu0 %11905 }
 0xd81   :  { %v11909_v38 = vpop.xlane.xlu1 %11908  ;;  %v11950_v63 = vadd.f32 %v11906_v49, %v11602_v62 }
 0xd82   :  { %v11951_v12 = vadd.f32 %v11909_v38, %v11605_v4 }
 0xd84   :  { %v12180_v59 = vpop.xlane.xlu0 %12179 }
 0xd85   :  { %v12224_v48 = vadd.f32 %v12180_v59, %v11950_v63  ;;  %v12183_v26 = vpop.xlane.xlu1 %12182 }
 0xd86   :  { %v12225_v17 = vadd.f32 %v12183_v26, %v11951_v12 }
 0xd87   :  { %v12263_v61 = vadd.f32 %v20388_v18, %v12224_v48 }
 0xd88   :  { %v12264_v23 = vadd.f32 %v20388_v18, %v12225_v17  ;;  %v11614_v3 = vpop.xlane.xlu0 %11613 }
 0xd89   :  { %12295 = vst.msk [vmem:[%s20700_s15 + $0xc8] sm:$0xff] %vm333_vm3, %v12263_v61  ;;  %v11611_v10 = vpop.xlane.xlu1 %11610 }
 0xd8a   :  { %12296 = vst.msk [vmem:[%s20700_s15 + $0xd0] sm:$0xff] %vm333_vm3, %v12264_v23 }
 0xd8c   :  { %v11912_v2 = vpop.xlane.xlu0 %11911 }
 0xd8d   :  { %v11915_v1 = vpop.xlane.xlu1 %11914  ;;  %v11952_v21 = vadd.f32 %v11912_v2, %v11608_v31 }
 0xd8e   :  { %v11953_v47 = vadd.f32 %v11915_v1, %v11611_v10 }
 0xd90   :  { %v12186_v44 = vpop.xlane.xlu0 %12185 }
 0xd91   :  { %v12226_v58 = vadd.f32 %v12186_v44, %v11952_v21  ;;  %v12189_v11 = vpop.xlane.xlu1 %12188 }
 0xd92   :  { %v12227_v55 = vadd.f32 %v12189_v11, %v11953_v47 }
 0xd93   :  { %v12265_v20 = vadd.f32 %v20388_v18, %v12226_v58 }
 0xd94   :  { %v12266_v16 = vadd.f32 %v20388_v18, %v12227_v55  ;;  %v11620_v50 = vpop.xlane.xlu0 %11619 }
 0xd95   :  { %12297 = vst.msk [vmem:[%s20700_s15 + $0xd8] sm:$0xff] %vm333_vm3, %v12265_v20  ;;  %v11617_v27 = vpop.xlane.xlu1 %11616 }
 0xd96   :  { %12298 = vst.msk [vmem:[%s20700_s15 + $0xe0] sm:$0xff] %vm333_vm3, %v12266_v16 }
 0xd98   :  { %v11918_v52 = vpop.xlane.xlu0 %11917 }
 0xd99   :  { %v11921_v33 = vpop.xlane.xlu1 %11920  ;;  %v11954_v43 = vadd.f32 %v11918_v52, %v11614_v3 }
 0xd9a   :  { %v11955_v32 = vadd.f32 %v11921_v33, %v11617_v27 }
 0xd9c   :  { %v11924_v8 = vpop.xlane.xlu0 %11923 }
 0xd9d   :  { %v12195_v22 = vpop.xlane.xlu1 %12194  ;;  %v11956_v0 = vadd.f32 %v11924_v8, %v11620_v50 }
 0xd9e   :  { %v12229_v53 = vadd.f32 %v12195_v22, %v11955_v32 }
 0xda0   :  { %v12268_v40 = vadd.f32 %v20388_v18, %v12229_v53  ;;  %v12192_v24 = vpop.xlane.xlu0 %12191 }
 0xda1   :  { %v12228_v15 = vadd.f32 %v12192_v24, %v11954_v43 }
 0xda2   :  { %12300 = vst.msk [vmem:[%s20700_s15 + $0xf0] sm:$0xff] %vm333_vm3, %v12268_v40 }
 0xda3   :  { %v12267_v13 = vadd.f32 %v20388_v18, %v12228_v15 }
 0xda4   :  { %v12198_v5 = vpop.xlane.xlu0 %12197 }
 0xda5   :  { %12299 = vst.msk [vmem:[%s20700_s15 + $0xe8] sm:$0xff] %vm333_vm3, %v12267_v13  ;;  %v12230_v54 = vadd.f32 %v12198_v5, %v11956_v0 }
 0xda7   :  { %v12269_v35 = vadd.f32 %v20388_v18, %v12230_v54 }
 0xda9   :  { %12301 = vst.msk [vmem:[%s20700_s15 + $0xf8] sm:$0xff] %vm333_vm3, %v12269_v35 }
 0xdaa   :  { %12306 = vsyncpa [#allocation6], 1 }
 0xdab   :  { %12307 = vsyncpa [#allocation8], 1 }
 0xdac   :  { %12308 = vsyncpa [#allocation11], 1 }
 0xdad   :  { %12309 = vsyncpa [#allocation14], 1 }

</bundles_post_ra>
